<compile_context>
chip_gen: v6e
topology: v6e:2x2x1
jax: 0.10.0
libtpu: 0.0.40
codegen_flags: <defaults>
</compile_context>

<pallas_src>
import numpy as np

import jax
import jax.numpy as jnp
from jax.experimental import pallas as pl
from jax.experimental.pallas import tpu as pltpu

F32 = jnp.float32
BF16 = jnp.bfloat16

# ------------------------- model config (scaled-down, deterministic) -------------------------
B = 2              # batch
H = W = 7          # spatial size fed to gMLPVision (image_size=7, patch_size=7 -> 1 patch)
HW = H * W
P = B * HW         # position-major feature rows: row = p*B + b
C_IN = 3           # RGB input
C_IN_PAD = 8       # zero-padded contraction dim for the stem matmul
C_FEAT = 32        # stand-in backbone feature channels (real: 112/160/272/448 stages)
RATIO = 16         # ChannelAttention ratio (as in the module)
C_HEAD = 128       # conv_head output channels (real: 1792); 128 keeps the token flatten lane-aligned
GMLP_DIM = 64      # gMLP dim (real: 1344)
GMLP_FF = 4 * GMLP_DIM     # ff_mult = 4 (real: 5376)
GMLP_HALF = GMLP_FF // 2
GMLP_DEPTH = 4     # depth = 4 (as in the module)
LANE = 128         # lane-dense output width for the final logit

_VMEM = pl.BlockSpec(memory_space=pltpu.MemorySpace.VMEM)
_ANY = pl.BlockSpec(memory_space=pl.ANY)


# ------------------------- in-kernel helpers -------------------------
def _swish(x):
    return x * jax.nn.sigmoid(x)


# TODO(synk): PyTorch nn.GELU defaults to the exact erf GELU; the Mosaic-safe tanh approximation is used here.
def _gelu(x):
    return jax.nn.gelu(x, approximate=True)


def _layernorm(x, g, b, eps=1e-5):
    m = jnp.mean(x, axis=-1, keepdims=True)
    v = jnp.mean((x - m) ** 2, axis=-1, keepdims=True)
    return (x - m) * jax.lax.rsqrt(v + eps) * g + b


# ------------------------- the fused kernel -------------------------
def _egmlp_kernel(
        # backbone inputs (all VMEM)
        x_ref, stem_w_ref, stem_b_ref, att_w_ref, att_b_ref,
        ca_w1_ref, ca_w2_ref, pool_avg_ref, ca_expand_ref,
        sa_avg_ref, sa_max_ref, head_w_ref, head_b_ref,
        # gMLP inputs (big bf16 weights in HBM via pl.ANY, small affines in VMEM)
        patch_w_hbm, patch_b_ref, lng_ref, lnb_ref, win_hbm, bin_ref,
        sgug_ref, sgub_ref, wout_hbm, bout_ref,
        fing_ref, finb_ref, finw_ref, finbias_ref,
        # output
        o_ref,
        # scratch
        feat_s, tok_s, pw_s, win_s, wout_s, dma_sem):

    # ---- start gMLP weight DMAs now so they overlap the backbone compute ----
    cp_pw = pltpu.make_async_copy(patch_w_hbm, pw_s, dma_sem.at[0])
    cp_wi = pltpu.make_async_copy(win_hbm, win_s, dma_sem.at[1])
    cp_wo = pltpu.make_async_copy(wout_hbm, wout_s, dma_sem.at[2])
    cp_pw.start()
    cp_wi.start()
    cp_wo.start()

    # ---------------- backbone attention path (position-major rows: row = p*B + b) ----------------
    x = x_ref[...]                                                               # [P, 8]
    fb = _swish(jnp.dot(x, stem_w_ref[...], preferred_element_type=F32)
                + stem_b_ref[...])                                               # [P, C_FEAT]

    # attconv gate: x = x * sigmoid(Conv2d(C, 1, 1)(x))
    gate = jax.nn.sigmoid(jnp.sum(fb * att_w_ref[...], axis=-1, keepdims=True)
                          + att_b_ref[...])                                      # [P, 1]
    fb = fb * gate

    # ChannelAttention: x = ca(x) * x
    ca_expand = ca_expand_ref[...]                                               # [P, 2B] one-hot (avg|max cols)
    avg_rows = jnp.dot(pool_avg_ref[...], fb, preferred_element_type=F32)        # [B, C]  AdaptiveAvgPool2d(1)
    max_rows = []
    for b in range(B):                                                           # AdaptiveMaxPool2d(1), masked
        ind = ca_expand[:, b:b + 1]                                              # 1.0 on example-b rows
        max_rows.append(jnp.max(fb + (ind - 1.0) * 1e30, axis=0, keepdims=True))
    pooled = jnp.concatenate([avg_rows] + max_rows, axis=0)                      # [2B, C] = [avg_b..., max_b...]
    hmid = jnp.maximum(jnp.dot(pooled, ca_w1_ref[...], preferred_element_type=F32), 0.0)
    mlp_out = jnp.dot(hmid, ca_w2_ref[...], preferred_element_type=F32)          # [2B, C]  sharedMLP (one pass)
    # expand matmul = per-pixel (avg_out + max_out) of its own example, lane-dense
    ca_gate = jax.nn.sigmoid(jnp.dot(ca_expand, mlp_out, preferred_element_type=F32))   # [P, C]
    fb = fb * ca_gate

    # SpatialAttention: x = sa(x) * x   (7x7 conv as block-diagonal tap matmuls, lane-dense rhs)
    c_avg = jnp.broadcast_to(jnp.mean(fb, axis=-1, keepdims=True), (P, C_FEAT))  # torch.mean(x, dim=1)
    c_max = jnp.broadcast_to(jnp.max(fb, axis=-1, keepdims=True), (P, C_FEAT))   # torch.max(x, dim=1)
    sa_logit = (jnp.dot(sa_avg_ref[...], c_avg, preferred_element_type=F32)
                + jnp.dot(sa_max_ref[...], c_max, preferred_element_type=F32))   # [P, C] (cols identical)
    fb = fb * jax.nn.sigmoid(sa_logit)

    # conv_head (1x1) + folded bn1 + swish
    feat_s[...] = _swish(jnp.dot(fb, head_w_ref[...], preferred_element_type=F32)
                         + head_b_ref[...])                                      # [P, C_HEAD]

    # token flatten: tok[b, p*C_HEAD + c] = feat[p*B + b, c]   (49 lane-aligned VMEM copies)
    for p in range(HW):
        tok_s[:, pl.ds(p * C_HEAD, C_HEAD)] = feat_s[pl.ds(p * B, B), :]

    # ---------------- gMLPVision: patch embed + 4 blocks + head ----------------
    cp_pw.wait()
    cp_wi.wait()
    cp_wo.wait()

    # Rearrange('b c (h p1) (w p2) -> b (h w) (p1 p2 c)') + Linear   (single patch)
    t = jnp.dot(tok_s[...].astype(BF16), pw_s[...],
                preferred_element_type=F32) + patch_b_ref[...]                   # [B, DIM]

    for d in range(GMLP_DEPTH):                                                  # static unroll over depth
        # Residual(PreNorm(gMLPBlock))
        y = _layernorm(t, lng_ref[d], lnb_ref[d])
        h = _gelu(jnp.dot(y.astype(BF16), win_s[d],
                          preferred_element_type=F32) + bin_ref[d])              # proj_in + GELU   [B, FF]
        res = h[:, :GMLP_HALF]
        g = h[:, GMLP_HALF:]
        # SpatialGatingUnit: LayerNorm + Conv1d(seq, seq, 1) with seq_len == 1
        # (the scalar Conv1d affine was folded exactly into sgug/sgub at param-prep time)
        g = _layernorm(g, sgug_ref[d], sgub_ref[d])
        out = jnp.dot((g * res).astype(BF16), wout_s[d],
                      preferred_element_type=F32) + bout_ref[d]                  # proj_out
        t = t + out

    # Final: LayerNorm + mean over patches (num_patches == 1 -> identity) + Linear(dim, 1)
    y = _layernorm(t, fing_ref[...], finb_ref[...])
    logit = jnp.sum(y * finw_ref[...], axis=-1, keepdims=True) + finbias_ref[...]   # [B, 1]
    # lane-dense store (value replicated across 128 lanes; wrapper slices column 0)
    o_ref[...] = jnp.broadcast_to(logit, o_ref.shape).astype(o_ref.dtype)


# ------------------------- forward (single pallas_call) -------------------------
def egmlp_forward(x, kp):
    b, c_in, h, w = x.shape
    hw = h * w
    # NCHW -> position-major channels-last rows [HW*B, C_IN], zero-pad channels to C_IN_PAD
    x_pm = jnp.transpose(x, (2, 3, 0, 1)).reshape(hw * b, c_in).astype(F32)
    x_pm = jnp.pad(x_pm, ((0, 0), (0, C_IN_PAD - c_in)))

    in_specs = ([_VMEM] * 13           # x + backbone params
                + [_ANY]               # patch_w (bf16, HBM -> manual DMA)
                + [_VMEM] * 3          # patch_b, blk_ln_g, blk_ln_b
                + [_ANY]               # blk_w_in (bf16, HBM -> manual DMA)
                + [_VMEM] * 3          # blk_b_in, blk_sgu_g, blk_sgu_b
                + [_ANY]               # blk_w_out (bf16, HBM -> manual DMA)
                + [_VMEM] * 5)         # blk_b_out, fin_g, fin_b, fin_w, fin_bias

    logits_padded = pl.pallas_call(
        _egmlp_kernel,
        out_shape=jax.ShapeDtypeStruct((b, LANE), F32),
        in_specs=in_specs,
        out_specs=_VMEM,
        scratch_shapes=[
            pltpu.VMEM((P, C_HEAD), F32),                       # backbone features
            pltpu.VMEM((b, hw * C_HEAD), F32),                  # flattened tokens
            pltpu.VMEM((hw * C_HEAD, GMLP_DIM), BF16),          # patch_w landing buffer
            pltpu.VMEM((GMLP_DEPTH, GMLP_DIM, GMLP_FF), BF16),  # w_in landing buffer
            pltpu.VMEM((GMLP_DEPTH, GMLP_HALF, GMLP_DIM), BF16),  # w_out landing buffer
            pltpu.SemaphoreType.DMA((3,)),
        ],
    )(x_pm, kp['stem_w'], kp['stem_b'], kp['att_w'], kp['att_b'],
      kp['ca_w1'], kp['ca_w2'], kp['pool_avg'], kp['ca_expand'],
      kp['sa_avg'], kp['sa_max'], kp['head_w'], kp['head_b'],
      kp['patch_w'], kp['patch_b'],
      kp['blk_ln_g'], kp['blk_ln_b'], kp['blk_w_in'], kp['blk_b_in'],
      kp['blk_sgu_g'], kp['blk_sgu_b'], kp['blk_w_out'], kp['blk_b_out'],
      kp['fin_g'], kp['fin_b'], kp['fin_w'], kp['fin_bias'])

    return logits_padded[:, :1]                                                  # [B, 1]


# ------------------------- eager (one-time) parameter preparation -------------------------
def fold_bn(w, bn, eps=1e-3):
    # Fold eval-mode BatchNorm into the preceding bias-free 1x1 conv (EfficientNet BN eps = 1e-3).
    scale = bn['g'] / jnp.sqrt(bn['v'] + eps)
    return w * scale[None, :], (bn['b'] - bn['m'] * scale)[None, :]


def prepare_params(p):
    """Fold/stack/pack raw module-style params into kernel-ready arrays. Run eagerly, once."""
    kp = {}
    stem_w, kp['stem_b'] = fold_bn(p['stem_w'], p['bn0'])
    kp['stem_w'] = jnp.zeros((C_IN_PAD, C_FEAT), F32).at[:C_IN].set(stem_w)      # zero-pad K: 3 -> 8
    kp['att_w'] = p['attconv_w'].reshape(1, C_FEAT)                              # Conv2d(C, 1, 1) weight as a row
    kp['att_b'] = p['attconv_b'].reshape(1, 1)
    kp['ca_w1'] = p['ca_w1']
    kp['ca_w2'] = p['ca_w2']

    # Position-major row bookkeeping (row = spatial p * B + example b).
    pos = np.arange(P) // B
    ex = np.arange(P) % B
    onehot = (ex[:, None] == np.arange(B)[None, :]).astype(np.float32)           # [P, B]
    kp['pool_avg'] = jnp.asarray(onehot.T / HW)                                  # [B, P] avg-pool matrix
    kp['ca_expand'] = jnp.asarray(np.concatenate([onehot, onehot], axis=1))      # [P, 2B] (avg|max) expand

    # SpatialAttention Conv2d(2, 1, 7, padding=3, bias=False) folded into block-diagonal [P, P] taps.
    wconv = np.asarray(p['sa_conv'])                                             # [1, 2, 7, 7]
    k_avg = np.zeros((HW, HW), np.float32)
    k_max = np.zeros((HW, HW), np.float32)
    for q in range(HW):
        qi, qj = divmod(q, W)
        for s in range(HW):
            si, sj = divmod(s, W)
            kh, kw = si - qi + 3, sj - qj + 3
            if 0 <= kh < 7 and 0 <= kw < 7:
                k_avg[q, s] = wconv[0, 0, kh, kw]
                k_max[q, s] = wconv[0, 1, kh, kw]
    same_ex = (ex[:, None] == ex[None, :]).astype(np.float32)
    kp['sa_avg'] = jnp.asarray(k_avg[np.ix_(pos, pos)] * same_ex)                # [P, P]
    kp['sa_max'] = jnp.asarray(k_max[np.ix_(pos, pos)] * same_ex)                # [P, P]

    kp['head_w'], kp['head_b'] = fold_bn(p['head_w'], p['bn1'])

    # gMLP: big weights stored bf16 (f32 accumulation in-kernel), small affine params stay f32.
    kp['patch_w'] = p['patch_w'].astype(BF16)
    kp['patch_b'] = p['patch_b']
    stack = lambda name: jnp.stack([blk[name] for blk in p['blocks']], axis=0)
    kp['blk_ln_g'] = stack('ln_g')
    kp['blk_ln_b'] = stack('ln_b')
    kp['blk_w_in'] = stack('w_in').astype(BF16)
    kp['blk_b_in'] = stack('b_in')
    # Fold SGU spatial Conv1d(seq=1) scalar affine into the SGU LayerNorm affine (exact, eval mode).
    sgu_g, sgu_b = [], []
    for blk in p['blocks']:
        w_sp, b_sp = blk['sp'][0], blk['sp'][1]
        sgu_g.append(blk['sgu_g'] * w_sp)
        sgu_b.append(blk['sgu_b'] * w_sp + b_sp)
    kp['blk_sgu_g'] = jnp.stack(sgu_g, axis=0)
    kp['blk_sgu_b'] = jnp.stack(sgu_b, axis=0)
    kp['blk_w_out'] = stack('w_out').astype(BF16)
    kp['blk_b_out'] = stack('b_out')

    kp['fin_g'] = p['final']['ln_g']
    kp['fin_b'] = p['final']['ln_b']
    kp['fin_w'] = p['final']['w'].reshape(1, GMLP_DIM)                           # Linear(dim, 1) weight as a row
    kp['fin_bias'] = p['final']['b']
    return kp


# ------------------------- deterministic parameter init (module-style) -------------------------
def init_params(key):
    ks = iter(jax.random.split(key, 64))

    def nrm(shape, scale=0.05):
        return scale * jax.random.normal(next(ks), shape, dtype=F32)

    def bn(c):
        return {'g': 1.0 + nrm((c,), 0.1), 'b': nrm((c,), 0.1),
                'm': nrm((c,), 0.1), 'v': 1.0 + jnp.abs(nrm((c,), 0.1))}

    p = {}
    p['stem_w'] = nrm((C_IN, C_FEAT))
    p['bn0'] = bn(C_FEAT)
    p['attconv_w'] = nrm((C_FEAT, 1))              # Conv2d(C, 1, 1) (with bias)
    p['attconv_b'] = nrm((1, 1))
    p['ca_w1'] = nrm((C_FEAT, C_FEAT // RATIO))    # Conv2d(C, C//16, 1, bias=False)
    p['ca_w2'] = nrm((C_FEAT // RATIO, C_FEAT))    # Conv2d(C//16, C, 1, bias=False)
    p['sa_conv'] = nrm((1, 2, 7, 7))               # Conv2d(2, 1, 7, padding=3, bias=False)
    p['head_w'] = nrm((C_FEAT, C_HEAD))
    p['bn1'] = bn(C_HEAD)
    p['patch_w'] = nrm((HW * C_HEAD, GMLP_DIM), 0.02)
    p['patch_b'] = nrm((1, GMLP_DIM), 0.02)
    blocks = []
    for _ in range(GMLP_DEPTH):
        blocks.append({
            'ln_g': jnp.ones((1, GMLP_DIM), F32),
            'ln_b': jnp.zeros((1, GMLP_DIM), F32),
            'w_in': nrm((GMLP_DIM, GMLP_FF), 0.02),
            'b_in': nrm((1, GMLP_FF), 0.02),
            'sgu_g': jnp.ones((1, GMLP_HALF), F32),
            'sgu_b': jnp.zeros((1, GMLP_HALF), F32),
            # SpatialGatingUnit Conv1d(seq, seq, 1): tiny weight, bias initialized to 1
            'sp': jnp.array([5e-4, 1.0], dtype=F32),
            'w_out': nrm((GMLP_HALF, GMLP_DIM), 0.02),
            'b_out': nrm((1, GMLP_DIM), 0.02),
        })
    p['blocks'] = blocks
    p['final'] = {
        'ln_g': jnp.ones((1, GMLP_DIM), F32),
        'ln_b': jnp.zeros((1, GMLP_DIM), F32),
        'w': nrm((GMLP_DIM, 1), 0.02),
        'b': nrm((1, 1), 0.02),
    }
    return p


if __name__ == "__main__":
    key = jax.random.PRNGKey(0)
    pkey, xkey = jax.random.split(key)
    params = init_params(pkey)
    kparams = prepare_params(params)       # one-time eager weight folding / stacking / bf16 packing
    x = jax.random.normal(xkey, (B, C_IN, H, W), dtype=F32)   # NCHW, like the PyTorch module

    fwd = jax.jit(egmlp_forward)
    out = jax.block_until_ready(fwd(x, kparams))
    assert out.shape == (B, 1), out.shape
    assert bool(jnp.all(jnp.isfinite(out)))
    print("KERNEL_OK")
</pallas_src>

<mosaic_0001>
module attributes {stable_mosaic.version = 11 : i64} {
  func.func @_egmlp_kernel(%arg0: memref<98x8xf32, #tpu.memory_space<vmem>>, %arg1: memref<8x32xf32, #tpu.memory_space<vmem>>, %arg2: memref<1x32xf32, #tpu.memory_space<vmem>>, %arg3: memref<1x32xf32, #tpu.memory_space<vmem>>, %arg4: memref<1x1xf32, #tpu.memory_space<vmem>>, %arg5: memref<32x2xf32, #tpu.memory_space<vmem>>, %arg6: memref<2x32xf32, #tpu.memory_space<vmem>>, %arg7: memref<2x98xf32, #tpu.memory_space<vmem>>, %arg8: memref<98x4xf32, #tpu.memory_space<vmem>>, %arg9: memref<98x98xf32, #tpu.memory_space<vmem>>, %arg10: memref<98x98xf32, #tpu.memory_space<vmem>>, %arg11: memref<32x128xf32, #tpu.memory_space<vmem>>, %arg12: memref<1x128xf32, #tpu.memory_space<vmem>>, %arg13: memref<6272x64xbf16, #tpu.memory_space<any>>, %arg14: memref<1x64xf32, #tpu.memory_space<vmem>>, %arg15: memref<4x1x64xf32, #tpu.memory_space<vmem>>, %arg16: memref<4x1x64xf32, #tpu.memory_space<vmem>>, %arg17: memref<4x64x256xbf16, #tpu.memory_space<any>>, %arg18: memref<4x1x256xf32, #tpu.memory_space<vmem>>, %arg19: memref<4x1x128xf32, #tpu.memory_space<vmem>>, %arg20: memref<4x1x128xf32, #tpu.memory_space<vmem>>, %arg21: memref<4x128x64xbf16, #tpu.memory_space<any>>, %arg22: memref<4x1x64xf32, #tpu.memory_space<vmem>>, %arg23: memref<1x64xf32, #tpu.memory_space<vmem>>, %arg24: memref<1x64xf32, #tpu.memory_space<vmem>>, %arg25: memref<1x64xf32, #tpu.memory_space<vmem>>, %arg26: memref<1x1xf32, #tpu.memory_space<vmem>>, %arg27: memref<2x128xf32, #tpu.memory_space<vmem>>, %arg28: memref<98x128xf32, #tpu.memory_space<vmem>>, %arg29: memref<2x6272xf32, #tpu.memory_space<vmem>>, %arg30: memref<6272x64xbf16, #tpu.memory_space<vmem>>, %arg31: memref<4x64x256xbf16, #tpu.memory_space<vmem>>, %arg32: memref<4x128x64xbf16, #tpu.memory_space<vmem>>, %arg33: memref<3x!tpu.dma_semaphore, #tpu.memory_space<semaphore_mem>>) attributes {dimension_semantics = [], scalar_prefetch = 0 : i64, scratch_operands = 6 : i64, tpu.core_type = #tpu.core_type<tc>} {
    %c0_i32 = arith.constant 0 : i32
    %0 = tpu.memref_slice %arg33[%c0_i32] : memref<3x!tpu.dma_semaphore, #tpu.memory_space<semaphore_mem>> -> memref<1x!tpu.dma_semaphore, #tpu.memory_space<semaphore_mem>>
    %1 = tpu.memref_squeeze %0 : memref<1x!tpu.dma_semaphore, #tpu.memory_space<semaphore_mem>> -> memref<!tpu.dma_semaphore, #tpu.memory_space<semaphore_mem>>
    tpu.enqueue_dma source(%arg13 : memref<6272x64xbf16, #tpu.memory_space<any>>) target(%arg30 : memref<6272x64xbf16, #tpu.memory_space<vmem>>) target_semaphore(%1 : memref<!tpu.dma_semaphore, #tpu.memory_space<semaphore_mem>>)
    %c1_i32 = arith.constant 1 : i32
    %2 = tpu.memref_slice %arg33[%c1_i32] : memref<3x!tpu.dma_semaphore, #tpu.memory_space<semaphore_mem>> -> memref<1x!tpu.dma_semaphore, #tpu.memory_space<semaphore_mem>>
    %3 = tpu.memref_squeeze %2 : memref<1x!tpu.dma_semaphore, #tpu.memory_space<semaphore_mem>> -> memref<!tpu.dma_semaphore, #tpu.memory_space<semaphore_mem>>
    tpu.enqueue_dma source(%arg17 : memref<4x64x256xbf16, #tpu.memory_space<any>>) target(%arg31 : memref<4x64x256xbf16, #tpu.memory_space<vmem>>) target_semaphore(%3 : memref<!tpu.dma_semaphore, #tpu.memory_space<semaphore_mem>>)
    %c2_i32 = arith.constant 2 : i32
    %4 = tpu.memref_slice %arg33[%c2_i32] : memref<3x!tpu.dma_semaphore, #tpu.memory_space<semaphore_mem>> -> memref<1x!tpu.dma_semaphore, #tpu.memory_space<semaphore_mem>>
    %5 = tpu.memref_squeeze %4 : memref<1x!tpu.dma_semaphore, #tpu.memory_space<semaphore_mem>> -> memref<!tpu.dma_semaphore, #tpu.memory_space<semaphore_mem>>
    tpu.enqueue_dma source(%arg21 : memref<4x128x64xbf16, #tpu.memory_space<any>>) target(%arg32 : memref<4x128x64xbf16, #tpu.memory_space<vmem>>) target_semaphore(%5 : memref<!tpu.dma_semaphore, #tpu.memory_space<semaphore_mem>>)
    %c0 = arith.constant 0 : index
    %c0_0 = arith.constant 0 : index
    %6 = vector.load %arg0[%c0, %c0_0] : memref<98x8xf32, #tpu.memory_space<vmem>>, vector<98x8xf32>
    %c0_1 = arith.constant 0 : index
    %c0_2 = arith.constant 0 : index
    %7 = vector.load %arg1[%c0_1, %c0_2] : memref<8x32xf32, #tpu.memory_space<vmem>>, vector<8x32xf32>
    %cst = arith.constant dense<0.000000e+00> : vector<98x32xf32>
    %8 = tpu.matmul %6, %7, %cst {dimension_numbers = #tpu.dot_dimension_numbers<[1], [0], [0], [1], [0, 0, 1, 1], [], []>} : vector<98x8xf32>, vector<8x32xf32>, vector<98x32xf32> -> vector<98x32xf32>
    %c0_3 = arith.constant 0 : index
    %c0_4 = arith.constant 0 : index
    %9 = vector.load %arg2[%c0_3, %c0_4] : memref<1x32xf32, #tpu.memory_space<vmem>>, vector<1x32xf32>
    %10 = vector.broadcast %9 : vector<1x32xf32> to vector<98x32xf32>
    %11 = arith.addf %8, %10 : vector<98x32xf32>
    %12 = arith.negf %11 : vector<98x32xf32>
    %13 = math.exp %12 : vector<98x32xf32>
    %cst_5 = arith.constant 1.000000e+00 : f32
    %14 = vector.broadcast %cst_5 : f32 to vector<98x32xf32>
    %15 = arith.addf %14, %13 : vector<98x32xf32>
    %16 = arith.divf %14, %15 : vector<98x32xf32>
    %17 = arith.mulf %11, %16 : vector<98x32xf32>
    %c0_6 = arith.constant 0 : index
    %c0_7 = arith.constant 0 : index
    %18 = vector.load %arg3[%c0_6, %c0_7] : memref<1x32xf32, #tpu.memory_space<vmem>>, vector<1x32xf32>
    %19 = vector.broadcast %18 : vector<1x32xf32> to vector<98x32xf32>
    %20 = arith.mulf %17, %19 : vector<98x32xf32>
    %cst_8 = arith.constant dense<0.000000e+00> : vector<98xf32>
    %21 = vector.multi_reduction <add>, %20, %cst_8 [1] : vector<98x32xf32> to vector<98xf32>
    %22 = vector.shape_cast %21 : vector<98xf32> to vector<98x1xf32>
    %c0_9 = arith.constant 0 : index
    %c0_10 = arith.constant 0 : index
    %23 = vector.load %arg4[%c0_9, %c0_10] : memref<1x1xf32, #tpu.memory_space<vmem>>, vector<1x1xf32>
    %24 = vector.broadcast %23 : vector<1x1xf32> to vector<98x1xf32>
    %25 = arith.addf %22, %24 : vector<98x1xf32>
    %26 = arith.negf %25 : vector<98x1xf32>
    %27 = math.exp %26 : vector<98x1xf32>
    %cst_11 = arith.constant 1.000000e+00 : f32
    %28 = vector.broadcast %cst_11 : f32 to vector<98x1xf32>
    %29 = arith.addf %28, %27 : vector<98x1xf32>
    %30 = arith.divf %28, %29 : vector<98x1xf32>
    %31 = vector.broadcast %30 : vector<98x1xf32> to vector<98x32xf32>
    %32 = arith.mulf %17, %31 : vector<98x32xf32>
    %c0_12 = arith.constant 0 : index
    %c0_13 = arith.constant 0 : index
    %33 = vector.load %arg8[%c0_12, %c0_13] : memref<98x4xf32, #tpu.memory_space<vmem>>, vector<98x4xf32>
    %c0_14 = arith.constant 0 : index
    %c0_15 = arith.constant 0 : index
    %34 = vector.load %arg7[%c0_14, %c0_15] : memref<2x98xf32, #tpu.memory_space<vmem>>, vector<2x98xf32>
    %cst_16 = arith.constant dense<0.000000e+00> : vector<2x32xf32>
    %35 = tpu.matmul %34, %32, %cst_16 {dimension_numbers = #tpu.dot_dimension_numbers<[1], [0], [0], [1], [0, 0, 1, 1], [], []>} : vector<2x98xf32>, vector<98x32xf32>, vector<2x32xf32> -> vector<2x32xf32>
    %36 = vector.extract_strided_slice %33 {offsets = [0, 0], sizes = [98, 1], strides = [1, 1]} : vector<98x4xf32> to vector<98x1xf32>
    %cst_17 = arith.constant 1.000000e+00 : f32
    %37 = vector.broadcast %cst_17 : f32 to vector<98x1xf32>
    %38 = arith.subf %36, %37 : vector<98x1xf32>
    %cst_18 = arith.constant 1.000000e+30 : f32
    %39 = vector.broadcast %cst_18 : f32 to vector<98x1xf32>
    %40 = arith.mulf %38, %39 : vector<98x1xf32>
    %41 = vector.broadcast %40 : vector<98x1xf32> to vector<98x32xf32>
    %42 = arith.addf %32, %41 : vector<98x32xf32>
    %cst_19 = arith.constant dense<0xFF800000> : vector<32xf32>
    %43 = vector.multi_reduction <maximumf>, %42, %cst_19 [0] : vector<98x32xf32> to vector<32xf32>
    %44 = vector.shape_cast %43 : vector<32xf32> to vector<1x32xf32>
    %45 = vector.extract_strided_slice %33 {offsets = [0, 1], sizes = [98, 1], strides = [1, 1]} : vector<98x4xf32> to vector<98x1xf32>
    %cst_20 = arith.constant 1.000000e+00 : f32
    %46 = vector.broadcast %cst_20 : f32 to vector<98x1xf32>
    %47 = arith.subf %45, %46 : vector<98x1xf32>
    %cst_21 = arith.constant 1.000000e+30 : f32
    %48 = vector.broadcast %cst_21 : f32 to vector<98x1xf32>
    %49 = arith.mulf %47, %48 : vector<98x1xf32>
    %50 = vector.broadcast %49 : vector<98x1xf32> to vector<98x32xf32>
    %51 = arith.addf %32, %50 : vector<98x32xf32>
    %cst_22 = arith.constant dense<0xFF800000> : vector<32xf32>
    %52 = vector.multi_reduction <maximumf>, %51, %cst_22 [0] : vector<98x32xf32> to vector<32xf32>
    %53 = vector.shape_cast %52 : vector<32xf32> to vector<1x32xf32>
    %54 = tpu.concatenate %35, %44, %53 in 0 : vector<2x32xf32>, vector<1x32xf32>, vector<1x32xf32> -> vector<4x32xf32>
    %c0_23 = arith.constant 0 : index
    %c0_24 = arith.constant 0 : index
    %55 = vector.load %arg5[%c0_23, %c0_24] : memref<32x2xf32, #tpu.memory_space<vmem>>, vector<32x2xf32>
    %cst_25 = arith.constant dense<0.000000e+00> : vector<4x2xf32>
    %56 = tpu.matmul %54, %55, %cst_25 {dimension_numbers = #tpu.dot_dimension_numbers<[1], [0], [0], [1], [0, 0, 1, 1], [], []>} : vector<4x32xf32>, vector<32x2xf32>, vector<4x2xf32> -> vector<4x2xf32>
    %cst_26 = arith.constant 0.000000e+00 : f32
    %57 = vector.broadcast %cst_26 : f32 to vector<4x2xf32>
    %58 = arith.maximumf %56, %57 : vector<4x2xf32>
    %c0_27 = arith.constant 0 : index
    %c0_28 = arith.constant 0 : index
    %59 = vector.load %arg6[%c0_27, %c0_28] : memref<2x32xf32, #tpu.memory_space<vmem>>, vector<2x32xf32>
    %cst_29 = arith.constant dense<0.000000e+00> : vector<4x32xf32>
    %60 = tpu.matmul %58, %59, %cst_29 {dimension_numbers = #tpu.dot_dimension_numbers<[1], [0], [0], [1], [0, 0, 1, 1], [], []>} : vector<4x2xf32>, vector<2x32xf32>, vector<4x32xf32> -> vector<4x32xf32>
    %cst_30 = arith.constant dense<0.000000e+00> : vector<98x32xf32>
    %61 = tpu.matmul %33, %60, %cst_30 {dimension_numbers = #tpu.dot_dimension_numbers<[1], [0], [0], [1], [0, 0, 1, 1], [], []>} : vector<98x4xf32>, vector<4x32xf32>, vector<98x32xf32> -> vector<98x32xf32>
    %62 = arith.negf %61 : vector<98x32xf32>
    %63 = math.exp %62 : vector<98x32xf32>
    %cst_31 = arith.constant 1.000000e+00 : f32
    %64 = vector.broadcast %cst_31 : f32 to vector<98x32xf32>
    %65 = arith.addf %64, %63 : vector<98x32xf32>
    %66 = arith.divf %64, %65 : vector<98x32xf32>
    %67 = arith.mulf %32, %66 : vector<98x32xf32>
    %cst_32 = arith.constant dense<0.000000e+00> : vector<98xf32>
    %68 = vector.multi_reduction <add>, %67, %cst_32 [1] : vector<98x32xf32> to vector<98xf32>
    %69 = vector.shape_cast %68 : vector<98xf32> to vector<98x1xf32>
    %cst_33 = arith.constant 3.200000e+01 : f32
    %70 = vector.broadcast %cst_33 : f32 to vector<98x1xf32>
    %71 = arith.divf %69, %70 : vector<98x1xf32>
    %72 = vector.shape_cast %71 : vector<98x1xf32> to vector<98x1xf32>
    %73 = vector.broadcast %72 : vector<98x1xf32> to vector<98x32xf32>
    %cst_34 = arith.constant dense<0xFF800000> : vector<98xf32>
    %74 = vector.multi_reduction <maximumf>, %67, %cst_34 [1] : vector<98x32xf32> to vector<98xf32>
    %75 = vector.shape_cast %74 : vector<98xf32> to vector<98x1xf32>
    %76 = vector.shape_cast %75 : vector<98x1xf32> to vector<98x1xf32>
    %77 = vector.broadcast %76 : vector<98x1xf32> to vector<98x32xf32>
    %c0_35 = arith.constant 0 : index
    %c0_36 = arith.constant 0 : index
    %78 = vector.load %arg9[%c0_35, %c0_36] : memref<98x98xf32, #tpu.memory_space<vmem>>, vector<98x98xf32>
    %cst_37 = arith.constant dense<0.000000e+00> : vector<98x32xf32>
    %79 = tpu.matmul %78, %73, %cst_37 {dimension_numbers = #tpu.dot_dimension_numbers<[1], [0], [0], [1], [0, 0, 1, 1], [], []>} : vector<98x98xf32>, vector<98x32xf32>, vector<98x32xf32> -> vector<98x32xf32>
    %c0_38 = arith.constant 0 : index
    %c0_39 = arith.constant 0 : index
    %80 = vector.load %arg10[%c0_38, %c0_39] : memref<98x98xf32, #tpu.memory_space<vmem>>, vector<98x98xf32>
    %cst_40 = arith.constant dense<0.000000e+00> : vector<98x32xf32>
    %81 = tpu.matmul %80, %77, %cst_40 {dimension_numbers = #tpu.dot_dimension_numbers<[1], [0], [0], [1], [0, 0, 1, 1], [], []>} : vector<98x98xf32>, vector<98x32xf32>, vector<98x32xf32> -> vector<98x32xf32>
    %82 = arith.addf %79, %81 : vector<98x32xf32>
    %83 = arith.negf %82 : vector<98x32xf32>
    %84 = math.exp %83 : vector<98x32xf32>
    %cst_41 = arith.constant 1.000000e+00 : f32
    %85 = vector.broadcast %cst_41 : f32 to vector<98x32xf32>
    %86 = arith.addf %85, %84 : vector<98x32xf32>
    %87 = arith.divf %85, %86 : vector<98x32xf32>
    %88 = arith.mulf %67, %87 : vector<98x32xf32>
    %c0_42 = arith.constant 0 : index
    %c0_43 = arith.constant 0 : index
    %89 = vector.load %arg11[%c0_42, %c0_43] : memref<32x128xf32, #tpu.memory_space<vmem>>, vector<32x128xf32>
    %cst_44 = arith.constant dense<0.000000e+00> : vector<98x128xf32>
    %90 = tpu.matmul %88, %89, %cst_44 {dimension_numbers = #tpu.dot_dimension_numbers<[1], [0], [0], [1], [0, 0, 1, 1], [], []>} : vector<98x32xf32>, vector<32x128xf32>, vector<98x128xf32> -> vector<98x128xf32>
    %c0_45 = arith.constant 0 : index
    %c0_46 = arith.constant 0 : index
    %91 = vector.load %arg12[%c0_45, %c0_46] : memref<1x128xf32, #tpu.memory_space<vmem>>, vector<1x128xf32>
    %92 = vector.broadcast %91 : vector<1x128xf32> to vector<98x128xf32>
    %93 = arith.addf %90, %92 : vector<98x128xf32>
    %94 = arith.negf %93 : vector<98x128xf32>
    %95 = math.exp %94 : vector<98x128xf32>
    %cst_47 = arith.constant 1.000000e+00 : f32
    %96 = vector.broadcast %cst_47 : f32 to vector<98x128xf32>
    %97 = arith.addf %96, %95 : vector<98x128xf32>
    %98 = arith.divf %96, %97 : vector<98x128xf32>
    %99 = arith.mulf %93, %98 : vector<98x128xf32>
    %c0_48 = arith.constant 0 : index
    %c0_49 = arith.constant 0 : index
    %100 = vector.load %arg28[%c0_48, %c0_49] : memref<98x128xf32, #tpu.memory_space<vmem>>, vector<98x128xf32>
    tpu.vector_store %arg28[%c0_48, %c0_49], %99 {strides = array<i32>} : memref<98x128xf32, #tpu.memory_space<vmem>>, vector<98x128xf32>,
    %c0_50 = arith.constant 0 : index
    %c0_51 = arith.constant 0 : index
    %101 = vector.load %arg28[%c0_50, %c0_51] : memref<98x128xf32, #tpu.memory_space<vmem>>, vector<2x128xf32>
    %c0_52 = arith.constant 0 : index
    %c0_53 = arith.constant 0 : index
    %102 = vector.load %arg29[%c0_52, %c0_53] : memref<2x6272xf32, #tpu.memory_space<vmem>>, vector<2x128xf32>
    tpu.vector_store %arg29[%c0_52, %c0_53], %101 {strides = array<i32>} : memref<2x6272xf32, #tpu.memory_space<vmem>>, vector<2x128xf32>,
    %c2 = arith.constant 2 : index
    %c0_54 = arith.constant 0 : index
    %103 = vector.load %arg28[%c2, %c0_54] : memref<98x128xf32, #tpu.memory_space<vmem>>, vector<2x128xf32>
    %c0_55 = arith.constant 0 : index
    %c128 = arith.constant 128 : index
    %104 = vector.load %arg29[%c0_55, %c128] : memref<2x6272xf32, #tpu.memory_space<vmem>>, vector<2x128xf32>
    tpu.vector_store %arg29[%c0_55, %c128], %103 {strides = array<i32>} : memref<2x6272xf32, #tpu.memory_space<vmem>>, vector<2x128xf32>,
    %c4 = arith.constant 4 : index
    %c0_56 = arith.constant 0 : index
    %105 = vector.load %arg28[%c4, %c0_56] : memref<98x128xf32, #tpu.memory_space<vmem>>, vector<2x128xf32>
    %c0_57 = arith.constant 0 : index
    %c256 = arith.constant 256 : index
    %106 = vector.load %arg29[%c0_57, %c256] : memref<2x6272xf32, #tpu.memory_space<vmem>>, vector<2x128xf32>
    tpu.vector_store %arg29[%c0_57, %c256], %105 {strides = array<i32>} : memref<2x6272xf32, #tpu.memory_space<vmem>>, vector<2x128xf32>,
    %c6 = arith.constant 6 : index
    %c0_58 = arith.constant 0 : index
    %107 = vector.load %arg28[%c6, %c0_58] : memref<98x128xf32, #tpu.memory_space<vmem>>, vector<2x128xf32>
    %c0_59 = arith.constant 0 : index
    %c384 = arith.constant 384 : index
    %108 = vector.load %arg29[%c0_59, %c384] : memref<2x6272xf32, #tpu.memory_space<vmem>>, vector<2x128xf32>
    tpu.vector_store %arg29[%c0_59, %c384], %107 {strides = array<i32>} : memref<2x6272xf32, #tpu.memory_space<vmem>>, vector<2x128xf32>,
    %c8 = arith.constant 8 : index
    %c0_60 = arith.constant 0 : index
    %109 = vector.load %arg28[%c8, %c0_60] : memref<98x128xf32, #tpu.memory_space<vmem>>, vector<2x128xf32>
    %c0_61 = arith.constant 0 : index
    %c512 = arith.constant 512 : index
    %110 = vector.load %arg29[%c0_61, %c512] : memref<2x6272xf32, #tpu.memory_space<vmem>>, vector<2x128xf32>
    tpu.vector_store %arg29[%c0_61, %c512], %109 {strides = array<i32>} : memref<2x6272xf32, #tpu.memory_space<vmem>>, vector<2x128xf32>,
    %c10 = arith.constant 10 : index
    %c0_62 = arith.constant 0 : index
    %111 = vector.load %arg28[%c10, %c0_62] : memref<98x128xf32, #tpu.memory_space<vmem>>, vector<2x128xf32>
    %c0_63 = arith.constant 0 : index
    %c640 = arith.constant 640 : index
    %112 = vector.load %arg29[%c0_63, %c640] : memref<2x6272xf32, #tpu.memory_space<vmem>>, vector<2x128xf32>
    tpu.vector_store %arg29[%c0_63, %c640], %111 {strides = array<i32>} : memref<2x6272xf32, #tpu.memory_space<vmem>>, vector<2x128xf32>,
    %c12 = arith.constant 12 : index
    %c0_64 = arith.constant 0 : index
    %113 = vector.load %arg28[%c12, %c0_64] : memref<98x128xf32, #tpu.memory_space<vmem>>, vector<2x128xf32>
    %c0_65 = arith.constant 0 : index
    %c768 = arith.constant 768 : index
    %114 = vector.load %arg29[%c0_65, %c768] : memref<2x6272xf32, #tpu.memory_space<vmem>>, vector<2x128xf32>
    tpu.vector_store %arg29[%c0_65, %c768], %113 {strides = array<i32>} : memref<2x6272xf32, #tpu.memory_space<vmem>>, vector<2x128xf32>,
    %c14 = arith.constant 14 : index
    %c0_66 = arith.constant 0 : index
    %115 = vector.load %arg28[%c14, %c0_66] : memref<98x128xf32, #tpu.memory_space<vmem>>, vector<2x128xf32>
    %c0_67 = arith.constant 0 : index
    %c896 = arith.constant 896 : index
    %116 = vector.load %arg29[%c0_67, %c896] : memref<2x6272xf32, #tpu.memory_space<vmem>>, vector<2x128xf32>
    tpu.vector_store %arg29[%c0_67, %c896], %115 {strides = array<i32>} : memref<2x6272xf32, #tpu.memory_space<vmem>>, vector<2x128xf32>,
    %c16 = arith.constant 16 : index
    %c0_68 = arith.constant 0 : index
    %117 = vector.load %arg28[%c16, %c0_68] : memref<98x128xf32, #tpu.memory_space<vmem>>, vector<2x128xf32>
    %c0_69 = arith.constant 0 : index
    %c1024 = arith.constant 1024 : index
    %118 = vector.load %arg29[%c0_69, %c1024] : memref<2x6272xf32, #tpu.memory_space<vmem>>, vector<2x128xf32>
    tpu.vector_store %arg29[%c0_69, %c1024], %117 {strides = array<i32>} : memref<2x6272xf32, #tpu.memory_space<vmem>>, vector<2x128xf32>,
    %c18 = arith.constant 18 : index
    %c0_70 = arith.constant 0 : index
    %119 = vector.load %arg28[%c18, %c0_70] : memref<98x128xf32, #tpu.memory_space<vmem>>, vector<2x128xf32>
    %c0_71 = arith.constant 0 : index
    %c1152 = arith.constant 1152 : index
    %120 = vector.load %arg29[%c0_71, %c1152] : memref<2x6272xf32, #tpu.memory_space<vmem>>, vector<2x128xf32>
    tpu.vector_store %arg29[%c0_71, %c1152], %119 {strides = array<i32>} : memref<2x6272xf32, #tpu.memory_space<vmem>>, vector<2x128xf32>,
    %c20 = arith.constant 20 : index
    %c0_72 = arith.constant 0 : index
    %121 = vector.load %arg28[%c20, %c0_72] : memref<98x128xf32, #tpu.memory_space<vmem>>, vector<2x128xf32>
    %c0_73 = arith.constant 0 : index
    %c1280 = arith.constant 1280 : index
    %122 = vector.load %arg29[%c0_73, %c1280] : memref<2x6272xf32, #tpu.memory_space<vmem>>, vector<2x128xf32>
    tpu.vector_store %arg29[%c0_73, %c1280], %121 {strides = array<i32>} : memref<2x6272xf32, #tpu.memory_space<vmem>>, vector<2x128xf32>,
    %c22 = arith.constant 22 : index
    %c0_74 = arith.constant 0 : index
    %123 = vector.load %arg28[%c22, %c0_74] : memref<98x128xf32, #tpu.memory_space<vmem>>, vector<2x128xf32>
    %c0_75 = arith.constant 0 : index
    %c1408 = arith.constant 1408 : index
    %124 = vector.load %arg29[%c0_75, %c1408] : memref<2x6272xf32, #tpu.memory_space<vmem>>, vector<2x128xf32>
    tpu.vector_store %arg29[%c0_75, %c1408], %123 {strides = array<i32>} : memref<2x6272xf32, #tpu.memory_space<vmem>>, vector<2x128xf32>,
    %c24 = arith.constant 24 : index
    %c0_76 = arith.constant 0 : index
    %125 = vector.load %arg28[%c24, %c0_76] : memref<98x128xf32, #tpu.memory_space<vmem>>, vector<2x128xf32>
    %c0_77 = arith.constant 0 : index
    %c1536 = arith.constant 1536 : index
    %126 = vector.load %arg29[%c0_77, %c1536] : memref<2x6272xf32, #tpu.memory_space<vmem>>, vector<2x128xf32>
    tpu.vector_store %arg29[%c0_77, %c1536], %125 {strides = array<i32>} : memref<2x6272xf32, #tpu.memory_space<vmem>>, vector<2x128xf32>,
    %c26 = arith.constant 26 : index
    %c0_78 = arith.constant 0 : index
    %127 = vector.load %arg28[%c26, %c0_78] : memref<98x128xf32, #tpu.memory_space<vmem>>, vector<2x128xf32>
    %c0_79 = arith.constant 0 : index
    %c1664 = arith.constant 1664 : index
    %128 = vector.load %arg29[%c0_79, %c1664] : memref<2x6272xf32, #tpu.memory_space<vmem>>, vector<2x128xf32>
    tpu.vector_store %arg29[%c0_79, %c1664], %127 {strides = array<i32>} : memref<2x6272xf32, #tpu.memory_space<vmem>>, vector<2x128xf32>,
    %c28 = arith.constant 28 : index
    %c0_80 = arith.constant 0 : index
    %129 = vector.load %arg28[%c28, %c0_80] : memref<98x128xf32, #tpu.memory_space<vmem>>, vector<2x128xf32>
    %c0_81 = arith.constant 0 : index
    %c1792 = arith.constant 1792 : index
    %130 = vector.load %arg29[%c0_81, %c1792] : memref<2x6272xf32, #tpu.memory_space<vmem>>, vector<2x128xf32>
    tpu.vector_store %arg29[%c0_81, %c1792], %129 {strides = array<i32>} : memref<2x6272xf32, #tpu.memory_space<vmem>>, vector<2x128xf32>,
    %c30 = arith.constant 30 : index
    %c0_82 = arith.constant 0 : index
    %131 = vector.load %arg28[%c30, %c0_82] : memref<98x128xf32, #tpu.memory_space<vmem>>, vector<2x128xf32>
    %c0_83 = arith.constant 0 : index
    %c1920 = arith.constant 1920 : index
    %132 = vector.load %arg29[%c0_83, %c1920] : memref<2x6272xf32, #tpu.memory_space<vmem>>, vector<2x128xf32>
    tpu.vector_store %arg29[%c0_83, %c1920], %131 {strides = array<i32>} : memref<2x6272xf32, #tpu.memory_space<vmem>>, vector<2x128xf32>,
    %c32 = arith.constant 32 : index
    %c0_84 = arith.constant 0 : index
    %133 = vector.load %arg28[%c32, %c0_84] : memref<98x128xf32, #tpu.memory_space<vmem>>, vector<2x128xf32>
    %c0_85 = arith.constant 0 : index
    %c2048 = arith.constant 2048 : index
    %134 = vector.load %arg29[%c0_85, %c2048] : memref<2x6272xf32, #tpu.memory_space<vmem>>, vector<2x128xf32>
    tpu.vector_store %arg29[%c0_85, %c2048], %133 {strides = array<i32>} : memref<2x6272xf32, #tpu.memory_space<vmem>>, vector<2x128xf32>,
    %c34 = arith.constant 34 : index
    %c0_86 = arith.constant 0 : index
    %135 = vector.load %arg28[%c34, %c0_86] : memref<98x128xf32, #tpu.memory_space<vmem>>, vector<2x128xf32>
    %c0_87 = arith.constant 0 : index
    %c2176 = arith.constant 2176 : index
    %136 = vector.load %arg29[%c0_87, %c2176] : memref<2x6272xf32, #tpu.memory_space<vmem>>, vector<2x128xf32>
    tpu.vector_store %arg29[%c0_87, %c2176], %135 {strides = array<i32>} : memref<2x6272xf32, #tpu.memory_space<vmem>>, vector<2x128xf32>,
    %c36 = arith.constant 36 : index
    %c0_88 = arith.constant 0 : index
    %137 = vector.load %arg28[%c36, %c0_88] : memref<98x128xf32, #tpu.memory_space<vmem>>, vector<2x128xf32>
    %c0_89 = arith.constant 0 : index
    %c2304 = arith.constant 2304 : index
    %138 = vector.load %arg29[%c0_89, %c2304] : memref<2x6272xf32, #tpu.memory_space<vmem>>, vector<2x128xf32>
    tpu.vector_store %arg29[%c0_89, %c2304], %137 {strides = array<i32>} : memref<2x6272xf32, #tpu.memory_space<vmem>>, vector<2x128xf32>,
    %c38 = arith.constant 38 : index
    %c0_90 = arith.constant 0 : index
    %139 = vector.load %arg28[%c38, %c0_90] : memref<98x128xf32, #tpu.memory_space<vmem>>, vector<2x128xf32>
    %c0_91 = arith.constant 0 : index
    %c2432 = arith.constant 2432 : index
    %140 = vector.load %arg29[%c0_91, %c2432] : memref<2x6272xf32, #tpu.memory_space<vmem>>, vector<2x128xf32>
    tpu.vector_store %arg29[%c0_91, %c2432], %139 {strides = array<i32>} : memref<2x6272xf32, #tpu.memory_space<vmem>>, vector<2x128xf32>,
    %c40 = arith.constant 40 : index
    %c0_92 = arith.constant 0 : index
    %141 = vector.load %arg28[%c40, %c0_92] : memref<98x128xf32, #tpu.memory_space<vmem>>, vector<2x128xf32>
    %c0_93 = arith.constant 0 : index
    %c2560 = arith.constant 2560 : index
    %142 = vector.load %arg29[%c0_93, %c2560] : memref<2x6272xf32, #tpu.memory_space<vmem>>, vector<2x128xf32>
    tpu.vector_store %arg29[%c0_93, %c2560], %141 {strides = array<i32>} : memref<2x6272xf32, #tpu.memory_space<vmem>>, vector<2x128xf32>,
    %c42 = arith.constant 42 : index
    %c0_94 = arith.constant 0 : index
    %143 = vector.load %arg28[%c42, %c0_94] : memref<98x128xf32, #tpu.memory_space<vmem>>, vector<2x128xf32>
    %c0_95 = arith.constant 0 : index
    %c2688 = arith.constant 2688 : index
    %144 = vector.load %arg29[%c0_95, %c2688] : memref<2x6272xf32, #tpu.memory_space<vmem>>, vector<2x128xf32>
    tpu.vector_store %arg29[%c0_95, %c2688], %143 {strides = array<i32>} : memref<2x6272xf32, #tpu.memory_space<vmem>>, vector<2x128xf32>,
    %c44 = arith.constant 44 : index
    %c0_96 = arith.constant 0 : index
    %145 = vector.load %arg28[%c44, %c0_96] : memref<98x128xf32, #tpu.memory_space<vmem>>, vector<2x128xf32>
    %c0_97 = arith.constant 0 : index
    %c2816 = arith.constant 2816 : index
    %146 = vector.load %arg29[%c0_97, %c2816] : memref<2x6272xf32, #tpu.memory_space<vmem>>, vector<2x128xf32>
    tpu.vector_store %arg29[%c0_97, %c2816], %145 {strides = array<i32>} : memref<2x6272xf32, #tpu.memory_space<vmem>>, vector<2x128xf32>,
    %c46 = arith.constant 46 : index
    %c0_98 = arith.constant 0 : index
    %147 = vector.load %arg28[%c46, %c0_98] : memref<98x128xf32, #tpu.memory_space<vmem>>, vector<2x128xf32>
    %c0_99 = arith.constant 0 : index
    %c2944 = arith.constant 2944 : index
    %148 = vector.load %arg29[%c0_99, %c2944] : memref<2x6272xf32, #tpu.memory_space<vmem>>, vector<2x128xf32>
    tpu.vector_store %arg29[%c0_99, %c2944], %147 {strides = array<i32>} : memref<2x6272xf32, #tpu.memory_space<vmem>>, vector<2x128xf32>,
    %c48 = arith.constant 48 : index
    %c0_100 = arith.constant 0 : index
    %149 = vector.load %arg28[%c48, %c0_100] : memref<98x128xf32, #tpu.memory_space<vmem>>, vector<2x128xf32>
    %c0_101 = arith.constant 0 : index
    %c3072 = arith.constant 3072 : index
    %150 = vector.load %arg29[%c0_101, %c3072] : memref<2x6272xf32, #tpu.memory_space<vmem>>, vector<2x128xf32>
    tpu.vector_store %arg29[%c0_101, %c3072], %149 {strides = array<i32>} : memref<2x6272xf32, #tpu.memory_space<vmem>>, vector<2x128xf32>,
    %c50 = arith.constant 50 : index
    %c0_102 = arith.constant 0 : index
    %151 = vector.load %arg28[%c50, %c0_102] : memref<98x128xf32, #tpu.memory_space<vmem>>, vector<2x128xf32>
    %c0_103 = arith.constant 0 : index
    %c3200 = arith.constant 3200 : index
    %152 = vector.load %arg29[%c0_103, %c3200] : memref<2x6272xf32, #tpu.memory_space<vmem>>, vector<2x128xf32>
    tpu.vector_store %arg29[%c0_103, %c3200], %151 {strides = array<i32>} : memref<2x6272xf32, #tpu.memory_space<vmem>>, vector<2x128xf32>,
    %c52 = arith.constant 52 : index
    %c0_104 = arith.constant 0 : index
    %153 = vector.load %arg28[%c52, %c0_104] : memref<98x128xf32, #tpu.memory_space<vmem>>, vector<2x128xf32>
    %c0_105 = arith.constant 0 : index
    %c3328 = arith.constant 3328 : index
    %154 = vector.load %arg29[%c0_105, %c3328] : memref<2x6272xf32, #tpu.memory_space<vmem>>, vector<2x128xf32>
    tpu.vector_store %arg29[%c0_105, %c3328], %153 {strides = array<i32>} : memref<2x6272xf32, #tpu.memory_space<vmem>>, vector<2x128xf32>,
    %c54 = arith.constant 54 : index
    %c0_106 = arith.constant 0 : index
    %155 = vector.load %arg28[%c54, %c0_106] : memref<98x128xf32, #tpu.memory_space<vmem>>, vector<2x128xf32>
    %c0_107 = arith.constant 0 : index
    %c3456 = arith.constant 3456 : index
    %156 = vector.load %arg29[%c0_107, %c3456] : memref<2x6272xf32, #tpu.memory_space<vmem>>, vector<2x128xf32>
    tpu.vector_store %arg29[%c0_107, %c3456], %155 {strides = array<i32>} : memref<2x6272xf32, #tpu.memory_space<vmem>>, vector<2x128xf32>,
    %c56 = arith.constant 56 : index
    %c0_108 = arith.constant 0 : index
    %157 = vector.load %arg28[%c56, %c0_108] : memref<98x128xf32, #tpu.memory_space<vmem>>, vector<2x128xf32>
    %c0_109 = arith.constant 0 : index
    %c3584 = arith.constant 3584 : index
    %158 = vector.load %arg29[%c0_109, %c3584] : memref<2x6272xf32, #tpu.memory_space<vmem>>, vector<2x128xf32>
    tpu.vector_store %arg29[%c0_109, %c3584], %157 {strides = array<i32>} : memref<2x6272xf32, #tpu.memory_space<vmem>>, vector<2x128xf32>,
    %c58 = arith.constant 58 : index
    %c0_110 = arith.constant 0 : index
    %159 = vector.load %arg28[%c58, %c0_110] : memref<98x128xf32, #tpu.memory_space<vmem>>, vector<2x128xf32>
    %c0_111 = arith.constant 0 : index
    %c3712 = arith.constant 3712 : index
    %160 = vector.load %arg29[%c0_111, %c3712] : memref<2x6272xf32, #tpu.memory_space<vmem>>, vector<2x128xf32>
    tpu.vector_store %arg29[%c0_111, %c3712], %159 {strides = array<i32>} : memref<2x6272xf32, #tpu.memory_space<vmem>>, vector<2x128xf32>,
    %c60 = arith.constant 60 : index
    %c0_112 = arith.constant 0 : index
    %161 = vector.load %arg28[%c60, %c0_112] : memref<98x128xf32, #tpu.memory_space<vmem>>, vector<2x128xf32>
    %c0_113 = arith.constant 0 : index
    %c3840 = arith.constant 3840 : index
    %162 = vector.load %arg29[%c0_113, %c3840] : memref<2x6272xf32, #tpu.memory_space<vmem>>, vector<2x128xf32>
    tpu.vector_store %arg29[%c0_113, %c3840], %161 {strides = array<i32>} : memref<2x6272xf32, #tpu.memory_space<vmem>>, vector<2x128xf32>,
    %c62 = arith.constant 62 : index
    %c0_114 = arith.constant 0 : index
    %163 = vector.load %arg28[%c62, %c0_114] : memref<98x128xf32, #tpu.memory_space<vmem>>, vector<2x128xf32>
    %c0_115 = arith.constant 0 : index
    %c3968 = arith.constant 3968 : index
    %164 = vector.load %arg29[%c0_115, %c3968] : memref<2x6272xf32, #tpu.memory_space<vmem>>, vector<2x128xf32>
    tpu.vector_store %arg29[%c0_115, %c3968], %163 {strides = array<i32>} : memref<2x6272xf32, #tpu.memory_space<vmem>>, vector<2x128xf32>,
    %c64 = arith.constant 64 : index
    %c0_116 = arith.constant 0 : index
    %165 = vector.load %arg28[%c64, %c0_116] : memref<98x128xf32, #tpu.memory_space<vmem>>, vector<2x128xf32>
    %c0_117 = arith.constant 0 : index
    %c4096 = arith.constant 4096 : index
    %166 = vector.load %arg29[%c0_117, %c4096] : memref<2x6272xf32, #tpu.memory_space<vmem>>, vector<2x128xf32>
    tpu.vector_store %arg29[%c0_117, %c4096], %165 {strides = array<i32>} : memref<2x6272xf32, #tpu.memory_space<vmem>>, vector<2x128xf32>,
    %c66 = arith.constant 66 : index
    %c0_118 = arith.constant 0 : index
    %167 = vector.load %arg28[%c66, %c0_118] : memref<98x128xf32, #tpu.memory_space<vmem>>, vector<2x128xf32>
    %c0_119 = arith.constant 0 : index
    %c4224 = arith.constant 4224 : index
    %168 = vector.load %arg29[%c0_119, %c4224] : memref<2x6272xf32, #tpu.memory_space<vmem>>, vector<2x128xf32>
    tpu.vector_store %arg29[%c0_119, %c4224], %167 {strides = array<i32>} : memref<2x6272xf32, #tpu.memory_space<vmem>>, vector<2x128xf32>,
    %c68 = arith.constant 68 : index
    %c0_120 = arith.constant 0 : index
    %169 = vector.load %arg28[%c68, %c0_120] : memref<98x128xf32, #tpu.memory_space<vmem>>, vector<2x128xf32>
    %c0_121 = arith.constant 0 : index
    %c4352 = arith.constant 4352 : index
    %170 = vector.load %arg29[%c0_121, %c4352] : memref<2x6272xf32, #tpu.memory_space<vmem>>, vector<2x128xf32>
    tpu.vector_store %arg29[%c0_121, %c4352], %169 {strides = array<i32>} : memref<2x6272xf32, #tpu.memory_space<vmem>>, vector<2x128xf32>,
    %c70 = arith.constant 70 : index
    %c0_122 = arith.constant 0 : index
    %171 = vector.load %arg28[%c70, %c0_122] : memref<98x128xf32, #tpu.memory_space<vmem>>, vector<2x128xf32>
    %c0_123 = arith.constant 0 : index
    %c4480 = arith.constant 4480 : index
    %172 = vector.load %arg29[%c0_123, %c4480] : memref<2x6272xf32, #tpu.memory_space<vmem>>, vector<2x128xf32>
    tpu.vector_store %arg29[%c0_123, %c4480], %171 {strides = array<i32>} : memref<2x6272xf32, #tpu.memory_space<vmem>>, vector<2x128xf32>,
    %c72 = arith.constant 72 : index
    %c0_124 = arith.constant 0 : index
    %173 = vector.load %arg28[%c72, %c0_124] : memref<98x128xf32, #tpu.memory_space<vmem>>, vector<2x128xf32>
    %c0_125 = arith.constant 0 : index
    %c4608 = arith.constant 4608 : index
    %174 = vector.load %arg29[%c0_125, %c4608] : memref<2x6272xf32, #tpu.memory_space<vmem>>, vector<2x128xf32>
    tpu.vector_store %arg29[%c0_125, %c4608], %173 {strides = array<i32>} : memref<2x6272xf32, #tpu.memory_space<vmem>>, vector<2x128xf32>,
    %c74 = arith.constant 74 : index
    %c0_126 = arith.constant 0 : index
    %175 = vector.load %arg28[%c74, %c0_126] : memref<98x128xf32, #tpu.memory_space<vmem>>, vector<2x128xf32>
    %c0_127 = arith.constant 0 : index
    %c4736 = arith.constant 4736 : index
    %176 = vector.load %arg29[%c0_127, %c4736] : memref<2x6272xf32, #tpu.memory_space<vmem>>, vector<2x128xf32>
    tpu.vector_store %arg29[%c0_127, %c4736], %175 {strides = array<i32>} : memref<2x6272xf32, #tpu.memory_space<vmem>>, vector<2x128xf32>,
    %c76 = arith.constant 76 : index
    %c0_128 = arith.constant 0 : index
    %177 = vector.load %arg28[%c76, %c0_128] : memref<98x128xf32, #tpu.memory_space<vmem>>, vector<2x128xf32>
    %c0_129 = arith.constant 0 : index
    %c4864 = arith.constant 4864 : index
    %178 = vector.load %arg29[%c0_129, %c4864] : memref<2x6272xf32, #tpu.memory_space<vmem>>, vector<2x128xf32>
    tpu.vector_store %arg29[%c0_129, %c4864], %177 {strides = array<i32>} : memref<2x6272xf32, #tpu.memory_space<vmem>>, vector<2x128xf32>,
    %c78 = arith.constant 78 : index
    %c0_130 = arith.constant 0 : index
    %179 = vector.load %arg28[%c78, %c0_130] : memref<98x128xf32, #tpu.memory_space<vmem>>, vector<2x128xf32>
    %c0_131 = arith.constant 0 : index
    %c4992 = arith.constant 4992 : index
    %180 = vector.load %arg29[%c0_131, %c4992] : memref<2x6272xf32, #tpu.memory_space<vmem>>, vector<2x128xf32>
    tpu.vector_store %arg29[%c0_131, %c4992], %179 {strides = array<i32>} : memref<2x6272xf32, #tpu.memory_space<vmem>>, vector<2x128xf32>,
    %c80 = arith.constant 80 : index
    %c0_132 = arith.constant 0 : index
    %181 = vector.load %arg28[%c80, %c0_132] : memref<98x128xf32, #tpu.memory_space<vmem>>, vector<2x128xf32>
    %c0_133 = arith.constant 0 : index
    %c5120 = arith.constant 5120 : index
    %182 = vector.load %arg29[%c0_133, %c5120] : memref<2x6272xf32, #tpu.memory_space<vmem>>, vector<2x128xf32>
    tpu.vector_store %arg29[%c0_133, %c5120], %181 {strides = array<i32>} : memref<2x6272xf32, #tpu.memory_space<vmem>>, vector<2x128xf32>,
    %c82 = arith.constant 82 : index
    %c0_134 = arith.constant 0 : index
    %183 = vector.load %arg28[%c82, %c0_134] : memref<98x128xf32, #tpu.memory_space<vmem>>, vector<2x128xf32>
    %c0_135 = arith.constant 0 : index
    %c5248 = arith.constant 5248 : index
    %184 = vector.load %arg29[%c0_135, %c5248] : memref<2x6272xf32, #tpu.memory_space<vmem>>, vector<2x128xf32>
    tpu.vector_store %arg29[%c0_135, %c5248], %183 {strides = array<i32>} : memref<2x6272xf32, #tpu.memory_space<vmem>>, vector<2x128xf32>,
    %c84 = arith.constant 84 : index
    %c0_136 = arith.constant 0 : index
    %185 = vector.load %arg28[%c84, %c0_136] : memref<98x128xf32, #tpu.memory_space<vmem>>, vector<2x128xf32>
    %c0_137 = arith.constant 0 : index
    %c5376 = arith.constant 5376 : index
    %186 = vector.load %arg29[%c0_137, %c5376] : memref<2x6272xf32, #tpu.memory_space<vmem>>, vector<2x128xf32>
    tpu.vector_store %arg29[%c0_137, %c5376], %185 {strides = array<i32>} : memref<2x6272xf32, #tpu.memory_space<vmem>>, vector<2x128xf32>,
    %c86 = arith.constant 86 : index
    %c0_138 = arith.constant 0 : index
    %187 = vector.load %arg28[%c86, %c0_138] : memref<98x128xf32, #tpu.memory_space<vmem>>, vector<2x128xf32>
    %c0_139 = arith.constant 0 : index
    %c5504 = arith.constant 5504 : index
    %188 = vector.load %arg29[%c0_139, %c5504] : memref<2x6272xf32, #tpu.memory_space<vmem>>, vector<2x128xf32>
    tpu.vector_store %arg29[%c0_139, %c5504], %187 {strides = array<i32>} : memref<2x6272xf32, #tpu.memory_space<vmem>>, vector<2x128xf32>,
    %c88 = arith.constant 88 : index
    %c0_140 = arith.constant 0 : index
    %189 = vector.load %arg28[%c88, %c0_140] : memref<98x128xf32, #tpu.memory_space<vmem>>, vector<2x128xf32>
    %c0_141 = arith.constant 0 : index
    %c5632 = arith.constant 5632 : index
    %190 = vector.load %arg29[%c0_141, %c5632] : memref<2x6272xf32, #tpu.memory_space<vmem>>, vector<2x128xf32>
    tpu.vector_store %arg29[%c0_141, %c5632], %189 {strides = array<i32>} : memref<2x6272xf32, #tpu.memory_space<vmem>>, vector<2x128xf32>,
    %c90 = arith.constant 90 : index
    %c0_142 = arith.constant 0 : index
    %191 = vector.load %arg28[%c90, %c0_142] : memref<98x128xf32, #tpu.memory_space<vmem>>, vector<2x128xf32>
    %c0_143 = arith.constant 0 : index
    %c5760 = arith.constant 5760 : index
    %192 = vector.load %arg29[%c0_143, %c5760] : memref<2x6272xf32, #tpu.memory_space<vmem>>, vector<2x128xf32>
    tpu.vector_store %arg29[%c0_143, %c5760], %191 {strides = array<i32>} : memref<2x6272xf32, #tpu.memory_space<vmem>>, vector<2x128xf32>,
    %c92 = arith.constant 92 : index
    %c0_144 = arith.constant 0 : index
    %193 = vector.load %arg28[%c92, %c0_144] : memref<98x128xf32, #tpu.memory_space<vmem>>, vector<2x128xf32>
    %c0_145 = arith.constant 0 : index
    %c5888 = arith.constant 5888 : index
    %194 = vector.load %arg29[%c0_145, %c5888] : memref<2x6272xf32, #tpu.memory_space<vmem>>, vector<2x128xf32>
    tpu.vector_store %arg29[%c0_145, %c5888], %193 {strides = array<i32>} : memref<2x6272xf32, #tpu.memory_space<vmem>>, vector<2x128xf32>,
    %c94 = arith.constant 94 : index
    %c0_146 = arith.constant 0 : index
    %195 = vector.load %arg28[%c94, %c0_146] : memref<98x128xf32, #tpu.memory_space<vmem>>, vector<2x128xf32>
    %c0_147 = arith.constant 0 : index
    %c6016 = arith.constant 6016 : index
    %196 = vector.load %arg29[%c0_147, %c6016] : memref<2x6272xf32, #tpu.memory_space<vmem>>, vector<2x128xf32>
    tpu.vector_store %arg29[%c0_147, %c6016], %195 {strides = array<i32>} : memref<2x6272xf32, #tpu.memory_space<vmem>>, vector<2x128xf32>,
    %c96 = arith.constant 96 : index
    %c0_148 = arith.constant 0 : index
    %197 = vector.load %arg28[%c96, %c0_148] : memref<98x128xf32, #tpu.memory_space<vmem>>, vector<2x128xf32>
    %c0_149 = arith.constant 0 : index
    %c6144 = arith.constant 6144 : index
    %198 = vector.load %arg29[%c0_149, %c6144] : memref<2x6272xf32, #tpu.memory_space<vmem>>, vector<2x128xf32>
    tpu.vector_store %arg29[%c0_149, %c6144], %197 {strides = array<i32>} : memref<2x6272xf32, #tpu.memory_space<vmem>>, vector<2x128xf32>,
    %c0_i32_150 = arith.constant 0 : i32
    %199 = tpu.memref_slice %arg33[%c0_i32_150] : memref<3x!tpu.dma_semaphore, #tpu.memory_space<semaphore_mem>> -> memref<1x!tpu.dma_semaphore, #tpu.memory_space<semaphore_mem>>
    %200 = tpu.memref_squeeze %199 : memref<1x!tpu.dma_semaphore, #tpu.memory_space<semaphore_mem>> -> memref<!tpu.dma_semaphore, #tpu.memory_space<semaphore_mem>>
    tpu.wait_dma2 semaphore(%200 : memref<!tpu.dma_semaphore, #tpu.memory_space<semaphore_mem>>) src(%arg13 : memref<6272x64xbf16, #tpu.memory_space<any>>) dst(%arg30 : memref<6272x64xbf16, #tpu.memory_space<vmem>>)
    %c1_i32_151 = arith.constant 1 : i32
    %201 = tpu.memref_slice %arg33[%c1_i32_151] : memref<3x!tpu.dma_semaphore, #tpu.memory_space<semaphore_mem>> -> memref<1x!tpu.dma_semaphore, #tpu.memory_space<semaphore_mem>>
    %202 = tpu.memref_squeeze %201 : memref<1x!tpu.dma_semaphore, #tpu.memory_space<semaphore_mem>> -> memref<!tpu.dma_semaphore, #tpu.memory_space<semaphore_mem>>
    tpu.wait_dma2 semaphore(%202 : memref<!tpu.dma_semaphore, #tpu.memory_space<semaphore_mem>>) src(%arg17 : memref<4x64x256xbf16, #tpu.memory_space<any>>) dst(%arg31 : memref<4x64x256xbf16, #tpu.memory_space<vmem>>)
    %c2_i32_152 = arith.constant 2 : i32
    %203 = tpu.memref_slice %arg33[%c2_i32_152] : memref<3x!tpu.dma_semaphore, #tpu.memory_space<semaphore_mem>> -> memref<1x!tpu.dma_semaphore, #tpu.memory_space<semaphore_mem>>
    %204 = tpu.memref_squeeze %203 : memref<1x!tpu.dma_semaphore, #tpu.memory_space<semaphore_mem>> -> memref<!tpu.dma_semaphore, #tpu.memory_space<semaphore_mem>>
    tpu.wait_dma2 semaphore(%204 : memref<!tpu.dma_semaphore, #tpu.memory_space<semaphore_mem>>) src(%arg21 : memref<4x128x64xbf16, #tpu.memory_space<any>>) dst(%arg32 : memref<4x128x64xbf16, #tpu.memory_space<vmem>>)
    %c0_153 = arith.constant 0 : index
    %c0_154 = arith.constant 0 : index
    %205 = vector.load %arg29[%c0_153, %c0_154] : memref<2x6272xf32, #tpu.memory_space<vmem>>, vector<2x6272xf32>
    %206 = arith.truncf %205 : vector<2x6272xf32> to vector<2x6272xbf16>
    %c0_155 = arith.constant 0 : index
    %c0_156 = arith.constant 0 : index
    %207 = vector.load %arg30[%c0_155, %c0_156] : memref<6272x64xbf16, #tpu.memory_space<vmem>>, vector<6272x64xbf16>
    %cst_157 = arith.constant dense<0.000000e+00> : vector<2x64xf32>
    %208 = tpu.matmul %206, %207, %cst_157 {dimension_numbers = #tpu.dot_dimension_numbers<[1], [0], [0], [1], [0, 0, 1, 1], [], []>} : vector<2x6272xbf16>, vector<6272x64xbf16>, vector<2x64xf32> -> vector<2x64xf32>
    %c0_158 = arith.constant 0 : index
    %c0_159 = arith.constant 0 : index
    %209 = vector.load %arg14[%c0_158, %c0_159] : memref<1x64xf32, #tpu.memory_space<vmem>>, vector<1x64xf32>
    %210 = vector.broadcast %209 : vector<1x64xf32> to vector<2x64xf32>
    %211 = arith.addf %208, %210 : vector<2x64xf32>
    %c0_160 = arith.constant 0 : index
    %c0_161 = arith.constant 0 : index
    %c0_162 = arith.constant 0 : index
    %212 = vector.load %arg15[%c0_160, %c0_161, %c0_162] : memref<4x1x64xf32, #tpu.memory_space<vmem>>, vector<1x1x64xf32>
    %213 = vector.shape_cast %212 : vector<1x1x64xf32> to vector<1x64xf32>
    %c0_163 = arith.constant 0 : index
    %c0_164 = arith.constant 0 : index
    %c0_165 = arith.constant 0 : index
    %214 = vector.load %arg16[%c0_163, %c0_164, %c0_165] : memref<4x1x64xf32, #tpu.memory_space<vmem>>, vector<1x1x64xf32>
    %215 = vector.shape_cast %214 : vector<1x1x64xf32> to vector<1x64xf32>
    %cst_166 = arith.constant dense<0.000000e+00> : vector<2xf32>
    %216 = vector.multi_reduction <add>, %211, %cst_166 [1] : vector<2x64xf32> to vector<2xf32>
    %217 = vector.shape_cast %216 : vector<2xf32> to vector<2x1xf32>
    %cst_167 = arith.constant 6.400000e+01 : f32
    %218 = vector.broadcast %cst_167 : f32 to vector<2x1xf32>
    %219 = arith.divf %217, %218 : vector<2x1xf32>
    %220 = vector.broadcast %219 : vector<2x1xf32> to vector<2x64xf32>
    %221 = arith.subf %211, %220 : vector<2x64xf32>
    %222 = arith.mulf %221, %221 : vector<2x64xf32>
    %cst_168 = arith.constant dense<0.000000e+00> : vector<2xf32>
    %223 = vector.multi_reduction <add>, %222, %cst_168 [1] : vector<2x64xf32> to vector<2xf32>
    %224 = vector.shape_cast %223 : vector<2xf32> to vector<2x1xf32>
    %cst_169 = arith.constant 6.400000e+01 : f32
    %225 = vector.broadcast %cst_169 : f32 to vector<2x1xf32>
    %226 = arith.divf %224, %225 : vector<2x1xf32>
    %227 = vector.broadcast %219 : vector<2x1xf32> to vector<2x64xf32>
    %228 = arith.subf %211, %227 : vector<2x64xf32>
    %cst_170 = arith.constant 9.99999974E-6 : f32
    %229 = vector.broadcast %cst_170 : f32 to vector<2x1xf32>
    %230 = arith.addf %226, %229 : vector<2x1xf32>
    %231 = math.rsqrt %230 : vector<2x1xf32>
    %232 = vector.broadcast %231 : vector<2x1xf32> to vector<2x64xf32>
    %233 = arith.mulf %228, %232 : vector<2x64xf32>
    %234 = vector.broadcast %213 : vector<1x64xf32> to vector<2x64xf32>
    %235 = arith.mulf %233, %234 : vector<2x64xf32>
    %236 = vector.broadcast %215 : vector<1x64xf32> to vector<2x64xf32>
    %237 = arith.addf %235, %236 : vector<2x64xf32>
    %238 = arith.truncf %237 : vector<2x64xf32> to vector<2x64xbf16>
    %c0_171 = arith.constant 0 : index
    %c0_172 = arith.constant 0 : index
    %c0_173 = arith.constant 0 : index
    %239 = vector.load %arg31[%c0_171, %c0_172, %c0_173] : memref<4x64x256xbf16, #tpu.memory_space<vmem>>, vector<1x64x256xbf16>
    %240 = vector.shape_cast %239 : vector<1x64x256xbf16> to vector<64x256xbf16>
    %cst_174 = arith.constant dense<0.000000e+00> : vector<2x256xf32>
    %241 = tpu.matmul %238, %240, %cst_174 {dimension_numbers = #tpu.dot_dimension_numbers<[1], [0], [0], [1], [0, 0, 1, 1], [], []>} : vector<2x64xbf16>, vector<64x256xbf16>, vector<2x256xf32> -> vector<2x256xf32>
    %c0_175 = arith.constant 0 : index
    %c0_176 = arith.constant 0 : index
    %c0_177 = arith.constant 0 : index
    %242 = vector.load %arg18[%c0_175, %c0_176, %c0_177] : memref<4x1x256xf32, #tpu.memory_space<vmem>>, vector<1x1x256xf32>
    %243 = vector.shape_cast %242 : vector<1x1x256xf32> to vector<1x256xf32>
    %244 = vector.broadcast %243 : vector<1x256xf32> to vector<2x256xf32>
    %245 = arith.addf %241, %244 : vector<2x256xf32>
    %246 = arith.mulf %245, %245 : vector<2x256xf32>
    %247 = arith.mulf %245, %246 : vector<2x256xf32>
    %cst_178 = arith.constant 4.471500e-02 : f32
    %248 = vector.broadcast %cst_178 : f32 to vector<2x256xf32>
    %249 = arith.mulf %248, %247 : vector<2x256xf32>
    %250 = arith.addf %245, %249 : vector<2x256xf32>
    %cst_179 = arith.constant 0.797884583 : f32
    %251 = vector.broadcast %cst_179 : f32 to vector<2x256xf32>
    %252 = arith.mulf %251, %250 : vector<2x256xf32>
    %253 = math.tanh %252 : vector<2x256xf32>
    %cst_180 = arith.constant 1.000000e+00 : f32
    %254 = vector.broadcast %cst_180 : f32 to vector<2x256xf32>
    %255 = arith.addf %254, %253 : vector<2x256xf32>
    %cst_181 = arith.constant 5.000000e-01 : f32
    %256 = vector.broadcast %cst_181 : f32 to vector<2x256xf32>
    %257 = arith.mulf %256, %255 : vector<2x256xf32>
    %258 = arith.mulf %245, %257 : vector<2x256xf32>
    %259 = vector.extract_strided_slice %258 {offsets = [0, 0], sizes = [2, 128], strides = [1, 1]} : vector<2x256xf32> to vector<2x128xf32>
    %260 = vector.extract_strided_slice %258 {offsets = [0, 128], sizes = [2, 128], strides = [1, 1]} : vector<2x256xf32> to vector<2x128xf32>
    %c0_182 = arith.constant 0 : index
    %c0_183 = arith.constant 0 : index
    %c0_184 = arith.constant 0 : index
    %261 = vector.load %arg19[%c0_182, %c0_183, %c0_184] : memref<4x1x128xf32, #tpu.memory_space<vmem>>, vector<1x1x128xf32>
    %262 = vector.shape_cast %261 : vector<1x1x128xf32> to vector<1x128xf32>
    %c0_185 = arith.constant 0 : index
    %c0_186 = arith.constant 0 : index
    %c0_187 = arith.constant 0 : index
    %263 = vector.load %arg20[%c0_185, %c0_186, %c0_187] : memref<4x1x128xf32, #tpu.memory_space<vmem>>, vector<1x1x128xf32>
    %264 = vector.shape_cast %263 : vector<1x1x128xf32> to vector<1x128xf32>
    %cst_188 = arith.constant dense<0.000000e+00> : vector<2xf32>
    %265 = vector.multi_reduction <add>, %260, %cst_188 [1] : vector<2x128xf32> to vector<2xf32>
    %266 = vector.shape_cast %265 : vector<2xf32> to vector<2x1xf32>
    %cst_189 = arith.constant 1.280000e+02 : f32
    %267 = vector.broadcast %cst_189 : f32 to vector<2x1xf32>
    %268 = arith.divf %266, %267 : vector<2x1xf32>
    %269 = vector.broadcast %268 : vector<2x1xf32> to vector<2x128xf32>
    %270 = arith.subf %260, %269 : vector<2x128xf32>
    %271 = arith.mulf %270, %270 : vector<2x128xf32>
    %cst_190 = arith.constant dense<0.000000e+00> : vector<2xf32>
    %272 = vector.multi_reduction <add>, %271, %cst_190 [1] : vector<2x128xf32> to vector<2xf32>
    %273 = vector.shape_cast %272 : vector<2xf32> to vector<2x1xf32>
    %cst_191 = arith.constant 1.280000e+02 : f32
    %274 = vector.broadcast %cst_191 : f32 to vector<2x1xf32>
    %275 = arith.divf %273, %274 : vector<2x1xf32>
    %276 = vector.broadcast %268 : vector<2x1xf32> to vector<2x128xf32>
    %277 = arith.subf %260, %276 : vector<2x128xf32>
    %cst_192 = arith.constant 9.99999974E-6 : f32
    %278 = vector.broadcast %cst_192 : f32 to vector<2x1xf32>
    %279 = arith.addf %275, %278 : vector<2x1xf32>
    %280 = math.rsqrt %279 : vector<2x1xf32>
    %281 = vector.broadcast %280 : vector<2x1xf32> to vector<2x128xf32>
    %282 = arith.mulf %277, %281 : vector<2x128xf32>
    %283 = vector.broadcast %262 : vector<1x128xf32> to vector<2x128xf32>
    %284 = arith.mulf %282, %283 : vector<2x128xf32>
    %285 = vector.broadcast %264 : vector<1x128xf32> to vector<2x128xf32>
    %286 = arith.addf %284, %285 : vector<2x128xf32>
    %287 = arith.mulf %286, %259 : vector<2x128xf32>
    %288 = arith.truncf %287 : vector<2x128xf32> to vector<2x128xbf16>
    %c0_193 = arith.constant 0 : index
    %c0_194 = arith.constant 0 : index
    %c0_195 = arith.constant 0 : index
    %289 = vector.load %arg32[%c0_193, %c0_194, %c0_195] : memref<4x128x64xbf16, #tpu.memory_space<vmem>>, vector<1x128x64xbf16>
    %290 = vector.shape_cast %289 : vector<1x128x64xbf16> to vector<128x64xbf16>
    %cst_196 = arith.constant dense<0.000000e+00> : vector<2x64xf32>
    %291 = tpu.matmul %288, %290, %cst_196 {dimension_numbers = #tpu.dot_dimension_numbers<[1], [0], [0], [1], [0, 0, 1, 1], [], []>} : vector<2x128xbf16>, vector<128x64xbf16>, vector<2x64xf32> -> vector<2x64xf32>
    %c0_197 = arith.constant 0 : index
    %c0_198 = arith.constant 0 : index
    %c0_199 = arith.constant 0 : index
    %292 = vector.load %arg22[%c0_197, %c0_198, %c0_199] : memref<4x1x64xf32, #tpu.memory_space<vmem>>, vector<1x1x64xf32>
    %293 = vector.shape_cast %292 : vector<1x1x64xf32> to vector<1x64xf32>
    %294 = vector.broadcast %293 : vector<1x64xf32> to vector<2x64xf32>
    %295 = arith.addf %291, %294 : vector<2x64xf32>
    %296 = arith.addf %211, %295 : vector<2x64xf32>
    %c1 = arith.constant 1 : index
    %c0_200 = arith.constant 0 : index
    %c0_201 = arith.constant 0 : index
    %297 = vector.load %arg15[%c1, %c0_200, %c0_201] : memref<4x1x64xf32, #tpu.memory_space<vmem>>, vector<1x1x64xf32>
    %298 = vector.shape_cast %297 : vector<1x1x64xf32> to vector<1x64xf32>
    %c1_202 = arith.constant 1 : index
    %c0_203 = arith.constant 0 : index
    %c0_204 = arith.constant 0 : index
    %299 = vector.load %arg16[%c1_202, %c0_203, %c0_204] : memref<4x1x64xf32, #tpu.memory_space<vmem>>, vector<1x1x64xf32>
    %300 = vector.shape_cast %299 : vector<1x1x64xf32> to vector<1x64xf32>
    %cst_205 = arith.constant dense<0.000000e+00> : vector<2xf32>
    %301 = vector.multi_reduction <add>, %296, %cst_205 [1] : vector<2x64xf32> to vector<2xf32>
    %302 = vector.shape_cast %301 : vector<2xf32> to vector<2x1xf32>
    %cst_206 = arith.constant 6.400000e+01 : f32
    %303 = vector.broadcast %cst_206 : f32 to vector<2x1xf32>
    %304 = arith.divf %302, %303 : vector<2x1xf32>
    %305 = vector.broadcast %304 : vector<2x1xf32> to vector<2x64xf32>
    %306 = arith.subf %296, %305 : vector<2x64xf32>
    %307 = arith.mulf %306, %306 : vector<2x64xf32>
    %cst_207 = arith.constant dense<0.000000e+00> : vector<2xf32>
    %308 = vector.multi_reduction <add>, %307, %cst_207 [1] : vector<2x64xf32> to vector<2xf32>
    %309 = vector.shape_cast %308 : vector<2xf32> to vector<2x1xf32>
    %cst_208 = arith.constant 6.400000e+01 : f32
    %310 = vector.broadcast %cst_208 : f32 to vector<2x1xf32>
    %311 = arith.divf %309, %310 : vector<2x1xf32>
    %312 = vector.broadcast %304 : vector<2x1xf32> to vector<2x64xf32>
    %313 = arith.subf %296, %312 : vector<2x64xf32>
    %cst_209 = arith.constant 9.99999974E-6 : f32
    %314 = vector.broadcast %cst_209 : f32 to vector<2x1xf32>
    %315 = arith.addf %311, %314 : vector<2x1xf32>
    %316 = math.rsqrt %315 : vector<2x1xf32>
    %317 = vector.broadcast %316 : vector<2x1xf32> to vector<2x64xf32>
    %318 = arith.mulf %313, %317 : vector<2x64xf32>
    %319 = vector.broadcast %298 : vector<1x64xf32> to vector<2x64xf32>
    %320 = arith.mulf %318, %319 : vector<2x64xf32>
    %321 = vector.broadcast %300 : vector<1x64xf32> to vector<2x64xf32>
    %322 = arith.addf %320, %321 : vector<2x64xf32>
    %323 = arith.truncf %322 : vector<2x64xf32> to vector<2x64xbf16>
    %c1_210 = arith.constant 1 : index
    %c0_211 = arith.constant 0 : index
    %c0_212 = arith.constant 0 : index
    %324 = vector.load %arg31[%c1_210, %c0_211, %c0_212] : memref<4x64x256xbf16, #tpu.memory_space<vmem>>, vector<1x64x256xbf16>
    %325 = vector.shape_cast %324 : vector<1x64x256xbf16> to vector<64x256xbf16>
    %cst_213 = arith.constant dense<0.000000e+00> : vector<2x256xf32>
    %326 = tpu.matmul %323, %325, %cst_213 {dimension_numbers = #tpu.dot_dimension_numbers<[1], [0], [0], [1], [0, 0, 1, 1], [], []>} : vector<2x64xbf16>, vector<64x256xbf16>, vector<2x256xf32> -> vector<2x256xf32>
    %c1_214 = arith.constant 1 : index
    %c0_215 = arith.constant 0 : index
    %c0_216 = arith.constant 0 : index
    %327 = vector.load %arg18[%c1_214, %c0_215, %c0_216] : memref<4x1x256xf32, #tpu.memory_space<vmem>>, vector<1x1x256xf32>
    %328 = vector.shape_cast %327 : vector<1x1x256xf32> to vector<1x256xf32>
    %329 = vector.broadcast %328 : vector<1x256xf32> to vector<2x256xf32>
    %330 = arith.addf %326, %329 : vector<2x256xf32>
    %331 = arith.mulf %330, %330 : vector<2x256xf32>
    %332 = arith.mulf %330, %331 : vector<2x256xf32>
    %cst_217 = arith.constant 4.471500e-02 : f32
    %333 = vector.broadcast %cst_217 : f32 to vector<2x256xf32>
    %334 = arith.mulf %333, %332 : vector<2x256xf32>
    %335 = arith.addf %330, %334 : vector<2x256xf32>
    %cst_218 = arith.constant 0.797884583 : f32
    %336 = vector.broadcast %cst_218 : f32 to vector<2x256xf32>
    %337 = arith.mulf %336, %335 : vector<2x256xf32>
    %338 = math.tanh %337 : vector<2x256xf32>
    %cst_219 = arith.constant 1.000000e+00 : f32
    %339 = vector.broadcast %cst_219 : f32 to vector<2x256xf32>
    %340 = arith.addf %339, %338 : vector<2x256xf32>
    %cst_220 = arith.constant 5.000000e-01 : f32
    %341 = vector.broadcast %cst_220 : f32 to vector<2x256xf32>
    %342 = arith.mulf %341, %340 : vector<2x256xf32>
    %343 = arith.mulf %330, %342 : vector<2x256xf32>
    %344 = vector.extract_strided_slice %343 {offsets = [0, 0], sizes = [2, 128], strides = [1, 1]} : vector<2x256xf32> to vector<2x128xf32>
    %345 = vector.extract_strided_slice %343 {offsets = [0, 128], sizes = [2, 128], strides = [1, 1]} : vector<2x256xf32> to vector<2x128xf32>
    %c1_221 = arith.constant 1 : index
    %c0_222 = arith.constant 0 : index
    %c0_223 = arith.constant 0 : index
    %346 = vector.load %arg19[%c1_221, %c0_222, %c0_223] : memref<4x1x128xf32, #tpu.memory_space<vmem>>, vector<1x1x128xf32>
    %347 = vector.shape_cast %346 : vector<1x1x128xf32> to vector<1x128xf32>
    %c1_224 = arith.constant 1 : index
    %c0_225 = arith.constant 0 : index
    %c0_226 = arith.constant 0 : index
    %348 = vector.load %arg20[%c1_224, %c0_225, %c0_226] : memref<4x1x128xf32, #tpu.memory_space<vmem>>, vector<1x1x128xf32>
    %349 = vector.shape_cast %348 : vector<1x1x128xf32> to vector<1x128xf32>
    %cst_227 = arith.constant dense<0.000000e+00> : vector<2xf32>
    %350 = vector.multi_reduction <add>, %345, %cst_227 [1] : vector<2x128xf32> to vector<2xf32>
    %351 = vector.shape_cast %350 : vector<2xf32> to vector<2x1xf32>
    %cst_228 = arith.constant 1.280000e+02 : f32
    %352 = vector.broadcast %cst_228 : f32 to vector<2x1xf32>
    %353 = arith.divf %351, %352 : vector<2x1xf32>
    %354 = vector.broadcast %353 : vector<2x1xf32> to vector<2x128xf32>
    %355 = arith.subf %345, %354 : vector<2x128xf32>
    %356 = arith.mulf %355, %355 : vector<2x128xf32>
    %cst_229 = arith.constant dense<0.000000e+00> : vector<2xf32>
    %357 = vector.multi_reduction <add>, %356, %cst_229 [1] : vector<2x128xf32> to vector<2xf32>
    %358 = vector.shape_cast %357 : vector<2xf32> to vector<2x1xf32>
    %cst_230 = arith.constant 1.280000e+02 : f32
    %359 = vector.broadcast %cst_230 : f32 to vector<2x1xf32>
    %360 = arith.divf %358, %359 : vector<2x1xf32>
    %361 = vector.broadcast %353 : vector<2x1xf32> to vector<2x128xf32>
    %362 = arith.subf %345, %361 : vector<2x128xf32>
    %cst_231 = arith.constant 9.99999974E-6 : f32
    %363 = vector.broadcast %cst_231 : f32 to vector<2x1xf32>
    %364 = arith.addf %360, %363 : vector<2x1xf32>
    %365 = math.rsqrt %364 : vector<2x1xf32>
    %366 = vector.broadcast %365 : vector<2x1xf32> to vector<2x128xf32>
    %367 = arith.mulf %362, %366 : vector<2x128xf32>
    %368 = vector.broadcast %347 : vector<1x128xf32> to vector<2x128xf32>
    %369 = arith.mulf %367, %368 : vector<2x128xf32>
    %370 = vector.broadcast %349 : vector<1x128xf32> to vector<2x128xf32>
    %371 = arith.addf %369, %370 : vector<2x128xf32>
    %372 = arith.mulf %371, %344 : vector<2x128xf32>
    %373 = arith.truncf %372 : vector<2x128xf32> to vector<2x128xbf16>
    %c1_232 = arith.constant 1 : index
    %c0_233 = arith.constant 0 : index
    %c0_234 = arith.constant 0 : index
    %374 = vector.load %arg32[%c1_232, %c0_233, %c0_234] : memref<4x128x64xbf16, #tpu.memory_space<vmem>>, vector<1x128x64xbf16>
    %375 = vector.shape_cast %374 : vector<1x128x64xbf16> to vector<128x64xbf16>
    %cst_235 = arith.constant dense<0.000000e+00> : vector<2x64xf32>
    %376 = tpu.matmul %373, %375, %cst_235 {dimension_numbers = #tpu.dot_dimension_numbers<[1], [0], [0], [1], [0, 0, 1, 1], [], []>} : vector<2x128xbf16>, vector<128x64xbf16>, vector<2x64xf32> -> vector<2x64xf32>
    %c1_236 = arith.constant 1 : index
    %c0_237 = arith.constant 0 : index
    %c0_238 = arith.constant 0 : index
    %377 = vector.load %arg22[%c1_236, %c0_237, %c0_238] : memref<4x1x64xf32, #tpu.memory_space<vmem>>, vector<1x1x64xf32>
    %378 = vector.shape_cast %377 : vector<1x1x64xf32> to vector<1x64xf32>
    %379 = vector.broadcast %378 : vector<1x64xf32> to vector<2x64xf32>
    %380 = arith.addf %376, %379 : vector<2x64xf32>
    %381 = arith.addf %296, %380 : vector<2x64xf32>
    %c2_239 = arith.constant 2 : index
    %c0_240 = arith.constant 0 : index
    %c0_241 = arith.constant 0 : index
    %382 = vector.load %arg15[%c2_239, %c0_240, %c0_241] : memref<4x1x64xf32, #tpu.memory_space<vmem>>, vector<1x1x64xf32>
    %383 = vector.shape_cast %382 : vector<1x1x64xf32> to vector<1x64xf32>
    %c2_242 = arith.constant 2 : index
    %c0_243 = arith.constant 0 : index
    %c0_244 = arith.constant 0 : index
    %384 = vector.load %arg16[%c2_242, %c0_243, %c0_244] : memref<4x1x64xf32, #tpu.memory_space<vmem>>, vector<1x1x64xf32>
    %385 = vector.shape_cast %384 : vector<1x1x64xf32> to vector<1x64xf32>
    %cst_245 = arith.constant dense<0.000000e+00> : vector<2xf32>
    %386 = vector.multi_reduction <add>, %381, %cst_245 [1] : vector<2x64xf32> to vector<2xf32>
    %387 = vector.shape_cast %386 : vector<2xf32> to vector<2x1xf32>
    %cst_246 = arith.constant 6.400000e+01 : f32
    %388 = vector.broadcast %cst_246 : f32 to vector<2x1xf32>
    %389 = arith.divf %387, %388 : vector<2x1xf32>
    %390 = vector.broadcast %389 : vector<2x1xf32> to vector<2x64xf32>
    %391 = arith.subf %381, %390 : vector<2x64xf32>
    %392 = arith.mulf %391, %391 : vector<2x64xf32>
    %cst_247 = arith.constant dense<0.000000e+00> : vector<2xf32>
    %393 = vector.multi_reduction <add>, %392, %cst_247 [1] : vector<2x64xf32> to vector<2xf32>
    %394 = vector.shape_cast %393 : vector<2xf32> to vector<2x1xf32>
    %cst_248 = arith.constant 6.400000e+01 : f32
    %395 = vector.broadcast %cst_248 : f32 to vector<2x1xf32>
    %396 = arith.divf %394, %395 : vector<2x1xf32>
    %397 = vector.broadcast %389 : vector<2x1xf32> to vector<2x64xf32>
    %398 = arith.subf %381, %397 : vector<2x64xf32>
    %cst_249 = arith.constant 9.99999974E-6 : f32
    %399 = vector.broadcast %cst_249 : f32 to vector<2x1xf32>
    %400 = arith.addf %396, %399 : vector<2x1xf32>
    %401 = math.rsqrt %400 : vector<2x1xf32>
    %402 = vector.broadcast %401 : vector<2x1xf32> to vector<2x64xf32>
    %403 = arith.mulf %398, %402 : vector<2x64xf32>
    %404 = vector.broadcast %383 : vector<1x64xf32> to vector<2x64xf32>
    %405 = arith.mulf %403, %404 : vector<2x64xf32>
    %406 = vector.broadcast %385 : vector<1x64xf32> to vector<2x64xf32>
    %407 = arith.addf %405, %406 : vector<2x64xf32>
    %408 = arith.truncf %407 : vector<2x64xf32> to vector<2x64xbf16>
    %c2_250 = arith.constant 2 : index
    %c0_251 = arith.constant 0 : index
    %c0_252 = arith.constant 0 : index
    %409 = vector.load %arg31[%c2_250, %c0_251, %c0_252] : memref<4x64x256xbf16, #tpu.memory_space<vmem>>, vector<1x64x256xbf16>
    %410 = vector.shape_cast %409 : vector<1x64x256xbf16> to vector<64x256xbf16>
    %cst_253 = arith.constant dense<0.000000e+00> : vector<2x256xf32>
    %411 = tpu.matmul %408, %410, %cst_253 {dimension_numbers = #tpu.dot_dimension_numbers<[1], [0], [0], [1], [0, 0, 1, 1], [], []>} : vector<2x64xbf16>, vector<64x256xbf16>, vector<2x256xf32> -> vector<2x256xf32>
    %c2_254 = arith.constant 2 : index
    %c0_255 = arith.constant 0 : index
    %c0_256 = arith.constant 0 : index
    %412 = vector.load %arg18[%c2_254, %c0_255, %c0_256] : memref<4x1x256xf32, #tpu.memory_space<vmem>>, vector<1x1x256xf32>
    %413 = vector.shape_cast %412 : vector<1x1x256xf32> to vector<1x256xf32>
    %414 = vector.broadcast %413 : vector<1x256xf32> to vector<2x256xf32>
    %415 = arith.addf %411, %414 : vector<2x256xf32>
    %416 = arith.mulf %415, %415 : vector<2x256xf32>
    %417 = arith.mulf %415, %416 : vector<2x256xf32>
    %cst_257 = arith.constant 4.471500e-02 : f32
    %418 = vector.broadcast %cst_257 : f32 to vector<2x256xf32>
    %419 = arith.mulf %418, %417 : vector<2x256xf32>
    %420 = arith.addf %415, %419 : vector<2x256xf32>
    %cst_258 = arith.constant 0.797884583 : f32
    %421 = vector.broadcast %cst_258 : f32 to vector<2x256xf32>
    %422 = arith.mulf %421, %420 : vector<2x256xf32>
    %423 = math.tanh %422 : vector<2x256xf32>
    %cst_259 = arith.constant 1.000000e+00 : f32
    %424 = vector.broadcast %cst_259 : f32 to vector<2x256xf32>
    %425 = arith.addf %424, %423 : vector<2x256xf32>
    %cst_260 = arith.constant 5.000000e-01 : f32
    %426 = vector.broadcast %cst_260 : f32 to vector<2x256xf32>
    %427 = arith.mulf %426, %425 : vector<2x256xf32>
    %428 = arith.mulf %415, %427 : vector<2x256xf32>
    %429 = vector.extract_strided_slice %428 {offsets = [0, 0], sizes = [2, 128], strides = [1, 1]} : vector<2x256xf32> to vector<2x128xf32>
    %430 = vector.extract_strided_slice %428 {offsets = [0, 128], sizes = [2, 128], strides = [1, 1]} : vector<2x256xf32> to vector<2x128xf32>
    %c2_261 = arith.constant 2 : index
    %c0_262 = arith.constant 0 : index
    %c0_263 = arith.constant 0 : index
    %431 = vector.load %arg19[%c2_261, %c0_262, %c0_263] : memref<4x1x128xf32, #tpu.memory_space<vmem>>, vector<1x1x128xf32>
    %432 = vector.shape_cast %431 : vector<1x1x128xf32> to vector<1x128xf32>
    %c2_264 = arith.constant 2 : index
    %c0_265 = arith.constant 0 : index
    %c0_266 = arith.constant 0 : index
    %433 = vector.load %arg20[%c2_264, %c0_265, %c0_266] : memref<4x1x128xf32, #tpu.memory_space<vmem>>, vector<1x1x128xf32>
    %434 = vector.shape_cast %433 : vector<1x1x128xf32> to vector<1x128xf32>
    %cst_267 = arith.constant dense<0.000000e+00> : vector<2xf32>
    %435 = vector.multi_reduction <add>, %430, %cst_267 [1] : vector<2x128xf32> to vector<2xf32>
    %436 = vector.shape_cast %435 : vector<2xf32> to vector<2x1xf32>
    %cst_268 = arith.constant 1.280000e+02 : f32
    %437 = vector.broadcast %cst_268 : f32 to vector<2x1xf32>
    %438 = arith.divf %436, %437 : vector<2x1xf32>
    %439 = vector.broadcast %438 : vector<2x1xf32> to vector<2x128xf32>
    %440 = arith.subf %430, %439 : vector<2x128xf32>
    %441 = arith.mulf %440, %440 : vector<2x128xf32>
    %cst_269 = arith.constant dense<0.000000e+00> : vector<2xf32>
    %442 = vector.multi_reduction <add>, %441, %cst_269 [1] : vector<2x128xf32> to vector<2xf32>
    %443 = vector.shape_cast %442 : vector<2xf32> to vector<2x1xf32>
    %cst_270 = arith.constant 1.280000e+02 : f32
    %444 = vector.broadcast %cst_270 : f32 to vector<2x1xf32>
    %445 = arith.divf %443, %444 : vector<2x1xf32>
    %446 = vector.broadcast %438 : vector<2x1xf32> to vector<2x128xf32>
    %447 = arith.subf %430, %446 : vector<2x128xf32>
    %cst_271 = arith.constant 9.99999974E-6 : f32
    %448 = vector.broadcast %cst_271 : f32 to vector<2x1xf32>
    %449 = arith.addf %445, %448 : vector<2x1xf32>
    %450 = math.rsqrt %449 : vector<2x1xf32>
    %451 = vector.broadcast %450 : vector<2x1xf32> to vector<2x128xf32>
    %452 = arith.mulf %447, %451 : vector<2x128xf32>
    %453 = vector.broadcast %432 : vector<1x128xf32> to vector<2x128xf32>
    %454 = arith.mulf %452, %453 : vector<2x128xf32>
    %455 = vector.broadcast %434 : vector<1x128xf32> to vector<2x128xf32>
    %456 = arith.addf %454, %455 : vector<2x128xf32>
    %457 = arith.mulf %456, %429 : vector<2x128xf32>
    %458 = arith.truncf %457 : vector<2x128xf32> to vector<2x128xbf16>
    %c2_272 = arith.constant 2 : index
    %c0_273 = arith.constant 0 : index
    %c0_274 = arith.constant 0 : index
    %459 = vector.load %arg32[%c2_272, %c0_273, %c0_274] : memref<4x128x64xbf16, #tpu.memory_space<vmem>>, vector<1x128x64xbf16>
    %460 = vector.shape_cast %459 : vector<1x128x64xbf16> to vector<128x64xbf16>
    %cst_275 = arith.constant dense<0.000000e+00> : vector<2x64xf32>
    %461 = tpu.matmul %458, %460, %cst_275 {dimension_numbers = #tpu.dot_dimension_numbers<[1], [0], [0], [1], [0, 0, 1, 1], [], []>} : vector<2x128xbf16>, vector<128x64xbf16>, vector<2x64xf32> -> vector<2x64xf32>
    %c2_276 = arith.constant 2 : index
    %c0_277 = arith.constant 0 : index
    %c0_278 = arith.constant 0 : index
    %462 = vector.load %arg22[%c2_276, %c0_277, %c0_278] : memref<4x1x64xf32, #tpu.memory_space<vmem>>, vector<1x1x64xf32>
    %463 = vector.shape_cast %462 : vector<1x1x64xf32> to vector<1x64xf32>
    %464 = vector.broadcast %463 : vector<1x64xf32> to vector<2x64xf32>
    %465 = arith.addf %461, %464 : vector<2x64xf32>
    %466 = arith.addf %381, %465 : vector<2x64xf32>
    %c3 = arith.constant 3 : index
    %c0_279 = arith.constant 0 : index
    %c0_280 = arith.constant 0 : index
    %467 = vector.load %arg15[%c3, %c0_279, %c0_280] : memref<4x1x64xf32, #tpu.memory_space<vmem>>, vector<1x1x64xf32>
    %468 = vector.shape_cast %467 : vector<1x1x64xf32> to vector<1x64xf32>
    %c3_281 = arith.constant 3 : index
    %c0_282 = arith.constant 0 : index
    %c0_283 = arith.constant 0 : index
    %469 = vector.load %arg16[%c3_281, %c0_282, %c0_283] : memref<4x1x64xf32, #tpu.memory_space<vmem>>, vector<1x1x64xf32>
    %470 = vector.shape_cast %469 : vector<1x1x64xf32> to vector<1x64xf32>
    %cst_284 = arith.constant dense<0.000000e+00> : vector<2xf32>
    %471 = vector.multi_reduction <add>, %466, %cst_284 [1] : vector<2x64xf32> to vector<2xf32>
    %472 = vector.shape_cast %471 : vector<2xf32> to vector<2x1xf32>
    %cst_285 = arith.constant 6.400000e+01 : f32
    %473 = vector.broadcast %cst_285 : f32 to vector<2x1xf32>
    %474 = arith.divf %472, %473 : vector<2x1xf32>
    %475 = vector.broadcast %474 : vector<2x1xf32> to vector<2x64xf32>
    %476 = arith.subf %466, %475 : vector<2x64xf32>
    %477 = arith.mulf %476, %476 : vector<2x64xf32>
    %cst_286 = arith.constant dense<0.000000e+00> : vector<2xf32>
    %478 = vector.multi_reduction <add>, %477, %cst_286 [1] : vector<2x64xf32> to vector<2xf32>
    %479 = vector.shape_cast %478 : vector<2xf32> to vector<2x1xf32>
    %cst_287 = arith.constant 6.400000e+01 : f32
    %480 = vector.broadcast %cst_287 : f32 to vector<2x1xf32>
    %481 = arith.divf %479, %480 : vector<2x1xf32>
    %482 = vector.broadcast %474 : vector<2x1xf32> to vector<2x64xf32>
    %483 = arith.subf %466, %482 : vector<2x64xf32>
    %cst_288 = arith.constant 9.99999974E-6 : f32
    %484 = vector.broadcast %cst_288 : f32 to vector<2x1xf32>
    %485 = arith.addf %481, %484 : vector<2x1xf32>
    %486 = math.rsqrt %485 : vector<2x1xf32>
    %487 = vector.broadcast %486 : vector<2x1xf32> to vector<2x64xf32>
    %488 = arith.mulf %483, %487 : vector<2x64xf32>
    %489 = vector.broadcast %468 : vector<1x64xf32> to vector<2x64xf32>
    %490 = arith.mulf %488, %489 : vector<2x64xf32>
    %491 = vector.broadcast %470 : vector<1x64xf32> to vector<2x64xf32>
    %492 = arith.addf %490, %491 : vector<2x64xf32>
    %493 = arith.truncf %492 : vector<2x64xf32> to vector<2x64xbf16>
    %c3_289 = arith.constant 3 : index
    %c0_290 = arith.constant 0 : index
    %c0_291 = arith.constant 0 : index
    %494 = vector.load %arg31[%c3_289, %c0_290, %c0_291] : memref<4x64x256xbf16, #tpu.memory_space<vmem>>, vector<1x64x256xbf16>
    %495 = vector.shape_cast %494 : vector<1x64x256xbf16> to vector<64x256xbf16>
    %cst_292 = arith.constant dense<0.000000e+00> : vector<2x256xf32>
    %496 = tpu.matmul %493, %495, %cst_292 {dimension_numbers = #tpu.dot_dimension_numbers<[1], [0], [0], [1], [0, 0, 1, 1], [], []>} : vector<2x64xbf16>, vector<64x256xbf16>, vector<2x256xf32> -> vector<2x256xf32>
    %c3_293 = arith.constant 3 : index
    %c0_294 = arith.constant 0 : index
    %c0_295 = arith.constant 0 : index
    %497 = vector.load %arg18[%c3_293, %c0_294, %c0_295] : memref<4x1x256xf32, #tpu.memory_space<vmem>>, vector<1x1x256xf32>
    %498 = vector.shape_cast %497 : vector<1x1x256xf32> to vector<1x256xf32>
    %499 = vector.broadcast %498 : vector<1x256xf32> to vector<2x256xf32>
    %500 = arith.addf %496, %499 : vector<2x256xf32>
    %501 = arith.mulf %500, %500 : vector<2x256xf32>
    %502 = arith.mulf %500, %501 : vector<2x256xf32>
    %cst_296 = arith.constant 4.471500e-02 : f32
    %503 = vector.broadcast %cst_296 : f32 to vector<2x256xf32>
    %504 = arith.mulf %503, %502 : vector<2x256xf32>
    %505 = arith.addf %500, %504 : vector<2x256xf32>
    %cst_297 = arith.constant 0.797884583 : f32
    %506 = vector.broadcast %cst_297 : f32 to vector<2x256xf32>
    %507 = arith.mulf %506, %505 : vector<2x256xf32>
    %508 = math.tanh %507 : vector<2x256xf32>
    %cst_298 = arith.constant 1.000000e+00 : f32
    %509 = vector.broadcast %cst_298 : f32 to vector<2x256xf32>
    %510 = arith.addf %509, %508 : vector<2x256xf32>
    %cst_299 = arith.constant 5.000000e-01 : f32
    %511 = vector.broadcast %cst_299 : f32 to vector<2x256xf32>
    %512 = arith.mulf %511, %510 : vector<2x256xf32>
    %513 = arith.mulf %500, %512 : vector<2x256xf32>
    %514 = vector.extract_strided_slice %513 {offsets = [0, 0], sizes = [2, 128], strides = [1, 1]} : vector<2x256xf32> to vector<2x128xf32>
    %515 = vector.extract_strided_slice %513 {offsets = [0, 128], sizes = [2, 128], strides = [1, 1]} : vector<2x256xf32> to vector<2x128xf32>
    %c3_300 = arith.constant 3 : index
    %c0_301 = arith.constant 0 : index
    %c0_302 = arith.constant 0 : index
    %516 = vector.load %arg19[%c3_300, %c0_301, %c0_302] : memref<4x1x128xf32, #tpu.memory_space<vmem>>, vector<1x1x128xf32>
    %517 = vector.shape_cast %516 : vector<1x1x128xf32> to vector<1x128xf32>
    %c3_303 = arith.constant 3 : index
    %c0_304 = arith.constant 0 : index
    %c0_305 = arith.constant 0 : index
    %518 = vector.load %arg20[%c3_303, %c0_304, %c0_305] : memref<4x1x128xf32, #tpu.memory_space<vmem>>, vector<1x1x128xf32>
    %519 = vector.shape_cast %518 : vector<1x1x128xf32> to vector<1x128xf32>
    %cst_306 = arith.constant dense<0.000000e+00> : vector<2xf32>
    %520 = vector.multi_reduction <add>, %515, %cst_306 [1] : vector<2x128xf32> to vector<2xf32>
    %521 = vector.shape_cast %520 : vector<2xf32> to vector<2x1xf32>
    %cst_307 = arith.constant 1.280000e+02 : f32
    %522 = vector.broadcast %cst_307 : f32 to vector<2x1xf32>
    %523 = arith.divf %521, %522 : vector<2x1xf32>
    %524 = vector.broadcast %523 : vector<2x1xf32> to vector<2x128xf32>
    %525 = arith.subf %515, %524 : vector<2x128xf32>
    %526 = arith.mulf %525, %525 : vector<2x128xf32>
    %cst_308 = arith.constant dense<0.000000e+00> : vector<2xf32>
    %527 = vector.multi_reduction <add>, %526, %cst_308 [1] : vector<2x128xf32> to vector<2xf32>
    %528 = vector.shape_cast %527 : vector<2xf32> to vector<2x1xf32>
    %cst_309 = arith.constant 1.280000e+02 : f32
    %529 = vector.broadcast %cst_309 : f32 to vector<2x1xf32>
    %530 = arith.divf %528, %529 : vector<2x1xf32>
    %531 = vector.broadcast %523 : vector<2x1xf32> to vector<2x128xf32>
    %532 = arith.subf %515, %531 : vector<2x128xf32>
    %cst_310 = arith.constant 9.99999974E-6 : f32
    %533 = vector.broadcast %cst_310 : f32 to vector<2x1xf32>
    %534 = arith.addf %530, %533 : vector<2x1xf32>
    %535 = math.rsqrt %534 : vector<2x1xf32>
    %536 = vector.broadcast %535 : vector<2x1xf32> to vector<2x128xf32>
    %537 = arith.mulf %532, %536 : vector<2x128xf32>
    %538 = vector.broadcast %517 : vector<1x128xf32> to vector<2x128xf32>
    %539 = arith.mulf %537, %538 : vector<2x128xf32>
    %540 = vector.broadcast %519 : vector<1x128xf32> to vector<2x128xf32>
    %541 = arith.addf %539, %540 : vector<2x128xf32>
    %542 = arith.mulf %541, %514 : vector<2x128xf32>
    %543 = arith.truncf %542 : vector<2x128xf32> to vector<2x128xbf16>
    %c3_311 = arith.constant 3 : index
    %c0_312 = arith.constant 0 : index
    %c0_313 = arith.constant 0 : index
    %544 = vector.load %arg32[%c3_311, %c0_312, %c0_313] : memref<4x128x64xbf16, #tpu.memory_space<vmem>>, vector<1x128x64xbf16>
    %545 = vector.shape_cast %544 : vector<1x128x64xbf16> to vector<128x64xbf16>
    %cst_314 = arith.constant dense<0.000000e+00> : vector<2x64xf32>
    %546 = tpu.matmul %543, %545, %cst_314 {dimension_numbers = #tpu.dot_dimension_numbers<[1], [0], [0], [1], [0, 0, 1, 1], [], []>} : vector<2x128xbf16>, vector<128x64xbf16>, vector<2x64xf32> -> vector<2x64xf32>
    %c3_315 = arith.constant 3 : index
    %c0_316 = arith.constant 0 : index
    %c0_317 = arith.constant 0 : index
    %547 = vector.load %arg22[%c3_315, %c0_316, %c0_317] : memref<4x1x64xf32, #tpu.memory_space<vmem>>, vector<1x1x64xf32>
    %548 = vector.shape_cast %547 : vector<1x1x64xf32> to vector<1x64xf32>
    %549 = vector.broadcast %548 : vector<1x64xf32> to vector<2x64xf32>
    %550 = arith.addf %546, %549 : vector<2x64xf32>
    %551 = arith.addf %466, %550 : vector<2x64xf32>
    %c0_318 = arith.constant 0 : index
    %c0_319 = arith.constant 0 : index
    %552 = vector.load %arg23[%c0_318, %c0_319] : memref<1x64xf32, #tpu.memory_space<vmem>>, vector<1x64xf32>
    %c0_320 = arith.constant 0 : index
    %c0_321 = arith.constant 0 : index
    %553 = vector.load %arg24[%c0_320, %c0_321] : memref<1x64xf32, #tpu.memory_space<vmem>>, vector<1x64xf32>
    %cst_322 = arith.constant dense<0.000000e+00> : vector<2xf32>
    %554 = vector.multi_reduction <add>, %551, %cst_322 [1] : vector<2x64xf32> to vector<2xf32>
    %555 = vector.shape_cast %554 : vector<2xf32> to vector<2x1xf32>
    %cst_323 = arith.constant 6.400000e+01 : f32
    %556 = vector.broadcast %cst_323 : f32 to vector<2x1xf32>
    %557 = arith.divf %555, %556 : vector<2x1xf32>
    %558 = vector.broadcast %557 : vector<2x1xf32> to vector<2x64xf32>
    %559 = arith.subf %551, %558 : vector<2x64xf32>
    %560 = arith.mulf %559, %559 : vector<2x64xf32>
    %cst_324 = arith.constant dense<0.000000e+00> : vector<2xf32>
    %561 = vector.multi_reduction <add>, %560, %cst_324 [1] : vector<2x64xf32> to vector<2xf32>
    %562 = vector.shape_cast %561 : vector<2xf32> to vector<2x1xf32>
    %cst_325 = arith.constant 6.400000e+01 : f32
    %563 = vector.broadcast %cst_325 : f32 to vector<2x1xf32>
    %564 = arith.divf %562, %563 : vector<2x1xf32>
    %565 = vector.broadcast %557 : vector<2x1xf32> to vector<2x64xf32>
    %566 = arith.subf %551, %565 : vector<2x64xf32>
    %cst_326 = arith.constant 9.99999974E-6 : f32
    %567 = vector.broadcast %cst_326 : f32 to vector<2x1xf32>
    %568 = arith.addf %564, %567 : vector<2x1xf32>
    %569 = math.rsqrt %568 : vector<2x1xf32>
    %570 = vector.broadcast %569 : vector<2x1xf32> to vector<2x64xf32>
    %571 = arith.mulf %566, %570 : vector<2x64xf32>
    %572 = vector.broadcast %552 : vector<1x64xf32> to vector<2x64xf32>
    %573 = arith.mulf %571, %572 : vector<2x64xf32>
    %574 = vector.broadcast %553 : vector<1x64xf32> to vector<2x64xf32>
    %575 = arith.addf %573, %574 : vector<2x64xf32>
    %c0_327 = arith.constant 0 : index
    %c0_328 = arith.constant 0 : index
    %576 = vector.load %arg25[%c0_327, %c0_328] : memref<1x64xf32, #tpu.memory_space<vmem>>, vector<1x64xf32>
    %577 = vector.broadcast %576 : vector<1x64xf32> to vector<2x64xf32>
    %578 = arith.mulf %575, %577 : vector<2x64xf32>
    %cst_329 = arith.constant dense<0.000000e+00> : vector<2xf32>
    %579 = vector.multi_reduction <add>, %578, %cst_329 [1] : vector<2x64xf32> to vector<2xf32>
    %580 = vector.shape_cast %579 : vector<2xf32> to vector<2x1xf32>
    %c0_330 = arith.constant 0 : index
    %c0_331 = arith.constant 0 : index
    %581 = vector.load %arg26[%c0_330, %c0_331] : memref<1x1xf32, #tpu.memory_space<vmem>>, vector<1x1xf32>
    %582 = vector.broadcast %581 : vector<1x1xf32> to vector<2x1xf32>
    %583 = arith.addf %580, %582 : vector<2x1xf32>
    %584 = vector.shape_cast %583 : vector<2x1xf32> to vector<2x1xf32>
    %585 = vector.broadcast %584 : vector<2x1xf32> to vector<2x128xf32>
    %c0_332 = arith.constant 0 : index
    %c0_333 = arith.constant 0 : index
    %586 = vector.load %arg27[%c0_332, %c0_333] : memref<2x128xf32, #tpu.memory_space<vmem>>, vector<2x128xf32>
    tpu.vector_store %arg27[%c0_332, %c0_333], %585 {strides = array<i32>} : memref<2x128xf32, #tpu.memory_space<vmem>>, vector<2x128xf32>,
    return
  }
}

</mosaic_0001>

<bundles_post_ra>
// kernel: egmlp_forward.1
= control target key start
LH: loop header
LB: loop body
LE: loop exit
PB: predicated region body
PF: predicated region fallthrough
CT: control target
= control target key end

     0   :  { %s14475_s0 = inlined_call_operand.vmem [shape: f32[98,8], index: 0, kind: input, shape index: {}]   ;;  %s14476_s1 = inlined_call_operand.vmem [shape: f32[8,32], index: 1, kind: input, shape index: {}]   ;;  %s14477_s2 = inlined_call_operand.vmem [shape: f32[1,32], index: 2, kind: input, shape index: {}]   ;;  %s14478_s3 = inlined_call_operand.vmem [shape: f32[1,32], index: 3, kind: input, shape index: {}]   ;;  %s14479_s4 = inlined_call_operand.<no memory space> [shape: f32[1,1], index: 4, kind: input, shape index: {}]   ;;  %s14480_s5 = inlined_call_operand.vmem [shape: f32[32,2], index: 5, kind: input, shape index: {}]   ;;  %s14481_s6 = inlined_call_operand.vmem [shape: f32[2,32], index: 6, kind: input, shape index: {}]   ;;  %s14482_s7 = inlined_call_operand.vmem [shape: f32[2,98], index: 7, kind: input, shape index: {}]   ;;  %s14483_s8 = inlined_call_operand.vmem [shape: f32[98,4], index: 8, kind: input, shape index: {}]   ;;  %s14484_s9 = inlined_call_operand.vmem [shape: f32[98,98], index: 9, kind: input, shape index: {}]   ;;  %s14485_s10 = inlined_call_operand.vmem [shape: f32[98,98], index: 10, kind: input, shape index: {}]   ;;  %s14486_s11 = inlined_call_operand.vmem [shape: f32[32,128], index: 11, kind: input, shape index: {}]   ;;  %s14487_s12 = inlined_call_operand.vmem [shape: f32[1,128], index: 12, kind: input, shape index: {}]   ;;  %s14488_s14 = inlined_call_operand.vmem [shape: f32[1,64], index: 14, kind: input, shape index: {}]   ;;  %s14489_s15 = inlined_call_operand.vmem [shape: f32[4,1,64], index: 15, kind: input, shape index: {}]   ;;  %s14490_s16 = inlined_call_operand.vmem [shape: f32[4,1,64], index: 16, kind: input, shape index: {}]   ;;  %s14491_s17 = inlined_call_operand.vmem [shape: bf16[4,64,256], index: 17, kind: input, shape index: {}]   ;;  %s14492_s18 = inlined_call_operand.vmem [shape: f32[4,1,256], index: 18, kind: input, shape index: {}]   ;;  %s14493_s19 = inlined_call_operand.vmem [shape: f32[4,1,128], index: 19, kind: input, shape index: {}]   ;;  %s14494_s20 = inlined_call_operand.vmem [shape: f32[4,1,128], index: 20, kind: input, shape index: {}]   ;;  %s14495_s21 = inlined_call_operand.vmem [shape: bf16[4,128,64], index: 21, kind: input, shape index: {}]   ;;  %s14496_s22 = inlined_call_operand.vmem [shape: f32[4,1,64], index: 22, kind: input, shape index: {}]   ;;  %s14497_s23 = inlined_call_operand.vmem [shape: f32[1,64], index: 23, kind: input, shape index: {}]   ;;  %s14498_s24 = inlined_call_operand.vmem [shape: f32[1,64], index: 24, kind: input, shape index: {}]   ;;  %s14499_s25 = inlined_call_operand.vmem [shape: f32[1,64], index: 25, kind: input, shape index: {}]   ;;  %s14500_s27 = inlined_call_operand.vmem [shape: f32[2,128], index: 27, kind: output, shape index: {}]   ;;  %s14501_s26 = inlined_call_operand.<no memory space> [shape: f32[1,1], index: 26, kind: input, shape index: {}]   ;;  %s14502_s13 = inlined_call_operand.vmem [shape: bf16[6272,64], index: 13, kind: input, shape index: {}]  }
   0x1   :  { %14545 = sst [smem:[#allocation48_spill]] %s14475_s0  ;;  %v34_v1 = vstv %s14501_s26  ;;  %v118_v2 = vld [vmem:[%s14502_s13] sm:$0xff]  ;;  %v120_v3 = vld [vmem:[%s14502_s13 + $0x8] sm:$0xff]  ;;  %v122_v4 = vld [vmem:[%s14502_s13 + $0x10] sm:$0xff] }
   0x2   :  { %14546 = sst [smem:[#allocation49_spill]] %s14476_s1  ;;  %35 = vst [vmem:[#allocation9] sm:$0x1] %v34_v1  ;;  %119 = vst [vmem:[#allocation4] sm:$0xff] %v118_v2  ;;  %v124_v5 = vld [vmem:[%s14502_s13 + $0x18] sm:$0xff]  ;;  %v126_v6 = vld [vmem:[%s14502_s13 + $0x20] sm:$0xff] }
   0x3   :  { %14547 = sst [smem:[#allocation50_spill]] %s14477_s2  ;;  %121 = vst [vmem:[#allocation4 + $0x8] sm:$0xff] %v120_v3  ;;  %123 = vst [vmem:[#allocation4 + $0x10] sm:$0xff] %v122_v4  ;;  %v128_v7 = vld [vmem:[%s14502_s13 + $0x28] sm:$0xff]  ;;  %v130_v8 = vld [vmem:[%s14502_s13 + $0x30] sm:$0xff] }
   0x4   :  { %14548 = sst [smem:[#allocation51_spill]] %s14478_s3  ;;  %125 = vst [vmem:[#allocation4 + $0x18] sm:$0xff] %v124_v5  ;;  %127 = vst [vmem:[#allocation4 + $0x20] sm:$0xff] %v126_v6  ;;  %v132_v9 = vld [vmem:[%s14502_s13 + $0x38] sm:$0xff]  ;;  %v134_v10 = vld [vmem:[%s14502_s13 + $0x40] sm:$0xff] }
   0x5   :  { %14549 = sst [smem:[#allocation52_spill]] %s14479_s4  ;;  %129 = vst [vmem:[#allocation4 + $0x28] sm:$0xff] %v128_v7  ;;  %131 = vst [vmem:[#allocation4 + $0x30] sm:$0xff] %v130_v8  ;;  %v136_v11 = vld [vmem:[%s14502_s13 + $0x48] sm:$0xff]  ;;  %v138_v12 = vld [vmem:[%s14502_s13 + $0x50] sm:$0xff] }
   0x6   :  { %14550 = sst [smem:[#allocation53_spill]] %s14480_s5  ;;  %133 = vst [vmem:[#allocation4 + $0x38] sm:$0xff] %v132_v9  ;;  %135 = vst [vmem:[#allocation4 + $0x40] sm:$0xff] %v134_v10  ;;  %v140_v13 = vld [vmem:[%s14502_s13 + $0x58] sm:$0xff]  ;;  %v142_v14 = vld [vmem:[%s14502_s13 + $0x60] sm:$0xff] }
   0x7   :  { %14551 = sst [smem:[#allocation54_spill]] %s14481_s6  ;;  %137 = vst [vmem:[#allocation4 + $0x48] sm:$0xff] %v136_v11  ;;  %139 = vst [vmem:[#allocation4 + $0x50] sm:$0xff] %v138_v12  ;;  %v144_v15 = vld [vmem:[%s14502_s13 + $0x68] sm:$0xff]  ;;  %v146_v16 = vld [vmem:[%s14502_s13 + $0x70] sm:$0xff] }
   0x8   :  { %14552 = sst [smem:[#allocation55_spill]] %s14482_s7  ;;  %141 = vst [vmem:[#allocation4 + $0x58] sm:$0xff] %v140_v13  ;;  %143 = vst [vmem:[#allocation4 + $0x60] sm:$0xff] %v142_v14  ;;  %v148_v17 = vld [vmem:[%s14502_s13 + $0x78] sm:$0xff]  ;;  %v150_v18 = vld [vmem:[%s14502_s13 + $0x80] sm:$0xff] }
   0x9   :  { %14553 = sst [smem:[#allocation56_spill]] %s14483_s8  ;;  %145 = vst [vmem:[#allocation4 + $0x68] sm:$0xff] %v144_v15  ;;  %147 = vst [vmem:[#allocation4 + $0x70] sm:$0xff] %v146_v16  ;;  %v152_v19 = vld [vmem:[%s14502_s13 + $0x88] sm:$0xff]  ;;  %v154_v20 = vld [vmem:[%s14502_s13 + $0x90] sm:$0xff] }
   0xa   :  { %14554 = sst [smem:[#allocation57_spill]] %s14484_s9  ;;  %149 = vst [vmem:[#allocation4 + $0x78] sm:$0xff] %v148_v17  ;;  %151 = vst [vmem:[#allocation4 + $0x80] sm:$0xff] %v150_v18  ;;  %v156_v21 = vld [vmem:[%s14502_s13 + $0x98] sm:$0xff]  ;;  %v158_v22 = vld [vmem:[%s14502_s13 + $0xa0] sm:$0xff] }
   0xb   :  { %14555 = sst [smem:[#allocation58_spill]] %s14485_s10  ;;  %153 = vst [vmem:[#allocation4 + $0x88] sm:$0xff] %v152_v19  ;;  %155 = vst [vmem:[#allocation4 + $0x90] sm:$0xff] %v154_v20  ;;  %v160_v23 = vld [vmem:[%s14502_s13 + $0xa8] sm:$0xff]  ;;  %v162_v24 = vld [vmem:[%s14502_s13 + $0xb0] sm:$0xff] }
   0xc   :  { %14556 = sst [smem:[#allocation59_spill]] %s14486_s11  ;;  %157 = vst [vmem:[#allocation4 + $0x98] sm:$0xff] %v156_v21  ;;  %159 = vst [vmem:[#allocation4 + $0xa0] sm:$0xff] %v158_v22  ;;  %v164_v25 = vld [vmem:[%s14502_s13 + $0xb8] sm:$0xff]  ;;  %v166_v26 = vld [vmem:[%s14502_s13 + $0xc0] sm:$0xff] }
   0xd   :  { %s14557_s8 = sld [smem:[#allocation52_spill]]  ;;  %161 = vst [vmem:[#allocation4 + $0xa8] sm:$0xff] %v160_v23  ;;  %163 = vst [vmem:[#allocation4 + $0xb0] sm:$0xff] %v162_v24  ;;  %v168_v27 = vld [vmem:[%s14502_s13 + $0xc8] sm:$0xff]  ;;  %v170_v28 = vld [vmem:[%s14502_s13 + $0xd0] sm:$0xff] }
   0xe   :  { %165 = vst [vmem:[#allocation4 + $0xb8] sm:$0xff] %v164_v25  ;;  %167 = vst [vmem:[#allocation4 + $0xc0] sm:$0xff] %v166_v26  ;;  %v172_v29 = vld [vmem:[%s14502_s13 + $0xd8] sm:$0xff]  ;;  %v174_v30 = vld [vmem:[%s14502_s13 + $0xe0] sm:$0xff] }
   0xf   :  { %169 = vst [vmem:[#allocation4 + $0xc8] sm:$0xff] %v168_v27  ;;  %171 = vst [vmem:[#allocation4 + $0xd0] sm:$0xff] %v170_v28  ;;  %v176_v31 = vld [vmem:[%s14502_s13 + $0xe8] sm:$0xff]  ;;  %v178_v32 = vld [vmem:[%s14502_s13 + $0xf0] sm:$0xff] }
  0x10   :  { %173 = vst [vmem:[#allocation4 + $0xd8] sm:$0xff] %v172_v29  ;;  %175 = vst [vmem:[#allocation4 + $0xe0] sm:$0xff] %v174_v30  ;;  %v180_v33 = vld [vmem:[%s14502_s13 + $0xf8] sm:$0xff]  ;;  %v182_v34 = vld [vmem:[%s14502_s13 + $0x100] sm:$0xff] }
  0x11   :  { %177 = vst [vmem:[#allocation4 + $0xe8] sm:$0xff] %v176_v31  ;;  %179 = vst [vmem:[#allocation4 + $0xf0] sm:$0xff] %v178_v32  ;;  %v184_v35 = vld [vmem:[%s14502_s13 + $0x108] sm:$0xff]  ;;  %v186_v36 = vld [vmem:[%s14502_s13 + $0x110] sm:$0xff] }
  0x12   :  { %181 = vst [vmem:[#allocation4 + $0xf8] sm:$0xff] %v180_v33  ;;  %183 = vst [vmem:[#allocation4 + $0x100] sm:$0xff] %v182_v34  ;;  %v188_v37 = vld [vmem:[%s14502_s13 + $0x118] sm:$0xff]  ;;  %v190_v38 = vld [vmem:[%s14502_s13 + $0x120] sm:$0xff] }
  0x13   :  { %v32_v0 = vstv %s14557_s8  ;;  %185 = vst [vmem:[#allocation4 + $0x108] sm:$0xff] %v184_v35  ;;  %187 = vst [vmem:[#allocation4 + $0x110] sm:$0xff] %v186_v36  ;;  %v192_v39 = vld [vmem:[%s14502_s13 + $0x128] sm:$0xff]  ;;  %v194_v40 = vld [vmem:[%s14502_s13 + $0x130] sm:$0xff] }
  0x14   :  { %33 = vst [vmem:[#allocation8] sm:$0x1] %v32_v0  ;;  %189 = vst [vmem:[#allocation4 + $0x118] sm:$0xff] %v188_v37  ;;  %v196_v41 = vld [vmem:[%s14502_s13 + $0x138] sm:$0xff]  ;;  %v198_v42 = vld [vmem:[%s14502_s13 + $0x140] sm:$0xff] }
  0x15   :  { %191 = vst [vmem:[#allocation4 + $0x120] sm:$0xff] %v190_v38  ;;  %193 = vst [vmem:[#allocation4 + $0x128] sm:$0xff] %v192_v39  ;;  %v200_v43 = vld [vmem:[%s14502_s13 + $0x148] sm:$0xff]  ;;  %v202_v44 = vld [vmem:[%s14502_s13 + $0x150] sm:$0xff] }
  0x16   :  { %195 = vst [vmem:[#allocation4 + $0x130] sm:$0xff] %v194_v40  ;;  %197 = vst [vmem:[#allocation4 + $0x138] sm:$0xff] %v196_v41  ;;  %v204_v45 = vld [vmem:[%s14502_s13 + $0x158] sm:$0xff]  ;;  %v206_v46 = vld [vmem:[%s14502_s13 + $0x160] sm:$0xff] }
  0x17   :  { %199 = vst [vmem:[#allocation4 + $0x140] sm:$0xff] %v198_v42  ;;  %201 = vst [vmem:[#allocation4 + $0x148] sm:$0xff] %v200_v43  ;;  %v208_v47 = vld [vmem:[%s14502_s13 + $0x168] sm:$0xff]  ;;  %v210_v48 = vld [vmem:[%s14502_s13 + $0x170] sm:$0xff] }
  0x18   :  { %203 = vst [vmem:[#allocation4 + $0x150] sm:$0xff] %v202_v44  ;;  %205 = vst [vmem:[#allocation4 + $0x158] sm:$0xff] %v204_v45  ;;  %v212_v49 = vld [vmem:[%s14502_s13 + $0x178] sm:$0xff]  ;;  %v214_v50 = vld [vmem:[%s14502_s13 + $0x180] sm:$0xff] }
  0x19   :  { %207 = vst [vmem:[#allocation4 + $0x160] sm:$0xff] %v206_v46  ;;  %209 = vst [vmem:[#allocation4 + $0x168] sm:$0xff] %v208_v47  ;;  %v216_v51 = vld [vmem:[%s14502_s13 + $0x188] sm:$0xff]  ;;  %v218_v52 = vld [vmem:[%s14502_s13 + $0x190] sm:$0xff] }
  0x1a   :  { %211 = vst [vmem:[#allocation4 + $0x170] sm:$0xff] %v210_v48  ;;  %213 = vst [vmem:[#allocation4 + $0x178] sm:$0xff] %v212_v49  ;;  %v220_v53 = vld [vmem:[%s14502_s13 + $0x198] sm:$0xff]  ;;  %v222_v54 = vld [vmem:[%s14502_s13 + $0x1a0] sm:$0xff] }
  0x1b   :  { %215 = vst [vmem:[#allocation4 + $0x180] sm:$0xff] %v214_v50  ;;  %217 = vst [vmem:[#allocation4 + $0x188] sm:$0xff] %v216_v51  ;;  %v224_v55 = vld [vmem:[%s14502_s13 + $0x1a8] sm:$0xff]  ;;  %v226_v56 = vld [vmem:[%s14502_s13 + $0x1b0] sm:$0xff] }
  0x1c   :  { %219 = vst [vmem:[#allocation4 + $0x190] sm:$0xff] %v218_v52  ;;  %221 = vst [vmem:[#allocation4 + $0x198] sm:$0xff] %v220_v53  ;;  %v228_v57 = vld [vmem:[%s14502_s13 + $0x1b8] sm:$0xff]  ;;  %v230_v58 = vld [vmem:[%s14502_s13 + $0x1c0] sm:$0xff] }
  0x1d   :  { %223 = vst [vmem:[#allocation4 + $0x1a0] sm:$0xff] %v222_v54  ;;  %225 = vst [vmem:[#allocation4 + $0x1a8] sm:$0xff] %v224_v55  ;;  %v232_v59 = vld [vmem:[%s14502_s13 + $0x1c8] sm:$0xff]  ;;  %v234_v60 = vld [vmem:[%s14502_s13 + $0x1d0] sm:$0xff] }
  0x1e   :  { %227 = vst [vmem:[#allocation4 + $0x1b0] sm:$0xff] %v226_v56  ;;  %229 = vst [vmem:[#allocation4 + $0x1b8] sm:$0xff] %v228_v57  ;;  %v236_v61 = vld [vmem:[%s14502_s13 + $0x1d8] sm:$0xff]  ;;  %v238_v62 = vld [vmem:[%s14502_s13 + $0x1e0] sm:$0xff] }
  0x1f   :  { %231 = vst [vmem:[#allocation4 + $0x1c0] sm:$0xff] %v230_v58  ;;  %233 = vst [vmem:[#allocation4 + $0x1c8] sm:$0xff] %v232_v59  ;;  %v240_v63 = vld [vmem:[%s14502_s13 + $0x1e8] sm:$0xff]  ;;  %v242_v0 = vld [vmem:[%s14502_s13 + $0x1f0] sm:$0xff] }
  0x20   :  { %235 = vst [vmem:[#allocation4 + $0x1d0] sm:$0xff] %v234_v60  ;;  %237 = vst [vmem:[#allocation4 + $0x1d8] sm:$0xff] %v236_v61  ;;  %v244_v1 = vld [vmem:[%s14502_s13 + $0x1f8] sm:$0xff]  ;;  %v246_v2 = vld [vmem:[%s14502_s13 + $0x200] sm:$0xff] }
  0x21   :  { %239 = vst [vmem:[#allocation4 + $0x1e0] sm:$0xff] %v238_v62  ;;  %241 = vst [vmem:[#allocation4 + $0x1e8] sm:$0xff] %v240_v63  ;;  %v248_v3 = vld [vmem:[%s14502_s13 + $0x208] sm:$0xff]  ;;  %v250_v4 = vld [vmem:[%s14502_s13 + $0x210] sm:$0xff] }
  0x22   :  { %243 = vst [vmem:[#allocation4 + $0x1f0] sm:$0xff] %v242_v0  ;;  %245 = vst [vmem:[#allocation4 + $0x1f8] sm:$0xff] %v244_v1  ;;  %v252_v5 = vld [vmem:[%s14502_s13 + $0x218] sm:$0xff]  ;;  %v254_v6 = vld [vmem:[%s14502_s13 + $0x220] sm:$0xff] }
  0x23   :  { %247 = vst [vmem:[#allocation4 + $0x200] sm:$0xff] %v246_v2  ;;  %249 = vst [vmem:[#allocation4 + $0x208] sm:$0xff] %v248_v3  ;;  %v256_v7 = vld [vmem:[%s14502_s13 + $0x228] sm:$0xff]  ;;  %v258_v8 = vld [vmem:[%s14502_s13 + $0x230] sm:$0xff] }
  0x24   :  { %251 = vst [vmem:[#allocation4 + $0x210] sm:$0xff] %v250_v4  ;;  %253 = vst [vmem:[#allocation4 + $0x218] sm:$0xff] %v252_v5  ;;  %v260_v9 = vld [vmem:[%s14502_s13 + $0x238] sm:$0xff]  ;;  %v262_v10 = vld [vmem:[%s14502_s13 + $0x240] sm:$0xff] }
  0x25   :  { %255 = vst [vmem:[#allocation4 + $0x220] sm:$0xff] %v254_v6  ;;  %257 = vst [vmem:[#allocation4 + $0x228] sm:$0xff] %v256_v7  ;;  %v264_v11 = vld [vmem:[%s14502_s13 + $0x248] sm:$0xff]  ;;  %v266_v12 = vld [vmem:[%s14502_s13 + $0x250] sm:$0xff] }
  0x26   :  { %259 = vst [vmem:[#allocation4 + $0x230] sm:$0xff] %v258_v8  ;;  %261 = vst [vmem:[#allocation4 + $0x238] sm:$0xff] %v260_v9  ;;  %v268_v13 = vld [vmem:[%s14502_s13 + $0x258] sm:$0xff]  ;;  %v270_v14 = vld [vmem:[%s14502_s13 + $0x260] sm:$0xff] }
  0x27   :  { %263 = vst [vmem:[#allocation4 + $0x240] sm:$0xff] %v262_v10  ;;  %265 = vst [vmem:[#allocation4 + $0x248] sm:$0xff] %v264_v11  ;;  %v272_v15 = vld [vmem:[%s14502_s13 + $0x268] sm:$0xff]  ;;  %v274_v16 = vld [vmem:[%s14502_s13 + $0x270] sm:$0xff] }
  0x28   :  { %267 = vst [vmem:[#allocation4 + $0x250] sm:$0xff] %v266_v12  ;;  %269 = vst [vmem:[#allocation4 + $0x258] sm:$0xff] %v268_v13  ;;  %v276_v17 = vld [vmem:[%s14502_s13 + $0x278] sm:$0xff]  ;;  %v278_v18 = vld [vmem:[%s14502_s13 + $0x280] sm:$0xff] }
  0x29   :  { %271 = vst [vmem:[#allocation4 + $0x260] sm:$0xff] %v270_v14  ;;  %273 = vst [vmem:[#allocation4 + $0x268] sm:$0xff] %v272_v15  ;;  %v280_v19 = vld [vmem:[%s14502_s13 + $0x288] sm:$0xff]  ;;  %v282_v20 = vld [vmem:[%s14502_s13 + $0x290] sm:$0xff] }
  0x2a   :  { %275 = vst [vmem:[#allocation4 + $0x270] sm:$0xff] %v274_v16  ;;  %277 = vst [vmem:[#allocation4 + $0x278] sm:$0xff] %v276_v17  ;;  %v284_v21 = vld [vmem:[%s14502_s13 + $0x298] sm:$0xff]  ;;  %v286_v22 = vld [vmem:[%s14502_s13 + $0x2a0] sm:$0xff] }
  0x2b   :  { %279 = vst [vmem:[#allocation4 + $0x280] sm:$0xff] %v278_v18  ;;  %281 = vst [vmem:[#allocation4 + $0x288] sm:$0xff] %v280_v19  ;;  %v288_v23 = vld [vmem:[%s14502_s13 + $0x2a8] sm:$0xff]  ;;  %v290_v24 = vld [vmem:[%s14502_s13 + $0x2b0] sm:$0xff] }
  0x2c   :  { %283 = vst [vmem:[#allocation4 + $0x290] sm:$0xff] %v282_v20  ;;  %285 = vst [vmem:[#allocation4 + $0x298] sm:$0xff] %v284_v21  ;;  %v292_v25 = vld [vmem:[%s14502_s13 + $0x2b8] sm:$0xff]  ;;  %v294_v26 = vld [vmem:[%s14502_s13 + $0x2c0] sm:$0xff] }
  0x2d   :  { %287 = vst [vmem:[#allocation4 + $0x2a0] sm:$0xff] %v286_v22  ;;  %289 = vst [vmem:[#allocation4 + $0x2a8] sm:$0xff] %v288_v23  ;;  %v296_v27 = vld [vmem:[%s14502_s13 + $0x2c8] sm:$0xff]  ;;  %v298_v28 = vld [vmem:[%s14502_s13 + $0x2d0] sm:$0xff] }
  0x2e   :  { %291 = vst [vmem:[#allocation4 + $0x2b0] sm:$0xff] %v290_v24  ;;  %293 = vst [vmem:[#allocation4 + $0x2b8] sm:$0xff] %v292_v25  ;;  %v300_v29 = vld [vmem:[%s14502_s13 + $0x2d8] sm:$0xff]  ;;  %v302_v30 = vld [vmem:[%s14502_s13 + $0x2e0] sm:$0xff] }
  0x2f   :  { %295 = vst [vmem:[#allocation4 + $0x2c0] sm:$0xff] %v294_v26  ;;  %297 = vst [vmem:[#allocation4 + $0x2c8] sm:$0xff] %v296_v27  ;;  %v304_v31 = vld [vmem:[%s14502_s13 + $0x2e8] sm:$0xff]  ;;  %v306_v32 = vld [vmem:[%s14502_s13 + $0x2f0] sm:$0xff] }
  0x30   :  { %299 = vst [vmem:[#allocation4 + $0x2d0] sm:$0xff] %v298_v28  ;;  %301 = vst [vmem:[#allocation4 + $0x2d8] sm:$0xff] %v300_v29  ;;  %v308_v33 = vld [vmem:[%s14502_s13 + $0x2f8] sm:$0xff]  ;;  %v310_v34 = vld [vmem:[%s14502_s13 + $0x300] sm:$0xff] }
  0x31   :  { %303 = vst [vmem:[#allocation4 + $0x2e0] sm:$0xff] %v302_v30  ;;  %305 = vst [vmem:[#allocation4 + $0x2e8] sm:$0xff] %v304_v31  ;;  %v312_v35 = vld [vmem:[%s14502_s13 + $0x308] sm:$0xff]  ;;  %v314_v36 = vld [vmem:[%s14502_s13 + $0x310] sm:$0xff] }
  0x32   :  { %307 = vst [vmem:[#allocation4 + $0x2f0] sm:$0xff] %v306_v32  ;;  %309 = vst [vmem:[#allocation4 + $0x2f8] sm:$0xff] %v308_v33  ;;  %v316_v37 = vld [vmem:[%s14502_s13 + $0x318] sm:$0xff]  ;;  %v318_v38 = vld [vmem:[%s14502_s13 + $0x320] sm:$0xff] }
  0x33   :  { %311 = vst [vmem:[#allocation4 + $0x300] sm:$0xff] %v310_v34  ;;  %313 = vst [vmem:[#allocation4 + $0x308] sm:$0xff] %v312_v35  ;;  %v320_v39 = vld [vmem:[%s14502_s13 + $0x328] sm:$0xff]  ;;  %v322_v40 = vld [vmem:[%s14502_s13 + $0x330] sm:$0xff] }
  0x34   :  { %315 = vst [vmem:[#allocation4 + $0x310] sm:$0xff] %v314_v36  ;;  %317 = vst [vmem:[#allocation4 + $0x318] sm:$0xff] %v316_v37  ;;  %v324_v41 = vld [vmem:[%s14502_s13 + $0x338] sm:$0xff]  ;;  %v326_v42 = vld [vmem:[%s14502_s13 + $0x340] sm:$0xff] }
  0x35   :  { %319 = vst [vmem:[#allocation4 + $0x320] sm:$0xff] %v318_v38  ;;  %321 = vst [vmem:[#allocation4 + $0x328] sm:$0xff] %v320_v39  ;;  %v328_v43 = vld [vmem:[%s14502_s13 + $0x348] sm:$0xff]  ;;  %v330_v44 = vld [vmem:[%s14502_s13 + $0x350] sm:$0xff] }
  0x36   :  { %323 = vst [vmem:[#allocation4 + $0x330] sm:$0xff] %v322_v40  ;;  %325 = vst [vmem:[#allocation4 + $0x338] sm:$0xff] %v324_v41  ;;  %v332_v45 = vld [vmem:[%s14502_s13 + $0x358] sm:$0xff]  ;;  %v334_v46 = vld [vmem:[%s14502_s13 + $0x360] sm:$0xff] }
  0x37   :  { %327 = vst [vmem:[#allocation4 + $0x340] sm:$0xff] %v326_v42  ;;  %329 = vst [vmem:[#allocation4 + $0x348] sm:$0xff] %v328_v43  ;;  %v336_v47 = vld [vmem:[%s14502_s13 + $0x368] sm:$0xff]  ;;  %v338_v48 = vld [vmem:[%s14502_s13 + $0x370] sm:$0xff] }
  0x38   :  { %331 = vst [vmem:[#allocation4 + $0x350] sm:$0xff] %v330_v44  ;;  %333 = vst [vmem:[#allocation4 + $0x358] sm:$0xff] %v332_v45  ;;  %v340_v49 = vld [vmem:[%s14502_s13 + $0x378] sm:$0xff]  ;;  %v342_v50 = vld [vmem:[%s14502_s13 + $0x380] sm:$0xff] }
  0x39   :  { %335 = vst [vmem:[#allocation4 + $0x360] sm:$0xff] %v334_v46  ;;  %337 = vst [vmem:[#allocation4 + $0x368] sm:$0xff] %v336_v47  ;;  %v344_v51 = vld [vmem:[%s14502_s13 + $0x388] sm:$0xff]  ;;  %v346_v52 = vld [vmem:[%s14502_s13 + $0x390] sm:$0xff] }
  0x3a   :  { %339 = vst [vmem:[#allocation4 + $0x370] sm:$0xff] %v338_v48  ;;  %341 = vst [vmem:[#allocation4 + $0x378] sm:$0xff] %v340_v49  ;;  %v348_v53 = vld [vmem:[%s14502_s13 + $0x398] sm:$0xff]  ;;  %v350_v54 = vld [vmem:[%s14502_s13 + $0x3a0] sm:$0xff] }
  0x3b   :  { %343 = vst [vmem:[#allocation4 + $0x380] sm:$0xff] %v342_v50  ;;  %345 = vst [vmem:[#allocation4 + $0x388] sm:$0xff] %v344_v51  ;;  %v352_v55 = vld [vmem:[%s14502_s13 + $0x3a8] sm:$0xff]  ;;  %v354_v56 = vld [vmem:[%s14502_s13 + $0x3b0] sm:$0xff] }
  0x3c   :  { %347 = vst [vmem:[#allocation4 + $0x390] sm:$0xff] %v346_v52  ;;  %349 = vst [vmem:[#allocation4 + $0x398] sm:$0xff] %v348_v53  ;;  %v356_v57 = vld [vmem:[%s14502_s13 + $0x3b8] sm:$0xff]  ;;  %v358_v58 = vld [vmem:[%s14502_s13 + $0x3c0] sm:$0xff] }
  0x3d   :  { %351 = vst [vmem:[#allocation4 + $0x3a0] sm:$0xff] %v350_v54  ;;  %353 = vst [vmem:[#allocation4 + $0x3a8] sm:$0xff] %v352_v55  ;;  %v360_v59 = vld [vmem:[%s14502_s13 + $0x3c8] sm:$0xff]  ;;  %v362_v60 = vld [vmem:[%s14502_s13 + $0x3d0] sm:$0xff] }
  0x3e   :  { %355 = vst [vmem:[#allocation4 + $0x3b0] sm:$0xff] %v354_v56  ;;  %357 = vst [vmem:[#allocation4 + $0x3b8] sm:$0xff] %v356_v57  ;;  %v364_v61 = vld [vmem:[%s14502_s13 + $0x3d8] sm:$0xff]  ;;  %v366_v62 = vld [vmem:[%s14502_s13 + $0x3e0] sm:$0xff] }
  0x3f   :  { %359 = vst [vmem:[#allocation4 + $0x3c0] sm:$0xff] %v358_v58  ;;  %361 = vst [vmem:[#allocation4 + $0x3c8] sm:$0xff] %v360_v59  ;;  %v368_v63 = vld [vmem:[%s14502_s13 + $0x3e8] sm:$0xff]  ;;  %v370_v0 = vld [vmem:[%s14502_s13 + $0x3f0] sm:$0xff] }
  0x40   :  { %363 = vst [vmem:[#allocation4 + $0x3d0] sm:$0xff] %v362_v60  ;;  %365 = vst [vmem:[#allocation4 + $0x3d8] sm:$0xff] %v364_v61  ;;  %v372_v1 = vld [vmem:[%s14502_s13 + $0x3f8] sm:$0xff]  ;;  %v374_v2 = vld [vmem:[%s14502_s13 + $0x400] sm:$0xff] }
  0x41   :  { %367 = vst [vmem:[#allocation4 + $0x3e0] sm:$0xff] %v366_v62  ;;  %369 = vst [vmem:[#allocation4 + $0x3e8] sm:$0xff] %v368_v63  ;;  %v376_v3 = vld [vmem:[%s14502_s13 + $0x408] sm:$0xff]  ;;  %v378_v4 = vld [vmem:[%s14502_s13 + $0x410] sm:$0xff] }
  0x42   :  { %371 = vst [vmem:[#allocation4 + $0x3f0] sm:$0xff] %v370_v0  ;;  %373 = vst [vmem:[#allocation4 + $0x3f8] sm:$0xff] %v372_v1  ;;  %v380_v5 = vld [vmem:[%s14502_s13 + $0x418] sm:$0xff]  ;;  %v382_v6 = vld [vmem:[%s14502_s13 + $0x420] sm:$0xff] }
  0x43   :  { %375 = vst [vmem:[#allocation4 + $0x400] sm:$0xff] %v374_v2  ;;  %377 = vst [vmem:[#allocation4 + $0x408] sm:$0xff] %v376_v3  ;;  %v384_v7 = vld [vmem:[%s14502_s13 + $0x428] sm:$0xff]  ;;  %v386_v8 = vld [vmem:[%s14502_s13 + $0x430] sm:$0xff] }
  0x44   :  { %379 = vst [vmem:[#allocation4 + $0x410] sm:$0xff] %v378_v4  ;;  %381 = vst [vmem:[#allocation4 + $0x418] sm:$0xff] %v380_v5  ;;  %v388_v9 = vld [vmem:[%s14502_s13 + $0x438] sm:$0xff]  ;;  %v390_v10 = vld [vmem:[%s14502_s13 + $0x440] sm:$0xff] }
  0x45   :  { %383 = vst [vmem:[#allocation4 + $0x420] sm:$0xff] %v382_v6  ;;  %385 = vst [vmem:[#allocation4 + $0x428] sm:$0xff] %v384_v7  ;;  %v392_v11 = vld [vmem:[%s14502_s13 + $0x448] sm:$0xff]  ;;  %v394_v12 = vld [vmem:[%s14502_s13 + $0x450] sm:$0xff] }
  0x46   :  { %387 = vst [vmem:[#allocation4 + $0x430] sm:$0xff] %v386_v8  ;;  %389 = vst [vmem:[#allocation4 + $0x438] sm:$0xff] %v388_v9  ;;  %v396_v13 = vld [vmem:[%s14502_s13 + $0x458] sm:$0xff]  ;;  %v398_v14 = vld [vmem:[%s14502_s13 + $0x460] sm:$0xff] }
  0x47   :  { %391 = vst [vmem:[#allocation4 + $0x440] sm:$0xff] %v390_v10  ;;  %393 = vst [vmem:[#allocation4 + $0x448] sm:$0xff] %v392_v11  ;;  %v400_v15 = vld [vmem:[%s14502_s13 + $0x468] sm:$0xff]  ;;  %v402_v16 = vld [vmem:[%s14502_s13 + $0x470] sm:$0xff] }
  0x48   :  { %395 = vst [vmem:[#allocation4 + $0x450] sm:$0xff] %v394_v12  ;;  %397 = vst [vmem:[#allocation4 + $0x458] sm:$0xff] %v396_v13  ;;  %v404_v17 = vld [vmem:[%s14502_s13 + $0x478] sm:$0xff]  ;;  %v406_v18 = vld [vmem:[%s14502_s13 + $0x480] sm:$0xff] }
  0x49   :  { %399 = vst [vmem:[#allocation4 + $0x460] sm:$0xff] %v398_v14  ;;  %401 = vst [vmem:[#allocation4 + $0x468] sm:$0xff] %v400_v15  ;;  %v408_v19 = vld [vmem:[%s14502_s13 + $0x488] sm:$0xff]  ;;  %v410_v20 = vld [vmem:[%s14502_s13 + $0x490] sm:$0xff] }
  0x4a   :  { %403 = vst [vmem:[#allocation4 + $0x470] sm:$0xff] %v402_v16  ;;  %405 = vst [vmem:[#allocation4 + $0x478] sm:$0xff] %v404_v17  ;;  %v412_v21 = vld [vmem:[%s14502_s13 + $0x498] sm:$0xff]  ;;  %v414_v22 = vld [vmem:[%s14502_s13 + $0x4a0] sm:$0xff] }
  0x4b   :  { %407 = vst [vmem:[#allocation4 + $0x480] sm:$0xff] %v406_v18  ;;  %409 = vst [vmem:[#allocation4 + $0x488] sm:$0xff] %v408_v19  ;;  %v416_v23 = vld [vmem:[%s14502_s13 + $0x4a8] sm:$0xff]  ;;  %v418_v24 = vld [vmem:[%s14502_s13 + $0x4b0] sm:$0xff] }
  0x4c   :  { %411 = vst [vmem:[#allocation4 + $0x490] sm:$0xff] %v410_v20  ;;  %413 = vst [vmem:[#allocation4 + $0x498] sm:$0xff] %v412_v21  ;;  %v420_v25 = vld [vmem:[%s14502_s13 + $0x4b8] sm:$0xff]  ;;  %v422_v26 = vld [vmem:[%s14502_s13 + $0x4c0] sm:$0xff] }
  0x4d   :  { %415 = vst [vmem:[#allocation4 + $0x4a0] sm:$0xff] %v414_v22  ;;  %417 = vst [vmem:[#allocation4 + $0x4a8] sm:$0xff] %v416_v23  ;;  %v424_v27 = vld [vmem:[%s14502_s13 + $0x4c8] sm:$0xff]  ;;  %v426_v28 = vld [vmem:[%s14502_s13 + $0x4d0] sm:$0xff] }
  0x4e   :  { %419 = vst [vmem:[#allocation4 + $0x4b0] sm:$0xff] %v418_v24  ;;  %421 = vst [vmem:[#allocation4 + $0x4b8] sm:$0xff] %v420_v25  ;;  %v428_v29 = vld [vmem:[%s14502_s13 + $0x4d8] sm:$0xff]  ;;  %v430_v30 = vld [vmem:[%s14502_s13 + $0x4e0] sm:$0xff] }
  0x4f   :  { %423 = vst [vmem:[#allocation4 + $0x4c0] sm:$0xff] %v422_v26  ;;  %425 = vst [vmem:[#allocation4 + $0x4c8] sm:$0xff] %v424_v27  ;;  %v432_v31 = vld [vmem:[%s14502_s13 + $0x4e8] sm:$0xff]  ;;  %v434_v32 = vld [vmem:[%s14502_s13 + $0x4f0] sm:$0xff] }
  0x50   :  { %427 = vst [vmem:[#allocation4 + $0x4d0] sm:$0xff] %v426_v28  ;;  %429 = vst [vmem:[#allocation4 + $0x4d8] sm:$0xff] %v428_v29  ;;  %v436_v33 = vld [vmem:[%s14502_s13 + $0x4f8] sm:$0xff]  ;;  %v438_v34 = vld [vmem:[%s14502_s13 + $0x500] sm:$0xff] }
  0x51   :  { %431 = vst [vmem:[#allocation4 + $0x4e0] sm:$0xff] %v430_v30  ;;  %433 = vst [vmem:[#allocation4 + $0x4e8] sm:$0xff] %v432_v31  ;;  %v440_v35 = vld [vmem:[%s14502_s13 + $0x508] sm:$0xff]  ;;  %v442_v36 = vld [vmem:[%s14502_s13 + $0x510] sm:$0xff] }
  0x52   :  { %435 = vst [vmem:[#allocation4 + $0x4f0] sm:$0xff] %v434_v32  ;;  %437 = vst [vmem:[#allocation4 + $0x4f8] sm:$0xff] %v436_v33  ;;  %v444_v37 = vld [vmem:[%s14502_s13 + $0x518] sm:$0xff]  ;;  %v446_v38 = vld [vmem:[%s14502_s13 + $0x520] sm:$0xff] }
  0x53   :  { %439 = vst [vmem:[#allocation4 + $0x500] sm:$0xff] %v438_v34  ;;  %441 = vst [vmem:[#allocation4 + $0x508] sm:$0xff] %v440_v35  ;;  %v448_v39 = vld [vmem:[%s14502_s13 + $0x528] sm:$0xff]  ;;  %v450_v40 = vld [vmem:[%s14502_s13 + $0x530] sm:$0xff] }
  0x54   :  { %443 = vst [vmem:[#allocation4 + $0x510] sm:$0xff] %v442_v36  ;;  %445 = vst [vmem:[#allocation4 + $0x518] sm:$0xff] %v444_v37  ;;  %v452_v41 = vld [vmem:[%s14502_s13 + $0x538] sm:$0xff]  ;;  %v454_v42 = vld [vmem:[%s14502_s13 + $0x540] sm:$0xff] }
  0x55   :  { %447 = vst [vmem:[#allocation4 + $0x520] sm:$0xff] %v446_v38  ;;  %449 = vst [vmem:[#allocation4 + $0x528] sm:$0xff] %v448_v39  ;;  %v456_v43 = vld [vmem:[%s14502_s13 + $0x548] sm:$0xff]  ;;  %v458_v44 = vld [vmem:[%s14502_s13 + $0x550] sm:$0xff] }
  0x56   :  { %451 = vst [vmem:[#allocation4 + $0x530] sm:$0xff] %v450_v40  ;;  %453 = vst [vmem:[#allocation4 + $0x538] sm:$0xff] %v452_v41  ;;  %v460_v45 = vld [vmem:[%s14502_s13 + $0x558] sm:$0xff]  ;;  %v462_v46 = vld [vmem:[%s14502_s13 + $0x560] sm:$0xff] }
  0x57   :  { %455 = vst [vmem:[#allocation4 + $0x540] sm:$0xff] %v454_v42  ;;  %457 = vst [vmem:[#allocation4 + $0x548] sm:$0xff] %v456_v43  ;;  %v464_v47 = vld [vmem:[%s14502_s13 + $0x568] sm:$0xff]  ;;  %v466_v48 = vld [vmem:[%s14502_s13 + $0x570] sm:$0xff] }
  0x58   :  { %459 = vst [vmem:[#allocation4 + $0x550] sm:$0xff] %v458_v44  ;;  %461 = vst [vmem:[#allocation4 + $0x558] sm:$0xff] %v460_v45  ;;  %v468_v49 = vld [vmem:[%s14502_s13 + $0x578] sm:$0xff]  ;;  %v470_v50 = vld [vmem:[%s14502_s13 + $0x580] sm:$0xff] }
  0x59   :  { %463 = vst [vmem:[#allocation4 + $0x560] sm:$0xff] %v462_v46  ;;  %465 = vst [vmem:[#allocation4 + $0x568] sm:$0xff] %v464_v47  ;;  %v472_v51 = vld [vmem:[%s14502_s13 + $0x588] sm:$0xff]  ;;  %v474_v52 = vld [vmem:[%s14502_s13 + $0x590] sm:$0xff] }
  0x5a   :  { %467 = vst [vmem:[#allocation4 + $0x570] sm:$0xff] %v466_v48  ;;  %469 = vst [vmem:[#allocation4 + $0x578] sm:$0xff] %v468_v49  ;;  %v476_v53 = vld [vmem:[%s14502_s13 + $0x598] sm:$0xff]  ;;  %v478_v54 = vld [vmem:[%s14502_s13 + $0x5a0] sm:$0xff] }
  0x5b   :  { %471 = vst [vmem:[#allocation4 + $0x580] sm:$0xff] %v470_v50  ;;  %473 = vst [vmem:[#allocation4 + $0x588] sm:$0xff] %v472_v51  ;;  %v480_v55 = vld [vmem:[%s14502_s13 + $0x5a8] sm:$0xff]  ;;  %v482_v56 = vld [vmem:[%s14502_s13 + $0x5b0] sm:$0xff] }
  0x5c   :  { %475 = vst [vmem:[#allocation4 + $0x590] sm:$0xff] %v474_v52  ;;  %477 = vst [vmem:[#allocation4 + $0x598] sm:$0xff] %v476_v53  ;;  %v484_v57 = vld [vmem:[%s14502_s13 + $0x5b8] sm:$0xff]  ;;  %v486_v58 = vld [vmem:[%s14502_s13 + $0x5c0] sm:$0xff] }
  0x5d   :  { %479 = vst [vmem:[#allocation4 + $0x5a0] sm:$0xff] %v478_v54  ;;  %481 = vst [vmem:[#allocation4 + $0x5a8] sm:$0xff] %v480_v55  ;;  %v488_v59 = vld [vmem:[%s14502_s13 + $0x5c8] sm:$0xff]  ;;  %v490_v60 = vld [vmem:[%s14502_s13 + $0x5d0] sm:$0xff] }
  0x5e   :  { %483 = vst [vmem:[#allocation4 + $0x5b0] sm:$0xff] %v482_v56  ;;  %485 = vst [vmem:[#allocation4 + $0x5b8] sm:$0xff] %v484_v57  ;;  %v492_v61 = vld [vmem:[%s14502_s13 + $0x5d8] sm:$0xff]  ;;  %v494_v62 = vld [vmem:[%s14502_s13 + $0x5e0] sm:$0xff] }
  0x5f   :  { %487 = vst [vmem:[#allocation4 + $0x5c0] sm:$0xff] %v486_v58  ;;  %489 = vst [vmem:[#allocation4 + $0x5c8] sm:$0xff] %v488_v59  ;;  %v496_v63 = vld [vmem:[%s14502_s13 + $0x5e8] sm:$0xff]  ;;  %v498_v0 = vld [vmem:[%s14502_s13 + $0x5f0] sm:$0xff] }
  0x60   :  { %491 = vst [vmem:[#allocation4 + $0x5d0] sm:$0xff] %v490_v60  ;;  %493 = vst [vmem:[#allocation4 + $0x5d8] sm:$0xff] %v492_v61  ;;  %v500_v1 = vld [vmem:[%s14502_s13 + $0x5f8] sm:$0xff]  ;;  %v502_v2 = vld [vmem:[%s14502_s13 + $0x600] sm:$0xff] }
  0x61   :  { %495 = vst [vmem:[#allocation4 + $0x5e0] sm:$0xff] %v494_v62  ;;  %497 = vst [vmem:[#allocation4 + $0x5e8] sm:$0xff] %v496_v63  ;;  %v504_v3 = vld [vmem:[%s14502_s13 + $0x608] sm:$0xff]  ;;  %v506_v4 = vld [vmem:[%s14502_s13 + $0x610] sm:$0xff] }
  0x62   :  { %499 = vst [vmem:[#allocation4 + $0x5f0] sm:$0xff] %v498_v0  ;;  %501 = vst [vmem:[#allocation4 + $0x5f8] sm:$0xff] %v500_v1  ;;  %v508_v5 = vld [vmem:[%s14502_s13 + $0x618] sm:$0xff]  ;;  %v510_v6 = vld [vmem:[%s14502_s13 + $0x620] sm:$0xff] }
  0x63   :  { %503 = vst [vmem:[#allocation4 + $0x600] sm:$0xff] %v502_v2  ;;  %505 = vst [vmem:[#allocation4 + $0x608] sm:$0xff] %v504_v3  ;;  %v512_v7 = vld [vmem:[%s14502_s13 + $0x628] sm:$0xff]  ;;  %v514_v8 = vld [vmem:[%s14502_s13 + $0x630] sm:$0xff] }
  0x64   :  { %507 = vst [vmem:[#allocation4 + $0x610] sm:$0xff] %v506_v4  ;;  %509 = vst [vmem:[#allocation4 + $0x618] sm:$0xff] %v508_v5  ;;  %v516_v9 = vld [vmem:[%s14502_s13 + $0x638] sm:$0xff]  ;;  %v518_v10 = vld [vmem:[%s14502_s13 + $0x640] sm:$0xff] }
  0x65   :  { %511 = vst [vmem:[#allocation4 + $0x620] sm:$0xff] %v510_v6  ;;  %513 = vst [vmem:[#allocation4 + $0x628] sm:$0xff] %v512_v7  ;;  %v520_v11 = vld [vmem:[%s14502_s13 + $0x648] sm:$0xff]  ;;  %v522_v12 = vld [vmem:[%s14502_s13 + $0x650] sm:$0xff] }
  0x66   :  { %515 = vst [vmem:[#allocation4 + $0x630] sm:$0xff] %v514_v8  ;;  %517 = vst [vmem:[#allocation4 + $0x638] sm:$0xff] %v516_v9  ;;  %v524_v13 = vld [vmem:[%s14502_s13 + $0x658] sm:$0xff]  ;;  %v526_v14 = vld [vmem:[%s14502_s13 + $0x660] sm:$0xff] }
  0x67   :  { %519 = vst [vmem:[#allocation4 + $0x640] sm:$0xff] %v518_v10  ;;  %521 = vst [vmem:[#allocation4 + $0x648] sm:$0xff] %v520_v11  ;;  %v528_v15 = vld [vmem:[%s14502_s13 + $0x668] sm:$0xff]  ;;  %v530_v16 = vld [vmem:[%s14502_s13 + $0x670] sm:$0xff] }
  0x68   :  { %523 = vst [vmem:[#allocation4 + $0x650] sm:$0xff] %v522_v12  ;;  %525 = vst [vmem:[#allocation4 + $0x658] sm:$0xff] %v524_v13  ;;  %v532_v17 = vld [vmem:[%s14502_s13 + $0x678] sm:$0xff]  ;;  %v534_v18 = vld [vmem:[%s14502_s13 + $0x680] sm:$0xff] }
  0x69   :  { %527 = vst [vmem:[#allocation4 + $0x660] sm:$0xff] %v526_v14  ;;  %529 = vst [vmem:[#allocation4 + $0x668] sm:$0xff] %v528_v15  ;;  %v536_v19 = vld [vmem:[%s14502_s13 + $0x688] sm:$0xff]  ;;  %v538_v20 = vld [vmem:[%s14502_s13 + $0x690] sm:$0xff] }
  0x6a   :  { %531 = vst [vmem:[#allocation4 + $0x670] sm:$0xff] %v530_v16  ;;  %533 = vst [vmem:[#allocation4 + $0x678] sm:$0xff] %v532_v17  ;;  %v540_v21 = vld [vmem:[%s14502_s13 + $0x698] sm:$0xff]  ;;  %v542_v22 = vld [vmem:[%s14502_s13 + $0x6a0] sm:$0xff] }
  0x6b   :  { %535 = vst [vmem:[#allocation4 + $0x680] sm:$0xff] %v534_v18  ;;  %537 = vst [vmem:[#allocation4 + $0x688] sm:$0xff] %v536_v19  ;;  %v544_v23 = vld [vmem:[%s14502_s13 + $0x6a8] sm:$0xff]  ;;  %v546_v24 = vld [vmem:[%s14502_s13 + $0x6b0] sm:$0xff] }
  0x6c   :  { %539 = vst [vmem:[#allocation4 + $0x690] sm:$0xff] %v538_v20  ;;  %541 = vst [vmem:[#allocation4 + $0x698] sm:$0xff] %v540_v21  ;;  %v548_v25 = vld [vmem:[%s14502_s13 + $0x6b8] sm:$0xff]  ;;  %v550_v26 = vld [vmem:[%s14502_s13 + $0x6c0] sm:$0xff] }
  0x6d   :  { %543 = vst [vmem:[#allocation4 + $0x6a0] sm:$0xff] %v542_v22  ;;  %545 = vst [vmem:[#allocation4 + $0x6a8] sm:$0xff] %v544_v23  ;;  %v552_v27 = vld [vmem:[%s14502_s13 + $0x6c8] sm:$0xff]  ;;  %v554_v28 = vld [vmem:[%s14502_s13 + $0x6d0] sm:$0xff] }
  0x6e   :  { %547 = vst [vmem:[#allocation4 + $0x6b0] sm:$0xff] %v546_v24  ;;  %549 = vst [vmem:[#allocation4 + $0x6b8] sm:$0xff] %v548_v25  ;;  %v556_v29 = vld [vmem:[%s14502_s13 + $0x6d8] sm:$0xff]  ;;  %v558_v30 = vld [vmem:[%s14502_s13 + $0x6e0] sm:$0xff] }
  0x6f   :  { %551 = vst [vmem:[#allocation4 + $0x6c0] sm:$0xff] %v550_v26  ;;  %553 = vst [vmem:[#allocation4 + $0x6c8] sm:$0xff] %v552_v27  ;;  %v560_v31 = vld [vmem:[%s14502_s13 + $0x6e8] sm:$0xff]  ;;  %v562_v32 = vld [vmem:[%s14502_s13 + $0x6f0] sm:$0xff] }
  0x70   :  { %555 = vst [vmem:[#allocation4 + $0x6d0] sm:$0xff] %v554_v28  ;;  %557 = vst [vmem:[#allocation4 + $0x6d8] sm:$0xff] %v556_v29  ;;  %v564_v33 = vld [vmem:[%s14502_s13 + $0x6f8] sm:$0xff]  ;;  %v566_v34 = vld [vmem:[%s14502_s13 + $0x700] sm:$0xff] }
  0x71   :  { %559 = vst [vmem:[#allocation4 + $0x6e0] sm:$0xff] %v558_v30  ;;  %561 = vst [vmem:[#allocation4 + $0x6e8] sm:$0xff] %v560_v31  ;;  %v568_v35 = vld [vmem:[%s14502_s13 + $0x708] sm:$0xff]  ;;  %v570_v36 = vld [vmem:[%s14502_s13 + $0x710] sm:$0xff] }
  0x72   :  { %563 = vst [vmem:[#allocation4 + $0x6f0] sm:$0xff] %v562_v32  ;;  %565 = vst [vmem:[#allocation4 + $0x6f8] sm:$0xff] %v564_v33  ;;  %v572_v37 = vld [vmem:[%s14502_s13 + $0x718] sm:$0xff]  ;;  %v574_v38 = vld [vmem:[%s14502_s13 + $0x720] sm:$0xff] }
  0x73   :  { %567 = vst [vmem:[#allocation4 + $0x700] sm:$0xff] %v566_v34  ;;  %569 = vst [vmem:[#allocation4 + $0x708] sm:$0xff] %v568_v35  ;;  %v576_v39 = vld [vmem:[%s14502_s13 + $0x728] sm:$0xff]  ;;  %v578_v40 = vld [vmem:[%s14502_s13 + $0x730] sm:$0xff] }
  0x74   :  { %571 = vst [vmem:[#allocation4 + $0x710] sm:$0xff] %v570_v36  ;;  %573 = vst [vmem:[#allocation4 + $0x718] sm:$0xff] %v572_v37  ;;  %v580_v41 = vld [vmem:[%s14502_s13 + $0x738] sm:$0xff]  ;;  %v582_v42 = vld [vmem:[%s14502_s13 + $0x740] sm:$0xff] }
  0x75   :  { %575 = vst [vmem:[#allocation4 + $0x720] sm:$0xff] %v574_v38  ;;  %577 = vst [vmem:[#allocation4 + $0x728] sm:$0xff] %v576_v39  ;;  %v584_v43 = vld [vmem:[%s14502_s13 + $0x748] sm:$0xff]  ;;  %v586_v44 = vld [vmem:[%s14502_s13 + $0x750] sm:$0xff] }
  0x76   :  { %579 = vst [vmem:[#allocation4 + $0x730] sm:$0xff] %v578_v40  ;;  %581 = vst [vmem:[#allocation4 + $0x738] sm:$0xff] %v580_v41  ;;  %v588_v45 = vld [vmem:[%s14502_s13 + $0x758] sm:$0xff]  ;;  %v590_v46 = vld [vmem:[%s14502_s13 + $0x760] sm:$0xff] }
  0x77   :  { %583 = vst [vmem:[#allocation4 + $0x740] sm:$0xff] %v582_v42  ;;  %585 = vst [vmem:[#allocation4 + $0x748] sm:$0xff] %v584_v43  ;;  %v592_v47 = vld [vmem:[%s14502_s13 + $0x768] sm:$0xff]  ;;  %v594_v48 = vld [vmem:[%s14502_s13 + $0x770] sm:$0xff] }
  0x78   :  { %587 = vst [vmem:[#allocation4 + $0x750] sm:$0xff] %v586_v44  ;;  %589 = vst [vmem:[#allocation4 + $0x758] sm:$0xff] %v588_v45  ;;  %v596_v49 = vld [vmem:[%s14502_s13 + $0x778] sm:$0xff]  ;;  %v598_v50 = vld [vmem:[%s14502_s13 + $0x780] sm:$0xff] }
  0x79   :  { %591 = vst [vmem:[#allocation4 + $0x760] sm:$0xff] %v590_v46  ;;  %593 = vst [vmem:[#allocation4 + $0x768] sm:$0xff] %v592_v47  ;;  %v600_v51 = vld [vmem:[%s14502_s13 + $0x788] sm:$0xff]  ;;  %v602_v52 = vld [vmem:[%s14502_s13 + $0x790] sm:$0xff] }
  0x7a   :  { %595 = vst [vmem:[#allocation4 + $0x770] sm:$0xff] %v594_v48  ;;  %597 = vst [vmem:[#allocation4 + $0x778] sm:$0xff] %v596_v49  ;;  %v604_v53 = vld [vmem:[%s14502_s13 + $0x798] sm:$0xff]  ;;  %v606_v54 = vld [vmem:[%s14502_s13 + $0x7a0] sm:$0xff] }
  0x7b   :  { %599 = vst [vmem:[#allocation4 + $0x780] sm:$0xff] %v598_v50  ;;  %601 = vst [vmem:[#allocation4 + $0x788] sm:$0xff] %v600_v51  ;;  %v608_v55 = vld [vmem:[%s14502_s13 + $0x7a8] sm:$0xff]  ;;  %v610_v56 = vld [vmem:[%s14502_s13 + $0x7b0] sm:$0xff] }
  0x7c   :  { %603 = vst [vmem:[#allocation4 + $0x790] sm:$0xff] %v602_v52  ;;  %605 = vst [vmem:[#allocation4 + $0x798] sm:$0xff] %v604_v53  ;;  %v612_v57 = vld [vmem:[%s14502_s13 + $0x7b8] sm:$0xff]  ;;  %v614_v58 = vld [vmem:[%s14502_s13 + $0x7c0] sm:$0xff] }
  0x7d   :  { %607 = vst [vmem:[#allocation4 + $0x7a0] sm:$0xff] %v606_v54  ;;  %609 = vst [vmem:[#allocation4 + $0x7a8] sm:$0xff] %v608_v55  ;;  %v616_v59 = vld [vmem:[%s14502_s13 + $0x7c8] sm:$0xff]  ;;  %v618_v60 = vld [vmem:[%s14502_s13 + $0x7d0] sm:$0xff] }
  0x7e   :  { %611 = vst [vmem:[#allocation4 + $0x7b0] sm:$0xff] %v610_v56  ;;  %613 = vst [vmem:[#allocation4 + $0x7b8] sm:$0xff] %v612_v57  ;;  %v620_v61 = vld [vmem:[%s14502_s13 + $0x7d8] sm:$0xff]  ;;  %v622_v62 = vld [vmem:[%s14502_s13 + $0x7e0] sm:$0xff] }
  0x7f   :  { %615 = vst [vmem:[#allocation4 + $0x7c0] sm:$0xff] %v614_v58  ;;  %617 = vst [vmem:[#allocation4 + $0x7c8] sm:$0xff] %v616_v59  ;;  %v624_v63 = vld [vmem:[%s14502_s13 + $0x7e8] sm:$0xff]  ;;  %v626_v0 = vld [vmem:[%s14502_s13 + $0x7f0] sm:$0xff] }
  0x80   :  { %619 = vst [vmem:[#allocation4 + $0x7d0] sm:$0xff] %v618_v60  ;;  %621 = vst [vmem:[#allocation4 + $0x7d8] sm:$0xff] %v620_v61  ;;  %v628_v1 = vld [vmem:[%s14502_s13 + $0x7f8] sm:$0xff]  ;;  %v630_v2 = vld [vmem:[%s14502_s13 + $0x800] sm:$0xff] }
  0x81   :  { %623 = vst [vmem:[#allocation4 + $0x7e0] sm:$0xff] %v622_v62  ;;  %625 = vst [vmem:[#allocation4 + $0x7e8] sm:$0xff] %v624_v63  ;;  %v632_v3 = vld [vmem:[%s14502_s13 + $0x808] sm:$0xff]  ;;  %v634_v4 = vld [vmem:[%s14502_s13 + $0x810] sm:$0xff] }
  0x82   :  { %627 = vst [vmem:[#allocation4 + $0x7f0] sm:$0xff] %v626_v0  ;;  %629 = vst [vmem:[#allocation4 + $0x7f8] sm:$0xff] %v628_v1  ;;  %v636_v5 = vld [vmem:[%s14502_s13 + $0x818] sm:$0xff]  ;;  %v638_v6 = vld [vmem:[%s14502_s13 + $0x820] sm:$0xff] }
  0x83   :  { %631 = vst [vmem:[#allocation4 + $0x800] sm:$0xff] %v630_v2  ;;  %633 = vst [vmem:[#allocation4 + $0x808] sm:$0xff] %v632_v3  ;;  %v640_v7 = vld [vmem:[%s14502_s13 + $0x828] sm:$0xff]  ;;  %v642_v8 = vld [vmem:[%s14502_s13 + $0x830] sm:$0xff] }
  0x84   :  { %635 = vst [vmem:[#allocation4 + $0x810] sm:$0xff] %v634_v4  ;;  %637 = vst [vmem:[#allocation4 + $0x818] sm:$0xff] %v636_v5  ;;  %v644_v9 = vld [vmem:[%s14502_s13 + $0x838] sm:$0xff]  ;;  %v646_v10 = vld [vmem:[%s14502_s13 + $0x840] sm:$0xff] }
  0x85   :  { %639 = vst [vmem:[#allocation4 + $0x820] sm:$0xff] %v638_v6  ;;  %641 = vst [vmem:[#allocation4 + $0x828] sm:$0xff] %v640_v7  ;;  %v648_v11 = vld [vmem:[%s14502_s13 + $0x848] sm:$0xff]  ;;  %v650_v12 = vld [vmem:[%s14502_s13 + $0x850] sm:$0xff] }
  0x86   :  { %643 = vst [vmem:[#allocation4 + $0x830] sm:$0xff] %v642_v8  ;;  %645 = vst [vmem:[#allocation4 + $0x838] sm:$0xff] %v644_v9  ;;  %v652_v13 = vld [vmem:[%s14502_s13 + $0x858] sm:$0xff]  ;;  %v654_v14 = vld [vmem:[%s14502_s13 + $0x860] sm:$0xff] }
  0x87   :  { %647 = vst [vmem:[#allocation4 + $0x840] sm:$0xff] %v646_v10  ;;  %649 = vst [vmem:[#allocation4 + $0x848] sm:$0xff] %v648_v11  ;;  %v656_v15 = vld [vmem:[%s14502_s13 + $0x868] sm:$0xff]  ;;  %v658_v16 = vld [vmem:[%s14502_s13 + $0x870] sm:$0xff] }
  0x88   :  { %651 = vst [vmem:[#allocation4 + $0x850] sm:$0xff] %v650_v12  ;;  %653 = vst [vmem:[#allocation4 + $0x858] sm:$0xff] %v652_v13  ;;  %v660_v17 = vld [vmem:[%s14502_s13 + $0x878] sm:$0xff]  ;;  %v662_v18 = vld [vmem:[%s14502_s13 + $0x880] sm:$0xff] }
  0x89   :  { %655 = vst [vmem:[#allocation4 + $0x860] sm:$0xff] %v654_v14  ;;  %657 = vst [vmem:[#allocation4 + $0x868] sm:$0xff] %v656_v15  ;;  %v664_v19 = vld [vmem:[%s14502_s13 + $0x888] sm:$0xff]  ;;  %v666_v20 = vld [vmem:[%s14502_s13 + $0x890] sm:$0xff] }
  0x8a   :  { %659 = vst [vmem:[#allocation4 + $0x870] sm:$0xff] %v658_v16  ;;  %661 = vst [vmem:[#allocation4 + $0x878] sm:$0xff] %v660_v17  ;;  %v668_v21 = vld [vmem:[%s14502_s13 + $0x898] sm:$0xff]  ;;  %v670_v22 = vld [vmem:[%s14502_s13 + $0x8a0] sm:$0xff] }
  0x8b   :  { %663 = vst [vmem:[#allocation4 + $0x880] sm:$0xff] %v662_v18  ;;  %665 = vst [vmem:[#allocation4 + $0x888] sm:$0xff] %v664_v19  ;;  %v672_v23 = vld [vmem:[%s14502_s13 + $0x8a8] sm:$0xff]  ;;  %v674_v24 = vld [vmem:[%s14502_s13 + $0x8b0] sm:$0xff] }
  0x8c   :  { %667 = vst [vmem:[#allocation4 + $0x890] sm:$0xff] %v666_v20  ;;  %669 = vst [vmem:[#allocation4 + $0x898] sm:$0xff] %v668_v21  ;;  %v676_v25 = vld [vmem:[%s14502_s13 + $0x8b8] sm:$0xff]  ;;  %v678_v26 = vld [vmem:[%s14502_s13 + $0x8c0] sm:$0xff] }
  0x8d   :  { %671 = vst [vmem:[#allocation4 + $0x8a0] sm:$0xff] %v670_v22  ;;  %673 = vst [vmem:[#allocation4 + $0x8a8] sm:$0xff] %v672_v23  ;;  %v680_v27 = vld [vmem:[%s14502_s13 + $0x8c8] sm:$0xff]  ;;  %v682_v28 = vld [vmem:[%s14502_s13 + $0x8d0] sm:$0xff] }
  0x8e   :  { %675 = vst [vmem:[#allocation4 + $0x8b0] sm:$0xff] %v674_v24  ;;  %677 = vst [vmem:[#allocation4 + $0x8b8] sm:$0xff] %v676_v25  ;;  %v684_v29 = vld [vmem:[%s14502_s13 + $0x8d8] sm:$0xff]  ;;  %v686_v30 = vld [vmem:[%s14502_s13 + $0x8e0] sm:$0xff] }
  0x8f   :  { %679 = vst [vmem:[#allocation4 + $0x8c0] sm:$0xff] %v678_v26  ;;  %681 = vst [vmem:[#allocation4 + $0x8c8] sm:$0xff] %v680_v27  ;;  %v688_v31 = vld [vmem:[%s14502_s13 + $0x8e8] sm:$0xff]  ;;  %v690_v32 = vld [vmem:[%s14502_s13 + $0x8f0] sm:$0xff] }
  0x90   :  { %683 = vst [vmem:[#allocation4 + $0x8d0] sm:$0xff] %v682_v28  ;;  %685 = vst [vmem:[#allocation4 + $0x8d8] sm:$0xff] %v684_v29  ;;  %v692_v33 = vld [vmem:[%s14502_s13 + $0x8f8] sm:$0xff]  ;;  %v694_v34 = vld [vmem:[%s14502_s13 + $0x900] sm:$0xff] }
  0x91   :  { %687 = vst [vmem:[#allocation4 + $0x8e0] sm:$0xff] %v686_v30  ;;  %689 = vst [vmem:[#allocation4 + $0x8e8] sm:$0xff] %v688_v31  ;;  %v696_v35 = vld [vmem:[%s14502_s13 + $0x908] sm:$0xff]  ;;  %v698_v36 = vld [vmem:[%s14502_s13 + $0x910] sm:$0xff] }
  0x92   :  { %691 = vst [vmem:[#allocation4 + $0x8f0] sm:$0xff] %v690_v32  ;;  %693 = vst [vmem:[#allocation4 + $0x8f8] sm:$0xff] %v692_v33  ;;  %v700_v37 = vld [vmem:[%s14502_s13 + $0x918] sm:$0xff]  ;;  %v702_v38 = vld [vmem:[%s14502_s13 + $0x920] sm:$0xff] }
  0x93   :  { %695 = vst [vmem:[#allocation4 + $0x900] sm:$0xff] %v694_v34  ;;  %697 = vst [vmem:[#allocation4 + $0x908] sm:$0xff] %v696_v35  ;;  %v704_v39 = vld [vmem:[%s14502_s13 + $0x928] sm:$0xff]  ;;  %v706_v40 = vld [vmem:[%s14502_s13 + $0x930] sm:$0xff] }
  0x94   :  { %699 = vst [vmem:[#allocation4 + $0x910] sm:$0xff] %v698_v36  ;;  %701 = vst [vmem:[#allocation4 + $0x918] sm:$0xff] %v700_v37  ;;  %v708_v41 = vld [vmem:[%s14502_s13 + $0x938] sm:$0xff]  ;;  %v710_v42 = vld [vmem:[%s14502_s13 + $0x940] sm:$0xff] }
  0x95   :  { %703 = vst [vmem:[#allocation4 + $0x920] sm:$0xff] %v702_v38  ;;  %705 = vst [vmem:[#allocation4 + $0x928] sm:$0xff] %v704_v39  ;;  %v712_v43 = vld [vmem:[%s14502_s13 + $0x948] sm:$0xff]  ;;  %v714_v44 = vld [vmem:[%s14502_s13 + $0x950] sm:$0xff] }
  0x96   :  { %707 = vst [vmem:[#allocation4 + $0x930] sm:$0xff] %v706_v40  ;;  %709 = vst [vmem:[#allocation4 + $0x938] sm:$0xff] %v708_v41  ;;  %v716_v45 = vld [vmem:[%s14502_s13 + $0x958] sm:$0xff]  ;;  %v718_v46 = vld [vmem:[%s14502_s13 + $0x960] sm:$0xff] }
  0x97   :  { %711 = vst [vmem:[#allocation4 + $0x940] sm:$0xff] %v710_v42  ;;  %713 = vst [vmem:[#allocation4 + $0x948] sm:$0xff] %v712_v43  ;;  %v720_v47 = vld [vmem:[%s14502_s13 + $0x968] sm:$0xff]  ;;  %v722_v48 = vld [vmem:[%s14502_s13 + $0x970] sm:$0xff] }
  0x98   :  { %715 = vst [vmem:[#allocation4 + $0x950] sm:$0xff] %v714_v44  ;;  %717 = vst [vmem:[#allocation4 + $0x958] sm:$0xff] %v716_v45  ;;  %v724_v49 = vld [vmem:[%s14502_s13 + $0x978] sm:$0xff]  ;;  %v726_v50 = vld [vmem:[%s14502_s13 + $0x980] sm:$0xff] }
  0x99   :  { %719 = vst [vmem:[#allocation4 + $0x960] sm:$0xff] %v718_v46  ;;  %721 = vst [vmem:[#allocation4 + $0x968] sm:$0xff] %v720_v47  ;;  %v728_v51 = vld [vmem:[%s14502_s13 + $0x988] sm:$0xff]  ;;  %v730_v52 = vld [vmem:[%s14502_s13 + $0x990] sm:$0xff] }
  0x9a   :  { %723 = vst [vmem:[#allocation4 + $0x970] sm:$0xff] %v722_v48  ;;  %725 = vst [vmem:[#allocation4 + $0x978] sm:$0xff] %v724_v49  ;;  %v732_v53 = vld [vmem:[%s14502_s13 + $0x998] sm:$0xff]  ;;  %v734_v54 = vld [vmem:[%s14502_s13 + $0x9a0] sm:$0xff] }
  0x9b   :  { %727 = vst [vmem:[#allocation4 + $0x980] sm:$0xff] %v726_v50  ;;  %729 = vst [vmem:[#allocation4 + $0x988] sm:$0xff] %v728_v51  ;;  %v736_v55 = vld [vmem:[%s14502_s13 + $0x9a8] sm:$0xff]  ;;  %v738_v56 = vld [vmem:[%s14502_s13 + $0x9b0] sm:$0xff] }
  0x9c   :  { %731 = vst [vmem:[#allocation4 + $0x990] sm:$0xff] %v730_v52  ;;  %733 = vst [vmem:[#allocation4 + $0x998] sm:$0xff] %v732_v53  ;;  %v740_v57 = vld [vmem:[%s14502_s13 + $0x9b8] sm:$0xff]  ;;  %v742_v58 = vld [vmem:[%s14502_s13 + $0x9c0] sm:$0xff] }
  0x9d   :  { %735 = vst [vmem:[#allocation4 + $0x9a0] sm:$0xff] %v734_v54  ;;  %737 = vst [vmem:[#allocation4 + $0x9a8] sm:$0xff] %v736_v55  ;;  %v744_v59 = vld [vmem:[%s14502_s13 + $0x9c8] sm:$0xff]  ;;  %v746_v60 = vld [vmem:[%s14502_s13 + $0x9d0] sm:$0xff] }
  0x9e   :  { %739 = vst [vmem:[#allocation4 + $0x9b0] sm:$0xff] %v738_v56  ;;  %741 = vst [vmem:[#allocation4 + $0x9b8] sm:$0xff] %v740_v57  ;;  %v748_v61 = vld [vmem:[%s14502_s13 + $0x9d8] sm:$0xff]  ;;  %v750_v62 = vld [vmem:[%s14502_s13 + $0x9e0] sm:$0xff] }
  0x9f   :  { %743 = vst [vmem:[#allocation4 + $0x9c0] sm:$0xff] %v742_v58  ;;  %745 = vst [vmem:[#allocation4 + $0x9c8] sm:$0xff] %v744_v59  ;;  %v752_v63 = vld [vmem:[%s14502_s13 + $0x9e8] sm:$0xff]  ;;  %v754_v0 = vld [vmem:[%s14502_s13 + $0x9f0] sm:$0xff] }
  0xa0   :  { %747 = vst [vmem:[#allocation4 + $0x9d0] sm:$0xff] %v746_v60  ;;  %749 = vst [vmem:[#allocation4 + $0x9d8] sm:$0xff] %v748_v61  ;;  %v756_v1 = vld [vmem:[%s14502_s13 + $0x9f8] sm:$0xff]  ;;  %v758_v2 = vld [vmem:[%s14502_s13 + $0xa00] sm:$0xff] }
  0xa1   :  { %751 = vst [vmem:[#allocation4 + $0x9e0] sm:$0xff] %v750_v62  ;;  %753 = vst [vmem:[#allocation4 + $0x9e8] sm:$0xff] %v752_v63  ;;  %v760_v3 = vld [vmem:[%s14502_s13 + $0xa08] sm:$0xff]  ;;  %v762_v4 = vld [vmem:[%s14502_s13 + $0xa10] sm:$0xff] }
  0xa2   :  { %755 = vst [vmem:[#allocation4 + $0x9f0] sm:$0xff] %v754_v0  ;;  %757 = vst [vmem:[#allocation4 + $0x9f8] sm:$0xff] %v756_v1  ;;  %v764_v5 = vld [vmem:[%s14502_s13 + $0xa18] sm:$0xff]  ;;  %v766_v6 = vld [vmem:[%s14502_s13 + $0xa20] sm:$0xff] }
  0xa3   :  { %759 = vst [vmem:[#allocation4 + $0xa00] sm:$0xff] %v758_v2  ;;  %761 = vst [vmem:[#allocation4 + $0xa08] sm:$0xff] %v760_v3  ;;  %v768_v7 = vld [vmem:[%s14502_s13 + $0xa28] sm:$0xff]  ;;  %v770_v8 = vld [vmem:[%s14502_s13 + $0xa30] sm:$0xff] }
  0xa4   :  { %763 = vst [vmem:[#allocation4 + $0xa10] sm:$0xff] %v762_v4  ;;  %765 = vst [vmem:[#allocation4 + $0xa18] sm:$0xff] %v764_v5  ;;  %v772_v9 = vld [vmem:[%s14502_s13 + $0xa38] sm:$0xff]  ;;  %v774_v10 = vld [vmem:[%s14502_s13 + $0xa40] sm:$0xff] }
  0xa5   :  { %767 = vst [vmem:[#allocation4 + $0xa20] sm:$0xff] %v766_v6  ;;  %769 = vst [vmem:[#allocation4 + $0xa28] sm:$0xff] %v768_v7  ;;  %v776_v11 = vld [vmem:[%s14502_s13 + $0xa48] sm:$0xff]  ;;  %v778_v12 = vld [vmem:[%s14502_s13 + $0xa50] sm:$0xff] }
  0xa6   :  { %771 = vst [vmem:[#allocation4 + $0xa30] sm:$0xff] %v770_v8  ;;  %773 = vst [vmem:[#allocation4 + $0xa38] sm:$0xff] %v772_v9  ;;  %v780_v13 = vld [vmem:[%s14502_s13 + $0xa58] sm:$0xff]  ;;  %v782_v14 = vld [vmem:[%s14502_s13 + $0xa60] sm:$0xff] }
  0xa7   :  { %775 = vst [vmem:[#allocation4 + $0xa40] sm:$0xff] %v774_v10  ;;  %777 = vst [vmem:[#allocation4 + $0xa48] sm:$0xff] %v776_v11  ;;  %v784_v15 = vld [vmem:[%s14502_s13 + $0xa68] sm:$0xff]  ;;  %v786_v16 = vld [vmem:[%s14502_s13 + $0xa70] sm:$0xff] }
  0xa8   :  { %779 = vst [vmem:[#allocation4 + $0xa50] sm:$0xff] %v778_v12  ;;  %781 = vst [vmem:[#allocation4 + $0xa58] sm:$0xff] %v780_v13  ;;  %v788_v17 = vld [vmem:[%s14502_s13 + $0xa78] sm:$0xff]  ;;  %v790_v18 = vld [vmem:[%s14502_s13 + $0xa80] sm:$0xff] }
  0xa9   :  { %783 = vst [vmem:[#allocation4 + $0xa60] sm:$0xff] %v782_v14  ;;  %785 = vst [vmem:[#allocation4 + $0xa68] sm:$0xff] %v784_v15  ;;  %v792_v19 = vld [vmem:[%s14502_s13 + $0xa88] sm:$0xff]  ;;  %v794_v20 = vld [vmem:[%s14502_s13 + $0xa90] sm:$0xff] }
  0xaa   :  { %787 = vst [vmem:[#allocation4 + $0xa70] sm:$0xff] %v786_v16  ;;  %789 = vst [vmem:[#allocation4 + $0xa78] sm:$0xff] %v788_v17  ;;  %v796_v21 = vld [vmem:[%s14502_s13 + $0xa98] sm:$0xff]  ;;  %v798_v22 = vld [vmem:[%s14502_s13 + $0xaa0] sm:$0xff] }
  0xab   :  { %791 = vst [vmem:[#allocation4 + $0xa80] sm:$0xff] %v790_v18  ;;  %793 = vst [vmem:[#allocation4 + $0xa88] sm:$0xff] %v792_v19  ;;  %v800_v23 = vld [vmem:[%s14502_s13 + $0xaa8] sm:$0xff]  ;;  %v802_v24 = vld [vmem:[%s14502_s13 + $0xab0] sm:$0xff] }
  0xac   :  { %795 = vst [vmem:[#allocation4 + $0xa90] sm:$0xff] %v794_v20  ;;  %797 = vst [vmem:[#allocation4 + $0xa98] sm:$0xff] %v796_v21  ;;  %v804_v25 = vld [vmem:[%s14502_s13 + $0xab8] sm:$0xff]  ;;  %v806_v26 = vld [vmem:[%s14502_s13 + $0xac0] sm:$0xff] }
  0xad   :  { %799 = vst [vmem:[#allocation4 + $0xaa0] sm:$0xff] %v798_v22  ;;  %801 = vst [vmem:[#allocation4 + $0xaa8] sm:$0xff] %v800_v23  ;;  %v808_v27 = vld [vmem:[%s14502_s13 + $0xac8] sm:$0xff]  ;;  %v810_v28 = vld [vmem:[%s14502_s13 + $0xad0] sm:$0xff] }
  0xae   :  { %803 = vst [vmem:[#allocation4 + $0xab0] sm:$0xff] %v802_v24  ;;  %805 = vst [vmem:[#allocation4 + $0xab8] sm:$0xff] %v804_v25  ;;  %v812_v29 = vld [vmem:[%s14502_s13 + $0xad8] sm:$0xff]  ;;  %v814_v30 = vld [vmem:[%s14502_s13 + $0xae0] sm:$0xff] }
  0xaf   :  { %807 = vst [vmem:[#allocation4 + $0xac0] sm:$0xff] %v806_v26  ;;  %809 = vst [vmem:[#allocation4 + $0xac8] sm:$0xff] %v808_v27  ;;  %v816_v31 = vld [vmem:[%s14502_s13 + $0xae8] sm:$0xff]  ;;  %v818_v32 = vld [vmem:[%s14502_s13 + $0xaf0] sm:$0xff] }
  0xb0   :  { %811 = vst [vmem:[#allocation4 + $0xad0] sm:$0xff] %v810_v28  ;;  %813 = vst [vmem:[#allocation4 + $0xad8] sm:$0xff] %v812_v29  ;;  %v820_v33 = vld [vmem:[%s14502_s13 + $0xaf8] sm:$0xff]  ;;  %v822_v34 = vld [vmem:[%s14502_s13 + $0xb00] sm:$0xff] }
  0xb1   :  { %815 = vst [vmem:[#allocation4 + $0xae0] sm:$0xff] %v814_v30  ;;  %817 = vst [vmem:[#allocation4 + $0xae8] sm:$0xff] %v816_v31  ;;  %v824_v35 = vld [vmem:[%s14502_s13 + $0xb08] sm:$0xff]  ;;  %v826_v36 = vld [vmem:[%s14502_s13 + $0xb10] sm:$0xff] }
  0xb2   :  { %819 = vst [vmem:[#allocation4 + $0xaf0] sm:$0xff] %v818_v32  ;;  %821 = vst [vmem:[#allocation4 + $0xaf8] sm:$0xff] %v820_v33  ;;  %v828_v37 = vld [vmem:[%s14502_s13 + $0xb18] sm:$0xff]  ;;  %v830_v38 = vld [vmem:[%s14502_s13 + $0xb20] sm:$0xff] }
  0xb3   :  { %823 = vst [vmem:[#allocation4 + $0xb00] sm:$0xff] %v822_v34  ;;  %825 = vst [vmem:[#allocation4 + $0xb08] sm:$0xff] %v824_v35  ;;  %v832_v39 = vld [vmem:[%s14502_s13 + $0xb28] sm:$0xff]  ;;  %v834_v40 = vld [vmem:[%s14502_s13 + $0xb30] sm:$0xff] }
  0xb4   :  { %827 = vst [vmem:[#allocation4 + $0xb10] sm:$0xff] %v826_v36  ;;  %829 = vst [vmem:[#allocation4 + $0xb18] sm:$0xff] %v828_v37  ;;  %v836_v41 = vld [vmem:[%s14502_s13 + $0xb38] sm:$0xff]  ;;  %v838_v42 = vld [vmem:[%s14502_s13 + $0xb40] sm:$0xff] }
  0xb5   :  { %831 = vst [vmem:[#allocation4 + $0xb20] sm:$0xff] %v830_v38  ;;  %833 = vst [vmem:[#allocation4 + $0xb28] sm:$0xff] %v832_v39  ;;  %v840_v43 = vld [vmem:[%s14502_s13 + $0xb48] sm:$0xff]  ;;  %v842_v44 = vld [vmem:[%s14502_s13 + $0xb50] sm:$0xff] }
  0xb6   :  { %835 = vst [vmem:[#allocation4 + $0xb30] sm:$0xff] %v834_v40  ;;  %837 = vst [vmem:[#allocation4 + $0xb38] sm:$0xff] %v836_v41  ;;  %v844_v45 = vld [vmem:[%s14502_s13 + $0xb58] sm:$0xff]  ;;  %v846_v46 = vld [vmem:[%s14502_s13 + $0xb60] sm:$0xff] }
  0xb7   :  { %839 = vst [vmem:[#allocation4 + $0xb40] sm:$0xff] %v838_v42  ;;  %841 = vst [vmem:[#allocation4 + $0xb48] sm:$0xff] %v840_v43  ;;  %v848_v47 = vld [vmem:[%s14502_s13 + $0xb68] sm:$0xff]  ;;  %v850_v48 = vld [vmem:[%s14502_s13 + $0xb70] sm:$0xff] }
  0xb8   :  { %843 = vst [vmem:[#allocation4 + $0xb50] sm:$0xff] %v842_v44  ;;  %845 = vst [vmem:[#allocation4 + $0xb58] sm:$0xff] %v844_v45  ;;  %v852_v49 = vld [vmem:[%s14502_s13 + $0xb78] sm:$0xff]  ;;  %v854_v50 = vld [vmem:[%s14502_s13 + $0xb80] sm:$0xff] }
  0xb9   :  { %847 = vst [vmem:[#allocation4 + $0xb60] sm:$0xff] %v846_v46  ;;  %849 = vst [vmem:[#allocation4 + $0xb68] sm:$0xff] %v848_v47  ;;  %v856_v51 = vld [vmem:[%s14502_s13 + $0xb88] sm:$0xff]  ;;  %v858_v52 = vld [vmem:[%s14502_s13 + $0xb90] sm:$0xff] }
  0xba   :  { %851 = vst [vmem:[#allocation4 + $0xb70] sm:$0xff] %v850_v48  ;;  %853 = vst [vmem:[#allocation4 + $0xb78] sm:$0xff] %v852_v49  ;;  %v860_v53 = vld [vmem:[%s14502_s13 + $0xb98] sm:$0xff]  ;;  %v862_v54 = vld [vmem:[%s14502_s13 + $0xba0] sm:$0xff] }
  0xbb   :  { %855 = vst [vmem:[#allocation4 + $0xb80] sm:$0xff] %v854_v50  ;;  %857 = vst [vmem:[#allocation4 + $0xb88] sm:$0xff] %v856_v51  ;;  %v864_v55 = vld [vmem:[%s14502_s13 + $0xba8] sm:$0xff]  ;;  %v866_v56 = vld [vmem:[%s14502_s13 + $0xbb0] sm:$0xff] }
  0xbc   :  { %859 = vst [vmem:[#allocation4 + $0xb90] sm:$0xff] %v858_v52  ;;  %861 = vst [vmem:[#allocation4 + $0xb98] sm:$0xff] %v860_v53  ;;  %v868_v57 = vld [vmem:[%s14502_s13 + $0xbb8] sm:$0xff]  ;;  %v870_v58 = vld [vmem:[%s14502_s13 + $0xbc0] sm:$0xff] }
  0xbd   :  { %863 = vst [vmem:[#allocation4 + $0xba0] sm:$0xff] %v862_v54  ;;  %865 = vst [vmem:[#allocation4 + $0xba8] sm:$0xff] %v864_v55  ;;  %v872_v59 = vld [vmem:[%s14502_s13 + $0xbc8] sm:$0xff]  ;;  %v874_v60 = vld [vmem:[%s14502_s13 + $0xbd0] sm:$0xff] }
  0xbe   :  { %867 = vst [vmem:[#allocation4 + $0xbb0] sm:$0xff] %v866_v56  ;;  %869 = vst [vmem:[#allocation4 + $0xbb8] sm:$0xff] %v868_v57  ;;  %v876_v61 = vld [vmem:[%s14502_s13 + $0xbd8] sm:$0xff]  ;;  %v878_v62 = vld [vmem:[%s14502_s13 + $0xbe0] sm:$0xff] }
  0xbf   :  { %871 = vst [vmem:[#allocation4 + $0xbc0] sm:$0xff] %v870_v58  ;;  %873 = vst [vmem:[#allocation4 + $0xbc8] sm:$0xff] %v872_v59  ;;  %v880_v63 = vld [vmem:[%s14502_s13 + $0xbe8] sm:$0xff]  ;;  %v882_v0 = vld [vmem:[%s14502_s13 + $0xbf0] sm:$0xff] }
  0xc0   :  { %875 = vst [vmem:[#allocation4 + $0xbd0] sm:$0xff] %v874_v60  ;;  %877 = vst [vmem:[#allocation4 + $0xbd8] sm:$0xff] %v876_v61  ;;  %v884_v1 = vld [vmem:[%s14502_s13 + $0xbf8] sm:$0xff]  ;;  %v886_v2 = vld [vmem:[%s14502_s13 + $0xc00] sm:$0xff] }
  0xc1   :  { %879 = vst [vmem:[#allocation4 + $0xbe0] sm:$0xff] %v878_v62  ;;  %881 = vst [vmem:[#allocation4 + $0xbe8] sm:$0xff] %v880_v63  ;;  %v888_v3 = vld [vmem:[%s14502_s13 + $0xc08] sm:$0xff]  ;;  %v890_v4 = vld [vmem:[%s14502_s13 + $0xc10] sm:$0xff] }
  0xc2   :  { %883 = vst [vmem:[#allocation4 + $0xbf0] sm:$0xff] %v882_v0  ;;  %885 = vst [vmem:[#allocation4 + $0xbf8] sm:$0xff] %v884_v1  ;;  %v892_v5 = vld [vmem:[%s14502_s13 + $0xc18] sm:$0xff]  ;;  %v894_v6 = vld [vmem:[%s14502_s13 + $0xc20] sm:$0xff] }
  0xc3   :  { %887 = vst [vmem:[#allocation4 + $0xc00] sm:$0xff] %v886_v2  ;;  %889 = vst [vmem:[#allocation4 + $0xc08] sm:$0xff] %v888_v3  ;;  %v896_v7 = vld [vmem:[%s14502_s13 + $0xc28] sm:$0xff]  ;;  %v898_v8 = vld [vmem:[%s14502_s13 + $0xc30] sm:$0xff] }
  0xc4   :  { %891 = vst [vmem:[#allocation4 + $0xc10] sm:$0xff] %v890_v4  ;;  %893 = vst [vmem:[#allocation4 + $0xc18] sm:$0xff] %v892_v5  ;;  %v900_v9 = vld [vmem:[%s14502_s13 + $0xc38] sm:$0xff] }
  0xc5   :  { %895 = vst [vmem:[#allocation4 + $0xc20] sm:$0xff] %v894_v6  ;;  %897 = vst [vmem:[#allocation4 + $0xc28] sm:$0xff] %v896_v7 }
  0xc6   :  { %899 = vst [vmem:[#allocation4 + $0xc30] sm:$0xff] %v898_v8  ;;  %901 = vst [vmem:[#allocation4 + $0xc38] sm:$0xff] %v900_v9 }
  0xc7   :  { %909 = vsyncadd [#allocation7], 50176  ;;  %v12988_v10 = vld [vmem:[%s14491_s17] sm:$0xff]  ;;  %v12993_v11 = vld [vmem:[%s14491_s17 + $0x8] sm:$0xff] }
  0xc8   :  { %14558 = vst [vmem:[#allocation16_spill] sm:$0xff] %v12988_v10  ;;  %14559 = vst [vmem:[#allocation17_spill] sm:$0xff] %v12993_v11  ;;  %v12998_v12 = vld [vmem:[%s14491_s17 + $0x10] sm:$0xff]  ;;  %v13003_v13 = vld [vmem:[%s14491_s17 + $0x18] sm:$0xff] }
  0xc9   :  { %14560 = vst [vmem:[#allocation18_spill] sm:$0xff] %v12998_v12  ;;  %14561 = vst [vmem:[#allocation19_spill] sm:$0xff] %v13003_v13  ;;  %v13008_v14 = vld [vmem:[%s14491_s17 + $0x20] sm:$0xff]  ;;  %v13013_v15 = vld [vmem:[%s14491_s17 + $0x28] sm:$0xff] }
  0xca   :  { %14562 = vst [vmem:[#allocation20_spill] sm:$0xff] %v13008_v14  ;;  %14563 = vst [vmem:[#allocation21_spill] sm:$0xff] %v13013_v15  ;;  %v13018_v16 = vld [vmem:[%s14491_s17 + $0x30] sm:$0xff]  ;;  %v13023_v17 = vld [vmem:[%s14491_s17 + $0x38] sm:$0xff] }
  0xcb   :  { %14564 = vst [vmem:[#allocation22_spill] sm:$0xff] %v13018_v16  ;;  %14565 = vst [vmem:[#allocation23_spill] sm:$0xff] %v13023_v17  ;;  %v13028_v18 = vld [vmem:[%s14491_s17 + $0x40] sm:$0xff]  ;;  %v13033_v19 = vld [vmem:[%s14491_s17 + $0x48] sm:$0xff] }
  0xcc   :  { %14566 = vst [vmem:[#allocation24_spill] sm:$0xff] %v13028_v18  ;;  %14567 = vst [vmem:[#allocation25_spill] sm:$0xff] %v13033_v19  ;;  %v13038_v20 = vld [vmem:[%s14491_s17 + $0x50] sm:$0xff]  ;;  %v13043_v21 = vld [vmem:[%s14491_s17 + $0x58] sm:$0xff] }
  0xcd   :  { %14568 = vst [vmem:[#allocation26_spill] sm:$0xff] %v13038_v20  ;;  %14569 = vst [vmem:[#allocation27_spill] sm:$0xff] %v13043_v21  ;;  %v13048_v22 = vld [vmem:[%s14491_s17 + $0x60] sm:$0xff]  ;;  %v13053_v23 = vld [vmem:[%s14491_s17 + $0x68] sm:$0xff] }
  0xce   :  { %14570 = vst [vmem:[#allocation28_spill] sm:$0xff] %v13048_v22  ;;  %14571 = vst [vmem:[#allocation29_spill] sm:$0xff] %v13053_v23  ;;  %v13058_v24 = vld [vmem:[%s14491_s17 + $0x70] sm:$0xff]  ;;  %v13063_v25 = vld [vmem:[%s14491_s17 + $0x78] sm:$0xff] }
  0xcf   :  { %14572 = vst [vmem:[#allocation30_spill] sm:$0xff] %v13058_v24  ;;  %14573 = vst [vmem:[#allocation31_spill] sm:$0xff] %v13063_v25  ;;  %v13068_v26 = vld [vmem:[%s14491_s17 + $0x80] sm:$0xff]  ;;  %v13073_v27 = vld [vmem:[%s14491_s17 + $0x88] sm:$0xff] }
  0xd0   :  { %14574 = vst [vmem:[#allocation32_spill] sm:$0xff] %v13068_v26  ;;  %14575 = vst [vmem:[#allocation33_spill] sm:$0xff] %v13073_v27  ;;  %v13078_v28 = vld [vmem:[%s14491_s17 + $0x90] sm:$0xff]  ;;  %v13083_v29 = vld [vmem:[%s14491_s17 + $0x98] sm:$0xff] }
  0xd1   :  { %14576 = vst [vmem:[#allocation34_spill] sm:$0xff] %v13078_v28  ;;  %14577 = vst [vmem:[#allocation35_spill] sm:$0xff] %v13083_v29  ;;  %v13088_v30 = vld [vmem:[%s14491_s17 + $0xa0] sm:$0xff]  ;;  %v13093_v31 = vld [vmem:[%s14491_s17 + $0xa8] sm:$0xff] }
  0xd2   :  { %14578 = vst [vmem:[#allocation36_spill] sm:$0xff] %v13088_v30  ;;  %14579 = vst [vmem:[#allocation37_spill] sm:$0xff] %v13093_v31  ;;  %v13098_v32 = vld [vmem:[%s14491_s17 + $0xb0] sm:$0xff]  ;;  %v13103_v33 = vld [vmem:[%s14491_s17 + $0xb8] sm:$0xff] }
  0xd3   :  { %14580 = vst [vmem:[#allocation38_spill] sm:$0xff] %v13098_v32  ;;  %14581 = vst [vmem:[#allocation39_spill] sm:$0xff] %v13103_v33  ;;  %v13108_v34 = vld [vmem:[%s14491_s17 + $0xc0] sm:$0xff]  ;;  %v13113_v35 = vld [vmem:[%s14491_s17 + $0xc8] sm:$0xff] }
  0xd4   :  { %14582 = vst [vmem:[#allocation40_spill] sm:$0xff] %v13108_v34  ;;  %14583 = vst [vmem:[#allocation41_spill] sm:$0xff] %v13113_v35  ;;  %v13118_v36 = vld [vmem:[%s14491_s17 + $0xd0] sm:$0xff]  ;;  %v13123_v37 = vld [vmem:[%s14491_s17 + $0xd8] sm:$0xff] }
  0xd5   :  { %14584 = vst [vmem:[#allocation42_spill] sm:$0xff] %v13118_v36  ;;  %14585 = vst [vmem:[#allocation43_spill] sm:$0xff] %v13123_v37  ;;  %v13128_v38 = vld [vmem:[%s14491_s17 + $0xe0] sm:$0xff]  ;;  %v13133_v39 = vld [vmem:[%s14491_s17 + $0xe8] sm:$0xff] }
  0xd6   :  { %14586 = vst [vmem:[#allocation44_spill] sm:$0xff] %v13128_v38  ;;  %14587 = vst [vmem:[#allocation45_spill] sm:$0xff] %v13133_v39  ;;  %v13138_v40 = vld [vmem:[%s14491_s17 + $0xf0] sm:$0xff]  ;;  %v13143_v41 = vld [vmem:[%s14491_s17 + $0xf8] sm:$0xff] }
  0xd7   :  { %14588 = vst [vmem:[#allocation46_spill] sm:$0xff] %v13138_v40  ;;  %14589 = vst [vmem:[#allocation47_spill] sm:$0xff] %v13143_v41 }
  0xd8   :  { %1015 = vsyncadd [#allocation7 + $0x1], 4096  ;;  %v1050_v42 = vld [vmem:[%s14495_s21] sm:$0xff]  ;;  %v1052_v43 = vld [vmem:[%s14495_s21 + $0x8] sm:$0xff] }
  0xd9   :  { %1051 = vst [vmem:[#allocation6] sm:$0xff] %v1050_v42  ;;  %1053 = vst [vmem:[#allocation6 + $0x8] sm:$0xff] %v1052_v43  ;;  %v1054_v44 = vld [vmem:[%s14495_s21 + $0x10] sm:$0xff]  ;;  %v1056_v45 = vld [vmem:[%s14495_s21 + $0x18] sm:$0xff] }
  0xda   :  { %v1058_v46 = vld [vmem:[%s14495_s21 + $0x20] sm:$0xff]  ;;  %1055 = vst [vmem:[#allocation6 + $0x10] sm:$0xff] %v1054_v44  ;;  %1057 = vst [vmem:[#allocation6 + $0x18] sm:$0xff] %v1056_v45  ;;  %v1060_v47 = vld [vmem:[%s14495_s21 + $0x28] sm:$0xff] }
  0xdb   :  { %1059 = vst [vmem:[#allocation6 + $0x20] sm:$0xff] %v1058_v46  ;;  %v1062_v48 = vld [vmem:[%s14495_s21 + $0x30] sm:$0xff]  ;;  %v1064_v49 = vld [vmem:[%s14495_s21 + $0x38] sm:$0xff]  ;;  %1061 = vst [vmem:[#allocation6 + $0x28] sm:$0xff] %v1060_v47 }
  0xdc   :  { %1063 = vst [vmem:[#allocation6 + $0x30] sm:$0xff] %v1062_v48  ;;  %1065 = vst [vmem:[#allocation6 + $0x38] sm:$0xff] %v1064_v49  ;;  %v1066_v50 = vld [vmem:[%s14495_s21 + $0x40] sm:$0xff]  ;;  %v1068_v51 = vld [vmem:[%s14495_s21 + $0x48] sm:$0xff] }
  0xdd   :  { %v1070_v52 = vld [vmem:[%s14495_s21 + $0x50] sm:$0xff]  ;;  %1067 = vst [vmem:[#allocation6 + $0x40] sm:$0xff] %v1066_v50  ;;  %1069 = vst [vmem:[#allocation6 + $0x48] sm:$0xff] %v1068_v51  ;;  %v1072_v53 = vld [vmem:[%s14495_s21 + $0x58] sm:$0xff] }
  0xde   :  { %1071 = vst [vmem:[#allocation6 + $0x50] sm:$0xff] %v1070_v52  ;;  %v1074_v54 = vld [vmem:[%s14495_s21 + $0x60] sm:$0xff]  ;;  %v1076_v55 = vld [vmem:[%s14495_s21 + $0x68] sm:$0xff]  ;;  %1073 = vst [vmem:[#allocation6 + $0x58] sm:$0xff] %v1072_v53 }
  0xdf   :  { %1075 = vst [vmem:[#allocation6 + $0x60] sm:$0xff] %v1074_v54  ;;  %1077 = vst [vmem:[#allocation6 + $0x68] sm:$0xff] %v1076_v55  ;;  %v1078_v56 = vld [vmem:[%s14495_s21 + $0x70] sm:$0xff]  ;;  %v1080_v57 = vld [vmem:[%s14495_s21 + $0x78] sm:$0xff] }
  0xe0   :  { %v1082_v58 = vld [vmem:[%s14495_s21 + $0x80] sm:$0xff]  ;;  %1079 = vst [vmem:[#allocation6 + $0x70] sm:$0xff] %v1078_v56  ;;  %1081 = vst [vmem:[#allocation6 + $0x78] sm:$0xff] %v1080_v57  ;;  %v1084_v59 = vld [vmem:[%s14495_s21 + $0x88] sm:$0xff] }
  0xe1   :  { %1083 = vst [vmem:[#allocation6 + $0x80] sm:$0xff] %v1082_v58  ;;  %v1086_v60 = vld [vmem:[%s14495_s21 + $0x90] sm:$0xff]  ;;  %v1088_v61 = vld [vmem:[%s14495_s21 + $0x98] sm:$0xff]  ;;  %1085 = vst [vmem:[#allocation6 + $0x88] sm:$0xff] %v1084_v59 }
  0xe2   :  { %1087 = vst [vmem:[#allocation6 + $0x90] sm:$0xff] %v1086_v60  ;;  %1089 = vst [vmem:[#allocation6 + $0x98] sm:$0xff] %v1088_v61  ;;  %v1090_v62 = vld [vmem:[%s14495_s21 + $0xa0] sm:$0xff]  ;;  %v1092_v63 = vld [vmem:[%s14495_s21 + $0xa8] sm:$0xff] }
  0xe3   :  { %v1094_v0 = vld [vmem:[%s14495_s21 + $0xb0] sm:$0xff]  ;;  %1091 = vst [vmem:[#allocation6 + $0xa0] sm:$0xff] %v1090_v62  ;;  %1093 = vst [vmem:[#allocation6 + $0xa8] sm:$0xff] %v1092_v63  ;;  %v1096_v1 = vld [vmem:[%s14495_s21 + $0xb8] sm:$0xff] }
  0xe4   :  { %1095 = vst [vmem:[#allocation6 + $0xb0] sm:$0xff] %v1094_v0  ;;  %v1098_v2 = vld [vmem:[%s14495_s21 + $0xc0] sm:$0xff]  ;;  %v1100_v3 = vld [vmem:[%s14495_s21 + $0xc8] sm:$0xff]  ;;  %1097 = vst [vmem:[#allocation6 + $0xb8] sm:$0xff] %v1096_v1 }
  0xe5   :  { %1099 = vst [vmem:[#allocation6 + $0xc0] sm:$0xff] %v1098_v2  ;;  %1101 = vst [vmem:[#allocation6 + $0xc8] sm:$0xff] %v1100_v3  ;;  %v1102_v4 = vld [vmem:[%s14495_s21 + $0xd0] sm:$0xff]  ;;  %v1104_v5 = vld [vmem:[%s14495_s21 + $0xd8] sm:$0xff] }
  0xe6   :  { %v1106_v6 = vld [vmem:[%s14495_s21 + $0xe0] sm:$0xff]  ;;  %1103 = vst [vmem:[#allocation6 + $0xd0] sm:$0xff] %v1102_v4  ;;  %1105 = vst [vmem:[#allocation6 + $0xd8] sm:$0xff] %v1104_v5  ;;  %v1108_v7 = vld [vmem:[%s14495_s21 + $0xe8] sm:$0xff] }
  0xe7   :  { %1107 = vst [vmem:[#allocation6 + $0xe0] sm:$0xff] %v1106_v6  ;;  %v1110_v8 = vld [vmem:[%s14495_s21 + $0xf0] sm:$0xff]  ;;  %v1112_v9 = vld [vmem:[%s14495_s21 + $0xf8] sm:$0xff]  ;;  %1109 = vst [vmem:[#allocation6 + $0xe8] sm:$0xff] %v1108_v7 }
  0xe8   :  { %1111 = vst [vmem:[#allocation6 + $0xf0] sm:$0xff] %v1110_v8  ;;  %1113 = vst [vmem:[#allocation6 + $0xf8] sm:$0xff] %v1112_v9 }
  0xe9   :  { %1121 = vsyncadd [#allocation7 + $0x2], 4096  ;;  %s14590_s6 = sld [smem:[#allocation49_spill]]  ;;  %v14509_v44 = vmov 0.0   ;;  %vm11659_vm0 = vmmov 0   ;;  %vm1143_vm1 = vcmask 64512  }
  0xea   :  { %s14591_s2 = sld [smem:[#allocation48_spill]]  ;;  %10477 = vmatprep.subr.mxu0 %v14509_v44  ;;  %10479 = vmatprep.mubr.msk.f32.mxu0 %vm11659_vm0, %v14509_v44  ;;  %vm1424_vm2 = vcmask 261120   ;;  %vm1461_vm3 = vcmask 254976   ;;  %vm1659_vm4 = vcmask 1041408   ;;  %vm1655_vm5 = vcmask 801792  }
  0xeb   :  { %10518 = vmatprep.subr.mxu1 %v14509_v44  ;;  %10544 = vmatprep.mubr.msk.f32.mxu1 %vm11659_vm0, %v14509_v44  ;;  %s14592_s5 = sld [smem:[#allocation50_spill]]  ;;  %vm1965_vm6 = vcmask 1042432   ;;  %vm2046_vm7 = vcmask 15360   ;;  %vm2163_vm8 = vcmask 1043456   ;;  %vm2123_vm9 = vcmask 31744  }
  0xec   :  { %s14593_s10 = sld [smem:[#allocation51_spill]] }
  0xed   :  { %s14594_s1 = sld [smem:[#allocation56_spill]] }
  0xee   :  { %s14597_s4 = sld [smem:[#allocation55_spill]] }
  0xef   :  { %v1135_v42 = vld [vmem:[%s14590_s6] sm:$0xff]  ;;  %s14599_s6 = sld [smem:[#allocation54_spill]] }
  0xf0   :  { %v1122_v43 = vld [vmem:[%s14591_s2] sm:$0xff]  ;;  %10478 = vmatpush3.msra.mxu0 %v1135_v42  ;;  %v1123_v45 = vld [vmem:[%s14591_s2 + $0x8] sm:$0xff]  ;;  %v1124_v46 = vld [vmem:[%s14591_s2 + $0x10] sm:$0xff]  ;;  %s14600_s21 = sld [smem:[#allocation58_spill]] }
  0xf1   :  { %10480 = vmatmul.mubr.msk.f32.vlgmr.msra.gmra.mxu0 %vm1143_vm1, %v1122_v43  ;;  %10604 = vmatprep.subr.mxu0 %v14509_v44  ;;  %v1125_v47 = vld [vmem:[%s14591_s2 + $0x18] sm:$0xff]  ;;  %v1126_v48 = vld [vmem:[%s14591_s2 + $0x20] sm:$0xff]  ;;  %v1127_v49 = vld [vmem:[%s14591_s2 + $0x28] sm:$0xff]  ;;  %s14601_s11 = sld [smem:[#allocation57_spill]] }
  0xf2   :  { %10482 = vmatprep.mubr.msk.f32.mxu0 %vm11659_vm0, %v14509_v44  ;;  %v1128_v50 = vld [vmem:[%s14591_s2 + $0x30] sm:$0xff]  ;;  %v1129_v51 = vld [vmem:[%s14591_s2 + $0x38] sm:$0xff]  ;;  %v1130_v52 = vld [vmem:[%s14591_s2 + $0x40] sm:$0xff]  ;;  %s14602_s3 = sld [smem:[#allocation59_spill]] }
  0xf3   :  { %v1131_v53 = vld [vmem:[%s14591_s2 + $0x48] sm:$0xff]  ;;  %v1132_v54 = vld [vmem:[%s14591_s2 + $0x50] sm:$0xff]  ;;  %v1133_v55 = vld [vmem:[%s14591_s2 + $0x58] sm:$0xff] }
  0xf4   :  { %v1134_v56 = vld [vmem:[%s14591_s2 + $0x60] sm:$0x3]  ;;  %v13523_v38 = vld [vmem:[%s14594_s1 + $0x50] sm:$0xff]  ;;  %v13535_v41 = vld [vmem:[%s14594_s1 + $0x58] sm:$0xff]  ;;  %s14598_s2 = sld [smem:[#allocation53_spill]] }
  0xf5   :  { %10483 = vmatmul.mubr.msk.f32.gmra.mxu0 %vm1143_vm1, %v1123_v45  ;;  %v9124_v42 = vld [vmem:[%s14592_s5] ss:$0 sm:$0xff]  ;;  %v9178_v39 = vadd.f32 -1.0, %v13523_v38 }
  0xf6   :  { %10485 = vmatprep.mubr.msk.f32.mxu0 %vm11659_vm0, %v14509_v44 }
  0xf9   :  { %10486 = vmatmul.mubr.msk.f32.gmra.mxu0 %vm1143_vm1, %v1124_v46 }
  0xfa   :  { %10488 = vmatprep.mubr.msk.f32.mxu0 %vm11659_vm0, %v14509_v44 }
  0xfd   :  { %10489 = vmatmul.mubr.msk.f32.gmra.mxu0 %vm1143_vm1, %v1125_v47 }
  0xfe   :  { %10491 = vmatprep.mubr.msk.f32.mxu0 %vm11659_vm0, %v14509_v44 }
 0x101   :  { %10492 = vmatmul.mubr.msk.f32.gmra.mxu0 %vm1143_vm1, %v1126_v48 }
 0x102   :  { %10494 = vmatprep.mubr.msk.f32.mxu0 %vm11659_vm0, %v14509_v44 }
 0x105   :  { %10495 = vmatmul.mubr.msk.f32.gmra.mxu0 %vm1143_vm1, %v1127_v49 }
 0x106   :  { %10497 = vmatprep.mubr.msk.f32.mxu0 %vm11659_vm0, %v14509_v44 }
 0x109   :  { %10498 = vmatmul.mubr.msk.f32.gmra.mxu0 %vm1143_vm1, %v1128_v50 }
 0x10a   :  { %10500 = vmatprep.mubr.msk.f32.mxu0 %vm11659_vm0, %v14509_v44 }
 0x10d   :  { %10501 = vmatmul.mubr.msk.f32.gmra.mxu0 %vm1143_vm1, %v1129_v51 }
 0x10e   :  { %10503 = vmatprep.mubr.msk.f32.mxu0 %vm11659_vm0, %v14509_v44 }
 0x111   :  { %10504 = vmatmul.mubr.msk.f32.gmra.mxu0 %vm1143_vm1, %v1130_v52 }
 0x112   :  { %10506 = vmatprep.mubr.msk.f32.mxu0 %vm11659_vm0, %v14509_v44 }
 0x115   :  { %10507 = vmatmul.mubr.msk.f32.gmra.mxu0 %vm1143_vm1, %v1131_v53 }
 0x116   :  { %10509 = vmatprep.mubr.msk.f32.mxu0 %vm11659_vm0, %v14509_v44 }
 0x119   :  { %10510 = vmatmul.mubr.msk.f32.gmra.mxu0 %vm1143_vm1, %v1132_v54 }
 0x11a   :  { %10512 = vmatprep.mubr.msk.f32.mxu0 %vm11659_vm0, %v14509_v44 }
 0x11d   :  { %10513 = vmatmul.mubr.msk.f32.gmra.mxu0 %vm1143_vm1, %v1133_v55 }
 0x11e   :  { %10515 = vmatprep.mubr.msk.f32.mxu0 %vm11659_vm0, %v14509_v44 }
 0x121   :  { %10516 = vmatmul.mubr.msk.f32.gmra.mxu0 %vm1143_vm1, %v1134_v56 }
 0x122   :  { %10630 = vmatprep.mubr.msk.f32.mxu0 %vm11659_vm0, %v14509_v44 }
 0x1b1   :  { %v13329_v57 = vpop.f32.mrf.mxu0 }
 0x1b3   :  { %v10481_v58 = vpop.f32.mrf.mxu0 }
 0x1b5   :  { %v1254_v59 = vpop.f32.mrf.mxu0 }
 0x1b7   :  { %v10484_v60 = vpop.f32.mrf.mxu0 }
 0x1b9   :  { %v1259_v61 = vpop.f32.mrf.mxu0 }
 0x1bb   :  { %v10487_v62 = vpop.f32.mrf.mxu0 }
 0x1bd   :  { %v1264_v63 = vpop.f32.mrf.mxu0 }
 0x1be   :  { %v13344_v55 = vadd.f32 %v9124_v42, %v1264_v63 }
 0x1bf   :  { %v10490_v0 = vpop.f32.mrf.mxu0 }
 0x1c1   :  { %v1269_v1 = vpop.f32.mrf.mxu0 }
 0x1c3   :  { %v10493_v2 = vpop.f32.mrf.mxu0 }
 0x1c5   :  { %v1274_v3 = vpop.f32.mrf.mxu0 }
 0x1c6   :  { %v13338_v49 = vadd.f32 %v9124_v42, %v1274_v3  ;;  %v13352_v3 = vadd.f32 %v9124_v42, %v1254_v59 }
 0x1c7   :  { %v10496_v4 = vpop.f32.mrf.mxu0 }
 0x1c8   :  { %v9143_v56 = vmul.f32 -1.442695, %v13338_v49  ;;  %v9141_v4 = vmul.f32 -1.442695, %v13344_v55 }
 0x1c9   :  { %v1279_v5 = vpop.f32.mrf.mxu0 }
 0x1cb   :  { %v10499_v6 = vpop.f32.mrf.mxu0 }
 0x1cc   :  { %v13356_v6 = vadd.f32 %v9124_v42, %v1279_v5 }
 0x1cd   :  { %v1284_v7 = vpop.f32.mrf.mxu0 }
 0x1ce   :  { %v13334_v45 = vadd.f32 %v9124_v42, %v1284_v7 }
 0x1cf   :  { %v10502_v8 = vpop.f32.mrf.mxu0 }
 0x1d0   :  { %v9145_v50 = vmul.f32 -1.442695, %v13334_v45 }
 0x1d1   :  { %v1289_v9 = vpop.f32.mrf.mxu0 }
 0x1d2   :  { %v13348_v60 = vadd.f32 %v9124_v42, %v1289_v9 }
 0x1d3   :  { %v10505_v43 = vpop.f32.mrf.mxu0 }
 0x1d4   :  { %v9146_v7 = vmul.f32 -1.442695, %v13348_v60 }
 0x1d5   :  { %v1294_v46 = vpop.f32.mrf.mxu0 }
 0x1d6   :  { %v13336_v47 = vadd.f32 %v9124_v42, %v1294_v46  ;;  %v9139_v46 = vmul.f32 -1.442695, %v13352_v3 }
 0x1d7   :  { %v10508_v48 = vpop.f32.mrf.mxu0 }
 0x1d8   :  { %v9147_v51 = vmul.f32 -1.442695, %v13336_v47  ;;  %v13363_v48 = vadd.f32 %v9124_v42, %v1269_v1 }
 0x1d9   :  { %v1299_v52 = vpop.f32.mrf.mxu0 }
 0x1da   :  { %10920 = vpow2.f32 %v9147_v51  ;;  %v13342_v53 = vadd.f32 %v9124_v42, %v1299_v52 }
 0x1db   :  { %v10511_v54 = vpop.f32.mrf.mxu0  ;;  %10922 = vpow2.f32 %v9145_v50  ;;  %v9144_v50 = vmul.f32 -1.442695, %v13356_v6 }
 0x1dc   :  { %v9148_v58 = vmul.f32 -1.442695, %v13342_v53  ;;  %v13366_v54 = vadd.f32 %v9124_v42, %v1259_v61 }
 0x1dd   :  { %v1304_v62 = vpop.f32.mrf.mxu0 }
 0x1de   :  { %10924 = vpow2.f32 %v9148_v58  ;;  %v13350_v0 = vadd.f32 %v9124_v42, %v1304_v62  ;;  %v13370_v62 = vadd.f32 %v9124_v42, %v13329_v57 }
 0x1df   :  { %v10514_v2 = vpop.f32.mrf.mxu0  ;;  %10926 = vpow2.f32 %v9143_v56  ;;  %v9142_v56 = vmul.f32 -1.442695, %v13363_v48 }
 0x1e0   :  { %v9149_v63 = vmul.f32 -1.442695, %v13350_v0 }
 0x1e1   :  { %v1309_v8 = vpop.f32.mrf.mxu0 }
 0x1e2   :  { %10928 = vpow2.f32 %v9149_v63  ;;  %v13359_v9 = vadd.f32 %v9124_v42, %v1309_v8  ;;  %v9140_v63 = vmul.f32 -1.442695, %v13366_v54  ;;  %v9138_v8 = vmul.f32 -1.442695, %v13370_v62 }
 0x1e3   :  { %v10517_v43 = vpop.f32.mrf.mxu0  ;;  %10930 = vpow2.f32 %v9141_v4 }
 0x1e4   :  { %v9150_v59 = vmul.f32 -1.442695, %v13359_v9  ;;  %10932 = vpow2.f32 %v9146_v7 }
 0x1e6   :  { %10934 = vpow2.f32 %v9150_v59 }
 0x1e7   :  { %v10921_v51 = vpop.eup %10920  ;;  %10936 = vpow2.f32 %v9139_v46 }
 0x1e8   :  { %v1361_v5 = vadd.f32 1.0, %v10921_v51  ;;  %v10923_v52 = vpop.eup %10922  ;;  %10938 = vpow2.f32 %v9144_v50 }
 0x1e9   :  { %v1359_v2 = vadd.f32 1.0, %v10923_v52 }
 0x1ea   :  { %10940 = vrcp.f32 %v1361_v5 }
 0x1eb   :  { %v10925_v58 = vpop.eup %10924  ;;  %10942 = vpow2.f32 %v9142_v56 }
 0x1ec   :  { %v1362_v1 = vadd.f32 1.0, %v10925_v58  ;;  %v10927_v4 = vpop.eup %10926 }
 0x1ed   :  { %v1357_v61 = vadd.f32 1.0, %v10927_v4 }
 0x1ee   :  { %10944 = vrcp.f32 %v1362_v1 }
 0x1ef   :  { %v10929_v7 = vpop.eup %10928  ;;  %10946 = vrcp.f32 %v1359_v2 }
 0x1f0   :  { %v10931_v43 = vpop.eup %10930  ;;  %10948 = vpow2.f32 %v9140_v63  ;;  %v1363_v46 = vadd.f32 1.0, %v10929_v7 }
 0x1f1   :  { %v10933_v59 = vpop.eup %10932  ;;  %10950 = vpow2.f32 %v9138_v8  ;;  %v1355_v42 = vadd.f32 1.0, %v10931_v43  ;;  %v13383_v43 = vld [vmem:[%s14593_s10] ss:$0 sm:$0xff] }
 0x1f2   :  { %10952 = vrcp.f32 %v1357_v61  ;;  %v1360_v51 = vadd.f32 1.0, %v10933_v59 }
 0x1f3   :  { %v10935_v57 = vpop.eup %10934  ;;  %10954 = vrcp.f32 %v1363_v46 }
 0x1f4   :  { %v10937_v50 = vpop.eup %10936  ;;  %v1364_v5 = vadd.f32 1.0, %v10935_v57 }
 0x1f5   :  { %v10939_v52 = vpop.eup %10938  ;;  %v1353_v56 = vadd.f32 1.0, %v10937_v50 }
 0x1f6   :  { %10956 = vrcp.f32 %v1364_v5  ;;  %v1358_v1 = vadd.f32 1.0, %v10939_v52 }
 0x1f7   :  { %10958 = vrcp.f32 %v1355_v42  ;;  %v10941_v58 = vpop.eup %10940 }
 0x1f8   :  { %10960 = vrcp.f32 %v1360_v51  ;;  %v10943_v2 = vpop.eup %10942  ;;  %v13375_v63 = vmul.f32 %v10941_v58, %v13336_v47 }
 0x1f9   :  { %10962 = vrcp.f32 %v1353_v56  ;;  %v1356_v61 = vadd.f32 1.0, %v10943_v2 }
 0x1fa   :  { %10964 = vrcp.f32 %v1358_v1  ;;  %v1420_v42 = vmul.f32 %v13383_v43, %v13375_v63 }
 0x1fb   :  { %v10945_v4 = vpop.eup %10944  ;;  %10966 = vrcp.f32 %v1356_v61 }
 0x1fc   :  { %v13378_v7 = vmul.f32 %v10945_v4, %v13342_v53  ;;  %v10947_v8 = vpop.eup %10946  ;;  %v1452_v58 = vsel %vm1424_vm2, %v1420_v42, 0.0 }
 0x1fd   :  { %v10949_v46 = vpop.eup %10948  ;;  %v13388_v47 = vmul.f32 %v10947_v8, %v13334_v45 }
 0x1fe   :  { %v1421_v59 = vmul.f32 %v13383_v43, %v13378_v7  ;;  %v10951_v57 = vpop.eup %10950  ;;  %v1354_v51 = vadd.f32 1.0, %v10949_v46 }
 0x1ff   :  { %v10953_v50 = vpop.eup %10952  ;;  %v1418_v45 = vmul.f32 %v13383_v43, %v13388_v47  ;;  %v1352_v2 = vadd.f32 1.0, %v10951_v57 }
 0x200   :  { %v1455_v53 = vsel %vm1424_vm2, %v1421_v59, 0.0  ;;  %v10955_v5 = vpop.eup %10954  ;;  %v13394_v56 = vmul.f32 %v10953_v50, %v13338_v49  ;;  %10968 = vrcp.f32 %v1354_v51 }
 0x201   :  { %1456 = vadd.xlane.f32.xlu1 %v1455_v53  ;;  %v13400_v4 = vmul.f32 %v10955_v5, %v13350_v0  ;;  %v1446_v59 = vsel %vm1424_vm2, %v1418_v45, 0.0  ;;  %10970 = vrcp.f32 %v1352_v2 }
 0x202   :  { %v1416_v57 = vmul.f32 %v13383_v43, %v13394_v56 }
 0x203   :  { %v10957_v52 = vpop.eup %10956  ;;  %v1422_v42 = vmul.f32 %v13383_v43, %v13400_v4 }
 0x204   :  { %v10959_v1 = vpop.eup %10958  ;;  %v13403_v8 = vmul.f32 %v10957_v52, %v13359_v9  ;;  %v1440_v51 = vsel %vm1424_vm2, %v1416_v57, 0.0 }
 0x205   :  { %1453 = vadd.xlane.f32.xlu1 %v1452_v58  ;;  %v10961_v61 = vpop.eup %10960  ;;  %v13408_v46 = vmul.f32 %v10959_v1, %v13344_v55 }
 0x206   :  { %v1423_v49 = vmul.f32 %v13383_v43, %v13403_v8  ;;  %v10963_v53 = vpop.eup %10962  ;;  %v13414_v0 = vmul.f32 %v10961_v61, %v13348_v60  ;;  %v1458_v60 = vsel %vm1424_vm2, %v1422_v42, 0.0 }
 0x207   :  { %v10965_v50 = vpop.eup %10964  ;;  %v13420_v55 = vmul.f32 %v10963_v53, %v13352_v3  ;;  %v1414_v5 = vmul.f32 %v13383_v43, %v13408_v46 }
 0x208   :  { %v1462_v9 = vsel %vm1461_vm3, %v1423_v49, 0.0  ;;  %v13426_v52 = vmul.f32 %v10965_v50, %v13356_v6  ;;  %v1419_v58 = vmul.f32 %v13383_v43, %v13414_v0  ;;  %v10967_v45 = vpop.eup %10966 }
 0x209   :  { %1447 = vadd.xlane.f32.xlu1 %v1446_v59  ;;  %1463 = vadd.xlane.f32.xlu0 %v1462_v9  ;;  %v1434_v1 = vsel %vm1424_vm2, %v1414_v5, 0.0  ;;  %v1412_v3 = vmul.f32 %v13383_v43, %v13420_v55  ;;  %v13435_v2 = vmul.f32 %v10967_v45, %v13363_v48 }
 0x20a   :  { %v1449_v6 = vsel %vm1424_vm2, %v1419_v58, 0.0  ;;  %v1417_v61 = vmul.f32 %v13383_v43, %v13426_v52  ;;  %v14511_v58 = vmov 0  }
 0x20b   :  { %v1428_v59 = vsel %vm1424_vm2, %v1412_v3, 0.0  ;;  %v1415_v48 = vmul.f32 %v13383_v43, %v13435_v2  ;;  %10913 = vset.pattern.permute.xlu1 %v14511_v58  ;;  %10912 = vset.pattern.permute.xlu0 %v14511_v58 }
 0x20c   :  { %v1443_v53 = vsel %vm1424_vm2, %v1417_v61, 0.0 }
 0x20d   :  { %1441 = vadd.xlane.f32.xlu1 %v1440_v51  ;;  %1459 = vadd.xlane.f32.xlu0 %v1458_v60  ;;  %v10969_v49 = vpop.eup %10968  ;;  %v1437_v50 = vsel %vm1424_vm2, %v1415_v48, 0.0 }
 0x20e   :  { %v13442_v57 = vmul.f32 %v10969_v49, %v13366_v54  ;;  %v10971_v9 = vpop.eup %10970 }
 0x20f   :  { %v13448_v42 = vmul.f32 %v10971_v9, %v13370_v62  ;;  %v9152_v62 = vld [vmem:[#allocation8] ss:$0 sm:$0xff] }
 0x210   :  { %v1413_v51 = vmul.f32 %v13383_v43, %v13442_v57 }
 0x211   :  { %1435 = vadd.xlane.f32.xlu1 %v1434_v1  ;;  %1450 = vadd.xlane.f32.xlu0 %v1449_v6  ;;  %v1411_v5 = vmul.f32 %v13383_v43, %v13448_v42 }
 0x212   :  { %v1431_v54 = vsel %vm1424_vm2, %v1413_v51, 0.0 }
 0x213   :  { %v1425_v60 = vsel %vm1424_vm2, %v1411_v5, 0.0 }
 0x215   :  { %1429 = vadd.xlane.f32.xlu1 %v1428_v59  ;;  %1444 = vadd.xlane.f32.xlu0 %v1443_v53 }
 0x219   :  { %1438 = vadd.xlane.f32.xlu0 %v1437_v50 }
 0x21d   :  { %1432 = vadd.xlane.f32.xlu0 %v1431_v54 }
 0x221   :  { %1426 = vadd.xlane.f32.xlu0 %v1425_v60 }
 0x28a   :  { %v1457_v45 = vpop.xlane.xlu1 %1456 }
 0x28b   :  { %v1482_v1 = vadd.f32 %v9152_v62, %v1457_v45 }
 0x28d   :  { %v9163_v3 = vmul.f32 -1.442695, %v1482_v1 }
 0x28e   :  { %v1454_v6 = vpop.xlane.xlu1 %1453 }
 0x28f   :  { %10972 = vpow2.f32 %v9163_v3  ;;  %v1481_v61 = vadd.f32 %v9152_v62, %v1454_v6 }
 0x291   :  { %v9162_v49 = vmul.f32 -1.442695, %v1481_v61 }
 0x292   :  { %v1464_v59 = vpop.xlane.xlu0 %1463  ;;  %v1448_v9 = vpop.xlane.xlu1 %1447 }
 0x293   :  { %10974 = vpow2.f32 %v9162_v49  ;;  %v1484_v53 = vadd.f32 %v9152_v62, %v1464_v59  ;;  %v1479_v58 = vadd.f32 %v9152_v62, %v1448_v9 }
 0x295   :  { %v9165_v5 = vmul.f32 -1.442695, %v1484_v53  ;;  %v9160_v34 = vmul.f32 -1.442695, %v1479_v58 }
 0x296   :  { %v1460_v43 = vpop.xlane.xlu0 %1459  ;;  %v1442_v6 = vpop.xlane.xlu1 %1441 }
 0x297   :  { %v1483_v48 = vadd.f32 %v9152_v62, %v1460_v43  ;;  %v1477_v59 = vadd.f32 %v9152_v62, %v1442_v6 }
 0x299   :  { %v9164_v50 = vmul.f32 -1.442695, %v1483_v48  ;;  %v9158_v53 = vmul.f32 -1.442695, %v1477_v59 }
 0x29a   :  { %v1451_v51 = vpop.xlane.xlu0 %1450 }
 0x29b   :  { %10976 = vpow2.f32 %v9164_v50  ;;  %v1480_v60 = vadd.f32 %v9152_v62, %v1451_v51  ;;  %v1436_v50 = vpop.xlane.xlu1 %1435 }
 0x29c   :  { %v10973_v54 = vpop.eup %10972  ;;  %v1475_v58 = vadd.f32 %v9152_v62, %v1436_v50 }
 0x29d   :  { %v1534_v44 = vadd.f32 1.0, %v10973_v54  ;;  %v9161_v45 = vmul.f32 -1.442695, %v1480_v60 }
 0x29e   :  { %v1445_v1 = vpop.xlane.xlu0 %1444 }
 0x29f   :  { %10978 = vrcp.f32 %v1534_v44  ;;  %v1478_v61 = vadd.f32 %v9152_v62, %v1445_v1 }
 0x2a0   :  { %v10975_v3 = vpop.eup %10974  ;;  %10980 = vpow2.f32 %v9165_v5 }
 0x2a1   :  { %v1533_v49 = vadd.f32 1.0, %v10975_v3  ;;  %10982 = vpow2.f32 %v9161_v45  ;;  %v9159_v48 = vmul.f32 -1.442695, %v1478_v61 }
 0x2a2   :  { %v1439_v43 = vpop.xlane.xlu0 %1438 }
 0x2a3   :  { %10984 = vrcp.f32 %v1533_v49  ;;  %v1476_v9 = vadd.f32 %v9152_v62, %v1439_v43  ;;  %v1430_v49 = vpop.xlane.xlu1 %1429  ;;  %v9156_v43 = vmul.f32 -1.442695, %v1475_v58 }
 0x2a4   :  { %10986 = vpow2.f32 %v9160_v34 }
 0x2a5   :  { %10988 = vpow2.f32 %v9159_v48  ;;  %v9157_v45 = vmul.f32 -1.442695, %v1476_v9 }
 0x2a6   :  { %v1433_v51 = vpop.xlane.xlu0 %1432  ;;  %10990 = vpow2.f32 %v9158_v53 }
 0x2a7   :  { %v1474_v54 = vadd.f32 %v9152_v62, %v1433_v51  ;;  %v1473_v51 = vadd.f32 %v9152_v62, %v1430_v49 }
 0x2a8   :  { %v10977_v44 = vpop.eup %10976 }
 0x2a9   :  { %v1535_v60 = vadd.f32 1.0, %v10977_v44  ;;  %v9155_v35 = vmul.f32 -1.442695, %v1474_v54  ;;  %v9154_v50 = vmul.f32 -1.442695, %v1473_v51 }
 0x2aa   :  { %v1427_v5 = vpop.xlane.xlu0 %1426 }
 0x2ab   :  { %10992 = vrcp.f32 %v1535_v60  ;;  %v1472_v3 = vadd.f32 %v9152_v62, %v1427_v5 }
 0x2ac   :  { %v10979_v1 = vpop.eup %10978  ;;  %10994 = vpow2.f32 %v9155_v35 }
 0x2ad   :  { %v10981_v6 = vpop.eup %10980  ;;  %1615 = vperm.xlu1 %10913, %v10979_v1   ;;  %v9153_v61 = vmul.f32 -1.442695, %v1472_v3  ;;  %10996 = vpow2.f32 %v9157_v45 }
 0x2ae   :  { %v10983_v34 = vpop.eup %10982  ;;  %v1536_v44 = vadd.f32 1.0, %v10981_v6 }
 0x2af   :  { %v1532_v59 = vadd.f32 1.0, %v10983_v34 }
 0x2b0   :  { %v10985_v48 = vpop.eup %10984 }
 0x2b1   :  { %10998 = vrcp.f32 %v1532_v59  ;;  %1610 = vperm.xlu1 %10913, %v10985_v48   ;;  %v10987_v53 = vpop.eup %10986 }
 0x2b2   :  { %11000 = vpow2.f32 %v9153_v61  ;;  %v10989_v9 = vpop.eup %10988  ;;  %v1531_v54 = vadd.f32 1.0, %v10987_v53 }
 0x2b3   :  { %11002 = vpow2.f32 %v9156_v43  ;;  %v10991_v60 = vpop.eup %10990  ;;  %v1530_v35 = vadd.f32 1.0, %v10989_v9 }
 0x2b4   :  { %11004 = vrcp.f32 %v1536_v44  ;;  %v1529_v45 = vadd.f32 1.0, %v10991_v60  ;;  %v13468_v60 = vld [vmem:[%s14594_s1 + $0x18] sm:$0xff] }
 0x2b5   :  { %11006 = vpow2.f32 %v9154_v50  ;;  %v13462_v50 = vld [vmem:[%s14594_s1 + $0x20] sm:$0xff] }
 0x2b6   :  { %11008 = vrcp.f32 %v1531_v54  ;;  %v9172_v54 = vadd.f32 -1.0, %v13462_v50 }
 0x2b7   :  { %11010 = vrcp.f32 %v1530_v35 }
 0x2b8   :  { %v10993_v5 = vpop.eup %10992 }
 0x2b9   :  { %v10995_v1 = vpop.eup %10994  ;;  %1620 = vperm.xlu0 %10912, %v10993_v5  }
 0x2ba   :  { %v1526_v58 = vadd.f32 1.0, %v10995_v1  ;;  %v10997_v62 = vpop.eup %10996  ;;  %v1750_v1 = vmul.f32 1e+30, %v9172_v54 }
 0x2bb   :  { %v1528_v61 = vadd.f32 1.0, %v10997_v62  ;;  %v13474_v62 = vld [vmem:[%s14594_s1 + $0x38] sm:$0xff] }
 0x2bc   :  { %11012 = vrcp.f32 %v1526_v58  ;;  %v9171_v58 = vadd.f32 -1.0, %v13468_v60 }
 0x2bd   :  { %11014 = vrcp.f32 %v1529_v45 }
 0x2be   :  { %v10999_v3 = vpop.eup %10998 }
 0x2bf   :  { %v11001_v6 = vpop.eup %11000  ;;  %1605 = vperm.xlu1 %10913, %v10999_v3   ;;  %v1749_v3 = vmul.f32 1e+30, %v9171_v58 }
 0x2c0   :  { %v1524_v49 = vadd.f32 1.0, %v11001_v6  ;;  %v11003_v34 = vpop.eup %11002  ;;  %v9175_v6 = vadd.f32 -1.0, %v13474_v62 }
 0x2c1   :  { %v11005_v59 = vpop.eup %11004  ;;  %v1527_v43 = vadd.f32 1.0, %v11003_v34  ;;  %v13485_v34 = vld [vmem:[%s14594_s1 + $0x48] sm:$0xff] }
 0x2c2   :  { %11016 = vrcp.f32 %v1524_v49  ;;  %v11007_v48 = vpop.eup %11006  ;;  %v13480_v49 = vld [vmem:[%s14594_s1] sm:$0xff] }
 0x2c3   :  { %1625 = vperm.xlu1 %10913, %v11005_v59   ;;  %11018 = vrcp.f32 %v1528_v61  ;;  %v11009_v51 = vpop.eup %11008  ;;  %v1525_v53 = vadd.f32 1.0, %v11007_v48  ;;  %v9168_v59 = vadd.f32 -1.0, %v13480_v49  ;;  %v1753_v48 = vmul.f32 1e+30, %v9175_v6 }
 0x2c4   :  { %v11011_v44 = vpop.eup %11010  ;;  %11020 = vrcp.f32 %v1527_v43  ;;  %v9177_v43 = vadd.f32 -1.0, %v13485_v34  ;;  %v11661_v6 = vmov 1  }
 0x2c5   :  { %11022 = vrcp.f32 %v1525_v53  ;;  %v1746_v53 = vmul.f32 1e+30, %v9168_v59 }
 0x2c7   :  { %1600 = vperm.xlu1 %10913, %v11009_v51   ;;  %v13492_v51 = vld [vmem:[%s14594_s1 + $0x60] sm:$0x3] }
 0x2c8   :  { %v9180_v54 = vadd.f32 -1.0, %v13492_v51 }
 0x2c9   :  { %v11013_v9 = vpop.eup %11012 }
 0x2ca   :  { %1575 = vperm.xlu0 %10912, %v11013_v9   ;;  %v11015_v35 = vpop.eup %11014  ;;  %v1755_v9 = vmul.f32 1e+30, %v9177_v43  ;;  %v13510_v43 = vld [vmem:[%s14594_s1 + $0x28] sm:$0xff] }
 0x2cb   :  { %1595 = vperm.xlu1 %10913, %v11011_v44   ;;  %v9173_v36 = vadd.f32 -1.0, %v13510_v43 }
 0x2cf   :  { %v11017_v5 = vpop.eup %11016  ;;  %1590 = vperm.xlu1 %10913, %v11015_v35   ;;  %v13498_v35 = vld [vmem:[%s14594_s1 + $0x8] sm:$0xff] }
 0x2d0   :  { %1565 = vperm.xlu0 %10912, %v11017_v5   ;;  %v11019_v45 = vpop.eup %11018  ;;  %v1758_v5 = vmul.f32 1e+30, %v9180_v54  ;;  %v9169_v58 = vadd.f32 -1.0, %v13498_v35 }
 0x2d1   :  { %v11021_v61 = vpop.eup %11020 }
 0x2d2   :  { %v11023_v44 = vpop.eup %11022 }
 0x2d3   :  { %1585 = vperm.xlu1 %10913, %v11019_v45   ;;  %v13504_v45 = vld [vmem:[%s14594_s1 + $0x10] sm:$0xff] }
 0x2d4   :  { %1781 = vperm.xlu0 %10912, %v1750_v1   ;;  %v9170_v59 = vadd.f32 -1.0, %v13504_v45 }
 0x2d6   :  { %v1748_v54 = vmul.f32 1e+30, %v9170_v59 }
 0x2d7   :  { %1580 = vperm.xlu1 %10913, %v11021_v61   ;;  %v1747_v61 = vmul.f32 1e+30, %v9169_v58  ;;  %v1751_v58 = vmul.f32 1e+30, %v9173_v36  ;;  %v1756_v36 = vmul.f32 1e+30, %v9178_v39 }
 0x2d8   :  { %1776 = vperm.xlu0 %10912, %v1749_v3  }
 0x2db   :  { %1570 = vperm.xlu1 %10913, %v11023_v44   ;;  %v14595_v44 = vmov 0  }
 0x2dc   :  { %1796 = vperm.xlu0 %10912, %v1753_v48  }
 0x2df   :  { %1761 = vperm.xlu1 %10913, %v1746_v53  }
 0x2e0   :  { %1806 = vperm.xlu0 %10912, %v1755_v9  }
 0x2e3   :  { %10914 = vset.pattern.permute.xlu1 %v11661_v6 }
 0x2e4   :  { %1821 = vperm.xlu0 %10912, %v1758_v5   ;;  %1869 = vperm.xlu1 %10914, %v1746_v53   ;;  %v13517_v53 = vld [vmem:[%s14594_s1 + $0x30] sm:$0xff] }
 0x2e5   :  { %v9174_v37 = vadd.f32 -1.0, %v13517_v53 }
 0x2e7   :  { %v1752_v59 = vmul.f32 1e+30, %v9174_v37  ;;  %v9179_v37 = vadd.f32 -1.0, %v13535_v41 }
 0x2e8   :  { %10918 = vset.pattern.permute.xlu0 %v11661_v6  ;;  %10915 = vset.pattern.permute.xlu1 %v14595_v44 }
 0x2e9   :  { %1885 = vperm.xlu0 %10918, %v1750_v1   ;;  %1766 = vperm.xlu1 %10915, %v1747_v61   ;;  %v13528_v1 = vld [vmem:[%s14594_s1 + $0x40] sm:$0xff] }
 0x2ed   :  { %1873 = vperm.xlu0 %10918, %v1747_v61   ;;  %1771 = vperm.xlu1 %10915, %v1748_v54   ;;  %v9176_v61 = vadd.f32 -1.0, %v13528_v1 }
 0x2ef   :  { %v1754_v40 = vmul.f32 1e+30, %v9176_v61 }
 0x2f1   :  { %1889 = vperm.xlu0 %10918, %v1751_v58   ;;  %1786 = vperm.xlu1 %10915, %v1751_v58  }
 0x2f5   :  { %1897 = vperm.xlu0 %10918, %v1753_v48   ;;  %1791 = vperm.xlu1 %10915, %v1752_v59   ;;  %v1757_v48 = vmul.f32 1e+30, %v9179_v37 }
 0x2f9   :  { %1909 = vperm.xlu0 %10918, %v1756_v36   ;;  %1801 = vperm.xlu1 %10915, %v1754_v40  }
 0x2fd   :  { %10916 = vset.pattern.permute.xlu1 %v11661_v6 }
 0x2fe   :  { %1877 = vperm.xlu1 %10916, %v1748_v54  }
 0x302   :  { %1881 = vperm.xlu1 %10916, %v1749_v3  }
 0x306   :  { %1893 = vperm.xlu1 %10916, %v1752_v59  }
 0x30a   :  { %1901 = vperm.xlu1 %10916, %v1754_v40  }
 0x30e   :  { %10917 = vset.pattern.permute.xlu1 %v14595_v44 }
 0x30f   :  { %1811 = vperm.xlu1 %10917, %v1756_v36   ;;  %v14596_v36 = vmov 0.0  }
 0x313   :  { %1816 = vperm.xlu1 %10917, %v1757_v48  }
 0x317   :  { %10919 = vset.pattern.permute.xlu1 %v11661_v6 }
 0x318   :  { %1905 = vperm.xlu1 %10919, %v1755_v9  }
 0x31c   :  { %1913 = vperm.xlu1 %10919, %v1757_v48  }
 0x320   :  { %1917 = vperm.xlu1 %10919, %v1758_v5  }
 0x328   :  { %v1616_v39 = vpop.permute.xlu1 %1615 }
 0x329   :  { %v13549_v5 = vmul.f32 %v1616_v39, %v13378_v7 }
 0x32c   :  { %v1611_v3 = vpop.permute.xlu1 %1610 }
 0x32d   :  { %v13554_v6 = vmul.f32 %v1611_v3, %v13375_v63 }
 0x334   :  { %v1621_v58 = vpop.permute.xlu0 %1620 }
 0x335   :  { %v13543_v40 = vmul.f32 %v1621_v58, %v13400_v4 }
 0x33a   :  { %v1606_v54 = vpop.permute.xlu1 %1605 }
 0x33e   :  { %v1626_v59 = vpop.permute.xlu1 %1625 }
 0x33f   :  { %v13540_v61 = vmul.f32 %v1626_v59, %v13403_v8  ;;  %v13559_v8 = vmul.f32 %v1606_v54, %v13414_v0 }
 0x341   :  { %10519 = vmatpush3.msk.msra.mxu1 %vm1659_vm4, %v13540_v61 }
 0x342   :  { %10520 = vmatprep.subr.mxu1 %v14596_v36  ;;  %v1601_v9 = vpop.permute.xlu1 %1600 }
 0x343   :  { %10521 = vmatpush3.msra.mxu1 %v13543_v40  ;;  %v13564_v7 = vmul.f32 %v1601_v9, %v13388_v47  ;;  %v1968_v9 = vld [vmem:[%s14598_s2 + $0x8] sm:$0xff] }
 0x344   :  { %10522 = vmatprep.subr.mxu1 %v14596_v36 }
 0x345   :  { %10523 = vmatpush3.msra.mxu1 %v13549_v5  ;;  %v1576_v39 = vpop.permute.xlu0 %1575 }
 0x346   :  { %v1596_v4 = vpop.permute.xlu1 %1595  ;;  %10524 = vmatprep.subr.mxu1 %v14596_v36  ;;  %v13589_v3 = vmul.f32 %v1576_v39, %v13442_v57  ;;  %v1969_v57 = vld [vmem:[%s14598_s2 + $0x10] sm:$0xff] }
 0x347   :  { %10525 = vmatpush3.msra.mxu1 %v13554_v6  ;;  %v13569_v63 = vmul.f32 %v1596_v4, %v13426_v52 }
 0x348   :  { %10526 = vmatprep.subr.mxu1 %v14596_v36 }
 0x349   :  { %10527 = vmatpush3.msra.mxu1 %v13559_v8 }
 0x34a   :  { %v1591_v37 = vpop.permute.xlu1 %1590  ;;  %10528 = vmatprep.subr.mxu1 %v14596_v36 }
 0x34b   :  { %10529 = vmatpush3.msra.mxu1 %v13564_v7  ;;  %v13574_v0 = vmul.f32 %v1591_v37, %v13394_v56  ;;  %v1967_v37 = vld [vmem:[%s14598_s2] sm:$0xff] }
 0x34c   :  { %10530 = vmatprep.subr.mxu1 %v14596_v36 }
 0x34d   :  { %10531 = vmatpush3.msra.mxu1 %v13569_v63 }
 0x34e   :  { %v1586_v48 = vpop.permute.xlu1 %1585  ;;  %10532 = vmatprep.subr.mxu1 %v14596_v36 }
 0x34f   :  { %v13579_v47 = vmul.f32 %v1586_v48, %v13435_v2  ;;  %10533 = vmatpush3.msra.mxu1 %v13574_v0  ;;  %v1566_v2 = vpop.permute.xlu0 %1565 }
 0x350   :  { %10534 = vmatprep.subr.mxu1 %v14596_v36  ;;  %v13599_v59 = vmul.f32 %v1566_v2, %v13448_v42 }
 0x351   :  { %10535 = vmatpush3.msra.mxu1 %v13579_v47 }
 0x352   :  { %v1581_v52 = vpop.permute.xlu1 %1580  ;;  %10536 = vmatprep.subr.mxu1 %v14596_v36 }
 0x353   :  { %v13586_v56 = vmul.f32 %v1581_v52, %v13408_v46  ;;  %v1654_v46 = vld [vmem:[%s14597_s4] sm:$0x3] }
 0x355   :  { %10537 = vmatpush3.msra.mxu1 %v13586_v56 }
 0x356   :  { %v1571_v54 = vpop.permute.xlu1 %1570  ;;  %10538 = vmatprep.subr.mxu1 %v14596_v36 }
 0x357   :  { %v13594_v58 = vmul.f32 %v1571_v54, %v13420_v55  ;;  %10539 = vmatpush3.msra.mxu1 %v13589_v3  ;;  %v1970_v55 = vld [vmem:[%s14598_s2 + $0x18] sm:$0xff] }
 0x358   :  { %10540 = vmatprep.subr.mxu1 %v14596_v36 }
 0x359   :  { %10541 = vmatpush3.msra.mxu1 %v13594_v58 }
 0x35a   :  { %10542 = vmatprep.subr.mxu1 %v14596_v36  ;;  %v1762_v42 = vpop.permute.xlu1 %1761 }
 0x35b   :  { %10543 = vmatpush3.msra.mxu1 %v13599_v59  ;;  %v1824_v20 = vadd.f32 %v1762_v42, %v13599_v59 }
 0x35c   :  { %10545 = vmatmul.mubr.msk.f32.vlgmr.msra.gmra.mxu1 %vm1655_vm5, %v1654_v46  ;;  %10547 = vmatprep.subr.mxu1 %v14596_v36  ;;  %v1782_v46 = vpop.permute.xlu0 %1781 }
 0x35d   :  { %10548 = vmatpush3.msra.mxu1 %v1970_v55  ;;  %10555 = vmatprep.mubr.msk.f32.mxu1 %vm11659_vm0, %v14596_v36  ;;  %v1828_v22 = vadd.f32 %v1782_v46, %v13579_v47  ;;  %v1837_v11 = vsel %vm1424_vm2, %v1824_v20, -inf }
 0x35e   :  { %10549 = vmatprep.subr.mxu1 %v14596_v36 }
 0x35f   :  { %10550 = vmatpush3.msra.mxu1 %v1969_v57  ;;  %v1870_v4 = vpop.permute.xlu1 %1869  ;;  %v1841_v42 = vsel %vm1424_vm2, %v1828_v22, -inf }
 0x360   :  { %10551 = vmatprep.subr.mxu1 %v14596_v36  ;;  %v1777_v57 = vpop.permute.xlu0 %1776  ;;  %v1920_v12 = vadd.f32 %v1870_v4, %v13599_v59  ;;  %v1842_v15 = vmax.f32 %v1837_v11, %v1841_v42 }
 0x361   :  { %10552 = vmatpush3.msra.mxu1 %v1968_v9  ;;  %v1827_v23 = vadd.f32 %v1777_v57, %v13586_v56 }
 0x362   :  { %10553 = vmatprep.subr.mxu1 %v14596_v36  ;;  %v1933_v4 = vsel %vm1424_vm2, %v1920_v12, -inf }
 0x363   :  { %10554 = vmatpush3.msra.mxu1 %v1967_v37  ;;  %v1840_v14 = vsel %vm1424_vm2, %v1827_v23, -inf }
 0x364   :  { %10558 = vmatprep.subr.mxu1 %v14596_v36  ;;  %v1767_v48 = vpop.permute.xlu1 %1766  ;;  %v1797_v9 = vpop.permute.xlu0 %1796 }
 0x365   :  { %v1831_v19 = vadd.f32 %v1797_v9, %v13564_v7  ;;  %v1825_v9 = vadd.f32 %v1767_v48, %v13594_v58 }
 0x367   :  { %v1847_v10 = vsel %vm1424_vm2, %v1831_v19, -inf }
 0x368   :  { %v1772_v39 = vpop.permute.xlu1 %1771  ;;  %v1807_v28 = vpop.permute.xlu0 %1806 }
 0x369   :  { %v1833_v19 = vadd.f32 %v1807_v28, %v13554_v6 }
 0x36c   :  { %v1787_v52 = vpop.permute.xlu1 %1786  ;;  %v1822_v30 = vpop.permute.xlu0 %1821 }
 0x36d   :  { %v1836_v13 = vadd.f32 %v1822_v30, %v13540_v61  ;;  %v1829_v20 = vadd.f32 %v1787_v52, %v13574_v0  ;;  %v1826_v30 = vadd.f32 %v1772_v39, %v13589_v3 }
 0x36f   :  { %v1843_v52 = vsel %vm1424_vm2, %v1829_v20, -inf }
 0x370   :  { %v1792_v2 = vpop.permute.xlu1 %1791  ;;  %v1886_v32 = vpop.permute.xlu0 %1885 }
 0x371   :  { %v1924_v24 = vadd.f32 %v1886_v32, %v13579_v47  ;;  %v1848_v32 = vmax.f32 %v1840_v14, %v1847_v10  ;;  %v1830_v48 = vadd.f32 %v1792_v2, %v13569_v63  ;;  %v1838_v10 = vsel %vm1424_vm2, %v1825_v9, -inf }
 0x373   :  { %v1937_v46 = vsel %vm1424_vm2, %v1924_v24, -inf  ;;  %v1857_v24 = vsel %vm1461_vm3, %v1836_v13, -inf }
 0x374   :  { %v1802_v54 = vpop.permute.xlu1 %1801  ;;  %v1874_v37 = vpop.permute.xlu0 %1873  ;;  %v1938_v17 = vmax.f32 %v1933_v4, %v1937_v46 }
 0x375   :  { %v1921_v57 = vadd.f32 %v1874_v37, %v13594_v58  ;;  %v1832_v22 = vadd.f32 %v1802_v54, %v13559_v8  ;;  %v1839_v37 = vsel %vm1424_vm2, %v1826_v30, -inf }
 0x377   :  { %v1934_v14 = vsel %vm1424_vm2, %v1921_v57, -inf  ;;  %v1849_v9 = vsel %vm1424_vm2, %v1832_v22, -inf  ;;  %v1844_v57 = vmax.f32 %v1838_v10, %v1843_v52 }
 0x378   :  { %v1890_v21 = vpop.permute.xlu0 %1889  ;;  %v1850_v30 = vmax.f32 %v1842_v15, %v1849_v9 }
 0x379   :  { %v1878_v55 = vpop.permute.xlu1 %1877  ;;  %v1925_v28 = vadd.f32 %v1890_v21, %v13574_v0 }
 0x37c   :  { %v1898_v16 = vpop.permute.xlu0 %1897 }
 0x37d   :  { %v1882_v26 = vpop.permute.xlu1 %1881  ;;  %v1927_v12 = vadd.f32 %v1898_v16, %v13564_v7  ;;  %v1922_v16 = vadd.f32 %v1878_v55, %v13589_v3 }
 0x37e   :  { %v1923_v2 = vadd.f32 %v1882_v26, %v13586_v56 }
 0x37f   :  { %v1943_v20 = vsel %vm1424_vm2, %v1927_v12, -inf }
 0x380   :  { %v1910_v42 = vpop.permute.xlu0 %1909 }
 0x381   :  { %v1894_v27 = vpop.permute.xlu1 %1893 }
 0x382   :  { %v1926_v54 = vadd.f32 %v1894_v27, %v13569_v63  ;;  %v1939_v27 = vsel %vm1424_vm2, %v1925_v28, -inf }
 0x383   :  { %v1940_v15 = vmax.f32 %v1934_v14, %v1939_v27 }
 0x385   :  { %v1902_v29 = vpop.permute.xlu1 %1901 }
 0x386   :  { %v1928_v11 = vadd.f32 %v1902_v29, %v13559_v8  ;;  %v1845_v29 = vsel %vm1424_vm2, %v1830_v48, -inf  ;;  %v1936_v48 = vsel %vm1424_vm2, %v1923_v2, -inf }
 0x387   :  { %v1846_v22 = vmax.f32 %v1839_v37, %v1845_v29 }
 0x38a   :  { %v1812_v31 = vpop.permute.xlu1 %1811 }
 0x38b   :  { %v1834_v21 = vadd.f32 %v1812_v31, %v13549_v5  ;;  %v1941_v31 = vsel %vm1424_vm2, %v1926_v54, -inf  ;;  %v1858_v54 = vmax.f32 %v1850_v30, %v1857_v24 }
 0x38e   :  { %v1817_v33 = vpop.permute.xlu1 %1816 }
 0x38f   :  { %v1835_v39 = vadd.f32 %v1817_v33, %v13543_v40  ;;  %v1945_v33 = vsel %vm1424_vm2, %v1928_v11, -inf  ;;  %v1935_v11 = vsel %vm1424_vm2, %v1922_v16, -inf }
 0x390   :  { %v1942_v52 = vmax.f32 %v1935_v11, %v1941_v31 }
 0x391   :  { %v1855_v4 = vsel %vm1424_vm2, %v1835_v39, -inf  ;;  %v1944_v39 = vmax.f32 %v1936_v48, %v1943_v20 }
 0x392   :  { %v1856_v10 = vmax.f32 %v1848_v32, %v1855_v4 }
 0x393   :  { %v1906_v18 = vpop.permute.xlu1 %1905 }
 0x394   :  { %v1929_v46 = vadd.f32 %v1906_v18, %v13554_v6  ;;  %v1946_v18 = vmax.f32 %v1938_v17, %v1945_v33 }
 0x396   :  { %v1947_v28 = vsel %vm1424_vm2, %v1929_v46, -inf }
 0x397   :  { %v1914_v25 = vpop.permute.xlu1 %1913  ;;  %v1948_v37 = vmax.f32 %v1940_v15, %v1947_v28  ;;  %v2045_v28 = vld [vmem:[%s14599_s6] sm:$0x3] }
 0x398   :  { %v1931_v26 = vadd.f32 %v1914_v25, %v13543_v40  ;;  %v1853_v25 = vsel %vm1424_vm2, %v1834_v21, -inf }
 0x399   :  { %v1854_v9 = vmax.f32 %v1846_v22, %v1853_v25 }
 0x39a   :  { %v1951_v12 = vsel %vm1424_vm2, %v1931_v26, -inf }
 0x39b   :  { %v1918_v23 = vpop.permute.xlu1 %1917  ;;  %v1952_v29 = vmax.f32 %v1944_v39, %v1951_v12 }
 0x39c   :  { %v1932_v13 = vadd.f32 %v1918_v23, %v13540_v61  ;;  %v1930_v23 = vadd.f32 %v1910_v42, %v13549_v5  ;;  %v1860_v42 = vmax.f32 %v1854_v9, %v1856_v10 }
 0x39e   :  { %v1953_v55 = vsel %vm1461_vm3, %v1932_v13, -inf  ;;  %v1851_v13 = vsel %vm1424_vm2, %v1833_v19, -inf  ;;  %v1949_v21 = vsel %vm1424_vm2, %v1930_v23, -inf }
 0x39f   :  { %v1954_v2 = vmax.f32 %v1946_v18, %v1953_v55  ;;  %v1852_v17 = vmax.f32 %v1844_v57, %v1851_v13  ;;  %v1950_v16 = vmax.f32 %v1942_v52, %v1949_v21 }
 0x3a1   :  { %v1955_v32 = vmax.f32 %v1954_v2, %v1948_v37  ;;  %v1859_v33 = vmax.f32 %v1858_v54, %v1852_v17  ;;  %v1956_v46 = vmax.f32 %v1950_v16, %v1952_v29 }
 0x3a3   :  { %v1861_v4 = vmax.f32 %v1859_v33, %v1860_v42  ;;  %v1957_v26 = vmax.f32 %v1955_v32, %v1956_v46 }
 0x3a5   :  { %v1862_v14 = vrot.slane %v1861_v4, 4  ;;  %v1958_v27 = vrot.slane %v1957_v26, 4 }
 0x3a7   :  { %v1863_v20 = vmax.f32 %v1861_v4, %v1862_v14  ;;  %v1959_v48 = vmax.f32 %v1957_v26, %v1958_v27 }
 0x3a9   :  { %v1864_v24 = vrot.slane %v1863_v20, 2  ;;  %v1960_v30 = vrot.slane %v1959_v48, 2 }
 0x3ab   :  { %v1865_v31 = vmax.f32 %v1863_v20, %v1864_v24  ;;  %v1961_v19 = vmax.f32 %v1959_v48, %v1960_v30 }
 0x3ad   :  { %v1866_v55 = vrot.slane %v1865_v31, 1  ;;  %v1962_v22 = vrot.slane %v1961_v19, 1 }
 0x3af   :  { %v1867_v57 = vmax.f32 %v1865_v31, %v1866_v55  ;;  %v1963_v18 = vmax.f32 %v1961_v19, %v1962_v22 }
 0x41c   :  { %v1729_v23 = vpop.f32.mrf.mxu1 }
 0x41d   :  { %v1964_v25 = vsel %vm1659_vm4, %v1729_v23, %v1867_v57 }
 0x41e   :  { %v1966_v11 = vsel %vm1965_vm6, %v1964_v25, %v1963_v18  ;;  %v10546_v10 = vpop.f32.mrf.mxu1 }
 0x41f   :  { %10556 = vmatmul.mubr.msk.f32.vlgmr.msra.gmra.mxu1 %vm1424_vm2, %v1966_v11 }
 0x420   :  { %10560 = vmatprep.mubr.msk.f32.mxu1 %vm11659_vm0, %v14596_v36  ;;  %10559 = vmatpush3.msk.msra.mxu1 %vm1659_vm4, %v2045_v28 }
 0x421   :  { %10563 = vmatprep.subr.mxu1 %v14596_v36 }
 0x4df   :  { %v2040_v12 = vpop.f32.mrf.mxu1 }
 0x4e0   :  { %v2044_v15 = vmax.f32 %v2040_v12, 0.0 }
 0x4e1   :  { %v10557_v39 = vpop.f32.mrf.mxu1 }
 0x4e2   :  { %10561 = vmatmul.mubr.msk.f32.vlgmr.msra.gmra.mxu1 %vm2046_vm7, %v2044_v15 }
 0x4e3   :  { %10565 = vmatprep.mubr.msk.f32.mxu1 %vm11659_vm0, %v14596_v36 }
 0x5a2   :  { %v2119_v52 = vpop.f32.mrf.mxu1 }
 0x5a3   :  { %10564 = vmatpush3.msk.msra.mxu1 %vm2163_vm8, %v2119_v52 }
 0x5a4   :  { %v10562_v2 = vpop.f32.mrf.mxu1  ;;  %10566 = vmatmul.mubr.msk.f32.vlgmr.msra.gmra.mxu1 %vm2123_vm9, %v13480_v49  ;;  %10881 = vmatprep.subr.mxu1 %v14596_v36 }
 0x5a5   :  { %10568 = vmatprep.mubr.msk.f32.mxu1 %vm11659_vm0, %v14596_v36 }
 0x5a8   :  { %10569 = vmatmul.mubr.msk.f32.gmra.mxu1 %vm2123_vm9, %v13498_v35 }
 0x5a9   :  { %10571 = vmatprep.mubr.msk.f32.mxu1 %vm11659_vm0, %v14596_v36 }
 0x5ac   :  { %10572 = vmatmul.mubr.msk.f32.gmra.mxu1 %vm2123_vm9, %v13504_v45 }
 0x5ad   :  { %10574 = vmatprep.mubr.msk.f32.mxu1 %vm11659_vm0, %v14596_v36 }
 0x5b0   :  { %10575 = vmatmul.mubr.msk.f32.gmra.mxu1 %vm2123_vm9, %v13468_v60 }
 0x5b1   :  { %10577 = vmatprep.mubr.msk.f32.mxu1 %vm11659_vm0, %v14596_v36 }
 0x5b4   :  { %10578 = vmatmul.mubr.msk.f32.gmra.mxu1 %vm2123_vm9, %v13462_v50 }
 0x5b5   :  { %10580 = vmatprep.mubr.msk.f32.mxu1 %vm11659_vm0, %v14596_v36 }
 0x5b8   :  { %10581 = vmatmul.mubr.msk.f32.gmra.mxu1 %vm2123_vm9, %v13510_v43 }
 0x5b9   :  { %10583 = vmatprep.mubr.msk.f32.mxu1 %vm11659_vm0, %v14596_v36 }
 0x5bc   :  { %10584 = vmatmul.mubr.msk.f32.gmra.mxu1 %vm2123_vm9, %v13517_v53 }
 0x5bd   :  { %10586 = vmatprep.mubr.msk.f32.mxu1 %vm11659_vm0, %v14596_v36 }
 0x5c0   :  { %10587 = vmatmul.mubr.msk.f32.gmra.mxu1 %vm2123_vm9, %v13474_v62 }
 0x5c1   :  { %10589 = vmatprep.mubr.msk.f32.mxu1 %vm11659_vm0, %v14596_v36 }
 0x5c4   :  { %10590 = vmatmul.mubr.msk.f32.gmra.mxu1 %vm2123_vm9, %v13528_v1 }
 0x5c5   :  { %10592 = vmatprep.mubr.msk.f32.mxu1 %vm11659_vm0, %v14596_v36 }
 0x5c8   :  { %10593 = vmatmul.mubr.msk.f32.gmra.mxu1 %vm2123_vm9, %v13485_v34 }
 0x5c9   :  { %10595 = vmatprep.mubr.msk.f32.mxu1 %vm11659_vm0, %v14596_v36 }
 0x5cc   :  { %10596 = vmatmul.mubr.msk.f32.gmra.mxu1 %vm2123_vm9, %v13523_v38 }
 0x5cd   :  { %10598 = vmatprep.mubr.msk.f32.mxu1 %vm11659_vm0, %v14596_v36 }
 0x5d0   :  { %10599 = vmatmul.mubr.msk.f32.gmra.mxu1 %vm2123_vm9, %v13535_v41 }
 0x5d1   :  { %10601 = vmatprep.mubr.msk.f32.mxu1 %vm11659_vm0, %v14596_v36 }
 0x5d4   :  { %10602 = vmatmul.mubr.msk.f32.gmra.mxu1 %vm2123_vm9, %v13492_v51 }
 0x5d5   :  { %10701 = vmatprep.mubr.msk.f32.mxu1 %vm11659_vm0, %v14596_v36 }
 0x664   :  { %v2233_v50 = vpop.f32.mrf.mxu1 }
 0x665   :  { %v9198_v22 = vmul.f32 -1.442695, %v2233_v50 }
 0x666   :  { %v10567_v60 = vpop.f32.mrf.mxu1 }
 0x668   :  { %v2238_v62 = vpop.f32.mrf.mxu1 }
 0x669   :  { %v9199_v28 = vmul.f32 -1.442695, %v2238_v62 }
 0x66a   :  { %v10570_v49 = vpop.f32.mrf.mxu1 }
 0x66c   :  { %v2243_v38 = vpop.f32.mrf.mxu1 }
 0x66d   :  { %v9200_v31 = vmul.f32 -1.442695, %v2243_v38 }
 0x66e   :  { %v10573_v34 = vpop.f32.mrf.mxu1 }
 0x670   :  { %v2248_v35 = vpop.f32.mrf.mxu1 }
 0x671   :  { %v9201_v10 = vmul.f32 -1.442695, %v2248_v35 }
 0x672   :  { %v10576_v45 = vpop.f32.mrf.mxu1 }
 0x674   :  { %v2253_v43 = vpop.f32.mrf.mxu1 }
 0x675   :  { %v9202_v14 = vmul.f32 -1.442695, %v2253_v43 }
 0x676   :  { %v10579_v53 = vpop.f32.mrf.mxu1 }
 0x678   :  { %v2258_v41 = vpop.f32.mrf.mxu1 }
 0x679   :  { %v9203_v57 = vmul.f32 -1.442695, %v2258_v41 }
 0x67a   :  { %v10582_v1 = vpop.f32.mrf.mxu1 }
 0x67c   :  { %v2263_v54 = vpop.f32.mrf.mxu1 }
 0x67d   :  { %v9204_v32 = vmul.f32 -1.442695, %v2263_v54 }
 0x67e   :  { %v10585_v9 = vpop.f32.mrf.mxu1 }
 0x680   :  { %v2268_v13 = vpop.f32.mrf.mxu1 }
 0x681   :  { %v9205_v19 = vmul.f32 -1.442695, %v2268_v13 }
 0x682   :  { %v10588_v37 = vpop.f32.mrf.mxu1 }
 0x684   :  { %v2273_v51 = vpop.f32.mrf.mxu1 }
 0x685   :  { %v9206_v21 = vmul.f32 -1.442695, %v2273_v51 }
 0x686   :  { %v10591_v29 = vpop.f32.mrf.mxu1 }
 0x687   :  { %11024 = vpow2.f32 %v9206_v21 }
 0x688   :  { %v2278_v17 = vpop.f32.mrf.mxu1  ;;  %11026 = vpow2.f32 %v9204_v32 }
 0x689   :  { %v9207_v20 = vmul.f32 -1.442695, %v2278_v17 }
 0x68a   :  { %v10594_v42 = vpop.f32.mrf.mxu1 }
 0x68c   :  { %v2283_v16 = vpop.f32.mrf.mxu1 }
 0x68d   :  { %v9208_v33 = vmul.f32 -1.442695, %v2283_v16 }
 0x68e   :  { %v10597_v46 = vpop.f32.mrf.mxu1 }
 0x68f   :  { %11028 = vpow2.f32 %v9208_v33 }
 0x690   :  { %v2288_v4 = vpop.f32.mrf.mxu1 }
 0x691   :  { %v9209_v26 = vmul.f32 -1.442695, %v2288_v4 }
 0x692   :  { %v10600_v27 = vpop.f32.mrf.mxu1 }
 0x693   :  { %11030 = vpow2.f32 %v9209_v26 }
 0x694   :  { %v2293_v48 = vpop.f32.mrf.mxu1  ;;  %11032 = vpow2.f32 %v9202_v14  ;;  %v11025_v55 = vpop.eup %11024 }
 0x695   :  { %v9210_v24 = vmul.f32 -1.442695, %v2293_v48  ;;  %11034 = vpow2.f32 %v9207_v20  ;;  %v11027_v23 = vpop.eup %11026  ;;  %v2344_v18 = vadd.f32 1.0, %v11025_v55 }
 0x696   :  { %v10603_v30 = vpop.f32.mrf.mxu1  ;;  %v2342_v15 = vadd.f32 1.0, %v11027_v23 }
 0x697   :  { %11036 = vpow2.f32 %v9210_v24 }
 0x698   :  { %11038 = vpow2.f32 %v9200_v31 }
 0x699   :  { %11040 = vpow2.f32 %v9205_v19 }
 0x69a   :  { %11042 = vpow2.f32 %v9198_v22 }
 0x69b   :  { %11044 = vpow2.f32 %v9203_v57 }
 0x69c   :  { %v11029_v25 = vpop.eup %11028  ;;  %11046 = vrcp.f32 %v2344_v18 }
 0x69d   :  { %v2346_v52 = vadd.f32 1.0, %v11029_v25 }
 0x6a0   :  { %v11031_v11 = vpop.eup %11030 }
 0x6a1   :  { %v2347_v12 = vadd.f32 1.0, %v11031_v11  ;;  %v11033_v39 = vpop.eup %11032 }
 0x6a2   :  { %v11035_v2 = vpop.eup %11034  ;;  %v2340_v49 = vadd.f32 1.0, %v11033_v39 }
 0x6a3   :  { %11048 = vrcp.f32 %v2347_v12  ;;  %v2345_v34 = vadd.f32 1.0, %v11035_v2 }
 0x6a4   :  { %11050 = vpow2.f32 %v9201_v10  ;;  %v11037_v50 = vpop.eup %11036 }
 0x6a5   :  { %11052 = vpow2.f32 %v9199_v28  ;;  %v2348_v60 = vadd.f32 1.0, %v11037_v50  ;;  %v11039_v38 = vpop.eup %11038 }
 0x6a6   :  { %11054 = vrcp.f32 %v2342_v15  ;;  %v11041_v35 = vpop.eup %11040  ;;  %v2338_v45 = vadd.f32 1.0, %v11039_v38 }
 0x6a7   :  { %11056 = vrcp.f32 %v2346_v52  ;;  %v11043_v62 = vpop.eup %11042  ;;  %v2343_v43 = vadd.f32 1.0, %v11041_v35 }
 0x6a8   :  { %11058 = vrcp.f32 %v2348_v60  ;;  %v11045_v53 = vpop.eup %11044  ;;  %v2336_v1 = vadd.f32 1.0, %v11043_v62 }
 0x6a9   :  { %11060 = vrcp.f32 %v2340_v49  ;;  %v11047_v41 = vpop.eup %11046  ;;  %v2341_v9 = vadd.f32 1.0, %v11045_v53 }
 0x6aa   :  { %11062 = vrcp.f32 %v2345_v34  ;;  %v13749_v21 = vmul.f32 %v11047_v41, %v13559_v8 }
 0x6ab   :  { %11064 = vrcp.f32 %v2338_v45 }
 0x6ac   :  { %11066 = vrcp.f32 %v2343_v43  ;;  %v2412_v50 = vsel %vm1424_vm2, %v13749_v21, 0.0 }
 0x6ad   :  { %11068 = vrcp.f32 %v2336_v1 }
 0x6ae   :  { %11070 = vrcp.f32 %v2341_v9 }
 0x6b0   :  { %v11049_v54 = vpop.eup %11048 }
 0x6b1   :  { %v11051_v13 = vpop.eup %11050  ;;  %v13744_v37 = vmul.f32 %v11049_v54, %v13543_v40  ;;  %v2465_v40 = vsel %vm1424_vm2, %v13749_v21, -inf }
 0x6b2   :  { %v11053_v51 = vpop.eup %11052  ;;  %v2339_v16 = vadd.f32 1.0, %v11051_v13 }
 0x6b3   :  { %v11055_v29 = vpop.eup %11054  ;;  %v2474_v17 = vsel %vm1424_vm2, %v13744_v37, -inf  ;;  %v2337_v26 = vadd.f32 1.0, %v11053_v51  ;;  %v2421_v10 = vsel %vm1424_vm2, %v13744_v37, 0.0 }
 0x6b4   :  { %v11057_v42 = vpop.eup %11056  ;;  %2475 = vmax.xlane.f32.xlu1 %v2474_v17  ;;  %v13757_v46 = vmul.f32 %v11055_v29, %v13569_v63  ;;  %11072 = vrcp.f32 %v2339_v16 }
 0x6b5   :  { %v11059_v32 = vpop.eup %11058  ;;  %v13762_v14 = vmul.f32 %v11057_v42, %v13549_v5  ;;  %11074 = vrcp.f32 %v2337_v26 }
 0x6b6   :  { %v13752_v33 = vmul.f32 %v11059_v32, %v13540_v61  ;;  %v11061_v4 = vpop.eup %11060  ;;  %v2459_v61 = vsel %vm1424_vm2, %v13757_v46, -inf  ;;  %v2406_v49 = vsel %vm1424_vm2, %v13757_v46, 0.0  ;;  %v2493_v32 = vld [vmem:[%s14600_s21] sm:$0xff] }
 0x6b7   :  { %v11063_v27 = vpop.eup %11062  ;;  %v13767_v20 = vmul.f32 %v11061_v4, %v13579_v47  ;;  %v2471_v48 = vsel %vm1424_vm2, %v13762_v14, -inf  ;;  %v2418_v52 = vsel %vm1424_vm2, %v13762_v14, 0.0 }
 0x6b8   :  { %2466 = vmax.xlane.f32.xlu1 %v2465_v40  ;;  %v2477_v8 = vsel %vm1461_vm3, %v13752_v33, -inf  ;;  %v11065_v63 = vpop.eup %11064  ;;  %v13772_v24 = vmul.f32 %v11063_v27, %v13554_v6  ;;  %v2424_v39 = vsel %vm1461_vm3, %v13752_v33, 0.0 }
 0x6b9   :  { %2478 = vmax.xlane.f32.xlu0 %v2477_v8  ;;  %v11067_v30 = vpop.eup %11066  ;;  %v2453_v5 = vsel %vm1424_vm2, %v13767_v20, -inf  ;;  %v13777_v31 = vmul.f32 %v11065_v63, %v13589_v3  ;;  %v2400_v38 = vsel %vm1424_vm2, %v13767_v20, 0.0  ;;  %v2494_v8 = vld [vmem:[%s14600_s21 + $0x8] sm:$0xff] }
 0x6ba   :  { %v11069_v19 = vpop.eup %11068  ;;  %v2468_v47 = vsel %vm1424_vm2, %v13772_v24, -inf  ;;  %v13782_v55 = vmul.f32 %v11067_v30, %v13564_v7  ;;  %v2415_v12 = vsel %vm1424_vm2, %v13772_v24, 0.0 }
 0x6bb   :  { %v11071_v22 = vpop.eup %11070  ;;  %v2447_v6 = vsel %vm1424_vm2, %v13777_v31, -inf  ;;  %v13787_v57 = vmul.f32 %v11069_v19, %v13599_v59  ;;  %v2394_v34 = vsel %vm1424_vm2, %v13777_v31, 0.0 }
 0x6bc   :  { %2460 = vmax.xlane.f32.xlu1 %v2459_v61  ;;  %v2462_v3 = vsel %vm1424_vm2, %v13782_v55, -inf  ;;  %v13792_v23 = vmul.f32 %v11071_v22, %v13574_v0  ;;  %v2409_v15 = vsel %vm1424_vm2, %v13782_v55, 0.0  ;;  %v2496_v22 = vld [vmem:[%s14600_s21 + $0x18] sm:$0xff] }
 0x6bd   :  { %2472 = vmax.xlane.f32.xlu0 %v2471_v48  ;;  %v2441_v7 = vsel %vm1424_vm2, %v13787_v57, -inf  ;;  %v2388_v35 = vsel %vm1424_vm2, %v13787_v57, 0.0  ;;  %v2495_v48 = vld [vmem:[%s14600_s21 + $0x10] sm:$0xff] }
 0x6be   :  { %v2456_v25 = vsel %vm1424_vm2, %v13792_v23, -inf }
 0x6c0   :  { %2454 = vmax.xlane.f32.xlu1 %v2453_v5 }
 0x6c1   :  { %2469 = vmax.xlane.f32.xlu0 %v2468_v47  ;;  %v11073_v18 = vpop.eup %11072 }
 0x6c2   :  { %v13799_v11 = vmul.f32 %v11073_v18, %v13586_v56  ;;  %v11075_v59 = vpop.eup %11074 }
 0x6c3   :  { %v13806_v28 = vmul.f32 %v11075_v59, %v13594_v58  ;;  %v2403_v58 = vsel %vm1424_vm2, %v13792_v23, 0.0 }
 0x6c4   :  { %2448 = vmax.xlane.f32.xlu1 %v2447_v6  ;;  %v2450_v0 = vsel %vm1424_vm2, %v13799_v11, -inf  ;;  %v2397_v2 = vsel %vm1424_vm2, %v13799_v11, 0.0 }
 0x6c5   :  { %2463 = vmax.xlane.f32.xlu0 %v2462_v3  ;;  %v2444_v56 = vsel %vm1424_vm2, %v13806_v28, -inf  ;;  %v2391_v60 = vsel %vm1424_vm2, %v13806_v28, 0.0 }
 0x6c8   :  { %2442 = vmax.xlane.f32.xlu1 %v2441_v7 }
 0x6c9   :  { %2457 = vmax.xlane.f32.xlu0 %v2456_v25  ;;  %v2497_v25 = vld [vmem:[%s14600_s21 + $0x20] sm:$0xff] }
 0x6cc   :  { %2422 = vadd.xlane.f32.xlu1 %v2421_v10 }
 0x6cd   :  { %2451 = vmax.xlane.f32.xlu0 %v2450_v0 }
 0x6d0   :  { %2416 = vadd.xlane.f32.xlu1 %v2415_v12 }
 0x6d1   :  { %2445 = vmax.xlane.f32.xlu0 %v2444_v56 }
 0x6d4   :  { %2410 = vadd.xlane.f32.xlu1 %v2409_v15  ;;  %v2498_v15 = vld [vmem:[%s14600_s21 + $0x28] sm:$0xff] }
 0x6d5   :  { %2425 = vadd.xlane.f32.xlu0 %v2424_v39 }
 0x6d8   :  { %2404 = vadd.xlane.f32.xlu1 %v2403_v58 }
 0x6d9   :  { %2419 = vadd.xlane.f32.xlu0 %v2418_v52 }
 0x6dc   :  { %2398 = vadd.xlane.f32.xlu1 %v2397_v2  ;;  %v2499_v2 = vld [vmem:[%s14600_s21 + $0x30] sm:$0xff] }
 0x6dd   :  { %2413 = vadd.xlane.f32.xlu0 %v2412_v50 }
 0x6e0   :  { %2392 = vadd.xlane.f32.xlu1 %v2391_v60 }
 0x6e1   :  { %2407 = vadd.xlane.f32.xlu0 %v2406_v49 }
 0x6e5   :  { %2401 = vadd.xlane.f32.xlu0 %v2400_v38  ;;  %v2500_v38 = vld [vmem:[%s14600_s21 + $0x38] sm:$0xff] }
 0x6e9   :  { %2395 = vadd.xlane.f32.xlu0 %v2394_v34  ;;  %v2482_v34 = vld [vmem:[%s14601_s11 + $0x10] sm:$0xff] }
 0x6ed   :  { %2389 = vadd.xlane.f32.xlu0 %v2388_v35  ;;  %v2501_v35 = vld [vmem:[%s14600_s21 + $0x40] sm:$0xff] }
 0x73d   :  { %v2476_v45 = vpop.xlane.xlu1 %2475 }
 0x741   :  { %v2467_v62 = vpop.xlane.xlu1 %2466 }
 0x742   :  { %v2479_v43 = vpop.xlane.xlu0 %2478 }
 0x743   :  { %10605 = vmatpush3.msk.msra.mxu0 %vm1659_vm4, %v2479_v43  ;;  %v2484_v43 = vld [vmem:[%s14601_s11 + $0x20] sm:$0xff] }
 0x744   :  { %10606 = vmatprep.subr.mxu0 %v14596_v36 }
 0x745   :  { %10607 = vmatpush3.msra.mxu0 %v2476_v45  ;;  %v2461_v53 = vpop.xlane.xlu1 %2460  ;;  %v2483_v45 = vld [vmem:[%s14601_s11 + $0x18] sm:$0xff] }
 0x746   :  { %10608 = vmatprep.subr.mxu0 %v14596_v36  ;;  %v2473_v41 = vpop.xlane.xlu0 %2472 }
 0x747   :  { %10609 = vmatpush3.msra.mxu0 %v2473_v41  ;;  %v2485_v41 = vld [vmem:[%s14601_s11 + $0x28] sm:$0xff] }
 0x748   :  { %10610 = vmatprep.subr.mxu0 %v14596_v36 }
 0x749   :  { %v2455_v1 = vpop.xlane.xlu1 %2454 }
 0x74a   :  { %v2470_v54 = vpop.xlane.xlu0 %2469 }
 0x74b   :  { %10611 = vmatpush3.msra.mxu0 %v2470_v54  ;;  %v2486_v54 = vld [vmem:[%s14601_s11 + $0x30] sm:$0xff] }
 0x74c   :  { %10612 = vmatprep.subr.mxu0 %v14596_v36 }
 0x74d   :  { %10613 = vmatpush3.msra.mxu0 %v2467_v62  ;;  %v2449_v9 = vpop.xlane.xlu1 %2448  ;;  %v2502_v62 = vld [vmem:[%s14600_s21 + $0x48] sm:$0xff] }
 0x74e   :  { %10614 = vmatprep.subr.mxu0 %v14596_v36  ;;  %v2464_v13 = vpop.xlane.xlu0 %2463 }
 0x74f   :  { %10615 = vmatpush3.msra.mxu0 %v2464_v13  ;;  %v2487_v13 = vld [vmem:[%s14601_s11 + $0x38] sm:$0xff] }
 0x750   :  { %10616 = vmatprep.subr.mxu0 %v14596_v36 }
 0x751   :  { %10617 = vmatpush3.msra.mxu0 %v2461_v53  ;;  %v2443_v29 = vpop.xlane.xlu1 %2442  ;;  %v2503_v53 = vld [vmem:[%s14600_s21 + $0x50] sm:$0xff] }
 0x752   :  { %10618 = vmatprep.subr.mxu0 %v14596_v36  ;;  %v2458_v51 = vpop.xlane.xlu0 %2457 }
 0x753   :  { %10619 = vmatpush3.msra.mxu0 %v2458_v51  ;;  %v2480_v51 = vld [vmem:[%s14601_s11] sm:$0xff] }
 0x754   :  { %10620 = vmatprep.subr.mxu0 %v14596_v36 }
 0x755   :  { %10621 = vmatpush3.msra.mxu0 %v2455_v1  ;;  %v2423_v42 = vpop.xlane.xlu1 %2422  ;;  %v2504_v1 = vld [vmem:[%s14600_s21 + $0x58] sm:$0xff] }
 0x756   :  { %10622 = vmatprep.subr.mxu0 %v14596_v36  ;;  %v2452_v17 = vpop.xlane.xlu0 %2451  ;;  %v2439_v27 = vmul.f32 0.03125, %v2423_v42  ;;  %v2489_v42 = vld [vmem:[%s14601_s11 + $0x48] sm:$0xff] }
 0x757   :  { %10623 = vmatpush3.msra.mxu0 %v2452_v17  ;;  %v2481_v17 = vld [vmem:[%s14601_s11 + $0x8] sm:$0xff] }
 0x758   :  { %10624 = vmatprep.subr.mxu0 %v14596_v36 }
 0x759   :  { %10625 = vmatpush3.msra.mxu0 %v2449_v9  ;;  %v2417_v4 = vpop.xlane.xlu1 %2416  ;;  %v2505_v9 = vld [vmem:[%s14600_s21 + $0x60] sm:$0x3] }
 0x75a   :  { %10626 = vmatprep.subr.mxu0 %v14596_v36  ;;  %v2446_v16 = vpop.xlane.xlu0 %2445  ;;  %v2437_v5 = vmul.f32 0.03125, %v2417_v4  ;;  %v2944_v4 = vld [vmem:[%s14602_s3 + $0x18] sm:$0xff] }
 0x75b   :  { %10627 = vmatpush3.msra.mxu0 %v2446_v16  ;;  %v2490_v16 = vld [vmem:[%s14601_s11 + $0x50] sm:$0xff] }
 0x75c   :  { %10628 = vmatprep.subr.mxu0 %v14596_v36 }
 0x75d   :  { %10629 = vmatpush3.msra.mxu0 %v2443_v29  ;;  %v2411_v30 = vpop.xlane.xlu1 %2410  ;;  %v2488_v29 = vld [vmem:[%s14601_s11 + $0x40] sm:$0xff] }
 0x75e   :  { %10631 = vmatmul.mubr.msk.f32.vlgmr.msra.gmra.mxu0 %vm1655_vm5, %v2493_v32  ;;  %v2426_v40 = vpop.xlane.xlu0 %2425  ;;  %10669 = vmatprep.subr.mxu0 %v14596_v36  ;;  %v2435_v3 = vmul.f32 0.03125, %v2411_v30  ;;  %v2491_v32 = vld [vmem:[%s14601_s11 + $0x58] sm:$0xff] }
 0x75f   :  { %v2440_v26 = vmul.f32 0.03125, %v2426_v40  ;;  %10633 = vmatprep.mubr.msk.f32.mxu0 %vm11659_vm0, %v14596_v36  ;;  %v2492_v40 = vld [vmem:[%s14601_s11 + $0x60] sm:$0x3] }
 0x761   :  { %10670 = vmatpush3.msk.msra.mxu0 %vm1659_vm4, %v2440_v26  ;;  %10894 = vmatpush3.msk.msra.mxu1 %vm1659_vm4, %v2440_v26  ;;  %v2405_v18 = vpop.xlane.xlu1 %2404  ;;  %v2943_v26 = vld [vmem:[%s14602_s3 + $0x10] sm:$0xff] }
 0x762   :  { %10634 = vmatmul.mubr.msk.f32.gmra.mxu0 %vm1655_vm5, %v2494_v8  ;;  %10671 = vmatprep.subr.mxu0 %v14596_v36  ;;  %v2420_v61 = vpop.xlane.xlu0 %2419  ;;  %v2433_v10 = vmul.f32 0.03125, %v2405_v18  ;;  %v2942_v8 = vld [vmem:[%s14602_s3 + $0x8] sm:$0xff] }
 0x763   :  { %10882 = vmatprep.subr.mxu1 %v14596_v36  ;;  %v2438_v63 = vmul.f32 0.03125, %v2420_v61  ;;  %10672 = vmatpush3.msra.mxu0 %v2439_v27 }
 0x764   :  { %10895 = vmatpush3.msra.mxu1 %v2439_v27  ;;  %10673 = vmatprep.subr.mxu0 %v14596_v36  ;;  %v2941_v27 = vld [vmem:[%s14602_s3] sm:$0xff] }
 0x765   :  { %10883 = vmatprep.subr.mxu1 %v14596_v36  ;;  %10636 = vmatprep.mubr.msk.f32.mxu0 %vm11659_vm0, %v14596_v36  ;;  %v2399_v0 = vpop.xlane.xlu1 %2398 }
 0x766   :  { %10674 = vmatpush3.msra.mxu0 %v2438_v63  ;;  %10896 = vmatpush3.msra.mxu1 %v2438_v63  ;;  %v2414_v19 = vpop.xlane.xlu0 %2413  ;;  %v2431_v39 = vmul.f32 0.03125, %v2399_v0 }
 0x767   :  { %10637 = vmatmul.mubr.msk.f32.gmra.mxu0 %vm1655_vm5, %v2495_v48  ;;  %10675 = vmatprep.subr.mxu0 %v14596_v36  ;;  %v2436_v47 = vmul.f32 0.03125, %v2414_v19 }
 0x768   :  { %10884 = vmatprep.subr.mxu1 %v14596_v36  ;;  %10676 = vmatpush3.msra.mxu0 %v2437_v5 }
 0x769   :  { %10897 = vmatpush3.msra.mxu1 %v2437_v5  ;;  %10677 = vmatprep.subr.mxu0 %v14596_v36  ;;  %v2393_v52 = vpop.xlane.xlu1 %2392 }
 0x76a   :  { %10885 = vmatprep.subr.mxu1 %v14596_v36  ;;  %10639 = vmatprep.mubr.msk.f32.mxu0 %vm11659_vm0, %v14596_v36  ;;  %v2408_v6 = vpop.xlane.xlu0 %2407  ;;  %v2429_v60 = vmul.f32 0.03125, %v2393_v52 }
 0x76b   :  { %10678 = vmatpush3.msra.mxu0 %v2436_v47  ;;  %10898 = vmatpush3.msra.mxu1 %v2436_v47  ;;  %v2434_v7 = vmul.f32 0.03125, %v2408_v6 }
 0x76c   :  { %10640 = vmatmul.mubr.msk.f32.gmra.mxu0 %vm1655_vm5, %v2496_v22  ;;  %10679 = vmatprep.subr.mxu0 %v14596_v36 }
 0x76d   :  { %10886 = vmatprep.subr.mxu1 %v14596_v36  ;;  %10680 = vmatpush3.msra.mxu0 %v2435_v3 }
 0x76e   :  { %10899 = vmatpush3.msra.mxu1 %v2435_v3  ;;  %10681 = vmatprep.subr.mxu0 %v14596_v36  ;;  %v2402_v59 = vpop.xlane.xlu0 %2401 }
 0x76f   :  { %10887 = vmatprep.subr.mxu1 %v14596_v36  ;;  %10642 = vmatprep.mubr.msk.f32.mxu0 %vm11659_vm0, %v14596_v36  ;;  %v2432_v12 = vmul.f32 0.03125, %v2402_v59 }
 0x770   :  { %10682 = vmatpush3.msra.mxu0 %v2434_v7  ;;  %10900 = vmatpush3.msra.mxu1 %v2434_v7 }
 0x771   :  { %10643 = vmatmul.mubr.msk.f32.gmra.mxu0 %vm1655_vm5, %v2497_v25  ;;  %10683 = vmatprep.subr.mxu0 %v14596_v36 }
 0x772   :  { %10888 = vmatprep.subr.mxu1 %v14596_v36  ;;  %10684 = vmatpush3.msra.mxu0 %v2433_v10  ;;  %v2396_v56 = vpop.xlane.xlu0 %2395 }
 0x773   :  { %10901 = vmatpush3.msra.mxu1 %v2433_v10  ;;  %10685 = vmatprep.subr.mxu0 %v14596_v36  ;;  %v2430_v58 = vmul.f32 0.03125, %v2396_v56 }
 0x774   :  { %10889 = vmatprep.subr.mxu1 %v14596_v36  ;;  %10645 = vmatprep.mubr.msk.f32.mxu0 %vm11659_vm0, %v14596_v36 }
 0x775   :  { %10686 = vmatpush3.msra.mxu0 %v2432_v12  ;;  %10902 = vmatpush3.msra.mxu1 %v2432_v12 }
 0x776   :  { %10646 = vmatmul.mubr.msk.f32.gmra.mxu0 %vm1655_vm5, %v2498_v15  ;;  %10687 = vmatprep.subr.mxu0 %v14596_v36  ;;  %v2390_v50 = vpop.xlane.xlu0 %2389 }
 0x777   :  { %10890 = vmatprep.subr.mxu1 %v14596_v36  ;;  %10688 = vmatpush3.msra.mxu0 %v2431_v39  ;;  %v2428_v49 = vmul.f32 0.03125, %v2390_v50 }
 0x778   :  { %10903 = vmatpush3.msra.mxu1 %v2431_v39  ;;  %10689 = vmatprep.subr.mxu0 %v14596_v36 }
 0x779   :  { %10891 = vmatprep.subr.mxu1 %v14596_v36  ;;  %10648 = vmatprep.mubr.msk.f32.mxu0 %vm11659_vm0, %v14596_v36 }
 0x77a   :  { %10690 = vmatpush3.msra.mxu0 %v2430_v58  ;;  %10904 = vmatpush3.msra.mxu1 %v2430_v58 }
 0x77b   :  { %10649 = vmatmul.mubr.msk.f32.gmra.mxu0 %vm1655_vm5, %v2499_v2  ;;  %10691 = vmatprep.subr.mxu0 %v14596_v36 }
 0x77c   :  { %10892 = vmatprep.subr.mxu1 %v14596_v36  ;;  %10692 = vmatpush3.msra.mxu0 %v2429_v60 }
 0x77d   :  { %10905 = vmatpush3.msra.mxu1 %v2429_v60  ;;  %10693 = vmatprep.subr.mxu0 %v14596_v36 }
 0x77e   :  { %10893 = vmatprep.subr.mxu1 %v14596_v36  ;;  %10651 = vmatprep.mubr.msk.f32.mxu0 %vm11659_vm0, %v14596_v36 }
 0x77f   :  { %10694 = vmatpush3.msra.mxu0 %v2428_v49  ;;  %10906 = vmatpush3.msra.mxu1 %v2428_v49 }
 0x780   :  { %10652 = vmatmul.mubr.msk.f32.gmra.mxu0 %vm1655_vm5, %v2500_v38  ;;  %10702 = vmatmul.mubr.msk.f32.vlgmr.msra.gmra.mxu1 %vm1655_vm5, %v2482_v34 }
 0x781   :  { %10654 = vmatprep.mubr.msk.f32.mxu0 %vm11659_vm0, %v14596_v36  ;;  %10704 = vmatprep.mubr.msk.f32.mxu1 %vm11659_vm0, %v14596_v36 }
 0x782   :  { %10734 = vmatprep.subr.mxu0 %v14596_v36 }
 0x784   :  { %10655 = vmatmul.mubr.msk.f32.gmra.mxu0 %vm1655_vm5, %v2501_v35  ;;  %10705 = vmatmul.mubr.msk.f32.gmra.mxu1 %vm1655_vm5, %v2483_v45 }
 0x785   :  { %10657 = vmatprep.mubr.msk.f32.mxu0 %vm11659_vm0, %v14596_v36  ;;  %10707 = vmatprep.mubr.msk.f32.mxu1 %vm11659_vm0, %v14596_v36 }
 0x788   :  { %10658 = vmatmul.mubr.msk.f32.gmra.mxu0 %vm1655_vm5, %v2502_v62  ;;  %10708 = vmatmul.mubr.msk.f32.gmra.mxu1 %vm1655_vm5, %v2484_v43 }
 0x789   :  { %10660 = vmatprep.mubr.msk.f32.mxu0 %vm11659_vm0, %v14596_v36  ;;  %10710 = vmatprep.mubr.msk.f32.mxu1 %vm11659_vm0, %v14596_v36 }
 0x78c   :  { %10661 = vmatmul.mubr.msk.f32.gmra.mxu0 %vm1655_vm5, %v2503_v53  ;;  %10711 = vmatmul.mubr.msk.f32.gmra.mxu1 %vm1655_vm5, %v2485_v41 }
 0x78d   :  { %10663 = vmatprep.mubr.msk.f32.mxu0 %vm11659_vm0, %v14596_v36  ;;  %10713 = vmatprep.mubr.msk.f32.mxu1 %vm11659_vm0, %v14596_v36 }
 0x790   :  { %10664 = vmatmul.mubr.msk.f32.gmra.mxu0 %vm1655_vm5, %v2504_v1  ;;  %10714 = vmatmul.mubr.msk.f32.gmra.mxu1 %vm1655_vm5, %v2486_v54 }
 0x791   :  { %10666 = vmatprep.mubr.msk.f32.mxu0 %vm11659_vm0, %v14596_v36  ;;  %10716 = vmatprep.mubr.msk.f32.mxu1 %vm11659_vm0, %v14596_v36 }
 0x794   :  { %10667 = vmatmul.mubr.msk.f32.gmra.mxu0 %vm1655_vm5, %v2505_v9  ;;  %10717 = vmatmul.mubr.msk.f32.gmra.mxu1 %vm1655_vm5, %v2487_v13 }
 0x795   :  { %10695 = vmatprep.mubr.msk.f32.mxu0 %vm11659_vm0, %v14596_v36  ;;  %10719 = vmatprep.mubr.msk.f32.mxu1 %vm11659_vm0, %v14596_v36 }
 0x798   :  { %10696 = vmatmul.mubr.msk.f32.vlgmr.msra.gmra.mxu0 %vm1655_vm5, %v2480_v51  ;;  %10720 = vmatmul.mubr.msk.f32.gmra.mxu1 %vm1655_vm5, %v2488_v29 }
 0x799   :  { %10698 = vmatprep.mubr.msk.f32.mxu0 %vm11659_vm0, %v14596_v36  ;;  %10722 = vmatprep.mubr.msk.f32.mxu1 %vm11659_vm0, %v14596_v36 }
 0x79a   :  { %10735 = vmatpush3.msra.mxu0 %v2944_v4 }
 0x79b   :  { %10736 = vmatprep.subr.mxu0 %v14596_v36 }
 0x79c   :  { %10699 = vmatmul.mubr.msk.f32.gmra.mxu0 %vm1655_vm5, %v2481_v17  ;;  %10723 = vmatmul.mubr.msk.f32.gmra.mxu1 %vm1655_vm5, %v2489_v42 }
 0x79d   :  { %10725 = vmatprep.mubr.msk.f32.mxu1 %vm11659_vm0, %v14596_v36  ;;  %10742 = vmatprep.mubr.msk.f32.mxu0 %vm11659_vm0, %v14596_v36 }
 0x79e   :  { %10737 = vmatpush3.msra.mxu0 %v2943_v26 }
 0x79f   :  { %10738 = vmatprep.subr.mxu0 %v14596_v36 }
 0x7a0   :  { %10726 = vmatmul.mubr.msk.f32.gmra.mxu1 %vm1655_vm5, %v2490_v16  ;;  %10739 = vmatpush3.msra.mxu0 %v2942_v8 }
 0x7a1   :  { %10728 = vmatprep.mubr.msk.f32.mxu1 %vm11659_vm0, %v14596_v36  ;;  %10740 = vmatprep.subr.mxu0 %v14596_v36 }
 0x7a2   :  { %10741 = vmatpush3.msra.mxu0 %v2941_v27 }
 0x7a4   :  { %10729 = vmatmul.mubr.msk.f32.gmra.mxu1 %vm1655_vm5, %v2491_v32 }
 0x7a5   :  { %10731 = vmatprep.mubr.msk.f32.mxu1 %vm11659_vm0, %v14596_v36 }
 0x7a8   :  { %10732 = vmatmul.mubr.msk.f32.gmra.mxu1 %vm1655_vm5, %v2492_v40 }
 0x81e   :  { %v2614_v61 = vpop.f32.mrf.mxu0 }
 0x820   :  { %v10632_v63 = vpop.f32.mrf.mxu0 }
 0x822   :  { %v2619_v48 = vpop.f32.mrf.mxu0 }
 0x824   :  { %v10635_v30 = vpop.f32.mrf.mxu0 }
 0x827   :  { %v2624_v5 = vpop.f32.mrf.mxu0 }
 0x829   :  { %v10638_v19 = vpop.f32.mrf.mxu0 }
 0x82c   :  { %v2629_v47 = vpop.f32.mrf.mxu0 }
 0x82e   :  { %v10641_v22 = vpop.f32.mrf.mxu0 }
 0x831   :  { %v2634_v6 = vpop.f32.mrf.mxu0 }
 0x833   :  { %v10644_v3 = vpop.f32.mrf.mxu0 }
 0x836   :  { %v2639_v18 = vpop.f32.mrf.mxu0 }
 0x838   :  { %v10647_v7 = vpop.f32.mrf.mxu0 }
 0x83b   :  { %v2644_v25 = vpop.f32.mrf.mxu0 }
 0x83d   :  { %v10650_v59 = vpop.f32.mrf.mxu0 }
 0x840   :  { %v2649_v10 = vpop.f32.mrf.mxu0  ;;  %v2796_v0 = vpop.f32.mrf.mxu1 }
 0x841   :  { %v2797_v51 = vadd.f32 %v2796_v0, %v2624_v5 }
 0x842   :  { %v10653_v12 = vpop.f32.mrf.mxu0  ;;  %v10703_v56 = vpop.f32.mrf.mxu1 }
 0x843   :  { %v9241_v26 = vmul.f32 -1.442695, %v2797_v51 }
 0x844   :  { %v14044_v15 = vpop.f32.mrf.mxu0  ;;  %v2801_v39 = vpop.f32.mrf.mxu1 }
 0x845   :  { %v2802_v40 = vadd.f32 %v2801_v39, %v2629_v47 }
 0x846   :  { %v10656_v58 = vpop.f32.mrf.mxu0  ;;  %v10706_v52 = vpop.f32.mrf.mxu1 }
 0x847   :  { %v9242_v22 = vmul.f32 -1.442695, %v2802_v40 }
 0x848   :  { %v14046_v2 = vpop.f32.mrf.mxu0  ;;  %v2806_v50 = vpop.f32.mrf.mxu1 }
 0x849   :  { %v2807_v3 = vadd.f32 %v2806_v50, %v2634_v6 }
 0x84a   :  { %v10659_v60 = vpop.f32.mrf.mxu0  ;;  %v10709_v49 = vpop.f32.mrf.mxu1 }
 0x84c   :  { %v14048_v38 = vpop.f32.mrf.mxu0  ;;  %v2811_v34 = vpop.f32.mrf.mxu1 }
 0x84d   :  { %v2812_v0 = vadd.f32 %v2811_v34, %v2639_v18 }
 0x84e   :  { %v10662_v35 = vpop.f32.mrf.mxu0  ;;  %v10712_v45 = vpop.f32.mrf.mxu1 }
 0x84f   :  { %v9244_v56 = vmul.f32 -1.442695, %v2812_v0 }
 0x850   :  { %v14050_v62 = vpop.f32.mrf.mxu0  ;;  %v2816_v43 = vpop.f32.mrf.mxu1 }
 0x851   :  { %v2817_v39 = vadd.f32 %v2816_v43, %v2644_v25 }
 0x852   :  { %v10665_v53 = vpop.f32.mrf.mxu0  ;;  %v10715_v41 = vpop.f32.mrf.mxu1 }
 0x853   :  { %v9245_v60 = vmul.f32 -1.442695, %v2817_v39 }
 0x854   :  { %v14052_v1 = vpop.f32.mrf.mxu0  ;;  %v2821_v54 = vpop.f32.mrf.mxu1 }
 0x855   :  { %v2822_v49 = vadd.f32 %v2821_v54, %v2649_v10 }
 0x856   :  { %v10668_v9 = vpop.f32.mrf.mxu0  ;;  %v10718_v13 = vpop.f32.mrf.mxu1 }
 0x857   :  { %v9246_v45 = vmul.f32 -1.442695, %v2822_v49 }
 0x858   :  { %v2786_v29 = vpop.f32.mrf.mxu0  ;;  %v2826_v17 = vpop.f32.mrf.mxu1 }
 0x859   :  { %v2787_v42 = vadd.f32 %v2786_v29, %v2614_v61  ;;  %v9243_v61 = vmul.f32 -1.442695, %v2807_v3  ;;  %v2827_v18 = vadd.f32 %v2826_v17, %v14044_v15 }
 0x85a   :  { %v10697_v16 = vpop.f32.mrf.mxu0  ;;  %v10721_v32 = vpop.f32.mrf.mxu1 }
 0x85b   :  { %v9239_v4 = vmul.f32 -1.442695, %v2787_v42  ;;  %v9247_v43 = vmul.f32 -1.442695, %v2827_v18 }
 0x85c   :  { %v2791_v8 = vpop.f32.mrf.mxu0  ;;  %v2831_v27 = vpop.f32.mrf.mxu1 }
 0x85d   :  { %v2792_v63 = vadd.f32 %v2791_v8, %v2619_v48  ;;  %11076 = vpow2.f32 %v9239_v4  ;;  %v2832_v13 = vadd.f32 %v2831_v27, %v14046_v2 }
 0x85e   :  { %v10724_v30 = vpop.f32.mrf.mxu1  ;;  %v10700_v19 = vpop.f32.mrf.mxu0  ;;  %11078 = vpow2.f32 %v9241_v26 }
 0x85f   :  { %v9240_v7 = vmul.f32 -1.442695, %v2792_v63  ;;  %v9248_v51 = vmul.f32 -1.442695, %v2832_v13 }
 0x860   :  { %v2836_v59 = vpop.f32.mrf.mxu1 }
 0x861   :  { %11080 = vpow2.f32 %v9240_v7  ;;  %v2837_v29 = vadd.f32 %v2836_v59, %v14048_v38 }
 0x862   :  { %v10727_v5 = vpop.f32.mrf.mxu1  ;;  %11082 = vpow2.f32 %v9242_v22 }
 0x863   :  { %11084 = vpow2.f32 %v9243_v61  ;;  %v9249_v17 = vmul.f32 -1.442695, %v2837_v29 }
 0x864   :  { %v2841_v12 = vpop.f32.mrf.mxu1  ;;  %11086 = vpow2.f32 %v9244_v56 }
 0x865   :  { %v2842_v32 = vadd.f32 %v2841_v12, %v14050_v62 }
 0x866   :  { %v10730_v47 = vpop.f32.mrf.mxu1 }
 0x867   :  { %v9250_v38 = vmul.f32 -1.442695, %v2842_v32 }
 0x868   :  { %v2846_v58 = vpop.f32.mrf.mxu1 }
 0x869   :  { %v2847_v8 = vadd.f32 %v2846_v58, %v14052_v1 }
 0x86a   :  { %v10733_v48 = vpop.f32.mrf.mxu1  ;;  %v11077_v52 = vpop.eup %11076 }
 0x86b   :  { %v2889_v6 = vadd.f32 1.0, %v11077_v52  ;;  %v11079_v50 = vpop.eup %11078  ;;  %v9251_v30 = vmul.f32 -1.442695, %v2847_v8 }
 0x86c   :  { %v2891_v41 = vadd.f32 1.0, %v11079_v50 }
 0x86d   :  { %11088 = vrcp.f32 %v2889_v6 }
 0x86e   :  { %v11081_v35 = vpop.eup %11080  ;;  %11090 = vpow2.f32 %v9245_v60 }
 0x86f   :  { %v11083_v53 = vpop.eup %11082  ;;  %v2890_v34 = vadd.f32 1.0, %v11081_v35 }
 0x870   :  { %v2892_v9 = vadd.f32 1.0, %v11083_v53  ;;  %v11085_v25 = vpop.eup %11084 }
 0x871   :  { %11092 = vrcp.f32 %v2890_v34  ;;  %v2893_v10 = vadd.f32 1.0, %v11085_v25  ;;  %v11087_v54 = vpop.eup %11086 }
 0x872   :  { %11094 = vpow2.f32 %v9246_v45  ;;  %v2894_v16 = vadd.f32 1.0, %v11087_v54 }
 0x873   :  { %11096 = vrcp.f32 %v2891_v41 }
 0x874   :  { %11098 = vrcp.f32 %v2892_v9 }
 0x875   :  { %11100 = vpow2.f32 %v9247_v43 }
 0x876   :  { %11102 = vrcp.f32 %v2893_v10 }
 0x877   :  { %11104 = vpow2.f32 %v9248_v51 }
 0x878   :  { %11106 = vrcp.f32 %v2894_v16 }
 0x879   :  { %11108 = vpow2.f32 %v9249_v17 }
 0x87a   :  { %v11089_v42 = vpop.eup %11088 }
 0x87b   :  { %v11091_v15 = vpop.eup %11090  ;;  %v2928_v40 = vmul.f32 %v11089_v42, %v13787_v57 }
 0x87c   :  { %v2895_v4 = vadd.f32 1.0, %v11091_v15 }
 0x87d   :  { %10743 = vmatmul.mubr.msk.f32.vlgmr.msra.gmra.mxu0 %vm1424_vm2, %v2928_v40 }
 0x87e   :  { %v11093_v2 = vpop.eup %11092  ;;  %10745 = vmatprep.mubr.msk.f32.mxu0 %vm11659_vm0, %v14596_v36  ;;  %11110 = vrcp.f32 %v2895_v4 }
 0x87f   :  { %v11095_v26 = vpop.eup %11094  ;;  %v2929_v27 = vmul.f32 %v11093_v2, %v13806_v28  ;;  %11112 = vpow2.f32 %v9250_v38 }
 0x880   :  { %v11097_v63 = vpop.eup %11096  ;;  %v2896_v57 = vadd.f32 1.0, %v11095_v26 }
 0x881   :  { %10746 = vmatmul.mubr.msk.f32.gmra.mxu0 %vm1424_vm2, %v2929_v27  ;;  %v11099_v62 = vpop.eup %11098  ;;  %v2930_v19 = vmul.f32 %v11097_v63, %v13777_v31 }
 0x882   :  { %10748 = vmatprep.mubr.msk.f32.mxu0 %vm11659_vm0, %v14596_v36  ;;  %v11101_v22 = vpop.eup %11100  ;;  %11114 = vrcp.f32 %v2896_v57  ;;  %v2931_v3 = vmul.f32 %v11099_v62, %v13799_v11 }
 0x883   :  { %v11103_v28 = vpop.eup %11102  ;;  %v2897_v1 = vadd.f32 1.0, %v11101_v22  ;;  %11116 = vpow2.f32 %v9251_v30 }
 0x884   :  { %v11105_v7 = vpop.eup %11104  ;;  %v2932_v5 = vmul.f32 %v11103_v28, %v13767_v20 }
 0x885   :  { %10749 = vmatmul.mubr.msk.f32.gmra.mxu0 %vm1424_vm2, %v2930_v19  ;;  %v11107_v59 = vpop.eup %11106  ;;  %11118 = vrcp.f32 %v2897_v1  ;;  %v2898_v31 = vadd.f32 1.0, %v11105_v7 }
 0x886   :  { %10751 = vmatprep.mubr.msk.f32.mxu0 %vm11659_vm0, %v14596_v36  ;;  %v11109_v61 = vpop.eup %11108  ;;  %v2933_v12 = vmul.f32 %v11107_v59, %v13792_v23 }
 0x887   :  { %11120 = vrcp.f32 %v2898_v31  ;;  %v2899_v11 = vadd.f32 1.0, %v11109_v61 }
 0x889   :  { %10752 = vmatmul.mubr.msk.f32.gmra.mxu0 %vm1424_vm2, %v2931_v3  ;;  %11122 = vrcp.f32 %v2899_v11 }
 0x88a   :  { %10754 = vmatprep.mubr.msk.f32.mxu0 %vm11659_vm0, %v14596_v36 }
 0x88b   :  { %v11111_v0 = vpop.eup %11110 }
 0x88c   :  { %v11113_v47 = vpop.eup %11112  ;;  %v2934_v39 = vmul.f32 %v11111_v0, %v13757_v46 }
 0x88d   :  { %10755 = vmatmul.mubr.msk.f32.gmra.mxu0 %vm1424_vm2, %v2932_v5  ;;  %v2900_v20 = vadd.f32 1.0, %v11113_v47 }
 0x88e   :  { %10757 = vmatprep.mubr.msk.f32.mxu0 %vm11659_vm0, %v14596_v36 }
 0x88f   :  { %v11115_v56 = vpop.eup %11114  ;;  %11124 = vrcp.f32 %v2900_v20 }
 0x890   :  { %v11117_v58 = vpop.eup %11116  ;;  %v2935_v23 = vmul.f32 %v11115_v56, %v13782_v55 }
 0x891   :  { %10758 = vmatmul.mubr.msk.f32.gmra.mxu0 %vm1424_vm2, %v2933_v12  ;;  %v2901_v48 = vadd.f32 1.0, %v11117_v58 }
 0x892   :  { %10760 = vmatprep.mubr.msk.f32.mxu0 %vm11659_vm0, %v14596_v36  ;;  %v11119_v52 = vpop.eup %11118 }
 0x893   :  { %11126 = vrcp.f32 %v2901_v48  ;;  %v2936_v60 = vmul.f32 %v11119_v52, %v13749_v21 }
 0x894   :  { %v11121_v46 = vpop.eup %11120 }
 0x895   :  { %10761 = vmatmul.mubr.msk.f32.gmra.mxu0 %vm1424_vm2, %v2934_v39  ;;  %v2937_v49 = vmul.f32 %v11121_v46, %v13772_v24 }
 0x896   :  { %10763 = vmatprep.mubr.msk.f32.mxu0 %vm11659_vm0, %v14596_v36  ;;  %v11123_v6 = vpop.eup %11122 }
 0x897   :  { %v2938_v55 = vmul.f32 %v11123_v6, %v13762_v14  ;;  %v14112_v14 = vld [vmem:[%s14487_s12] ss:$0 sm:$0xff] }
 0x899   :  { %10764 = vmatmul.mubr.msk.f32.gmra.mxu0 %vm1424_vm2, %v2935_v23 }
 0x89a   :  { %10766 = vmatprep.mubr.msk.f32.mxu0 %vm11659_vm0, %v14596_v36 }
 0x89c   :  { %v11125_v50 = vpop.eup %11124 }
 0x89d   :  { %10767 = vmatmul.mubr.msk.f32.gmra.mxu0 %vm1424_vm2, %v2936_v60  ;;  %v2939_v21 = vmul.f32 %v11125_v50, %v13744_v37 }
 0x89e   :  { %10769 = vmatprep.mubr.msk.f32.mxu0 %vm11659_vm0, %v14596_v36 }
 0x8a0   :  { %v11127_v35 = vpop.eup %11126 }
 0x8a1   :  { %10770 = vmatmul.mubr.msk.f32.gmra.mxu0 %vm1424_vm2, %v2937_v49  ;;  %v2940_v24 = vmul.f32 %v11127_v35, %v13752_v33 }
 0x8a2   :  { %10772 = vmatprep.mubr.msk.f32.mxu0 %vm11659_vm0, %v14596_v36 }
 0x8a5   :  { %10773 = vmatmul.mubr.msk.f32.gmra.mxu0 %vm1424_vm2, %v2938_v55 }
 0x8a6   :  { %10775 = vmatprep.mubr.msk.f32.mxu0 %vm11659_vm0, %v14596_v36 }
 0x8a9   :  { %10776 = vmatmul.mubr.msk.f32.gmra.mxu0 %vm1424_vm2, %v2939_v21 }
 0x8aa   :  { %10778 = vmatprep.mubr.msk.f32.mxu0 %vm11659_vm0, %v14596_v36 }
 0x8ad   :  { %10779 = vmatmul.mubr.msk.f32.gmra.mxu0 %vm1424_vm2, %v2940_v24 }
 0x93d   :  { %v3057_v45 = vpop.f32.mrf.mxu0 }
 0x93e   :  { %v3058_v53 = vadd.f32 %v14112_v14, %v3057_v45 }
 0x93f   :  { %v10744_v41 = vpop.f32.mrf.mxu0 }
 0x940   :  { %v9266_v37 = vmul.f32 -1.442695, %v3058_v53 }
 0x941   :  { %v3062_v18 = vpop.f32.mrf.mxu0 }
 0x942   :  { %11128 = vpow2.f32 %v9266_v37  ;;  %v3063_v34 = vadd.f32 %v14112_v14, %v3062_v18 }
 0x943   :  { %v10747_v9 = vpop.f32.mrf.mxu0 }
 0x944   :  { %v9267_v25 = vmul.f32 -1.442695, %v3063_v34 }
 0x945   :  { %v3067_v43 = vpop.f32.mrf.mxu0 }
 0x946   :  { %11130 = vpow2.f32 %v9267_v25  ;;  %v14117_v33 = vadd.f32 %v14112_v14, %v3067_v43 }
 0x947   :  { %v10750_v13 = vpop.f32.mrf.mxu0 }
 0x948   :  { %v9268_v10 = vmul.f32 -1.442695, %v14117_v33 }
 0x949   :  { %v3072_v54 = vpop.f32.mrf.mxu0 }
 0x94a   :  { %11132 = vpow2.f32 %v9268_v10  ;;  %v14121_v51 = vadd.f32 %v14112_v14, %v3072_v54 }
 0x94b   :  { %v10753_v29 = vpop.f32.mrf.mxu0 }
 0x94c   :  { %v9269_v42 = vmul.f32 -1.442695, %v14121_v51 }
 0x94d   :  { %v3077_v16 = vpop.f32.mrf.mxu0 }
 0x94e   :  { %11134 = vpow2.f32 %v9269_v42  ;;  %v14125_v15 = vadd.f32 %v14112_v14, %v3077_v16 }
 0x94f   :  { %v11129_v17 = vpop.eup %11128  ;;  %v10756_v32 = vpop.f32.mrf.mxu0 }
 0x950   :  { %v3160_v40 = vadd.f32 1.0, %v11129_v17  ;;  %v9270_v2 = vmul.f32 -1.442695, %v14125_v15 }
 0x951   :  { %v3082_v4 = vpop.f32.mrf.mxu0 }
 0x952   :  { %11136 = vrcp.f32 %v3160_v40  ;;  %v14129_v26 = vadd.f32 %v14112_v14, %v3082_v4 }
 0x953   :  { %v11131_v38 = vpop.eup %11130  ;;  %11138 = vpow2.f32 %v9270_v2  ;;  %v10759_v8 = vpop.f32.mrf.mxu0 }
 0x954   :  { %v3161_v27 = vadd.f32 1.0, %v11131_v38  ;;  %v9271_v63 = vmul.f32 -1.442695, %v14129_v26 }
 0x955   :  { %v3087_v57 = vpop.f32.mrf.mxu0 }
 0x956   :  { %11140 = vrcp.f32 %v3161_v27  ;;  %v14133_v62 = vadd.f32 %v14112_v14, %v3087_v57 }
 0x957   :  { %v11133_v30 = vpop.eup %11132  ;;  %11142 = vpow2.f32 %v9271_v63  ;;  %v10762_v19 = vpop.f32.mrf.mxu0 }
 0x958   :  { %v3162_v22 = vadd.f32 1.0, %v11133_v30  ;;  %v9272_v28 = vmul.f32 -1.442695, %v14133_v62 }
 0x959   :  { %v3092_v1 = vpop.f32.mrf.mxu0 }
 0x95a   :  { %11144 = vrcp.f32 %v3162_v22  ;;  %v14137_v3 = vadd.f32 %v14112_v14, %v3092_v1 }
 0x95b   :  { %v11135_v7 = vpop.eup %11134  ;;  %11146 = vpow2.f32 %v9272_v28  ;;  %v10765_v59 = vpop.f32.mrf.mxu0 }
 0x95c   :  { %v3163_v31 = vadd.f32 1.0, %v11135_v7  ;;  %v9273_v5 = vmul.f32 -1.442695, %v14137_v3 }
 0x95d   :  { %v3097_v61 = vpop.f32.mrf.mxu0 }
 0x95e   :  { %11148 = vrcp.f32 %v3163_v31  ;;  %v14141_v0 = vadd.f32 %v14112_v14, %v3097_v61 }
 0x95f   :  { %v11137_v11 = vpop.eup %11136  ;;  %11150 = vpow2.f32 %v9273_v5  ;;  %v10768_v12 = vpop.f32.mrf.mxu0 }
 0x960   :  { %v11139_v47 = vpop.eup %11138  ;;  %v3199_v56 = vmul.f32 %v11137_v11, %v3058_v53  ;;  %v9274_v20 = vmul.f32 -1.442695, %v14141_v0 }
 0x961   :  { %v3164_v39 = vadd.f32 1.0, %v11139_v47  ;;  %v3102_v58 = vpop.f32.mrf.mxu0 }
 0x962   :  { %3212 = vst [vmem:[#allocation2] sm:$0xff] %v3199_v56  ;;  %11152 = vpow2.f32 %v9274_v20  ;;  %v14145_v48 = vadd.f32 %v14112_v14, %v3102_v58 }
 0x963   :  { %v11141_v23 = vpop.eup %11140  ;;  %11154 = vrcp.f32 %v3164_v39  ;;  %v10771_v52 = vpop.f32.mrf.mxu0 }
 0x964   :  { %v11143_v60 = vpop.eup %11142  ;;  %v3200_v46 = vmul.f32 %v11141_v23, %v3063_v34  ;;  %v9275_v49 = vmul.f32 -1.442695, %v14145_v48 }
 0x965   :  { %v3165_v6 = vadd.f32 1.0, %v11143_v60  ;;  %v3107_v55 = vpop.f32.mrf.mxu0 }
 0x966   :  { %3213 = vst [vmem:[#allocation2 + $0x8] sm:$0xff] %v3200_v46  ;;  %11156 = vpow2.f32 %v9275_v49  ;;  %v14149_v50 = vadd.f32 %v14112_v14, %v3107_v55 }
 0x967   :  { %v11145_v21 = vpop.eup %11144  ;;  %11158 = vrcp.f32 %v3165_v6  ;;  %v10774_v35 = vpop.f32.mrf.mxu0 }
 0x968   :  { %v11147_v24 = vpop.eup %11146  ;;  %v3201_v45 = vmul.f32 %v11145_v21, %v14117_v33  ;;  %v9276_v53 = vmul.f32 -1.442695, %v14149_v50 }
 0x969   :  { %v3225_v41 = vld [vmem:[#allocation2] sm:$0xff]   ;;  %v3166_v37 = vadd.f32 1.0, %v11147_v24  ;;  %v3112_v18 = vpop.f32.mrf.mxu0 }
 0x96a   :  { %3226 = vst [vmem:[#allocation3] sm:$0xff] %v3225_v41   ;;  %3214 = vst [vmem:[#allocation2 + $0x10] sm:$0xff] %v3201_v45  ;;  %11160 = vpow2.f32 %v9276_v53  ;;  %v14154_v34 = vadd.f32 %v14112_v14, %v3112_v18 }
 0x96b   :  { %v11149_v9 = vpop.eup %11148  ;;  %11162 = vrcp.f32 %v3166_v37  ;;  %v10777_v25 = vpop.f32.mrf.mxu0 }
 0x96c   :  { %v11151_v43 = vpop.eup %11150  ;;  %v3202_v13 = vmul.f32 %v11149_v9, %v14121_v51  ;;  %v9277_v10 = vmul.f32 -1.442695, %v14154_v34 }
 0x96d   :  { %v3233_v33 = vld [vmem:[#allocation2 + $0x8] sm:$0xff]   ;;  %v3167_v54 = vadd.f32 1.0, %v11151_v43  ;;  %v3117_v29 = vpop.f32.mrf.mxu0 }
 0x96e   :  { %3234 = vst [vmem:[#allocation3 + $0x8] sm:$0xff] %v3233_v33   ;;  %3215 = vst [vmem:[#allocation2 + $0x18] sm:$0xff] %v3202_v13  ;;  %11164 = vpow2.f32 %v9277_v10  ;;  %v3118_v42 = vadd.f32 %v14112_v14, %v3117_v29 }
 0x96f   :  { %v11153_v16 = vpop.eup %11152  ;;  %11166 = vrcp.f32 %v3167_v54  ;;  %v10780_v17 = vpop.f32.mrf.mxu0 }
 0x970   :  { %v11155_v32 = vpop.eup %11154  ;;  %v3168_v40 = vadd.f32 1.0, %v11153_v16  ;;  %v9278_v2 = vmul.f32 -1.442695, %v3118_v42 }
 0x971   :  { %v3241_v4 = vld [vmem:[#allocation2 + $0x10] sm:$0xff]   ;;  %v3203_v38 = vmul.f32 %v11155_v32, %v14125_v15 }
 0x972   :  { %3242 = vst [vmem:[#allocation3 + $0x10] sm:$0xff] %v3241_v4   ;;  %11168 = vrcp.f32 %v3168_v40 }
 0x973   :  { %v11157_v51 = vpop.eup %11156  ;;  %3216 = vst [vmem:[#allocation2 + $0x20] sm:$0xff] %v3203_v38  ;;  %11170 = vpow2.f32 %v9278_v2 }
 0x974   :  { %v11159_v8 = vpop.eup %11158  ;;  %v3169_v27 = vadd.f32 1.0, %v11157_v51 }
 0x975   :  { %v3249_v63 = vld [vmem:[#allocation2 + $0x18] sm:$0xff]   ;;  %v3204_v57 = vmul.f32 %v11159_v8, %v14129_v26 }
 0x976   :  { %3250 = vst [vmem:[#allocation3 + $0x18] sm:$0xff] %v3249_v63   ;;  %11172 = vrcp.f32 %v3169_v27 }
 0x977   :  { %v11161_v14 = vpop.eup %11160  ;;  %3217 = vst [vmem:[#allocation2 + $0x28] sm:$0xff] %v3204_v57 }
 0x978   :  { %v11163_v30 = vpop.eup %11162  ;;  %v3170_v19 = vadd.f32 1.0, %v11161_v14 }
 0x979   :  { %v3205_v22 = vmul.f32 %v11163_v30, %v14133_v62 }
 0x97a   :  { %v3257_v28 = vld [vmem:[#allocation2 + $0x20] sm:$0xff]   ;;  %11174 = vrcp.f32 %v3170_v19 }
 0x97b   :  { %v11165_v15 = vpop.eup %11164  ;;  %3258 = vst [vmem:[#allocation3 + $0x20] sm:$0xff] %v3257_v28   ;;  %3218 = vst [vmem:[#allocation2 + $0x30] sm:$0xff] %v3205_v22 }
 0x97c   :  { %v11167_v1 = vpop.eup %11166  ;;  %v3171_v7 = vadd.f32 1.0, %v11165_v15 }
 0x97d   :  { %v3206_v59 = vmul.f32 %v11167_v1, %v14137_v3 }
 0x97e   :  { %v3265_v31 = vld [vmem:[#allocation2 + $0x28] sm:$0xff]   ;;  %11176 = vrcp.f32 %v3171_v7 }
 0x97f   :  { %v11169_v26 = vpop.eup %11168  ;;  %3266 = vst [vmem:[#allocation3 + $0x28] sm:$0xff] %v3265_v31   ;;  %3219 = vst [vmem:[#allocation2 + $0x38] sm:$0xff] %v3206_v59 }
 0x980   :  { %v11171_v5 = vpop.eup %11170  ;;  %v3207_v61 = vmul.f32 %v11169_v26, %v14141_v0 }
 0x981   :  { %v3172_v11 = vadd.f32 1.0, %v11171_v5 }
 0x982   :  { %v3273_v12 = vld [vmem:[#allocation2 + $0x30] sm:$0xff]   ;;  %3220 = vst [vmem:[#allocation2 + $0x40] sm:$0xff] %v3207_v61 }
 0x983   :  { %v11173_v62 = vpop.eup %11172  ;;  %3274 = vst [vmem:[#allocation3 + $0x30] sm:$0xff] %v3273_v12   ;;  %11178 = vrcp.f32 %v3172_v11 }
 0x984   :  { %v3208_v47 = vmul.f32 %v11173_v62, %v14145_v48 }
 0x986   :  { %v3281_v56 = vld [vmem:[#allocation2 + $0x38] sm:$0xff]   ;;  %3221 = vst [vmem:[#allocation2 + $0x48] sm:$0xff] %v3208_v47 }
 0x987   :  { %v11175_v20 = vpop.eup %11174  ;;  %3282 = vst [vmem:[#allocation3 + $0x38] sm:$0xff] %v3281_v56  }
 0x988   :  { %v3209_v3 = vmul.f32 %v11175_v20, %v14149_v50 }
 0x989   :  { %v3289_v39 = vld [vmem:[#allocation2 + $0x40] sm:$0xff]  }
 0x98a   :  { %3290 = vst [vmem:[#allocation3 + $0x40] sm:$0xff] %v3289_v39   ;;  %3222 = vst [vmem:[#allocation2 + $0x50] sm:$0xff] %v3209_v3 }
 0x98b   :  { %v11177_v58 = vpop.eup %11176 }
 0x98c   :  { %v3210_v0 = vmul.f32 %v11177_v58, %v14154_v34 }
 0x98d   :  { %v3297_v23 = vld [vmem:[#allocation2 + $0x48] sm:$0xff]  }
 0x98e   :  { %3298 = vst [vmem:[#allocation3 + $0x48] sm:$0xff] %v3297_v23   ;;  %3223 = vst [vmem:[#allocation2 + $0x58] sm:$0xff] %v3210_v0 }
 0x990   :  { %v11179_v52 = vpop.eup %11178 }
 0x991   :  { %v3305_v60 = vld [vmem:[#allocation2 + $0x50] sm:$0xff]   ;;  %v3211_v46 = vmul.f32 %v11179_v52, %v3118_v42 }
 0x992   :  { %3306 = vst [vmem:[#allocation3 + $0x50] sm:$0xff] %v3305_v60  }
 0x993   :  { %3224 = vst [vmem:[#allocation2 + $0x60] sm:$0x3] %v3211_v46 }
 0x995   :  { %v3313_v48 = vld [vmem:[#allocation2 + $0x58] sm:$0xff]  }
 0x996   :  { %3314 = vst [vmem:[#allocation3 + $0x58] sm:$0xff] %v3313_v48  }
 0x99a   :  { %v3321_v49 = vld [vmem:[#allocation2 + $0x60] sm:$0x3] }
 0x99b   :  { %3322 = vst [vmem:[#allocation3 + $0x60] sm:$0x3] %v3321_v49 }
 0x99c   :  { %11652 = dma.done.wait [#allocation7], 50176 }
 0x99d   :  { %11653 = vsyncadd [#allocation7], 4294917120 }
 0x99e   :  { %11654 = dma.done.wait [#allocation7 + $0x1], 4096 }
 0x99f   :  { %11655 = vsyncadd [#allocation7 + $0x1], 4294963200 }
 0x9a0   :  { %11656 = dma.done.wait [#allocation7 + $0x2], 4096 }
 0x9a1   :  { %11657 = vsyncadd [#allocation7 + $0x2], 4294963200  ;;  %11180 = vset.pattern.permute.xlu1 %v14595_v44  ;;  %11181 = vset.pattern.permute.xlu0 %v14595_v44  ;;  %v11182_v6 = vld [vmem:[#allocation4 + $0x78] sm:$0xff]   ;;  %v11186_v35 = vld [vmem:[#allocation4 + $0x70] sm:$0xff]   ;;  %v11662_v16 = vmov 1983009808   ;;  %v3366_v32 = vlaneseq }
 0x9a2   :  { %v11183_v55 = vld [vmem:[#allocation4 + $0x38] sm:$0xff]   ;;  %9904 = vmatprep.subr.bf16.mxu1 %v11182_v6  ;;  %v11187_v24 = vld [vmem:[#allocation4 + $0x30] sm:$0xff]   ;;  %v11190_v41 = vld [vmem:[#allocation4 + $0x68] sm:$0xff]   ;;  %v3364_v17 = vunpack.c.l.s4 %v11662_v16  ;;  %vm7816_vm10 = vcmask 517120   ;;  %vm7906_vm11 = vcmask 523264  }
 0x9a3   :  { %v11184_v50 = vld [vmem:[#allocation4 + $0xf8] sm:$0xff]   ;;  %9905 = vmatpush3.bf16.msra.mxu1 %v11183_v55  ;;  %v11188_v45 = vld [vmem:[#allocation4 + $0xf0] sm:$0xff]   ;;  %v11191_v37 = vld [vmem:[#allocation4 + $0x28] sm:$0xff]   ;;  %v14169_v8 = vshrl.u32 %v3366_v32, 7 }
 0x9a4   :  { %v11185_v21 = vld [vmem:[#allocation4 + $0xb8] sm:$0xff]   ;;  %9926 = vmatprep.subr.bf16.mxu0 %v11184_v50  ;;  %9906 = vmatprep.subr.bf16.mxu1 %v11186_v35  ;;  %v11189_v53 = vld [vmem:[#allocation4 + $0xb0] sm:$0xff]   ;;  %v11192_v18 = vld [vmem:[#allocation4 + $0xe8] sm:$0xff]   ;;  %v3365_v51 = vunpack.c.0.s8 %v3364_v17 }
 0x9a5   :  { %9927 = vmatpush3.bf16.msra.mxu0 %v11185_v21  ;;  %v11193_v34 = vld [vmem:[#allocation4 + $0xa8] sm:$0xff]   ;;  %v11194_v9 = vld [vmem:[#allocation4 + $0x60] sm:$0xff]   ;;  %v11198_v10 = vld [vmem:[#allocation4 + $0x58] sm:$0xff]  }
 0x9a6   :  { %9928 = vmatprep.subr.bf16.mxu0 %v11188_v45  ;;  %v11195_v25 = vld [vmem:[#allocation4 + $0x20] sm:$0xff]   ;;  %v11199_v33 = vld [vmem:[#allocation4 + $0x18] sm:$0xff]   ;;  %v11202_v42 = vld [vmem:[#allocation4 + $0x50] sm:$0xff]   ;;  %v14172_v30 = vsub.s32 %v3365_v51, %v14169_v8 }
 0x9a7   :  { %9907 = vmatpush3.bf16.msra.mxu1 %v11187_v24  ;;  %v11196_v43 = vld [vmem:[#allocation4 + $0xe0] sm:$0xff]   ;;  %v11200_v54 = vld [vmem:[#allocation4 + $0xd8] sm:$0xff]   ;;  %v11203_v40 = vld [vmem:[#allocation4 + $0x10] sm:$0xff]  }
 0x9a8   :  { %9908 = vmatprep.subr.bf16.mxu1 %v11190_v41  ;;  %v11197_v13 = vld [vmem:[#allocation4 + $0xa0] sm:$0xff]   ;;  %v11201_v29 = vld [vmem:[#allocation4 + $0x98] sm:$0xff]   ;;  %v11204_v2 = vld [vmem:[#allocation4 + $0xd0] sm:$0xff]  }
 0x9a9   :  { %9929 = vmatpush3.bf16.msra.mxu0 %v11189_v53  ;;  %v11205_v4 = vld [vmem:[#allocation4 + $0x90] sm:$0xff]   ;;  %v11206_v38 = vld [vmem:[#allocation4 + $0x48] sm:$0xff]   ;;  %v11210_v14 = vld [vmem:[#allocation4 + $0x40] sm:$0xff]  }
 0x9aa   :  { %9930 = vmatprep.subr.bf16.mxu0 %v11192_v18  ;;  %v11207_v27 = vld [vmem:[#allocation4 + $0x8] sm:$0xff]   ;;  %v11211_v19 = vld [vmem:[#allocation4] sm:$0xff]   ;;  %v11214_v59 = vld [vmem:[#allocation4 + $0x178] sm:$0xff]  }
 0x9ab   :  { %9909 = vmatpush3.bf16.msra.mxu1 %v11191_v37  ;;  %v11208_v63 = vld [vmem:[#allocation4 + $0xc8] sm:$0xff]   ;;  %v11212_v22 = vld [vmem:[#allocation4 + $0xc0] sm:$0xff]   ;;  %v11216_v5 = vld [vmem:[#allocation4 + $0x138] sm:$0xff]  }
 0x9ac   :  { %9910 = vmatprep.subr.bf16.mxu1 %v11194_v9  ;;  %v11209_v57 = vld [vmem:[#allocation4 + $0x88] sm:$0xff]   ;;  %v3336_v28 = vld [vmem:[#allocation3] sm:$0xff]  ;;  %v11219_v20 = vld [vmem:[#allocation4 + $0x170] sm:$0xff]  }
 0x9ad   :  { %9931 = vmatpush3.bf16.msra.mxu0 %v11193_v34  ;;  %v3369_v15 = vrot.slane %v3336_v28, %v14172_v30  ;;  %v11213_v1 = vld [vmem:[#allocation4 + $0x80] sm:$0xff]   ;;  %v3362_v7 = vcombine.high %v3336_v28, %v3336_v28  ;;  %v11217_v11 = vld [vmem:[#allocation4 + $0x1f8] sm:$0xff]   ;;  %v11220_v39 = vld [vmem:[#allocation4 + $0x130] sm:$0xff]  }
 0x9ae   :  { %9932 = vmatprep.subr.bf16.mxu0 %v11196_v43  ;;  %v11218_v47 = vld [vmem:[#allocation4 + $0x1b8] sm:$0xff]   ;;  %v11221_v58 = vld [vmem:[#allocation4 + $0x1f0] sm:$0xff]   ;;  %v11223_v23 = vld [vmem:[#allocation4 + $0x168] sm:$0xff]  }
 0x9af   :  { %9911 = vmatpush3.bf16.msra.mxu1 %v11195_v25  ;;  %v3377_v31 = vcombine.high %v3369_v15, %v3369_v15  ;;  %v3376_v26 = vrot.slane %v3362_v7, %v14172_v30  ;;  %v3622_v61 = vpack.c.bf16 %v3369_v15, %v3369_v15  ;;  %v11222_v0 = vld [vmem:[#allocation4 + $0x1b0] sm:$0xff]   ;;  %v11224_v52 = vld [vmem:[#allocation4 + $0x128] sm:$0xff]   ;;  %v11227_v48 = vld [vmem:[#allocation4 + $0x160] sm:$0xff]  }
 0x9b0   :  { %9912 = vmatprep.subr.bf16.mxu1 %v11198_v10  ;;  %v11225_v60 = vld [vmem:[#allocation4 + $0x1e8] sm:$0xff]   ;;  %v11228_v49 = vld [vmem:[#allocation4 + $0x120] sm:$0xff]   ;;  %v11231_v50 = vld [vmem:[#allocation4 + $0x158] sm:$0xff]  }
 0x9b1   :  { %9933 = vmatpush3.bf16.msra.mxu0 %v11197_v13  ;;  %v3623_v12 = vpack.c.bf16 %v3377_v31, %v3377_v31  ;;  %v3378_v62 = vcombine.high %v3376_v26, %v3376_v26  ;;  %v3624_v56 = vpack.c.bf16 %v3376_v26, %v3376_v26  ;;  %v11226_v46 = vld [vmem:[#allocation4 + $0x1a8] sm:$0xff]   ;;  %v11229_v6 = vld [vmem:[#allocation4 + $0x1e0] sm:$0xff]   ;;  %v11232_v21 = vld [vmem:[#allocation4 + $0x118] sm:$0xff]  }
 0x9b2   :  { %9934 = vmatprep.subr.bf16.mxu0 %v11200_v54  ;;  %v11230_v55 = vld [vmem:[#allocation4 + $0x1a0] sm:$0xff]   ;;  %v11233_v35 = vld [vmem:[#allocation4 + $0x1d8] sm:$0xff]   ;;  %v11235_v45 = vld [vmem:[#allocation4 + $0x150] sm:$0xff]  }
 0x9b3   :  { %9913 = vmatpush3.bf16.msra.mxu1 %v11199_v33  ;;  %6846 = vmatprep.mubr.bf16.mxu1 %v3623_v12  ;;  %v3625_v3 = vpack.c.bf16 %v3378_v62, %v3378_v62  ;;  %v11234_v24 = vld [vmem:[#allocation4 + $0x198] sm:$0xff]   ;;  %v11236_v53 = vld [vmem:[#allocation4 + $0x110] sm:$0xff]   ;;  %v11239_v18 = vld [vmem:[#allocation4 + $0x148] sm:$0xff]  }
 0x9b4   :  { %9914 = vmatprep.subr.bf16.mxu1 %v11202_v42  ;;  %v11237_v41 = vld [vmem:[#allocation4 + $0x1d0] sm:$0xff]   ;;  %v11240_v34 = vld [vmem:[#allocation4 + $0x108] sm:$0xff]   ;;  %v11243_v43 = vld [vmem:[#allocation4 + $0x140] sm:$0xff]  }
 0x9b5   :  { %9935 = vmatpush3.bf16.msra.mxu0 %v11201_v29  ;;  %6886 = vmatprep.mubr.bf16.mxu0 %v3625_v3  ;;  %v11238_v37 = vld [vmem:[#allocation4 + $0x190] sm:$0xff]   ;;  %v11241_v9 = vld [vmem:[#allocation4 + $0x1c8] sm:$0xff]   ;;  %v11244_v13 = vld [vmem:[#allocation4 + $0x100] sm:$0xff]  }
 0x9b6   :  { %9936 = vmatprep.subr.bf16.mxu0 %v11204_v2  ;;  %v11242_v25 = vld [vmem:[#allocation4 + $0x188] sm:$0xff]   ;;  %v11245_v10 = vld [vmem:[#allocation4 + $0x1c0] sm:$0xff]   ;;  %v11247_v16 = vld [vmem:[#allocation4 + $0x278] sm:$0xff]  }
 0x9b7   :  { %9915 = vmatpush3.bf16.msra.mxu1 %v11203_v40  ;;  %v3337_v33 = vld [vmem:[#allocation3 + $0x8] sm:$0xff]  ;;  %v11249_v40 = vld [vmem:[#allocation4 + $0x238] sm:$0xff]   ;;  %v11255_v28 = vld [vmem:[#allocation4 + $0x2b0] sm:$0xff]  }
 0x9b8   :  { %9916 = vmatprep.subr.bf16.mxu1 %v11206_v38  ;;  %v3386_v54 = vrot.slane %v3337_v33, %v14172_v30  ;;  %v11246_v29 = vld [vmem:[#allocation4 + $0x180] sm:$0xff]   ;;  %v3379_v42 = vcombine.high %v3337_v33, %v3337_v33  ;;  %v11256_v15 = vld [vmem:[#allocation4 + $0x268] sm:$0xff]   ;;  %v11265_v12 = vld [vmem:[#allocation4 + $0x218] sm:$0xff]  }
 0x9b9   :  { %9937 = vmatpush3.bf16.msra.mxu0 %v11205_v4  ;;  %v11250_v4 = vld [vmem:[#allocation4 + $0x2f8] sm:$0xff]   ;;  %v11258_v7 = vld [vmem:[#allocation4 + $0x2e8] sm:$0xff]   ;;  %v11260_v31 = vld [vmem:[#allocation4 + $0x260] sm:$0xff]  }
 0x9ba   :  { %9938 = vmatprep.subr.bf16.mxu0 %v11208_v63  ;;  %v3394_v17 = vcombine.high %v3386_v54, %v3386_v54  ;;  %v3393_v32 = vrot.slane %v3379_v42, %v14172_v30  ;;  %v3626_v2 = vpack.c.bf16 %v3386_v54, %v3386_v54  ;;  %v11261_v26 = vld [vmem:[#allocation4 + $0x220] sm:$0xff]   ;;  %v11266_v62 = vld [vmem:[#allocation4 + $0x2d8] sm:$0xff]   ;;  %v11270_v3 = vld [vmem:[#allocation4 + $0x2d0] sm:$0xff]  }
 0x9bb   :  { %9917 = vmatpush3.bf16.msra.mxu1 %v11207_v27  ;;  %v11251_v27 = vld [vmem:[#allocation4 + $0x2b8] sm:$0xff]   ;;  %v11288_v33 = vld [vmem:[#allocation4 + $0x3b0] sm:$0xff]   ;;  %v11289_v54 = vld [vmem:[#allocation4 + $0x368] sm:$0xff]  }
 0x9bc   :  { %9918 = vmatprep.subr.bf16.mxu1 %v11210_v14  ;;  %v3627_v38 = vpack.c.bf16 %v3394_v17, %v3394_v17  ;;  %v3395_v51 = vcombine.high %v3393_v32, %v3393_v32  ;;  %v3628_v63 = vpack.c.bf16 %v3393_v32, %v3393_v32  ;;  %v11291_v42 = vld [vmem:[#allocation4 + $0x3e8] sm:$0xff]   ;;  %v11293_v17 = vld [vmem:[#allocation4 + $0x360] sm:$0xff]  }
 0x9bd   :  { %9939 = vmatpush3.bf16.msra.mxu0 %v11209_v57  ;;  %v11252_v57 = vld [vmem:[#allocation4 + $0x270] sm:$0xff]   ;;  %v11294_v32 = vld [vmem:[#allocation4 + $0x320] sm:$0xff]  }
 0x9be   :  { %9940 = vmatprep.subr.bf16.mxu0 %v11212_v22  ;;  %v3629_v14 = vpack.c.bf16 %v3395_v51, %v3395_v51  ;;  %v11254_v22 = vld [vmem:[#allocation4 + $0x2f0] sm:$0xff]   ;;  %v11299_v51 = vld [vmem:[#allocation4 + $0x3d8] sm:$0xff]  }
 0x9bf   :  { %9919 = vmatpush3.bf16.msra.mxu1 %v11211_v19  ;;  %v11253_v19 = vld [vmem:[#allocation4 + $0x230] sm:$0xff]  }
 0x9c0   :  { %9948 = vmatprep.subr.bf16.mxu1 %v11214_v59  ;;  %v11259_v59 = vld [vmem:[#allocation4 + $0x2a8] sm:$0xff]  }
 0x9c1   :  { %9941 = vmatpush3.bf16.msra.mxu0 %v11213_v1  ;;  %v11257_v1 = vld [vmem:[#allocation4 + $0x228] sm:$0xff]  }
 0x9c2   :  { %9970 = vmatprep.subr.bf16.mxu0 %v11217_v11  ;;  %6847 = vmatmul.mubr.bf16.vlgmr.msra.gmra.mxu1 %v3622_v61  ;;  %v11263_v61 = vld [vmem:[#allocation4 + $0x2a0] sm:$0xff]   ;;  %v11264_v11 = vld [vmem:[#allocation4 + $0x258] sm:$0xff]  }
 0x9c3   :  { %9949 = vmatpush3.bf16.msra.mxu1 %v11216_v5  ;;  %6926 = vmatprep.mubr.bf16.mxu1 %v3627_v38  ;;  %v11262_v5 = vld [vmem:[#allocation4 + $0x2e0] sm:$0xff]   ;;  %v11298_v38 = vld [vmem:[#allocation4 + $0x318] sm:$0xff]  }
 0x9c4   :  { %6887 = vmatmul.mubr.bf16.vlgmr.msra.gmra.mxu0 %v3624_v56  ;;  %9950 = vmatprep.subr.bf16.mxu1 %v11219_v20  ;;  %v11268_v56 = vld [vmem:[#allocation4 + $0x250] sm:$0xff]  }
 0x9c5   :  { %9971 = vmatpush3.bf16.msra.mxu0 %v11218_v47  ;;  %6966 = vmatprep.mubr.bf16.mxu0 %v3629_v14  ;;  %v11267_v47 = vld [vmem:[#allocation4 + $0x298] sm:$0xff]   ;;  %v11269_v20 = vld [vmem:[#allocation4 + $0x210] sm:$0xff]  }
 0x9c6   :  { %9972 = vmatprep.subr.bf16.mxu0 %v11221_v58  ;;  %v11272_v58 = vld [vmem:[#allocation4 + $0x248] sm:$0xff]   ;;  %v11303_v14 = vld [vmem:[#allocation4 + $0x3d0] sm:$0xff]  }
 0x9c7   :  { %9951 = vmatpush3.bf16.msra.mxu1 %v11220_v39  ;;  %v11271_v39 = vld [vmem:[#allocation4 + $0x290] sm:$0xff]  }
 0x9c8   :  { %9952 = vmatprep.subr.bf16.mxu1 %v11223_v23  ;;  %v11274_v23 = vld [vmem:[#allocation4 + $0x2c8] sm:$0xff]  }
 0x9c9   :  { %9973 = vmatpush3.bf16.msra.mxu0 %v11222_v0  ;;  %v11273_v0 = vld [vmem:[#allocation4 + $0x208] sm:$0xff]  }
 0x9ca   :  { %9974 = vmatprep.subr.bf16.mxu0 %v11225_v60  ;;  %v11276_v60 = vld [vmem:[#allocation4 + $0x240] sm:$0xff]  }
 0x9cb   :  { %9953 = vmatpush3.bf16.msra.mxu1 %v11224_v52  ;;  %v11275_v52 = vld [vmem:[#allocation4 + $0x288] sm:$0xff]  }
 0x9cc   :  { %9954 = vmatprep.subr.bf16.mxu1 %v11227_v48  ;;  %v11278_v48 = vld [vmem:[#allocation4 + $0x2c0] sm:$0xff]  }
 0x9cd   :  { %9975 = vmatpush3.bf16.msra.mxu0 %v11226_v46  ;;  %v11277_v46 = vld [vmem:[#allocation4 + $0x200] sm:$0xff]  }
 0x9ce   :  { %9976 = vmatprep.subr.bf16.mxu0 %v11229_v6 }
 0x9cf   :  { %9955 = vmatpush3.bf16.msra.mxu1 %v11228_v49  ;;  %v3338_v49 = vld [vmem:[#allocation3 + $0x10] sm:$0xff] }
 0x9d0   :  { %9956 = vmatprep.subr.bf16.mxu1 %v11231_v50  ;;  %v3403_v6 = vrot.slane %v3338_v49, %v14172_v30  ;;  %v3396_v50 = vcombine.high %v3338_v49, %v3338_v49  ;;  %v11321_v49 = vld [vmem:[#allocation4 + $0x4b0] sm:$0xff]  }
 0x9d1   :  { %9977 = vmatpush3.bf16.msra.mxu0 %v11230_v55  ;;  %v11279_v55 = vld [vmem:[#allocation4 + $0x280] sm:$0xff]  }
 0x9d2   :  { %9978 = vmatprep.subr.bf16.mxu0 %v11233_v35  ;;  %v3411_v35 = vcombine.high %v3403_v6, %v3403_v6 }
 0x9d3   :  { %9957 = vmatpush3.bf16.msra.mxu1 %v11232_v21  ;;  %v11280_v21 = vld [vmem:[#allocation4 + $0x378] sm:$0xff]  }
 0x9d4   :  { %9958 = vmatprep.subr.bf16.mxu1 %v11235_v45  ;;  %v11282_v45 = vld [vmem:[#allocation4 + $0x338] sm:$0xff]  }
 0x9d5   :  { %9979 = vmatpush3.bf16.msra.mxu0 %v11234_v24  ;;  %v3410_v24 = vrot.slane %v3396_v50, %v14172_v30  ;;  %v11324_v50 = vld [vmem:[#allocation4 + $0x4e8] sm:$0xff]  }
 0x9d6   :  { %9980 = vmatprep.subr.bf16.mxu0 %v11237_v41  ;;  %v11283_v41 = vld [vmem:[#allocation4 + $0x3f8] sm:$0xff]  }
 0x9d7   :  { %9959 = vmatpush3.bf16.msra.mxu1 %v11236_v53  ;;  %v3630_v53 = vpack.c.bf16 %v3403_v6, %v3403_v6  ;;  %v11322_v6 = vld [vmem:[#allocation4 + $0x468] sm:$0xff]  }
 0x9d8   :  { %9960 = vmatprep.subr.bf16.mxu1 %v11239_v18  ;;  %v3412_v18 = vcombine.high %v3410_v24, %v3410_v24 }
 0x9d9   :  { %9981 = vmatpush3.bf16.msra.mxu0 %v11238_v37  ;;  %v3631_v37 = vpack.c.bf16 %v3411_v35, %v3411_v35  ;;  %v11326_v35 = vld [vmem:[#allocation4 + $0x460] sm:$0xff]  }
 0x9da   :  { %9982 = vmatprep.subr.bf16.mxu0 %v11241_v9  ;;  %v3632_v9 = vpack.c.bf16 %v3410_v24, %v3410_v24  ;;  %v11327_v24 = vld [vmem:[#allocation4 + $0x420] sm:$0xff]  }
 0x9db   :  { %9961 = vmatpush3.bf16.msra.mxu1 %v11240_v34  ;;  %v11284_v34 = vld [vmem:[#allocation4 + $0x3b8] sm:$0xff]  }
 0x9dc   :  { %9962 = vmatprep.subr.bf16.mxu1 %v11243_v43  ;;  %v3633_v43 = vpack.c.bf16 %v3412_v18, %v3412_v18  ;;  %v11332_v18 = vld [vmem:[#allocation4 + $0x4d8] sm:$0xff]  }
 0x9dd   :  { %9983 = vmatpush3.bf16.msra.mxu0 %v11242_v25  ;;  %v11285_v25 = vld [vmem:[#allocation4 + $0x370] sm:$0xff]  }
 0x9de   :  { %9984 = vmatprep.subr.bf16.mxu0 %v11245_v10  ;;  %v11287_v10 = vld [vmem:[#allocation4 + $0x3f0] sm:$0xff]  }
 0x9df   :  { %9963 = vmatpush3.bf16.msra.mxu1 %v11244_v13  ;;  %v11286_v13 = vld [vmem:[#allocation4 + $0x330] sm:$0xff]  }
 0x9e0   :  { %9992 = vmatprep.subr.bf16.mxu1 %v11247_v16  ;;  %v11292_v16 = vld [vmem:[#allocation4 + $0x3a8] sm:$0xff]  }
 0x9e1   :  { %9985 = vmatpush3.bf16.msra.mxu0 %v11246_v29  ;;  %v11290_v29 = vld [vmem:[#allocation4 + $0x328] sm:$0xff]  }
 0x9e2   :  { %6927 = vmatmul.mubr.bf16.vlgmr.msra.gmra.mxu1 %v3626_v2  ;;  %10014 = vmatprep.subr.bf16.mxu0 %v11250_v4  ;;  %v11296_v2 = vld [vmem:[#allocation4 + $0x3a0] sm:$0xff]   ;;  %v11297_v4 = vld [vmem:[#allocation4 + $0x358] sm:$0xff]  }
 0x9e3   :  { %9993 = vmatpush3.bf16.msra.mxu1 %v11249_v40  ;;  %7006 = vmatprep.mubr.bf16.mxu1 %v3631_v37  ;;  %v11295_v40 = vld [vmem:[#allocation4 + $0x3e0] sm:$0xff]   ;;  %v11331_v37 = vld [vmem:[#allocation4 + $0x418] sm:$0xff]  }
 0x9e4   :  { %6967 = vmatmul.mubr.bf16.vlgmr.msra.gmra.mxu0 %v3628_v63  ;;  %9994 = vmatprep.subr.bf16.mxu1 %v11252_v57  ;;  %v11301_v63 = vld [vmem:[#allocation4 + $0x350] sm:$0xff]  }
 0x9e5   :  { %10015 = vmatpush3.bf16.msra.mxu0 %v11251_v27  ;;  %7046 = vmatprep.mubr.bf16.mxu0 %v3633_v43  ;;  %v11300_v27 = vld [vmem:[#allocation4 + $0x398] sm:$0xff]   ;;  %v11302_v57 = vld [vmem:[#allocation4 + $0x310] sm:$0xff]  }
 0x9e6   :  { %10016 = vmatprep.subr.bf16.mxu0 %v11254_v22  ;;  %v11305_v22 = vld [vmem:[#allocation4 + $0x348] sm:$0xff]   ;;  %v11336_v43 = vld [vmem:[#allocation4 + $0x4d0] sm:$0xff]  }
 0x9e7   :  { %9995 = vmatpush3.bf16.msra.mxu1 %v11253_v19  ;;  %v11304_v19 = vld [vmem:[#allocation4 + $0x390] sm:$0xff]  }
 0x9e8   :  { %9996 = vmatprep.subr.bf16.mxu1 %v11256_v15  ;;  %v11307_v15 = vld [vmem:[#allocation4 + $0x3c8] sm:$0xff]  }
 0x9e9   :  { %10017 = vmatpush3.bf16.msra.mxu0 %v11255_v28  ;;  %v11306_v28 = vld [vmem:[#allocation4 + $0x308] sm:$0xff]  }
 0x9ea   :  { %10018 = vmatprep.subr.bf16.mxu0 %v11258_v7  ;;  %v11309_v7 = vld [vmem:[#allocation4 + $0x340] sm:$0xff]  }
 0x9eb   :  { %9997 = vmatpush3.bf16.msra.mxu1 %v11257_v1  ;;  %v11308_v1 = vld [vmem:[#allocation4 + $0x388] sm:$0xff]  }
 0x9ec   :  { %9998 = vmatprep.subr.bf16.mxu1 %v11260_v31  ;;  %v11311_v31 = vld [vmem:[#allocation4 + $0x3c0] sm:$0xff]  }
 0x9ed   :  { %10019 = vmatpush3.bf16.msra.mxu0 %v11259_v59  ;;  %v11310_v59 = vld [vmem:[#allocation4 + $0x300] sm:$0xff]  }
 0x9ee   :  { %10020 = vmatprep.subr.bf16.mxu0 %v11262_v5 }
 0x9ef   :  { %9999 = vmatpush3.bf16.msra.mxu1 %v11261_v26  ;;  %v3339_v26 = vld [vmem:[#allocation3 + $0x18] sm:$0xff] }
 0x9f0   :  { %10000 = vmatprep.subr.bf16.mxu1 %v11264_v11  ;;  %v3420_v5 = vrot.slane %v3339_v26, %v14172_v30  ;;  %v3413_v11 = vcombine.high %v3339_v26, %v3339_v26  ;;  %v11354_v26 = vld [vmem:[#allocation4 + $0x5b0] sm:$0xff]  }
 0x9f1   :  { %10021 = vmatpush3.bf16.msra.mxu0 %v11263_v61  ;;  %v11312_v61 = vld [vmem:[#allocation4 + $0x380] sm:$0xff]  }
 0x9f2   :  { %10022 = vmatprep.subr.bf16.mxu0 %v11266_v62  ;;  %v3428_v62 = vcombine.high %v3420_v5, %v3420_v5 }
 0x9f3   :  { %10001 = vmatpush3.bf16.msra.mxu1 %v11265_v12  ;;  %v11313_v12 = vld [vmem:[#allocation4 + $0x478] sm:$0xff]  }
 0x9f4   :  { %10002 = vmatprep.subr.bf16.mxu1 %v11268_v56  ;;  %v11315_v56 = vld [vmem:[#allocation4 + $0x438] sm:$0xff]  }
 0x9f5   :  { %10023 = vmatpush3.bf16.msra.mxu0 %v11267_v47  ;;  %v3427_v47 = vrot.slane %v3413_v11, %v14172_v30  ;;  %v11357_v11 = vld [vmem:[#allocation4 + $0x5e8] sm:$0xff]  }
 0x9f6   :  { %10024 = vmatprep.subr.bf16.mxu0 %v11270_v3  ;;  %v11316_v3 = vld [vmem:[#allocation4 + $0x4f8] sm:$0xff]  }
 0x9f7   :  { %10003 = vmatpush3.bf16.msra.mxu1 %v11269_v20  ;;  %v3634_v20 = vpack.c.bf16 %v3420_v5, %v3420_v5  ;;  %v11355_v5 = vld [vmem:[#allocation4 + $0x568] sm:$0xff]  }
 0x9f8   :  { %10004 = vmatprep.subr.bf16.mxu1 %v11272_v58  ;;  %v3429_v58 = vcombine.high %v3427_v47, %v3427_v47 }
 0x9f9   :  { %10025 = vmatpush3.bf16.msra.mxu0 %v11271_v39  ;;  %v3635_v39 = vpack.c.bf16 %v3428_v62, %v3428_v62  ;;  %v11359_v62 = vld [vmem:[#allocation4 + $0x560] sm:$0xff]  }
 0x9fa   :  { %10026 = vmatprep.subr.bf16.mxu0 %v11274_v23  ;;  %v3636_v23 = vpack.c.bf16 %v3427_v47, %v3427_v47  ;;  %v11360_v47 = vld [vmem:[#allocation4 + $0x520] sm:$0xff]  }
 0x9fb   :  { %10005 = vmatpush3.bf16.msra.mxu1 %v11273_v0  ;;  %v11317_v0 = vld [vmem:[#allocation4 + $0x4b8] sm:$0xff]  }
 0x9fc   :  { %10006 = vmatprep.subr.bf16.mxu1 %v11276_v60  ;;  %v3637_v60 = vpack.c.bf16 %v3429_v58, %v3429_v58  ;;  %v11365_v58 = vld [vmem:[#allocation4 + $0x5d8] sm:$0xff]  }
 0x9fd   :  { %10027 = vmatpush3.bf16.msra.mxu0 %v11275_v52  ;;  %v11318_v52 = vld [vmem:[#allocation4 + $0x470] sm:$0xff]  }
 0x9fe   :  { %10028 = vmatprep.subr.bf16.mxu0 %v11278_v48  ;;  %v11320_v48 = vld [vmem:[#allocation4 + $0x4f0] sm:$0xff]  }
 0x9ff   :  { %10007 = vmatpush3.bf16.msra.mxu1 %v11277_v46  ;;  %v11319_v46 = vld [vmem:[#allocation4 + $0x430] sm:$0xff]  }
 0xa00   :  { %10036 = vmatprep.subr.bf16.mxu1 %v11280_v21  ;;  %v11325_v21 = vld [vmem:[#allocation4 + $0x4a8] sm:$0xff]  }
 0xa01   :  { %10029 = vmatpush3.bf16.msra.mxu0 %v11279_v55  ;;  %v11323_v55 = vld [vmem:[#allocation4 + $0x428] sm:$0xff]  }
 0xa02   :  { %7007 = vmatmul.mubr.bf16.vlgmr.msra.gmra.mxu1 %v3630_v53  ;;  %10058 = vmatprep.subr.bf16.mxu0 %v11283_v41  ;;  %v11329_v53 = vld [vmem:[#allocation4 + $0x4a0] sm:$0xff]   ;;  %v11330_v41 = vld [vmem:[#allocation4 + $0x458] sm:$0xff]  }
 0xa03   :  { %10037 = vmatpush3.bf16.msra.mxu1 %v11282_v45  ;;  %7086 = vmatprep.mubr.bf16.mxu1 %v3635_v39  ;;  %v11328_v45 = vld [vmem:[#allocation4 + $0x4e0] sm:$0xff]   ;;  %v11364_v39 = vld [vmem:[#allocation4 + $0x518] sm:$0xff]  }
 0xa04   :  { %7047 = vmatmul.mubr.bf16.vlgmr.msra.gmra.mxu0 %v3632_v9  ;;  %10038 = vmatprep.subr.bf16.mxu1 %v11285_v25  ;;  %v11334_v9 = vld [vmem:[#allocation4 + $0x450] sm:$0xff]  }
 0xa05   :  { %10059 = vmatpush3.bf16.msra.mxu0 %v11284_v34  ;;  %7126 = vmatprep.mubr.bf16.mxu0 %v3637_v60  ;;  %v11333_v34 = vld [vmem:[#allocation4 + $0x498] sm:$0xff]   ;;  %v11335_v25 = vld [vmem:[#allocation4 + $0x410] sm:$0xff]  }
 0xa06   :  { %10060 = vmatprep.subr.bf16.mxu0 %v11287_v10  ;;  %v11338_v10 = vld [vmem:[#allocation4 + $0x448] sm:$0xff]   ;;  %v11369_v60 = vld [vmem:[#allocation4 + $0x5d0] sm:$0xff]  }
 0xa07   :  { %10039 = vmatpush3.bf16.msra.mxu1 %v11286_v13  ;;  %v11337_v13 = vld [vmem:[#allocation4 + $0x490] sm:$0xff]  }
 0xa08   :  { %10040 = vmatprep.subr.bf16.mxu1 %v11289_v54  ;;  %v11340_v54 = vld [vmem:[#allocation4 + $0x4c8] sm:$0xff]  }
 0xa09   :  { %10061 = vmatpush3.bf16.msra.mxu0 %v11288_v33  ;;  %v11339_v33 = vld [vmem:[#allocation4 + $0x408] sm:$0xff]  }
 0xa0a   :  { %10062 = vmatprep.subr.bf16.mxu0 %v11291_v42  ;;  %v11342_v42 = vld [vmem:[#allocation4 + $0x440] sm:$0xff]  }
 0xa0b   :  { %10041 = vmatpush3.bf16.msra.mxu1 %v11290_v29  ;;  %v11341_v29 = vld [vmem:[#allocation4 + $0x488] sm:$0xff]  }
 0xa0c   :  { %10042 = vmatprep.subr.bf16.mxu1 %v11293_v17  ;;  %v11344_v17 = vld [vmem:[#allocation4 + $0x4c0] sm:$0xff]  }
 0xa0d   :  { %10063 = vmatpush3.bf16.msra.mxu0 %v11292_v16  ;;  %v11343_v16 = vld [vmem:[#allocation4 + $0x400] sm:$0xff]  }
 0xa0e   :  { %10064 = vmatprep.subr.bf16.mxu0 %v11295_v40 }
 0xa0f   :  { %10043 = vmatpush3.bf16.msra.mxu1 %v11294_v32  ;;  %v3340_v32 = vld [vmem:[#allocation3 + $0x20] sm:$0xff] }
 0xa10   :  { %10044 = vmatprep.subr.bf16.mxu1 %v11297_v4  ;;  %v3437_v40 = vrot.slane %v3340_v32, %v14172_v30  ;;  %v3430_v4 = vcombine.high %v3340_v32, %v3340_v32  ;;  %v11387_v32 = vld [vmem:[#allocation4 + $0x6b0] sm:$0xff]  }
 0xa11   :  { %10065 = vmatpush3.bf16.msra.mxu0 %v11296_v2  ;;  %v11345_v2 = vld [vmem:[#allocation4 + $0x480] sm:$0xff]  }
 0xa12   :  { %10066 = vmatprep.subr.bf16.mxu0 %v11299_v51  ;;  %v3445_v51 = vcombine.high %v3437_v40, %v3437_v40 }
 0xa13   :  { %10045 = vmatpush3.bf16.msra.mxu1 %v11298_v38  ;;  %v11346_v38 = vld [vmem:[#allocation4 + $0x578] sm:$0xff]  }
 0xa14   :  { %10046 = vmatprep.subr.bf16.mxu1 %v11301_v63  ;;  %v11348_v63 = vld [vmem:[#allocation4 + $0x538] sm:$0xff]  }
 0xa15   :  { %10067 = vmatpush3.bf16.msra.mxu0 %v11300_v27  ;;  %v3444_v27 = vrot.slane %v3430_v4, %v14172_v30  ;;  %v11390_v4 = vld [vmem:[#allocation4 + $0x6e8] sm:$0xff]  }
 0xa16   :  { %10068 = vmatprep.subr.bf16.mxu0 %v11303_v14  ;;  %v11349_v14 = vld [vmem:[#allocation4 + $0x5f8] sm:$0xff]  }
 0xa17   :  { %10047 = vmatpush3.bf16.msra.mxu1 %v11302_v57  ;;  %v3638_v57 = vpack.c.bf16 %v3437_v40, %v3437_v40  ;;  %v11388_v40 = vld [vmem:[#allocation4 + $0x668] sm:$0xff]  }
 0xa18   :  { %10048 = vmatprep.subr.bf16.mxu1 %v11305_v22  ;;  %v3446_v22 = vcombine.high %v3444_v27, %v3444_v27 }
 0xa19   :  { %10069 = vmatpush3.bf16.msra.mxu0 %v11304_v19  ;;  %v3639_v19 = vpack.c.bf16 %v3445_v51, %v3445_v51  ;;  %v11392_v51 = vld [vmem:[#allocation4 + $0x660] sm:$0xff]  }
 0xa1a   :  { %10070 = vmatprep.subr.bf16.mxu0 %v11307_v15  ;;  %v3640_v15 = vpack.c.bf16 %v3444_v27, %v3444_v27  ;;  %v11393_v27 = vld [vmem:[#allocation4 + $0x620] sm:$0xff]  }
 0xa1b   :  { %10049 = vmatpush3.bf16.msra.mxu1 %v11306_v28  ;;  %v11350_v28 = vld [vmem:[#allocation4 + $0x5b8] sm:$0xff]  }
 0xa1c   :  { %10050 = vmatprep.subr.bf16.mxu1 %v11309_v7  ;;  %v3641_v7 = vpack.c.bf16 %v3446_v22, %v3446_v22  ;;  %v11398_v22 = vld [vmem:[#allocation4 + $0x6d8] sm:$0xff]  }
 0xa1d   :  { %10071 = vmatpush3.bf16.msra.mxu0 %v11308_v1  ;;  %v11351_v1 = vld [vmem:[#allocation4 + $0x570] sm:$0xff]  }
 0xa1e   :  { %10072 = vmatprep.subr.bf16.mxu0 %v11311_v31  ;;  %v11353_v31 = vld [vmem:[#allocation4 + $0x5f0] sm:$0xff]  }
 0xa1f   :  { %10051 = vmatpush3.bf16.msra.mxu1 %v11310_v59  ;;  %v11352_v59 = vld [vmem:[#allocation4 + $0x530] sm:$0xff]  }
 0xa20   :  { %10080 = vmatprep.subr.bf16.mxu1 %v11313_v12  ;;  %v11358_v12 = vld [vmem:[#allocation4 + $0x5a8] sm:$0xff]  }
 0xa21   :  { %10073 = vmatpush3.bf16.msra.mxu0 %v11312_v61  ;;  %v11356_v61 = vld [vmem:[#allocation4 + $0x528] sm:$0xff]  }
 0xa22   :  { %10102 = vmatprep.subr.bf16.mxu0 %v11316_v3  ;;  %7087 = vmatmul.mubr.bf16.vlgmr.msra.gmra.mxu1 %v3634_v20  ;;  %v11362_v20 = vld [vmem:[#allocation4 + $0x5a0] sm:$0xff]   ;;  %v11363_v3 = vld [vmem:[#allocation4 + $0x558] sm:$0xff]  }
 0xa23   :  { %10081 = vmatpush3.bf16.msra.mxu1 %v11315_v56  ;;  %7166 = vmatprep.mubr.bf16.mxu1 %v3639_v19  ;;  %v11361_v56 = vld [vmem:[#allocation4 + $0x5e0] sm:$0xff]   ;;  %v11397_v19 = vld [vmem:[#allocation4 + $0x618] sm:$0xff]  }
 0xa24   :  { %7127 = vmatmul.mubr.bf16.vlgmr.msra.gmra.mxu0 %v3636_v23  ;;  %10082 = vmatprep.subr.bf16.mxu1 %v11318_v52  ;;  %v11367_v23 = vld [vmem:[#allocation4 + $0x550] sm:$0xff]  }
 0xa25   :  { %10103 = vmatpush3.bf16.msra.mxu0 %v11317_v0  ;;  %7206 = vmatprep.mubr.bf16.mxu0 %v3641_v7  ;;  %v11366_v0 = vld [vmem:[#allocation4 + $0x598] sm:$0xff]   ;;  %v11368_v52 = vld [vmem:[#allocation4 + $0x510] sm:$0xff]  }
 0xa26   :  { %10104 = vmatprep.subr.bf16.mxu0 %v11320_v48  ;;  %v11371_v48 = vld [vmem:[#allocation4 + $0x548] sm:$0xff]   ;;  %v11402_v7 = vld [vmem:[#allocation4 + $0x6d0] sm:$0xff]  }
 0xa27   :  { %10083 = vmatpush3.bf16.msra.mxu1 %v11319_v46  ;;  %v11370_v46 = vld [vmem:[#allocation4 + $0x590] sm:$0xff]  }
 0xa28   :  { %10084 = vmatprep.subr.bf16.mxu1 %v11322_v6  ;;  %v11373_v6 = vld [vmem:[#allocation4 + $0x5c8] sm:$0xff]  }
 0xa29   :  { %10105 = vmatpush3.bf16.msra.mxu0 %v11321_v49  ;;  %v11372_v49 = vld [vmem:[#allocation4 + $0x508] sm:$0xff]  }
 0xa2a   :  { %10106 = vmatprep.subr.bf16.mxu0 %v11324_v50  ;;  %v11375_v50 = vld [vmem:[#allocation4 + $0x540] sm:$0xff]  }
 0xa2b   :  { %10085 = vmatpush3.bf16.msra.mxu1 %v11323_v55  ;;  %v11374_v55 = vld [vmem:[#allocation4 + $0x588] sm:$0xff]  }
 0xa2c   :  { %10086 = vmatprep.subr.bf16.mxu1 %v11326_v35  ;;  %v11377_v35 = vld [vmem:[#allocation4 + $0x5c0] sm:$0xff]  }
 0xa2d   :  { %10107 = vmatpush3.bf16.msra.mxu0 %v11325_v21  ;;  %v11376_v21 = vld [vmem:[#allocation4 + $0x500] sm:$0xff]  }
 0xa2e   :  { %10108 = vmatprep.subr.bf16.mxu0 %v11328_v45 }
 0xa2f   :  { %10087 = vmatpush3.bf16.msra.mxu1 %v11327_v24  ;;  %v3341_v24 = vld [vmem:[#allocation3 + $0x28] sm:$0xff] }
 0xa30   :  { %10088 = vmatprep.subr.bf16.mxu1 %v11330_v41  ;;  %v3454_v45 = vrot.slane %v3341_v24, %v14172_v30  ;;  %v3447_v41 = vcombine.high %v3341_v24, %v3341_v24  ;;  %v11418_v24 = vld [vmem:[#allocation4 + $0x730] sm:$0xff]  }
 0xa31   :  { %10109 = vmatpush3.bf16.msra.mxu0 %v11329_v53  ;;  %v11378_v53 = vld [vmem:[#allocation4 + $0x580] sm:$0xff]  }
 0xa32   :  { %10110 = vmatprep.subr.bf16.mxu0 %v11332_v18  ;;  %v3462_v18 = vcombine.high %v3454_v45, %v3454_v45 }
 0xa33   :  { %10089 = vmatpush3.bf16.msra.mxu1 %v11331_v37  ;;  %v11379_v37 = vld [vmem:[#allocation4 + $0x678] sm:$0xff]  }
 0xa34   :  { %10090 = vmatprep.subr.bf16.mxu1 %v11334_v9  ;;  %v11381_v9 = vld [vmem:[#allocation4 + $0x638] sm:$0xff]  }
 0xa35   :  { %10111 = vmatpush3.bf16.msra.mxu0 %v11333_v34  ;;  %v3461_v34 = vrot.slane %v3447_v41, %v14172_v30  ;;  %v11419_v41 = vld [vmem:[#allocation4 + $0x7f0] sm:$0xff]  }
 0xa36   :  { %10112 = vmatprep.subr.bf16.mxu0 %v11336_v43  ;;  %v11382_v43 = vld [vmem:[#allocation4 + $0x6f8] sm:$0xff]  }
 0xa37   :  { %10091 = vmatpush3.bf16.msra.mxu1 %v11335_v25  ;;  %v3642_v25 = vpack.c.bf16 %v3454_v45, %v3454_v45 }
 0xa38   :  { %10092 = vmatprep.subr.bf16.mxu1 %v11338_v10  ;;  %v3463_v10 = vcombine.high %v3461_v34, %v3461_v34 }
 0xa39   :  { %10113 = vmatpush3.bf16.msra.mxu0 %v11337_v13  ;;  %v3643_v13 = vpack.c.bf16 %v3462_v18, %v3462_v18  ;;  %v11420_v18 = vld [vmem:[#allocation4 + $0x7b0] sm:$0xff]  }
 0xa3a   :  { %10114 = vmatprep.subr.bf16.mxu0 %v11340_v54  ;;  %v3644_v54 = vpack.c.bf16 %v3461_v34, %v3461_v34 }
 0xa3b   :  { %10093 = vmatpush3.bf16.msra.mxu1 %v11339_v33  ;;  %v11383_v33 = vld [vmem:[#allocation4 + $0x6b8] sm:$0xff]  }
 0xa3c   :  { %10094 = vmatprep.subr.bf16.mxu1 %v11342_v42  ;;  %v3645_v42 = vpack.c.bf16 %v3463_v10, %v3463_v10  ;;  %v11422_v10 = vld [vmem:[#allocation4 + $0x728] sm:$0xff]  }
 0xa3d   :  { %10115 = vmatpush3.bf16.msra.mxu0 %v11341_v29  ;;  %v11384_v29 = vld [vmem:[#allocation4 + $0x670] sm:$0xff]  }
 0xa3e   :  { %10116 = vmatprep.subr.bf16.mxu0 %v11344_v17  ;;  %v11386_v17 = vld [vmem:[#allocation4 + $0x6f0] sm:$0xff]  }
 0xa3f   :  { %10095 = vmatpush3.bf16.msra.mxu1 %v11343_v16  ;;  %v11385_v16 = vld [vmem:[#allocation4 + $0x630] sm:$0xff]  }
 0xa40   :  { %10124 = vmatprep.subr.bf16.mxu1 %v11346_v38  ;;  %v11391_v38 = vld [vmem:[#allocation4 + $0x6a8] sm:$0xff]  }
 0xa41   :  { %10117 = vmatpush3.bf16.msra.mxu0 %v11345_v2  ;;  %v11389_v2 = vld [vmem:[#allocation4 + $0x628] sm:$0xff]  }
 0xa42   :  { %7167 = vmatmul.mubr.bf16.vlgmr.msra.gmra.mxu1 %v3638_v57  ;;  %10146 = vmatprep.subr.bf16.mxu0 %v11349_v14  ;;  %v11395_v57 = vld [vmem:[#allocation4 + $0x6a0] sm:$0xff]   ;;  %v11396_v14 = vld [vmem:[#allocation4 + $0x658] sm:$0xff]  }
 0xa43   :  { %10125 = vmatpush3.bf16.msra.mxu1 %v11348_v63  ;;  %7246 = vmatprep.mubr.bf16.mxu1 %v3643_v13  ;;  %v11394_v63 = vld [vmem:[#allocation4 + $0x6e0] sm:$0xff]  }
 0xa44   :  { %7207 = vmatmul.mubr.bf16.vlgmr.msra.gmra.mxu0 %v3640_v15  ;;  %10126 = vmatprep.subr.bf16.mxu1 %v11351_v1  ;;  %v11400_v15 = vld [vmem:[#allocation4 + $0x650] sm:$0xff]  }
 0xa45   :  { %10147 = vmatpush3.bf16.msra.mxu0 %v11350_v28  ;;  %7286 = vmatprep.mubr.bf16.mxu0 %v3645_v42  ;;  %v11399_v28 = vld [vmem:[#allocation4 + $0x698] sm:$0xff]   ;;  %v11401_v1 = vld [vmem:[#allocation4 + $0x610] sm:$0xff]  }
 0xa46   :  { %10148 = vmatprep.subr.bf16.mxu0 %v11353_v31  ;;  %v11404_v31 = vld [vmem:[#allocation4 + $0x648] sm:$0xff]  }
 0xa47   :  { %10127 = vmatpush3.bf16.msra.mxu1 %v11352_v59  ;;  %v11403_v59 = vld [vmem:[#allocation4 + $0x690] sm:$0xff]  }
 0xa48   :  { %10128 = vmatprep.subr.bf16.mxu1 %v11355_v5  ;;  %v11406_v5 = vld [vmem:[#allocation4 + $0x6c8] sm:$0xff]  }
 0xa49   :  { %10149 = vmatpush3.bf16.msra.mxu0 %v11354_v26  ;;  %v11405_v26 = vld [vmem:[#allocation4 + $0x608] sm:$0xff]  }
 0xa4a   :  { %10150 = vmatprep.subr.bf16.mxu0 %v11357_v11  ;;  %v11408_v11 = vld [vmem:[#allocation4 + $0x640] sm:$0xff]  }
 0xa4b   :  { %10129 = vmatpush3.bf16.msra.mxu1 %v11356_v61  ;;  %v11407_v61 = vld [vmem:[#allocation4 + $0x688] sm:$0xff]  }
 0xa4c   :  { %10130 = vmatprep.subr.bf16.mxu1 %v11359_v62  ;;  %v11410_v62 = vld [vmem:[#allocation4 + $0x6c0] sm:$0xff]  }
 0xa4d   :  { %10151 = vmatpush3.bf16.msra.mxu0 %v11358_v12  ;;  %v11409_v12 = vld [vmem:[#allocation4 + $0x600] sm:$0xff]  }
 0xa4e   :  { %10152 = vmatprep.subr.bf16.mxu0 %v11361_v56 }
 0xa4f   :  { %10131 = vmatpush3.bf16.msra.mxu1 %v11360_v47  ;;  %v3342_v47 = vld [vmem:[#allocation3 + $0x30] sm:$0xff] }
 0xa50   :  { %10132 = vmatprep.subr.bf16.mxu1 %v11363_v3  ;;  %v3471_v56 = vrot.slane %v3342_v47, %v14172_v30  ;;  %v3464_v3 = vcombine.high %v3342_v47, %v3342_v47 }
 0xa51   :  { %10153 = vmatpush3.bf16.msra.mxu0 %v11362_v20  ;;  %v11411_v20 = vld [vmem:[#allocation4 + $0x680] sm:$0xff]  }
 0xa52   :  { %10154 = vmatprep.subr.bf16.mxu0 %v11365_v58  ;;  %v3479_v58 = vcombine.high %v3471_v56, %v3471_v56 }
 0xa53   :  { %10133 = vmatpush3.bf16.msra.mxu1 %v11364_v39  ;;  %v11412_v39 = vld [vmem:[#allocation4 + $0x778] sm:$0xff]  }
 0xa54   :  { %10134 = vmatprep.subr.bf16.mxu1 %v11367_v23  ;;  %v11414_v23 = vld [vmem:[#allocation4 + $0x738] sm:$0xff]  }
 0xa55   :  { %10155 = vmatpush3.bf16.msra.mxu0 %v11366_v0  ;;  %v3478_v0 = vrot.slane %v3464_v3, %v14172_v30 }
 0xa56   :  { %10156 = vmatprep.subr.bf16.mxu0 %v11369_v60  ;;  %v11415_v60 = vld [vmem:[#allocation4 + $0x7f8] sm:$0xff]  }
 0xa57   :  { %10135 = vmatpush3.bf16.msra.mxu1 %v11368_v52  ;;  %v3646_v52 = vpack.c.bf16 %v3471_v56, %v3471_v56 }
 0xa58   :  { %10136 = vmatprep.subr.bf16.mxu1 %v11371_v48  ;;  %v3480_v48 = vcombine.high %v3478_v0, %v3478_v0 }
 0xa59   :  { %10157 = vmatpush3.bf16.msra.mxu0 %v11370_v46  ;;  %v3647_v46 = vpack.c.bf16 %v3479_v58, %v3479_v58 }
 0xa5a   :  { %10158 = vmatprep.subr.bf16.mxu0 %v11373_v6 }
 0xa5b   :  { %10137 = vmatpush3.bf16.msra.mxu1 %v11372_v49  ;;  %v11416_v49 = vld [vmem:[#allocation4 + $0x7b8] sm:$0xff]  }
 0xa5c   :  { %10138 = vmatprep.subr.bf16.mxu1 %v11375_v50  ;;  %v3648_v50 = vpack.c.bf16 %v3478_v0, %v3478_v0 }
 0xa5d   :  { %10159 = vmatpush3.bf16.msra.mxu0 %v11374_v55  ;;  %v9280_v55 = vld [vmem:[%s14488_s14] ss:$0 sm:$0xff] }
 0xa5e   :  { %10160 = vmatprep.subr.bf16.mxu0 %v11377_v35  ;;  %v3649_v35 = vpack.c.bf16 %v3480_v48, %v3480_v48 }
 0xa5f   :  { %10139 = vmatpush3.bf16.msra.mxu1 %v11376_v21  ;;  %v11417_v21 = vld [vmem:[#allocation4 + $0x770] sm:$0xff]  }
 0xa60   :  { %10168 = vmatprep.subr.bf16.mxu1 %v11379_v37 }
 0xa61   :  { %10161 = vmatpush3.bf16.msra.mxu0 %v11378_v53 }
 0xa62   :  { %7247 = vmatmul.mubr.bf16.vlgmr.msra.gmra.mxu1 %v3642_v25  ;;  %10190 = vmatprep.subr.bf16.mxu0 %v11382_v43  ;;  %v11421_v25 = vld [vmem:[#allocation4 + $0x768] sm:$0xff]  }
 0xa63   :  { %10169 = vmatpush3.bf16.msra.mxu1 %v11381_v9  ;;  %7326 = vmatprep.mubr.bf16.mxu1 %v3647_v46  ;;  %v11450_v46 = vld [vmem:[#allocation4 + $0x870] sm:$0xff]  }
 0xa64   :  { %7287 = vmatmul.mubr.bf16.vlgmr.msra.gmra.mxu0 %v3644_v54  ;;  %10170 = vmatprep.subr.bf16.mxu1 %v11384_v29  ;;  %v11423_v54 = vld [vmem:[#allocation4 + $0x7e8] sm:$0xff]  }
 0xa65   :  { %10191 = vmatpush3.bf16.msra.mxu0 %v11383_v33  ;;  %7366 = vmatprep.mubr.bf16.mxu0 %v3649_v35  ;;  %v11453_v35 = vld [vmem:[#allocation4 + $0x8b0] sm:$0xff]  }
 0xa66   :  { %10192 = vmatprep.subr.bf16.mxu0 %v11386_v17  ;;  %v11425_v17 = vld [vmem:[#allocation4 + $0x760] sm:$0xff]  }
 0xa67   :  { %10171 = vmatpush3.bf16.msra.mxu1 %v11385_v16  ;;  %v11424_v16 = vld [vmem:[#allocation4 + $0x7a8] sm:$0xff]  }
 0xa68   :  { %10172 = vmatprep.subr.bf16.mxu1 %v11388_v40  ;;  %v11426_v40 = vld [vmem:[#allocation4 + $0x720] sm:$0xff]  }
 0xa69   :  { %10193 = vmatpush3.bf16.msra.mxu0 %v11387_v32 }
 0xa6a   :  { %10194 = vmatprep.subr.bf16.mxu0 %v11390_v4  ;;  %v11428_v4 = vld [vmem:[#allocation4 + $0x7a0] sm:$0xff]  }
 0xa6b   :  { %10173 = vmatpush3.bf16.msra.mxu1 %v11389_v2  ;;  %v11427_v2 = vld [vmem:[#allocation4 + $0x7e0] sm:$0xff]  }
 0xa6c   :  { %10174 = vmatprep.subr.bf16.mxu1 %v11392_v51  ;;  %v11430_v51 = vld [vmem:[#allocation4 + $0x718] sm:$0xff]  }
 0xa6d   :  { %10195 = vmatpush3.bf16.msra.mxu0 %v11391_v38  ;;  %v11429_v38 = vld [vmem:[#allocation4 + $0x758] sm:$0xff]  }
 0xa6e   :  { %10196 = vmatprep.subr.bf16.mxu0 %v11394_v63  ;;  %v11432_v63 = vld [vmem:[#allocation4 + $0x798] sm:$0xff]  }
 0xa6f   :  { %10175 = vmatpush3.bf16.msra.mxu1 %v11393_v27  ;;  %v11431_v27 = vld [vmem:[#allocation4 + $0x7d8] sm:$0xff]  }
 0xa70   :  { %10176 = vmatprep.subr.bf16.mxu1 %v11396_v14  ;;  %v11434_v14 = vld [vmem:[#allocation4 + $0x710] sm:$0xff]  }
 0xa71   :  { %10197 = vmatpush3.bf16.msra.mxu0 %v11395_v57  ;;  %v11433_v57 = vld [vmem:[#allocation4 + $0x750] sm:$0xff]  }
 0xa72   :  { %10198 = vmatprep.subr.bf16.mxu0 %v11398_v22  ;;  %v11436_v22 = vld [vmem:[#allocation4 + $0x790] sm:$0xff]  }
 0xa73   :  { %10177 = vmatpush3.bf16.msra.mxu1 %v11397_v19  ;;  %v11435_v19 = vld [vmem:[#allocation4 + $0x7d0] sm:$0xff]  }
 0xa74   :  { %10178 = vmatprep.subr.bf16.mxu1 %v11400_v15  ;;  %v11438_v15 = vld [vmem:[#allocation4 + $0x708] sm:$0xff]  }
 0xa75   :  { %10199 = vmatpush3.bf16.msra.mxu0 %v11399_v28  ;;  %v11437_v28 = vld [vmem:[#allocation4 + $0x748] sm:$0xff]  }
 0xa76   :  { %10200 = vmatprep.subr.bf16.mxu0 %v11402_v7  ;;  %v11440_v7 = vld [vmem:[#allocation4 + $0x788] sm:$0xff]  }
 0xa77   :  { %10179 = vmatpush3.bf16.msra.mxu1 %v11401_v1  ;;  %v11439_v1 = vld [vmem:[#allocation4 + $0x7c8] sm:$0xff]  }
 0xa78   :  { %10180 = vmatprep.subr.bf16.mxu1 %v11404_v31  ;;  %v11442_v31 = vld [vmem:[#allocation4 + $0x700] sm:$0xff]  }
 0xa79   :  { %10201 = vmatpush3.bf16.msra.mxu0 %v11403_v59  ;;  %v11441_v59 = vld [vmem:[#allocation4 + $0x740] sm:$0xff]  }
 0xa7a   :  { %10202 = vmatprep.subr.bf16.mxu0 %v11406_v5  ;;  %v3343_v5 = vld [vmem:[#allocation3 + $0x38] sm:$0xff] }
 0xa7b   :  { %10181 = vmatpush3.bf16.msra.mxu1 %v11405_v26  ;;  %v11443_v26 = vld [vmem:[#allocation4 + $0x7c0] sm:$0xff]  }
 0xa7c   :  { %10182 = vmatprep.subr.bf16.mxu1 %v11408_v11  ;;  %v11444_v11 = vld [vmem:[#allocation4 + $0x780] sm:$0xff]  }
 0xa7d   :  { %10203 = vmatpush3.bf16.msra.mxu0 %v11407_v61  ;;  %v3488_v61 = vrot.slane %v3343_v5, %v14172_v30 }
 0xa7e   :  { %10204 = vmatprep.subr.bf16.mxu0 %v11410_v62  ;;  %v11445_v62 = vld [vmem:[#allocation4 + $0x878] sm:$0xff]  }
 0xa7f   :  { %10183 = vmatpush3.bf16.msra.mxu1 %v11409_v12  ;;  %v3481_v12 = vcombine.high %v3343_v5, %v3343_v5  ;;  %v3496_v47 = vcombine.high %v3488_v61, %v3488_v61  ;;  %v3650_v3 = vpack.c.bf16 %v3488_v61, %v3488_v61  ;;  %v11480_v61 = vld [vmem:[#allocation4 + $0x938] sm:$0xff]  }
 0xa80   :  { %10212 = vmatprep.subr.bf16.mxu1 %v11412_v39  ;;  %v11448_v39 = vld [vmem:[#allocation4 + $0x8f8] sm:$0xff]  }
 0xa81   :  { %10205 = vmatpush3.bf16.msra.mxu0 %v11411_v20  ;;  %v3495_v56 = vrot.slane %v3481_v12, %v14172_v30  ;;  %v11447_v20 = vld [vmem:[#allocation4 + $0x838] sm:$0xff]   ;;  %v3651_v58 = vpack.c.bf16 %v3496_v47, %v3496_v47 }
 0xa82   :  { %v9920_v6 = vpop.f32.mrf.mxu1  ;;  %10234 = vmatprep.subr.bf16.mxu0 %v11415_v60  ;;  %7327 = vmatmul.mubr.bf16.vlgmr.msra.gmra.mxu1 %v3646_v52  ;;  %v11481_v12 = vld [vmem:[#allocation4 + $0x9f8] sm:$0xff]  }
 0xa83   :  { %10213 = vmatpush3.bf16.msra.mxu1 %v11414_v23  ;;  %v3497_v0 = vcombine.high %v3495_v56, %v3495_v56  ;;  %v11449_v23 = vld [vmem:[#allocation4 + $0x8b8] sm:$0xff]   ;;  %v3652_v60 = vpack.c.bf16 %v3495_v56, %v3495_v56  ;;  %7406 = vmatprep.mubr.bf16.mxu1 %v3651_v58 }
 0xa84   :  { %v9921_v45 = vpop.f32.mrf.mxu1  ;;  %v9942_v53 = vpop.f32.mrf.mxu0  ;;  %7367 = vmatmul.mubr.bf16.vlgmr.msra.gmra.mxu0 %v3648_v50  ;;  %10214 = vmatprep.subr.bf16.mxu1 %v11417_v21  ;;  %v11452_v50 = vld [vmem:[#allocation4 + $0x8f0] sm:$0xff]  }
 0xa85   :  { %v9922_v37 = vadd.f32 %v9921_v45, %v9920_v6  ;;  %10235 = vmatpush3.bf16.msra.mxu0 %v11416_v49  ;;  %v3653_v48 = vpack.c.bf16 %v3497_v0, %v3497_v0  ;;  %v11451_v49 = vld [vmem:[#allocation4 + $0x830] sm:$0xff]  }
 0xa86   :  { %v9923_v34 = vpop.f32.mrf.mxu1  ;;  %v9943_v9 = vpop.f32.mrf.mxu0  ;;  %10236 = vmatprep.subr.bf16.mxu0 %v11419_v41 }
 0xa87   :  { %v6849_v43 = vadd.f32 %v9922_v37, %v9280_v55  ;;  %v9944_v13 = vadd.f32 %v9943_v9, %v9942_v53  ;;  %10215 = vmatpush3.bf16.msra.mxu1 %v11418_v24  ;;  %7446 = vmatprep.mubr.bf16.mxu0 %v3653_v48  ;;  %v11454_v53 = vld [vmem:[#allocation4 + $0x868] sm:$0xff]  }
 0xa88   :  { %v9924_v33 = vpop.f32.mrf.mxu1  ;;  %v9945_v29 = vpop.f32.mrf.mxu0  ;;  %10216 = vmatprep.subr.bf16.mxu1 %v11421_v25  ;;  %v11456_v9 = vld [vmem:[#allocation4 + $0x8e8] sm:$0xff]  }
 0xa89   :  { %v14191_v42 = vadd.f32 %v9944_v13, %v6849_v43  ;;  %10237 = vmatpush3.bf16.msra.mxu0 %v11420_v18  ;;  %v11455_v18 = vld [vmem:[#allocation4 + $0x828] sm:$0xff]   ;;  %v11460_v29 = vld [vmem:[#allocation4 + $0x8e0] sm:$0xff]  }
 0xa8a   :  { %v9946_v32 = vpop.f32.mrf.mxu0  ;;  %10238 = vmatprep.subr.bf16.mxu0 %v11423_v54  ;;  %v11457_v13 = vld [vmem:[#allocation4 + $0x8a8] sm:$0xff]   ;;  %v11459_v54 = vld [vmem:[#allocation4 + $0x820] sm:$0xff]  }
 0xa8b   :  { %10217 = vmatpush3.bf16.msra.mxu1 %v11422_v10  ;;  %v11458_v10 = vld [vmem:[#allocation4 + $0x860] sm:$0xff]   ;;  %v11464_v32 = vld [vmem:[#allocation4 + $0x8d8] sm:$0xff]  }
 0xa8c   :  { %10218 = vmatprep.subr.bf16.mxu1 %v11425_v17  ;;  %v11463_v17 = vld [vmem:[#allocation4 + $0x818] sm:$0xff]  }
 0xa8d   :  { %10239 = vmatpush3.bf16.msra.mxu0 %v11424_v16  ;;  %v11462_v16 = vld [vmem:[#allocation4 + $0x858] sm:$0xff]  }
 0xa8e   :  { %10240 = vmatprep.subr.bf16.mxu0 %v11427_v2  ;;  %v11466_v2 = vld [vmem:[#allocation4 + $0x850] sm:$0xff]  }
 0xa8f   :  { %10219 = vmatpush3.bf16.msra.mxu1 %v11426_v40  ;;  %v11465_v40 = vld [vmem:[#allocation4 + $0x898] sm:$0xff]  }
 0xa90   :  { %10220 = vmatprep.subr.bf16.mxu1 %v11429_v38  ;;  %v11468_v38 = vld [vmem:[#allocation4 + $0x8d0] sm:$0xff]  }
 0xa91   :  { %10241 = vmatpush3.bf16.msra.mxu0 %v11428_v4  ;;  %v11467_v4 = vld [vmem:[#allocation4 + $0x810] sm:$0xff]  }
 0xa92   :  { %10242 = vmatprep.subr.bf16.mxu0 %v11431_v27  ;;  %v11470_v27 = vld [vmem:[#allocation4 + $0x848] sm:$0xff]  }
 0xa93   :  { %10221 = vmatpush3.bf16.msra.mxu1 %v11430_v51  ;;  %v11469_v51 = vld [vmem:[#allocation4 + $0x890] sm:$0xff]  }
 0xa94   :  { %10222 = vmatprep.subr.bf16.mxu1 %v11433_v57  ;;  %v11472_v57 = vld [vmem:[#allocation4 + $0x8c8] sm:$0xff]  }
 0xa95   :  { %10243 = vmatpush3.bf16.msra.mxu0 %v11432_v63  ;;  %v11471_v63 = vld [vmem:[#allocation4 + $0x808] sm:$0xff]  }
 0xa96   :  { %10244 = vmatprep.subr.bf16.mxu0 %v11435_v19  ;;  %v11474_v19 = vld [vmem:[#allocation4 + $0x840] sm:$0xff]  }
 0xa97   :  { %10223 = vmatpush3.bf16.msra.mxu1 %v11434_v14  ;;  %v11473_v14 = vld [vmem:[#allocation4 + $0x888] sm:$0xff]  }
 0xa98   :  { %10224 = vmatprep.subr.bf16.mxu1 %v11437_v28  ;;  %v11476_v28 = vld [vmem:[#allocation4 + $0x8c0] sm:$0xff]  }
 0xa99   :  { %10245 = vmatpush3.bf16.msra.mxu0 %v11436_v22  ;;  %v11475_v22 = vld [vmem:[#allocation4 + $0x800] sm:$0xff]  }
 0xa9a   :  { %10246 = vmatprep.subr.bf16.mxu0 %v11439_v1 }
 0xa9b   :  { %10225 = vmatpush3.bf16.msra.mxu1 %v11438_v15  ;;  %v3344_v15 = vld [vmem:[#allocation3 + $0x40] sm:$0xff] }
 0xa9c   :  { %10226 = vmatprep.subr.bf16.mxu1 %v11441_v59  ;;  %v3505_v1 = vrot.slane %v3344_v15, %v14172_v30  ;;  %v3498_v59 = vcombine.high %v3344_v15, %v3344_v15 }
 0xa9d   :  { %10247 = vmatpush3.bf16.msra.mxu0 %v11440_v7  ;;  %v11477_v7 = vld [vmem:[#allocation4 + $0x880] sm:$0xff]  }
 0xa9e   :  { %10248 = vmatprep.subr.bf16.mxu0 %v11443_v26  ;;  %v3513_v26 = vcombine.high %v3505_v1, %v3505_v1  ;;  %v3512_v5 = vrot.slane %v3498_v59, %v14172_v30  ;;  %v11514_v59 = vld [vmem:[#allocation4 + $0xaf8] sm:$0xff]  }
 0xa9f   :  { %10227 = vmatpush3.bf16.msra.mxu1 %v11442_v31  ;;  %v11478_v31 = vld [vmem:[#allocation4 + $0x978] sm:$0xff]  }
 0xaa0   :  { %10256 = vmatprep.subr.bf16.mxu1 %v11445_v62  ;;  %v3655_v62 = vpack.c.bf16 %v3513_v26, %v3513_v26  ;;  %v3514_v56 = vcombine.high %v3512_v5, %v3512_v5 }
 0xaa1   :  { %10249 = vmatpush3.bf16.msra.mxu0 %v11444_v11  ;;  %v3654_v11 = vpack.c.bf16 %v3505_v1, %v3505_v1  ;;  %v11513_v1 = vld [vmem:[#allocation4 + $0xa38] sm:$0xff]  }
 0xaa2   :  { %v9964_v52 = vpop.f32.mrf.mxu1  ;;  %7407 = vmatmul.mubr.bf16.vlgmr.msra.gmra.mxu1 %v3650_v3  ;;  %10278 = vmatprep.subr.bf16.mxu0 %v11448_v39  ;;  %v3656_v3 = vpack.c.bf16 %v3512_v5, %v3512_v5  ;;  %v11483_v39 = vld [vmem:[#allocation4 + $0x970] sm:$0xff]   ;;  %v3657_v58 = vpack.c.bf16 %v3514_v56, %v3514_v56  ;;  %v11515_v5 = vld [vmem:[#allocation4 + $0xab8] sm:$0xff]  }
 0xaa3   :  { %10257 = vmatpush3.bf16.msra.mxu1 %v11447_v20  ;;  %v11482_v20 = vld [vmem:[#allocation4 + $0x9b8] sm:$0xff]   ;;  %7486 = vmatprep.mubr.bf16.mxu1 %v3655_v62 }
 0xaa4   :  { %v9965_v6 = vpop.f32.mrf.mxu1  ;;  %v9986_v55 = vpop.f32.mrf.mxu0  ;;  %7447 = vmatmul.mubr.bf16.vlgmr.msra.gmra.mxu0 %v3652_v60  ;;  %10258 = vmatprep.subr.bf16.mxu1 %v11450_v46  ;;  %v11485_v46 = vld [vmem:[#allocation4 + $0x9f0] sm:$0xff]  }
 0xaa5   :  { %v9966_v21 = vadd.f32 %v9965_v6, %v9964_v52  ;;  %10279 = vmatpush3.bf16.msra.mxu0 %v11449_v23  ;;  %v11484_v52 = vld [vmem:[#allocation4 + $0x930] sm:$0xff]   ;;  %7526 = vmatprep.mubr.bf16.mxu0 %v3657_v58 }
 0xaa6   :  { %v9967_v24 = vpop.f32.mrf.mxu1  ;;  %v9987_v45 = vpop.f32.mrf.mxu0  ;;  %10280 = vmatprep.subr.bf16.mxu0 %v11452_v50  ;;  %v11486_v6 = vld [vmem:[#allocation4 + $0x9b0] sm:$0xff]  }
 0xaa7   :  { %v6929_v41 = vadd.f32 %v9966_v21, %v14191_v42  ;;  %v9988_v37 = vadd.f32 %v9987_v45, %v9986_v55  ;;  %10259 = vmatpush3.bf16.msra.mxu1 %v11451_v49  ;;  %v11461_v42 = vld [vmem:[#allocation4 + $0x8a0] sm:$0xff]   ;;  %v11487_v21 = vld [vmem:[#allocation4 + $0x968] sm:$0xff]   ;;  %v11519_v58 = vld [vmem:[#allocation4 + $0xab0] sm:$0xff]  }
 0xaa8   :  { %v9968_v34 = vpop.f32.mrf.mxu1  ;;  %v9989_v25 = vpop.f32.mrf.mxu0  ;;  %10260 = vmatprep.subr.bf16.mxu1 %v11454_v53  ;;  %v11488_v24 = vld [vmem:[#allocation4 + $0x928] sm:$0xff]  }
 0xaa9   :  { %v14196_v43 = vadd.f32 %v9988_v37, %v6929_v41  ;;  %10281 = vmatpush3.bf16.msra.mxu0 %v11453_v35  ;;  %v11489_v41 = vld [vmem:[#allocation4 + $0x9e8] sm:$0xff]   ;;  %v11491_v34 = vld [vmem:[#allocation4 + $0x960] sm:$0xff]  }
 0xaaa   :  { %v9990_v33 = vpop.f32.mrf.mxu0  ;;  %10282 = vmatprep.subr.bf16.mxu0 %v11456_v9  ;;  %v11490_v37 = vld [vmem:[#allocation4 + $0x9a8] sm:$0xff]   ;;  %v11492_v9 = vld [vmem:[#allocation4 + $0x920] sm:$0xff]  }
 0xaab   :  { %10261 = vmatpush3.bf16.msra.mxu1 %v11455_v18  ;;  %v11493_v25 = vld [vmem:[#allocation4 + $0x9e0] sm:$0xff]   ;;  %v11497_v33 = vld [vmem:[#allocation4 + $0x9d8] sm:$0xff]  }
 0xaac   :  { %10262 = vmatprep.subr.bf16.mxu1 %v11458_v10  ;;  %v11496_v10 = vld [vmem:[#allocation4 + $0x918] sm:$0xff]  }
 0xaad   :  { %10283 = vmatpush3.bf16.msra.mxu0 %v11457_v13  ;;  %v11495_v13 = vld [vmem:[#allocation4 + $0x958] sm:$0xff]  }
 0xaae   :  { %10284 = vmatprep.subr.bf16.mxu0 %v11460_v29  ;;  %v11499_v29 = vld [vmem:[#allocation4 + $0x950] sm:$0xff]  }
 0xaaf   :  { %10263 = vmatpush3.bf16.msra.mxu1 %v11459_v54  ;;  %v11498_v54 = vld [vmem:[#allocation4 + $0x998] sm:$0xff]  }
 0xab0   :  { %10264 = vmatprep.subr.bf16.mxu1 %v11462_v16  ;;  %v11501_v16 = vld [vmem:[#allocation4 + $0x9d0] sm:$0xff]  }
 0xab1   :  { %10285 = vmatpush3.bf16.msra.mxu0 %v11461_v42  ;;  %v11500_v42 = vld [vmem:[#allocation4 + $0x910] sm:$0xff]  }
 0xab2   :  { %10286 = vmatprep.subr.bf16.mxu0 %v11464_v32  ;;  %v11503_v32 = vld [vmem:[#allocation4 + $0x948] sm:$0xff]  }
 0xab3   :  { %10265 = vmatpush3.bf16.msra.mxu1 %v11463_v17  ;;  %v11502_v17 = vld [vmem:[#allocation4 + $0x990] sm:$0xff]  }
 0xab4   :  { %10266 = vmatprep.subr.bf16.mxu1 %v11466_v2  ;;  %v11505_v2 = vld [vmem:[#allocation4 + $0x9c8] sm:$0xff]  }
 0xab5   :  { %10287 = vmatpush3.bf16.msra.mxu0 %v11465_v40  ;;  %v11504_v40 = vld [vmem:[#allocation4 + $0x908] sm:$0xff]  }
 0xab6   :  { %10288 = vmatprep.subr.bf16.mxu0 %v11468_v38  ;;  %v11507_v38 = vld [vmem:[#allocation4 + $0x940] sm:$0xff]  }
 0xab7   :  { %10267 = vmatpush3.bf16.msra.mxu1 %v11467_v4  ;;  %v11506_v4 = vld [vmem:[#allocation4 + $0x988] sm:$0xff]  }
 0xab8   :  { %10268 = vmatprep.subr.bf16.mxu1 %v11470_v27  ;;  %v11509_v27 = vld [vmem:[#allocation4 + $0x9c0] sm:$0xff]  }
 0xab9   :  { %10289 = vmatpush3.bf16.msra.mxu0 %v11469_v51  ;;  %v11508_v51 = vld [vmem:[#allocation4 + $0x900] sm:$0xff]  }
 0xaba   :  { %10290 = vmatprep.subr.bf16.mxu0 %v11472_v57 }
 0xabb   :  { %10269 = vmatpush3.bf16.msra.mxu1 %v11471_v63  ;;  %v3345_v63 = vld [vmem:[#allocation3 + $0x48] sm:$0xff] }
 0xabc   :  { %10270 = vmatprep.subr.bf16.mxu1 %v11474_v19  ;;  %v3522_v57 = vrot.slane %v3345_v63, %v14172_v30  ;;  %v3515_v19 = vcombine.high %v3345_v63, %v3345_v63 }
 0xabd   :  { %10291 = vmatpush3.bf16.msra.mxu0 %v11473_v14  ;;  %v11510_v14 = vld [vmem:[#allocation4 + $0x980] sm:$0xff]  }
 0xabe   :  { %10292 = vmatprep.subr.bf16.mxu0 %v11476_v28  ;;  %v3530_v28 = vcombine.high %v3522_v57, %v3522_v57  ;;  %v3529_v15 = vrot.slane %v3515_v19, %v14172_v30  ;;  %v11547_v19 = vld [vmem:[#allocation4 + $0xbf8] sm:$0xff]  }
 0xabf   :  { %10271 = vmatpush3.bf16.msra.mxu1 %v11475_v22  ;;  %v11511_v22 = vld [vmem:[#allocation4 + $0xa78] sm:$0xff]  }
 0xac0   :  { %10300 = vmatprep.subr.bf16.mxu1 %v11478_v31  ;;  %v3659_v31 = vpack.c.bf16 %v3530_v28, %v3530_v28  ;;  %v3531_v26 = vcombine.high %v3529_v15, %v3529_v15 }
 0xac1   :  { %10293 = vmatpush3.bf16.msra.mxu0 %v11477_v7  ;;  %v3658_v7 = vpack.c.bf16 %v3522_v57, %v3522_v57  ;;  %v11546_v57 = vld [vmem:[#allocation4 + $0xb38] sm:$0xff]  }
 0xac2   :  { %v10008_v47 = vpop.f32.mrf.mxu1  ;;  %10322 = vmatprep.subr.bf16.mxu0 %v11481_v12  ;;  %7487 = vmatmul.mubr.bf16.vlgmr.msra.gmra.mxu1 %v3654_v11  ;;  %v3660_v11 = vpack.c.bf16 %v3529_v15, %v3529_v15  ;;  %v11516_v12 = vld [vmem:[#allocation4 + $0xa70] sm:$0xff]   ;;  %v3661_v62 = vpack.c.bf16 %v3531_v26, %v3531_v26  ;;  %v11548_v15 = vld [vmem:[#allocation4 + $0xbb8] sm:$0xff]  }
 0xac3   :  { %10301 = vmatpush3.bf16.msra.mxu1 %v11480_v61  ;;  %7566 = vmatprep.mubr.bf16.mxu1 %v3659_v31  ;;  %v11550_v26 = vld [vmem:[#allocation4 + $0xb30] sm:$0xff]  }
 0xac4   :  { %v10009_v0 = vpop.f32.mrf.mxu1  ;;  %v10030_v23 = vpop.f32.mrf.mxu0  ;;  %7527 = vmatmul.mubr.bf16.vlgmr.msra.gmra.mxu0 %v3656_v3  ;;  %10302 = vmatprep.subr.bf16.mxu1 %v11483_v39  ;;  %v11518_v3 = vld [vmem:[#allocation4 + $0xaf0] sm:$0xff]  }
 0xac5   :  { %v10010_v60 = vadd.f32 %v10009_v0, %v10008_v47  ;;  %10323 = vmatpush3.bf16.msra.mxu0 %v11482_v20  ;;  %v11517_v47 = vld [vmem:[#allocation4 + $0xa30] sm:$0xff]   ;;  %7606 = vmatprep.mubr.bf16.mxu0 %v3661_v62 }
 0xac6   :  { %v10011_v48 = vpop.f32.mrf.mxu1  ;;  %v10031_v49 = vpop.f32.mrf.mxu0  ;;  %10324 = vmatprep.subr.bf16.mxu0 %v11485_v46  ;;  %v11552_v62 = vld [vmem:[#allocation4 + $0xbb0] sm:$0xff]  }
 0xac7   :  { %v7009_v55 = vadd.f32 %v10010_v60, %v14196_v43  ;;  %v10032_v50 = vadd.f32 %v10031_v49, %v10030_v23  ;;  %10303 = vmatpush3.bf16.msra.mxu1 %v11484_v52  ;;  %v11494_v43 = vld [vmem:[#allocation4 + $0x9a0] sm:$0xff]   ;;  %v11520_v52 = vld [vmem:[#allocation4 + $0xa68] sm:$0xff]  }
 0xac8   :  { %v10012_v35 = vpop.f32.mrf.mxu1  ;;  %v10033_v45 = vpop.f32.mrf.mxu0  ;;  %10304 = vmatprep.subr.bf16.mxu1 %v11487_v21  ;;  %v11521_v48 = vld [vmem:[#allocation4 + $0xa28] sm:$0xff]  }
 0xac9   :  { %v14201_v53 = vadd.f32 %v10032_v50, %v7009_v55  ;;  %10325 = vmatpush3.bf16.msra.mxu0 %v11486_v6  ;;  %v11522_v6 = vld [vmem:[#allocation4 + $0xae8] sm:$0xff]   ;;  %v11524_v35 = vld [vmem:[#allocation4 + $0xa60] sm:$0xff]  }
 0xaca   :  { %v10034_v18 = vpop.f32.mrf.mxu0  ;;  %10326 = vmatprep.subr.bf16.mxu0 %v11489_v41  ;;  %v11523_v21 = vld [vmem:[#allocation4 + $0xaa8] sm:$0xff]   ;;  %v11525_v45 = vld [vmem:[#allocation4 + $0xa20] sm:$0xff]  }
 0xacb   :  { %10305 = vmatpush3.bf16.msra.mxu1 %v11488_v24  ;;  %v11526_v41 = vld [vmem:[#allocation4 + $0xae0] sm:$0xff]   ;;  %v11529_v18 = vld [vmem:[#allocation4 + $0xa18] sm:$0xff]  }
 0xacc   :  { %10306 = vmatprep.subr.bf16.mxu1 %v11491_v34  ;;  %v11530_v34 = vld [vmem:[#allocation4 + $0xad8] sm:$0xff]  }
 0xacd   :  { %10327 = vmatpush3.bf16.msra.mxu0 %v11490_v37  ;;  %v11528_v37 = vld [vmem:[#allocation4 + $0xa58] sm:$0xff]  }
 0xace   :  { %10328 = vmatprep.subr.bf16.mxu0 %v11493_v25  ;;  %v11532_v25 = vld [vmem:[#allocation4 + $0xa50] sm:$0xff]  }
 0xacf   :  { %10307 = vmatpush3.bf16.msra.mxu1 %v11492_v9  ;;  %v11531_v9 = vld [vmem:[#allocation4 + $0xa98] sm:$0xff]  }
 0xad0   :  { %10308 = vmatprep.subr.bf16.mxu1 %v11495_v13  ;;  %v11534_v13 = vld [vmem:[#allocation4 + $0xad0] sm:$0xff]  }
 0xad1   :  { %10329 = vmatpush3.bf16.msra.mxu0 %v11494_v43  ;;  %v11533_v43 = vld [vmem:[#allocation4 + $0xa10] sm:$0xff]  }
 0xad2   :  { %10330 = vmatprep.subr.bf16.mxu0 %v11497_v33  ;;  %v11536_v33 = vld [vmem:[#allocation4 + $0xa48] sm:$0xff]  }
 0xad3   :  { %10309 = vmatpush3.bf16.msra.mxu1 %v11496_v10  ;;  %v11535_v10 = vld [vmem:[#allocation4 + $0xa90] sm:$0xff]  }
 0xad4   :  { %10310 = vmatprep.subr.bf16.mxu1 %v11499_v29  ;;  %v11538_v29 = vld [vmem:[#allocation4 + $0xac8] sm:$0xff]  }
 0xad5   :  { %10331 = vmatpush3.bf16.msra.mxu0 %v11498_v54  ;;  %v11537_v54 = vld [vmem:[#allocation4 + $0xa08] sm:$0xff]  }
 0xad6   :  { %10332 = vmatprep.subr.bf16.mxu0 %v11501_v16  ;;  %v11540_v16 = vld [vmem:[#allocation4 + $0xa40] sm:$0xff]  }
 0xad7   :  { %10311 = vmatpush3.bf16.msra.mxu1 %v11500_v42  ;;  %v11539_v42 = vld [vmem:[#allocation4 + $0xa88] sm:$0xff]  }
 0xad8   :  { %10312 = vmatprep.subr.bf16.mxu1 %v11503_v32  ;;  %v11542_v32 = vld [vmem:[#allocation4 + $0xac0] sm:$0xff]  }
 0xad9   :  { %10333 = vmatpush3.bf16.msra.mxu0 %v11502_v17  ;;  %v11541_v17 = vld [vmem:[#allocation4 + $0xa00] sm:$0xff]  }
 0xada   :  { %10334 = vmatprep.subr.bf16.mxu0 %v11505_v2 }
 0xadb   :  { %10313 = vmatpush3.bf16.msra.mxu1 %v11504_v40  ;;  %v3346_v40 = vld [vmem:[#allocation3 + $0x50] sm:$0xff] }
 0xadc   :  { %10314 = vmatprep.subr.bf16.mxu1 %v11507_v38  ;;  %v3539_v2 = vrot.slane %v3346_v40, %v14172_v30  ;;  %v3532_v38 = vcombine.high %v3346_v40, %v3346_v40 }
 0xadd   :  { %10335 = vmatpush3.bf16.msra.mxu0 %v11506_v4  ;;  %v11543_v4 = vld [vmem:[#allocation4 + $0xa80] sm:$0xff]  }
 0xade   :  { %10336 = vmatprep.subr.bf16.mxu0 %v11509_v27  ;;  %v3547_v27 = vcombine.high %v3539_v2, %v3539_v2  ;;  %v3546_v63 = vrot.slane %v3532_v38, %v14172_v30 }
 0xadf   :  { %10315 = vmatpush3.bf16.msra.mxu1 %v11508_v51  ;;  %v11544_v51 = vld [vmem:[#allocation4 + $0xb78] sm:$0xff]  }
 0xae0   :  { %10344 = vmatprep.subr.bf16.mxu1 %v11511_v22  ;;  %v3663_v22 = vpack.c.bf16 %v3547_v27, %v3547_v27  ;;  %v3548_v28 = vcombine.high %v3546_v63, %v3546_v63 }
 0xae1   :  { %10337 = vmatpush3.bf16.msra.mxu0 %v11510_v14  ;;  %v3662_v14 = vpack.c.bf16 %v3539_v2, %v3539_v2 }
 0xae2   :  { %v10052_v61 = vpop.f32.mrf.mxu1  ;;  %7567 = vmatmul.mubr.bf16.vlgmr.msra.gmra.mxu1 %v3658_v7  ;;  %10366 = vmatprep.subr.bf16.mxu0 %v11514_v59  ;;  %v3664_v7 = vpack.c.bf16 %v3546_v63, %v3546_v63  ;;  %v11549_v59 = vld [vmem:[#allocation4 + $0xb70] sm:$0xff]   ;;  %v3665_v31 = vpack.c.bf16 %v3548_v28, %v3548_v28 }
 0xae3   :  { %10345 = vmatpush3.bf16.msra.mxu1 %v11513_v1  ;;  %7646 = vmatprep.mubr.bf16.mxu1 %v3663_v22  ;;  %v11579_v28 = vld [vmem:[#allocation4 + $0xc30] sm:$0xff]  }
 0xae4   :  { %v10053_v56 = vpop.f32.mrf.mxu1  ;;  %v10074_v20 = vpop.f32.mrf.mxu0  ;;  %7607 = vmatmul.mubr.bf16.vlgmr.msra.gmra.mxu0 %v3660_v11  ;;  %10346 = vmatprep.subr.bf16.mxu1 %v11516_v12  ;;  %v11551_v11 = vld [vmem:[#allocation4 + $0xbf0] sm:$0xff]  }
 0xae5   :  { %v10054_v39 = vadd.f32 %v10053_v56, %v10052_v61  ;;  %10367 = vmatpush3.bf16.msra.mxu0 %v11515_v5  ;;  %7686 = vmatprep.mubr.bf16.mxu0 %v3665_v31 }
 0xae6   :  { %v10055_v0 = vpop.f32.mrf.mxu1  ;;  %v10075_v23 = vpop.f32.mrf.mxu0  ;;  %10368 = vmatprep.subr.bf16.mxu0 %v11518_v3 }
 0xae7   :  { %v7089_v60 = vadd.f32 %v10054_v39, %v14201_v53  ;;  %v10076_v46 = vadd.f32 %v10075_v23, %v10074_v20  ;;  %10347 = vmatpush3.bf16.msra.mxu1 %v11517_v47  ;;  %v11527_v53 = vld [vmem:[#allocation4 + $0xaa0] sm:$0xff]   ;;  %v11553_v20 = vld [vmem:[#allocation4 + $0xb68] sm:$0xff]  }
 0xae8   :  { %v10056_v49 = vpop.f32.mrf.mxu1  ;;  %v10077_v55 = vpop.f32.mrf.mxu0  ;;  %10348 = vmatprep.subr.bf16.mxu1 %v11520_v52  ;;  %v11555_v23 = vld [vmem:[#allocation4 + $0xbe8] sm:$0xff]  }
 0xae9   :  { %v14206_v50 = vadd.f32 %v10076_v46, %v7089_v60  ;;  %10369 = vmatpush3.bf16.msra.mxu0 %v11519_v58  ;;  %v11554_v58 = vld [vmem:[#allocation4 + $0xb28] sm:$0xff]   ;;  %v11559_v55 = vld [vmem:[#allocation4 + $0xbe0] sm:$0xff]  }
 0xaea   :  { %v10078_v24 = vpop.f32.mrf.mxu0  ;;  %10370 = vmatprep.subr.bf16.mxu0 %v11522_v6  ;;  %v11556_v46 = vld [vmem:[#allocation4 + $0xba8] sm:$0xff]   ;;  %v11558_v6 = vld [vmem:[#allocation4 + $0xb20] sm:$0xff]  }
 0xaeb   :  { %10349 = vmatpush3.bf16.msra.mxu1 %v11521_v48  ;;  %v11557_v48 = vld [vmem:[#allocation4 + $0xb60] sm:$0xff]   ;;  %v11563_v24 = vld [vmem:[#allocation4 + $0xbd8] sm:$0xff]  }
 0xaec   :  { %10350 = vmatprep.subr.bf16.mxu1 %v11524_v35  ;;  %v11562_v35 = vld [vmem:[#allocation4 + $0xb18] sm:$0xff]  }
 0xaed   :  { %10371 = vmatpush3.bf16.msra.mxu0 %v11523_v21  ;;  %v11561_v21 = vld [vmem:[#allocation4 + $0xb58] sm:$0xff]  }
 0xaee   :  { %10372 = vmatprep.subr.bf16.mxu0 %v11526_v41  ;;  %v11565_v41 = vld [vmem:[#allocation4 + $0xb50] sm:$0xff]  }
 0xaef   :  { %10351 = vmatpush3.bf16.msra.mxu1 %v11525_v45  ;;  %v11564_v45 = vld [vmem:[#allocation4 + $0xb98] sm:$0xff]  }
 0xaf0   :  { %10352 = vmatprep.subr.bf16.mxu1 %v11528_v37  ;;  %v11567_v37 = vld [vmem:[#allocation4 + $0xbd0] sm:$0xff]  }
 0xaf1   :  { %10373 = vmatpush3.bf16.msra.mxu0 %v11527_v53  ;;  %v11566_v53 = vld [vmem:[#allocation4 + $0xb10] sm:$0xff]  }
 0xaf2   :  { %10374 = vmatprep.subr.bf16.mxu0 %v11530_v34  ;;  %v11569_v34 = vld [vmem:[#allocation4 + $0xb48] sm:$0xff]  }
 0xaf3   :  { %10353 = vmatpush3.bf16.msra.mxu1 %v11529_v18  ;;  %v11568_v18 = vld [vmem:[#allocation4 + $0xb90] sm:$0xff]  }
 0xaf4   :  { %10354 = vmatprep.subr.bf16.mxu1 %v11532_v25  ;;  %v11571_v25 = vld [vmem:[#allocation4 + $0xbc8] sm:$0xff]  }
 0xaf5   :  { %10375 = vmatpush3.bf16.msra.mxu0 %v11531_v9  ;;  %v11570_v9 = vld [vmem:[#allocation4 + $0xb08] sm:$0xff]  }
 0xaf6   :  { %10376 = vmatprep.subr.bf16.mxu0 %v11534_v13  ;;  %v11573_v13 = vld [vmem:[#allocation4 + $0xb40] sm:$0xff]  }
 0xaf7   :  { %10355 = vmatpush3.bf16.msra.mxu1 %v11533_v43  ;;  %v11572_v43 = vld [vmem:[#allocation4 + $0xb88] sm:$0xff]  }
 0xaf8   :  { %10356 = vmatprep.subr.bf16.mxu1 %v11536_v33  ;;  %v11575_v33 = vld [vmem:[#allocation4 + $0xbc0] sm:$0xff]  }
 0xaf9   :  { %10377 = vmatpush3.bf16.msra.mxu0 %v11535_v10  ;;  %v11574_v10 = vld [vmem:[#allocation4 + $0xb00] sm:$0xff]  }
 0xafa   :  { %10378 = vmatprep.subr.bf16.mxu0 %v11538_v29 }
 0xafb   :  { %10357 = vmatpush3.bf16.msra.mxu1 %v11537_v54  ;;  %v3347_v54 = vld [vmem:[#allocation3 + $0x58] sm:$0xff] }
 0xafc   :  { %10358 = vmatprep.subr.bf16.mxu1 %v11540_v16  ;;  %v3556_v29 = vrot.slane %v3347_v54, %v14172_v30  ;;  %v11576_v16 = vld [vmem:[#allocation4 + $0xb80] sm:$0xff]  }
 0xafd   :  { %10379 = vmatpush3.bf16.msra.mxu0 %v11539_v42  ;;  %v3549_v42 = vcombine.high %v3347_v54, %v3347_v54 }
 0xafe   :  { %10380 = vmatprep.subr.bf16.mxu0 %v11542_v32  ;;  %v3666_v40 = vpack.c.bf16 %v3556_v29, %v3556_v29 }
 0xaff   :  { %10359 = vmatpush3.bf16.msra.mxu1 %v11541_v17  ;;  %v3564_v17 = vcombine.high %v3556_v29, %v3556_v29  ;;  %v3563_v32 = vrot.slane %v3549_v42, %v14172_v30 }
 0xb00   :  { %10388 = vmatprep.subr.bf16.mxu1 %v11544_v51  ;;  %v11578_v51 = vld [vmem:[#allocation4 + $0xc38] sm:$0xff]  }
 0xb01   :  { %10381 = vmatpush3.bf16.msra.mxu0 %v11543_v4  ;;  %v3667_v2 = vpack.c.bf16 %v3564_v17, %v3564_v17  ;;  %v3565_v38 = vcombine.high %v3563_v32, %v3563_v32  ;;  %v3668_v27 = vpack.c.bf16 %v3563_v32, %v3563_v32 }
 0xb02   :  { %v10096_v1 = vpop.f32.mrf.mxu1  ;;  %7647 = vmatmul.mubr.bf16.vlgmr.msra.gmra.mxu1 %v3662_v14  ;;  %10410 = vmatprep.subr.bf16.mxu0 %v11547_v19 }
 0xb03   :  { %10389 = vmatpush3.bf16.msra.mxu1 %v11546_v57  ;;  %7726 = vmatprep.mubr.bf16.mxu1 %v3667_v2  ;;  %v3669_v63 = vpack.c.bf16 %v3565_v38, %v3565_v38 }
 0xb04   :  { %v10097_v5 = vpop.f32.mrf.mxu1  ;;  %v10118_v61 = vpop.f32.mrf.mxu0  ;;  %7687 = vmatmul.mubr.bf16.vlgmr.msra.gmra.mxu0 %v3664_v7  ;;  %10390 = vmatprep.subr.bf16.mxu1 %v11549_v59  ;;  %v11580_v59 = vld [vmem:[#allocation4 + $0xc28] sm:$0xff]  }
 0xb05   :  { %v10098_v12 = vadd.f32 %v10097_v5, %v10096_v1  ;;  %10411 = vmatpush3.bf16.msra.mxu0 %v11548_v15  ;;  %7766 = vmatprep.mubr.bf16.mxu0 %v3669_v63 }
 0xb06   :  { %v10099_v47 = vpop.f32.mrf.mxu1  ;;  %v10119_v56 = vpop.f32.mrf.mxu0  ;;  %10412 = vmatprep.subr.bf16.mxu0 %v11551_v11  ;;  %v11582_v11 = vld [vmem:[#allocation4 + $0xc18] sm:$0xff]  }
 0xb07   :  { %v7169_v3 = vadd.f32 %v10098_v12, %v14206_v50  ;;  %v10120_v39 = vadd.f32 %v10119_v56, %v10118_v61  ;;  %10391 = vmatpush3.bf16.msra.mxu1 %v11550_v26  ;;  %v11560_v50 = vld [vmem:[#allocation4 + $0xba0] sm:$0xff]   ;;  %v11583_v12 = vld [vmem:[#allocation4 + $0xc10] sm:$0xff]   ;;  %v9279_v56 = vld.sshfl [vmem:[#allocation3 + $0x60] sm:$0x3 pattern:$0x76325410] }
 0xb08   :  { %v10100_v0 = vpop.f32.mrf.mxu1  ;;  %v10121_v52 = vpop.f32.mrf.mxu0  ;;  %10392 = vmatprep.subr.bf16.mxu1 %v11553_v20  ;;  %v11581_v61 = vld [vmem:[#allocation4 + $0xc20] sm:$0xff]   ;;  %v3670_v20 = vpack.c.bf16 %v9279_v56, %v9279_v56 }
 0xb09   :  { %v14211_v60 = vadd.f32 %v10120_v39, %v7169_v3  ;;  %10413 = vmatpush3.bf16.msra.mxu0 %v11552_v62  ;;  %v11584_v62 = vld [vmem:[#allocation4 + $0xc08] sm:$0xff]   ;;  %v11585_v47 = vld [vmem:[#allocation4 + $0xc00] sm:$0xff]  }
 0xb0a   :  { %v10122_v49 = vpop.f32.mrf.mxu0  ;;  %10414 = vmatprep.subr.bf16.mxu0 %v11555_v23 }
 0xb0b   :  { %10393 = vmatpush3.bf16.msra.mxu1 %v11554_v58 }
 0xb0c   :  { %10394 = vmatprep.subr.bf16.mxu1 %v11557_v48 }
 0xb0d   :  { %10415 = vmatpush3.bf16.msra.mxu0 %v11556_v46 }
 0xb0e   :  { %10416 = vmatprep.subr.bf16.mxu0 %v11559_v55 }
 0xb0f   :  { %10395 = vmatpush3.bf16.msra.mxu1 %v11558_v6 }
 0xb10   :  { %10396 = vmatprep.subr.bf16.mxu1 %v11561_v21 }
 0xb11   :  { %10417 = vmatpush3.bf16.msra.mxu0 %v11560_v50 }
 0xb12   :  { %10418 = vmatprep.subr.bf16.mxu0 %v11563_v24 }
 0xb13   :  { %10397 = vmatpush3.bf16.msra.mxu1 %v11562_v35 }
 0xb14   :  { %10398 = vmatprep.subr.bf16.mxu1 %v11565_v41 }
 0xb15   :  { %10419 = vmatpush3.bf16.msra.mxu0 %v11564_v45 }
 0xb16   :  { %10420 = vmatprep.subr.bf16.mxu0 %v11567_v37 }
 0xb17   :  { %10399 = vmatpush3.bf16.msra.mxu1 %v11566_v53 }
 0xb18   :  { %10400 = vmatprep.subr.bf16.mxu1 %v11569_v34 }
 0xb19   :  { %10421 = vmatpush3.bf16.msra.mxu0 %v11568_v18 }
 0xb1a   :  { %10422 = vmatprep.subr.bf16.mxu0 %v11571_v25 }
 0xb1b   :  { %10401 = vmatpush3.bf16.msra.mxu1 %v11570_v9 }
 0xb1c   :  { %10402 = vmatprep.subr.bf16.mxu1 %v11573_v13 }
 0xb1d   :  { %10423 = vmatpush3.bf16.msra.mxu0 %v11572_v43 }
 0xb1e   :  { %10424 = vmatprep.subr.bf16.mxu0 %v11575_v33 }
 0xb1f   :  { %10403 = vmatpush3.bf16.msra.mxu1 %v11574_v10 }
 0xb20   :  { %10781 = vmatprep.subr.bf16.mxu1 %v14596_v36 }
 0xb21   :  { %10425 = vmatpush3.bf16.msra.mxu0 %v11576_v16 }
 0xb22   :  { %v10140_v4 = vpop.f32.mrf.mxu1  ;;  %7727 = vmatmul.mubr.bf16.vlgmr.msra.gmra.mxu1 %v3666_v40 }
 0xb23   :  { %10782 = vmatpush3.bf16.msra.mxu1 %v11578_v51  ;;  %10797 = vmatprep.mubr.msk.bf16.mxu1 %vm11659_vm0, %v14596_v36 }
 0xb24   :  { %v10141_v57 = vpop.f32.mrf.mxu1  ;;  %v10162_v14 = vpop.f32.mrf.mxu0  ;;  %7767 = vmatmul.mubr.bf16.vlgmr.msra.gmra.mxu0 %v3668_v27  ;;  %10783 = vmatprep.subr.bf16.mxu1 %v14596_v36 }
 0xb25   :  { %v10142_v19 = vadd.f32 %v10141_v57, %v10140_v4  ;;  %7942 = vmatprep.mubr.bf16.mxu0 %v14595_v44 }
 0xb26   :  { %v10143_v22 = vpop.f32.mrf.mxu1  ;;  %v10163_v30 = vpop.f32.mrf.mxu0 }
 0xb27   :  { %v7249_v15 = vadd.f32 %v10142_v19, %v14211_v60  ;;  %v10164_v1 = vadd.f32 %v10163_v30, %v10162_v14  ;;  %10784 = vmatpush3.bf16.msra.mxu1 %v11579_v28 }
 0xb28   :  { %v10144_v7 = vpop.f32.mrf.mxu1  ;;  %v10165_v31 = vpop.f32.mrf.mxu0  ;;  %10785 = vmatprep.subr.bf16.mxu1 %v14596_v36 }
 0xb29   :  { %v7289_v26 = vadd.f32 %v10164_v1, %v7249_v15 }
 0xb2a   :  { %v10166_v5 = vpop.f32.mrf.mxu0 }
 0xb2b   :  { %10786 = vmatpush3.bf16.msra.mxu1 %v11580_v59 }
 0xb2c   :  { %10787 = vmatprep.subr.bf16.mxu1 %v14596_v36 }
 0xb2f   :  { %10788 = vmatpush3.bf16.msra.mxu1 %v11581_v61 }
 0xb30   :  { %10789 = vmatprep.subr.bf16.mxu1 %v14596_v36 }
 0xb33   :  { %10790 = vmatpush3.bf16.msra.mxu1 %v11582_v11 }
 0xb34   :  { %10791 = vmatprep.subr.bf16.mxu1 %v14596_v36 }
 0xb37   :  { %10792 = vmatpush3.bf16.msra.mxu1 %v11583_v12 }
 0xb38   :  { %10793 = vmatprep.subr.bf16.mxu1 %v14596_v36 }
 0xb3b   :  { %10794 = vmatpush3.bf16.msra.mxu1 %v11584_v62 }
 0xb3c   :  { %10795 = vmatprep.subr.bf16.mxu1 %v14596_v36 }
 0xb3f   :  { %10796 = vmatpush3.bf16.msra.mxu1 %v11585_v47 }
 0xb42   :  { %v10184_v3 = vpop.f32.mrf.mxu1  ;;  %10798 = vmatmul.mubr.bf16.vlgmr.msra.gmra.mxu1 %v3670_v20 }
 0xb43   :  { %8242 = vmatprep.mubr.bf16.mxu1 %v14595_v44 }
 0xb44   :  { %v10185_v39 = vpop.f32.mrf.mxu1  ;;  %v10206_v58 = vpop.f32.mrf.mxu0 }
 0xb45   :  { %v10186_v0 = vadd.f32 %v10185_v39, %v10184_v3 }
 0xb46   :  { %v10187_v23 = vpop.f32.mrf.mxu1  ;;  %v10207_v52 = vpop.f32.mrf.mxu0 }
 0xb47   :  { %v7329_v60 = vadd.f32 %v10186_v0, %v7289_v26  ;;  %v10208_v46 = vadd.f32 %v10207_v52, %v10206_v58 }
 0xb48   :  { %v10188_v48 = vpop.f32.mrf.mxu1  ;;  %v10209_v49 = vpop.f32.mrf.mxu0 }
 0xb49   :  { %v7369_v6 = vadd.f32 %v10208_v46, %v7329_v60 }
 0xb4a   :  { %v10210_v55 = vpop.f32.mrf.mxu0 }
 0xb62   :  { %v10228_v50 = vpop.f32.mrf.mxu1 }
 0xb64   :  { %v10229_v21 = vpop.f32.mrf.mxu1  ;;  %v10250_v35 = vpop.f32.mrf.mxu0 }
 0xb65   :  { %v10230_v24 = vadd.f32 %v10229_v21, %v10228_v50 }
 0xb66   :  { %v10231_v45 = vpop.f32.mrf.mxu1  ;;  %v10251_v41 = vpop.f32.mrf.mxu0 }
 0xb67   :  { %v7409_v53 = vadd.f32 %v10230_v24, %v7369_v6  ;;  %v10252_v37 = vadd.f32 %v10251_v41, %v10250_v35 }
 0xb68   :  { %v10232_v18 = vpop.f32.mrf.mxu1  ;;  %v10253_v34 = vpop.f32.mrf.mxu0 }
 0xb69   :  { %v7449_v9 = vadd.f32 %v10252_v37, %v7409_v53 }
 0xb6a   :  { %v10254_v25 = vpop.f32.mrf.mxu0 }
 0xb6b   :  { %v14604_v25 = vld [vmem:[#allocation22_spill] sm:$0xff] }
 0xb82   :  { %v10272_v43 = vpop.f32.mrf.mxu1 }
 0xb84   :  { %v10273_v13 = vpop.f32.mrf.mxu1  ;;  %v10294_v10 = vpop.f32.mrf.mxu0 }
 0xb85   :  { %v10274_v33 = vadd.f32 %v10273_v13, %v10272_v43 }
 0xb86   :  { %v10275_v54 = vpop.f32.mrf.mxu1  ;;  %v10295_v29 = vpop.f32.mrf.mxu0 }
 0xb87   :  { %v7489_v42 = vadd.f32 %v10274_v33, %v7449_v9  ;;  %v10296_v16 = vadd.f32 %v10295_v29, %v10294_v10  ;;  %v14603_v9 = vld [vmem:[#allocation23_spill] sm:$0xff]  ;;  %v14605_v10 = vld [vmem:[#allocation21_spill] sm:$0xff]  ;;  %v14606_v33 = vld [vmem:[#allocation20_spill] sm:$0xff] }
 0xb88   :  { %v10276_v17 = vpop.f32.mrf.mxu1  ;;  %v10297_v32 = vpop.f32.mrf.mxu0  ;;  %v9682_v43 = vcombine.high %v14604_v25, %v14603_v9  ;;  %v9681_v13 = vcombine.low %v14604_v25, %v14603_v9  ;;  %v9680_v54 = vcombine.high %v14606_v33, %v14605_v10  ;;  %v9679_v29 = vcombine.low %v14606_v33, %v14605_v10 }
 0xb89   :  { %v7529_v40 = vadd.f32 %v10296_v16, %v7489_v42  ;;  %v14607_v42 = vld [vmem:[#allocation19_spill] sm:$0xff]  ;;  %v14608_v16 = vld [vmem:[#allocation18_spill] sm:$0xff] }
 0xb8a   :  { %v10298_v2 = vpop.f32.mrf.mxu0  ;;  %7918 = vmatprep.subr.bf16.mxu0 %v9682_v43  ;;  %v9678_v17 = vcombine.high %v14608_v16, %v14607_v42  ;;  %v9677_v32 = vcombine.low %v14608_v16, %v14607_v42 }
 0xb8b   :  { %7919 = vmatpush1.bf16.msra.mxu0 %v9681_v13  ;;  %v14610_v2 = vld [vmem:[#allocation16_spill] sm:$0xff] }
 0xb8c   :  { %7920 = vmatprep.subr.bf16.mxu0 %v9680_v54 }
 0xb8f   :  { %7921 = vmatpush1.bf16.msra.mxu0 %v9679_v29 }
 0xb90   :  { %7922 = vmatprep.subr.bf16.mxu0 %v9678_v17 }
 0xb93   :  { %7923 = vmatpush1.bf16.msra.mxu0 %v9677_v32 }
 0xba2   :  { %v10316_v4 = vpop.f32.mrf.mxu1 }
 0xba4   :  { %v10317_v38 = vpop.f32.mrf.mxu1  ;;  %v10338_v51 = vpop.f32.mrf.mxu0 }
 0xba5   :  { %v10318_v27 = vadd.f32 %v10317_v38, %v10316_v4 }
 0xba6   :  { %v10319_v63 = vpop.f32.mrf.mxu1  ;;  %v10339_v57 = vpop.f32.mrf.mxu0 }
 0xba7   :  { %v7569_v14 = vadd.f32 %v10318_v27, %v7529_v40  ;;  %v10340_v19 = vadd.f32 %v10339_v57, %v10338_v51  ;;  %v14609_v40 = vld [vmem:[#allocation17_spill] sm:$0xff] }
 0xba8   :  { %v10320_v22 = vpop.f32.mrf.mxu1  ;;  %v10341_v30 = vpop.f32.mrf.mxu0  ;;  %v9676_v4 = vcombine.high %v14610_v2, %v14609_v40  ;;  %v9675_v38 = vcombine.low %v14610_v2, %v14609_v40  ;;  %v9685_v2 = vld [vmem:[%s14494_s20] ss:$0 sm:$0xff] }
 0xba9   :  { %v7609_v28 = vadd.f32 %v10340_v19, %v7569_v14  ;;  %v9673_v14 = vld [vmem:[%s14489_s15] ss:$0 sm:$0xff] }
 0xbaa   :  { %v10342_v15 = vpop.f32.mrf.mxu0  ;;  %7924 = vmatprep.subr.bf16.mxu0 %v9676_v4  ;;  %v9674_v22 = vld [vmem:[%s14490_s16] ss:$0 sm:$0xff] }
 0xbab   :  { %7925 = vmatpush1.bf16.msra.mxu0 %v9675_v38 }
 0xbac   :  { %10801 = vmatprep.subr.bf16.mxu0 %v14596_v36 }
 0xbc2   :  { %v10360_v1 = vpop.f32.mrf.mxu1 }
 0xbc4   :  { %v10361_v7 = vpop.f32.mrf.mxu1  ;;  %v10382_v59 = vpop.f32.mrf.mxu0 }
 0xbc5   :  { %v10362_v0 = vadd.f32 %v10361_v7, %v10360_v1  ;;  %v14261_v1 = vsub.s32 1, %v14169_v8  ;;  %v7854_v7 = vld [vmem:[%s14492_s18] sm:$0x3] }
 0xbc6   :  { %v10363_v31 = vpop.f32.mrf.mxu1  ;;  %v10383_v26 = vpop.f32.mrf.mxu0 }
 0xbc7   :  { %v7649_v23 = vadd.f32 %v10362_v0, %v7609_v28  ;;  %v10384_v52 = vadd.f32 %v10383_v26, %v10382_v59  ;;  %v7863_v59 = vrot.slane %v7854_v7, %v14261_v1 }
 0xbc8   :  { %v10364_v5 = vpop.f32.mrf.mxu1  ;;  %v10385_v61 = vpop.f32.mrf.mxu0 }
 0xbc9   :  { %v7689_v46 = vadd.f32 %v10384_v52, %v7649_v23  ;;  %v11586_v52 = vld [vmem:[#allocation6 + $0x38] sm:$0xff]  }
 0xbca   :  { %v10386_v11 = vpop.f32.mrf.mxu0 }
 0xbe2   :  { %v10404_v12 = vpop.f32.mrf.mxu1 }
 0xbe4   :  { %v10405_v62 = vpop.f32.mrf.mxu1  ;;  %v10426_v47 = vpop.f32.mrf.mxu0 }
 0xbe5   :  { %v10406_v60 = vadd.f32 %v10405_v62, %v10404_v12 }
 0xbe6   :  { %v10407_v56 = vpop.f32.mrf.mxu1  ;;  %v10427_v20 = vpop.f32.mrf.mxu0 }
 0xbe7   :  { %v7729_v48 = vadd.f32 %v10406_v60, %v7689_v46  ;;  %v10428_v49 = vadd.f32 %v10427_v20, %v10426_v47 }
 0xbe8   :  { %v10408_v3 = vpop.f32.mrf.mxu1  ;;  %v10429_v39 = vpop.f32.mrf.mxu0 }
 0xbe9   :  { %v7769_v6 = vadd.f32 %v10428_v49, %v7729_v48 }
 0xbea   :  { %v10430_v58 = vpop.f32.mrf.mxu0 }
 0xc02   :  { %v7808_v55 = vpop.f32.mrf.mxu1 }
 0xc03   :  { %v14228_v50 = vadd.f32 %v7808_v55, %v7769_v6  ;;  %v11587_v55 = vld [vmem:[#allocation6 + $0x30] sm:$0xff]  }
 0xc04   :  { %v10799_v21 = vpop.f32.mrf.mxu1 }
 0xc05   :  { %v7817_v35 = vsel %vm7816_vm10, %v14228_v50, 0.0  ;;  %v11588_v21 = vld [vmem:[#allocation6 + $0x28] sm:$0xff]  }
 0xc06   :  { %v7811_v24 = vpop.f32.mrf.mxu1  ;;  %7818 = vadd.xlane.f32.xlu0 %v7817_v35  ;;  %v11589_v35 = vld [vmem:[#allocation6 + $0x20] sm:$0xff]  }
 0xc07   :  { %v11590_v24 = vld [vmem:[#allocation6 + $0x18] sm:$0xff]  }
 0xc08   :  { %v10800_v45 = vpop.f32.mrf.mxu1 }
 0xc09   :  { %v11591_v45 = vld [vmem:[#allocation6 + $0x10] sm:$0xff]  }
 0xc8f   :  { %v7819_v41 = vpop.xlane.xlu0 %7818 }
 0xc90   :  { %v7821_v53 = vmul.f32 0.015625, %v7819_v41  ;;  %v11592_v41 = vld [vmem:[#allocation6 + $0x8] sm:$0xff]  }
 0xc92   :  { %v7822_v37 = vsub.f32 %v14228_v50, %v7821_v53  ;;  %v11593_v53 = vld [vmem:[#allocation6] sm:$0xff]  }
 0xc94   :  { %v7823_v18 = vmul.f32 %v7822_v37, %v7822_v37 }
 0xc96   :  { %v7824_v34 = vsel %vm7816_vm10, %v7823_v18, 0.0 }
 0xc97   :  { %7825 = vadd.xlane.f32.xlu0 %v7824_v34 }
 0xd20   :  { %v7826_v51 = vpop.xlane.xlu0 %7825 }
 0xd21   :  { %v7827_v27 = vmul.f32 0.015625, %v7826_v51 }
 0xd23   :  { %v7828_v63 = vadd.f32 1e-05, %v7827_v27 }
 0xd25   :  { %11618 = vrsqrt.f32 %v7828_v63 }
 0xd32   :  { %v11619_v57 = vpop.eup %11618 }
 0xd33   :  { %v7830_v19 = vmul.f32 %v11619_v57, %v7822_v37  ;;  %v14277_v37 = vsub.s32 0, %v14169_v8  ;;  %v9684_v8 = vld [vmem:[%s14493_s19] ss:$0 sm:$0xff] }
 0xd34   :  { %v9686_v57 = vld [vmem:[%s14496_s22] ss:$0 sm:$0xff] }
 0xd35   :  { %v7837_v30 = vmul.f32 %v9673_v14, %v7830_v19  ;;  %v7859_v18 = vrot.slane %v7854_v7, %v14277_v37 }
 0xd37   :  { %v7844_v28 = vadd.f32 %v9674_v22, %v7837_v30 }
 0xd39   :  { %v7845_v15 = vpack.c.bf16 %v7844_v28, %v7844_v28 }
 0xd3b   :  { %9683 = vmatmul.mubr.msk.bf16.vlgmr.msra.gmra.mxu0 %vm7906_vm11, %v7845_v15 }
 0xd3c   :  { %10817 = vmatprep.mubr.msk.bf16.mxu0 %vm11659_vm0, %v14596_v36  ;;  %10802 = vmatpush3.bf16.msra.mxu0 %v11586_v52  ;;  %v14617_v52 = vld [vmem:[#allocation25_spill] sm:$0xff] }
 0xd3d   :  { %10803 = vmatprep.subr.bf16.mxu0 %v14596_v36 }
 0xd40   :  { %10804 = vmatpush3.bf16.msra.mxu0 %v11587_v55 }
 0xd41   :  { %10805 = vmatprep.subr.bf16.mxu0 %v14596_v36 }
 0xd44   :  { %10806 = vmatpush3.bf16.msra.mxu0 %v11588_v21 }
 0xd45   :  { %10807 = vmatprep.subr.bf16.mxu0 %v14596_v36 }
 0xd48   :  { %10808 = vmatpush3.bf16.msra.mxu0 %v11589_v35  ;;  %v9697_v35 = vld [vmem:[%s14489_s15 + $0x1] ss:$0 sm:$0xff] }
 0xd49   :  { %10809 = vmatprep.subr.bf16.mxu0 %v14596_v36 }
 0xd4c   :  { %10810 = vmatpush3.bf16.msra.mxu0 %v11590_v24 }
 0xd4d   :  { %10811 = vmatprep.subr.bf16.mxu0 %v14596_v36 }
 0xd50   :  { %10812 = vmatpush3.bf16.msra.mxu0 %v11591_v45  ;;  %v9698_v45 = vld [vmem:[%s14490_s16 + $0x1] ss:$0 sm:$0xff] }
 0xd51   :  { %10813 = vmatprep.subr.bf16.mxu0 %v14596_v36 }
 0xd54   :  { %10814 = vmatpush3.bf16.msra.mxu0 %v11592_v41 }
 0xd55   :  { %10815 = vmatprep.subr.bf16.mxu0 %v14596_v36 }
 0xd58   :  { %10816 = vmatpush3.bf16.msra.mxu0 %v11593_v53 }
 0xdfb   :  { %v7944_v31 = vpop.f32.mrf.mxu0 }
 0xdfc   :  { %v7945_v34 = vadd.f32 %v7944_v31, %v7859_v18 }
 0xdfd   :  { %v7946_v26 = vpop.f32.mrf.mxu0 }
 0xdfe   :  { %v7947_v5 = vadd.f32 %v7946_v26, %v7863_v59  ;;  %v7951_v9 = vmul.f32 %v7945_v34, %v7945_v34 }
 0xdff   :  { %v7948_v61 = vpop.f32.mrf.mxu0 }
 0xe00   :  { %v7952_v11 = vmul.f32 %v7947_v5, %v7947_v5  ;;  %v7953_v25 = vmul.f32 %v7951_v9, %v7945_v34 }
 0xe01   :  { %v7949_v12 = vpop.f32.mrf.mxu0 }
 0xe02   :  { %v7954_v62 = vmul.f32 %v7952_v11, %v7947_v5  ;;  %v7955_v43 = vmul.f32 0.044715, %v7953_v25  ;;  %v14611_v11 = vld [vmem:[#allocation31_spill] sm:$0xff]  ;;  %v14612_v12 = vld [vmem:[#allocation30_spill] sm:$0xff] }
 0xe04   :  { %v7956_v47 = vmul.f32 0.044715, %v7954_v62  ;;  %v7957_v13 = vadd.f32 %v7955_v43, %v7945_v34  ;;  %v9707_v62 = vcombine.high %v14612_v12, %v14611_v11 }
 0xe06   :  { %v7958_v56 = vadd.f32 %v7956_v47, %v7947_v5  ;;  %v7959_v10 = vmul.f32 0.7978846, %v7957_v13  ;;  %8218 = vmatprep.subr.bf16.mxu1 %v9707_v62  ;;  %v14613_v47 = vld [vmem:[#allocation29_spill] sm:$0xff] }
 0xe08   :  { %v7960_v20 = vmul.f32 0.7978846, %v7958_v56  ;;  %v14614_v56 = vld [vmem:[#allocation28_spill] sm:$0xff] }
 0xe0a   :  { %11620 = vtanh.f32 %v7960_v20  ;;  %v9705_v20 = vcombine.high %v14614_v56, %v14613_v47 }
 0xe0b   :  { %11622 = vtanh.f32 %v7959_v10 }
 0xe17   :  { %v11621_v3 = vpop.eup %11620 }
 0xe18   :  { %v7964_v39 = vadd.f32 1.0, %v11621_v3  ;;  %v11623_v42 = vpop.eup %11622  ;;  %v9704_v3 = vcombine.low %v14614_v56, %v14613_v47 }
 0xe19   :  { %v7963_v16 = vadd.f32 1.0, %v11623_v42 }
 0xe1a   :  { %v7966_v58 = vmul.f32 0.5, %v7964_v39  ;;  %v14615_v39 = vld [vmem:[#allocation27_spill] sm:$0xff] }
 0xe1b   :  { %v7965_v32 = vmul.f32 0.5, %v7963_v16 }
 0xe1c   :  { %v7968_v0 = vmul.f32 %v7966_v58, %v7947_v5  ;;  %v14616_v58 = vld [vmem:[#allocation26_spill] sm:$0xff] }
 0xe1d   :  { %v7967_v38 = vmul.f32 %v7965_v32, %v7945_v34  ;;  %v9699_v34 = vld [vmem:[%s14492_s18 + $0x2] sm:$0x3] }
 0xe1e   :  { %v7971_v23 = vsel %vm1659_vm4, %v7968_v0, 0.0  ;;  %v8164_v9 = vrot.slane %v9699_v34, %v14261_v1 }
 0xe1f   :  { %7972 = vadd.xlane.f32.xlu1 %v7971_v23  ;;  %v9702_v23 = vcombine.low %v14616_v58, %v14615_v39 }
 0xea8   :  { %v7973_v60 = vpop.xlane.xlu1 %7972 }
 0xea9   :  { %v7975_v46 = vmul.f32 0.0078125, %v7973_v60  ;;  %v14618_v60 = vld [vmem:[#allocation24_spill] sm:$0xff] }
 0xeab   :  { %v7976_v48 = vsub.f32 %v7968_v0, %v7975_v46  ;;  %v9703_v0 = vcombine.high %v14616_v58, %v14615_v39  ;;  %v9701_v46 = vcombine.high %v14618_v60, %v14617_v52 }
 0xead   :  { %v7977_v49 = vmul.f32 %v7976_v48, %v7976_v48 }
 0xeaf   :  { %v7978_v6 = vsel %vm1659_vm4, %v7977_v49, 0.0 }
 0xeb0   :  { %7979 = vadd.xlane.f32.xlu1 %v7978_v6 }
 0xf39   :  { %v7980_v33 = vpop.xlane.xlu1 %7979 }
 0xf3a   :  { %v7981_v54 = vmul.f32 0.0078125, %v7980_v33 }
 0xf3c   :  { %v7982_v29 = vadd.f32 1e-05, %v7981_v54 }
 0xf3e   :  { %11624 = vrsqrt.f32 %v7982_v29 }
 0xf4b   :  { %v11625_v17 = vpop.eup %11624 }
 0xf4c   :  { %v7984_v40 = vmul.f32 %v11625_v17, %v7976_v48  ;;  %v9700_v48 = vcombine.low %v14618_v60, %v14617_v52  ;;  %v9712_v60 = vld [vmem:[%s14494_s20 + $0x1] ss:$0 sm:$0xff] }
 0xf4e   :  { %v7991_v4 = vmul.f32 %v9684_v8, %v7984_v40 }
 0xf50   :  { %v7998_v51 = vadd.f32 %v9685_v2, %v7991_v4 }
 0xf52   :  { %v7999_v27 = vmul.f32 %v7998_v51, %v7967_v38  ;;  %v11594_v38 = vld [vmem:[#allocation6 + $0x78] sm:$0xff]  }
 0xf54   :  { %v8000_v63 = vpack.c.bf16 %v7999_v27, %v7999_v27 }
 0xf56   :  { %10818 = vmatmul.mubr.bf16.vlgmr.msra.gmra.mxu0 %v8000_v63 }
 0xf57   :  { %8545 = vmatprep.mubr.bf16.mxu0 %v14595_v44 }
0x1016   :  { %v8106_v14 = vpop.f32.mrf.mxu0 }
0x1017   :  { %v8107_v19 = vadd.f32 %v9686_v57, %v8106_v14 }
0x1018   :  { %v10819_v22 = vpop.f32.mrf.mxu0 }
0x1019   :  { %v14291_v30 = vadd.f32 %v8107_v19, %v14228_v50  ;;  %v9706_v50 = vcombine.low %v14612_v12, %v14611_v11  ;;  %v11595_v19 = vld [vmem:[#allocation6 + $0x70] sm:$0xff]   ;;  %v11596_v22 = vld [vmem:[#allocation6 + $0x68] sm:$0xff]  }
0x101a   :  { %v8109_v28 = vpop.f32.mrf.mxu0 }
0x101b   :  { %v8117_v15 = vsel %vm7816_vm10, %v14291_v30, 0.0  ;;  %8219 = vmatpush1.bf16.msra.mxu1 %v9706_v50  ;;  %v11597_v28 = vld [vmem:[#allocation6 + $0x60] sm:$0xff]  }
0x101c   :  { %8118 = vadd.xlane.f32.xlu0 %v8117_v15  ;;  %v10820_v7 = vpop.f32.mrf.mxu0  ;;  %8220 = vmatprep.subr.bf16.mxu1 %v9705_v20  ;;  %v11598_v15 = vld [vmem:[#allocation6 + $0x58] sm:$0xff]  }
0x101d   :  { %v11599_v7 = vld [vmem:[#allocation6 + $0x50] sm:$0xff]  }
0x101f   :  { %8221 = vmatpush1.bf16.msra.mxu1 %v9704_v3 }
0x1020   :  { %8222 = vmatprep.subr.bf16.mxu1 %v9703_v0  ;;  %v9711_v0 = vld [vmem:[%s14493_s19 + $0x1] ss:$0 sm:$0xff] }
0x1023   :  { %8223 = vmatpush1.bf16.msra.mxu1 %v9702_v23 }
0x1024   :  { %8224 = vmatprep.subr.bf16.mxu1 %v9701_v46 }
0x1027   :  { %8225 = vmatpush1.bf16.msra.mxu1 %v9700_v48 }
0x1028   :  { %10821 = vmatprep.subr.bf16.mxu1 %v14596_v36 }
0x10a5   :  { %v8119_v59 = vpop.xlane.xlu0 %8118 }
0x10a6   :  { %v8120_v31 = vmul.f32 0.015625, %v8119_v59  ;;  %v11600_v59 = vld [vmem:[#allocation6 + $0x48] sm:$0xff]  }
0x10a8   :  { %v8121_v26 = vsub.f32 %v14291_v30, %v8120_v31  ;;  %v11601_v31 = vld [vmem:[#allocation6 + $0x40] sm:$0xff]  }
0x10aa   :  { %v8122_v5 = vmul.f32 %v8121_v26, %v8121_v26 }
0x10ac   :  { %v8123_v61 = vsel %vm7816_vm10, %v8122_v5, 0.0 }
0x10ad   :  { %8124 = vadd.xlane.f32.xlu1 %v8123_v61 }
0x1136   :  { %v8125_v49 = vpop.xlane.xlu1 %8124 }
0x1137   :  { %v8126_v6 = vmul.f32 0.015625, %v8125_v49 }
0x1139   :  { %v8127_v55 = vadd.f32 1e-05, %v8126_v6 }
0x113b   :  { %11626 = vrsqrt.f32 %v8127_v55 }
0x1148   :  { %v11627_v21 = vpop.eup %11626 }
0x1149   :  { %v8129_v24 = vmul.f32 %v11627_v21, %v8121_v26  ;;  %v8160_v26 = vrot.slane %v9699_v34, %v14277_v37  ;;  %v9714_v21 = vld [vmem:[%s14496_s22 + $0x1] ss:$0 sm:$0xff] }
0x114b   :  { %v8136_v41 = vmul.f32 %v9697_v35, %v8129_v24 }
0x114d   :  { %v8143_v53 = vadd.f32 %v9698_v45, %v8136_v41 }
0x114f   :  { %v8144_v18 = vpack.c.bf16 %v8143_v53, %v8143_v53 }
0x1151   :  { %9708 = vmatmul.mubr.msk.bf16.vlgmr.msra.gmra.mxu1 %vm7906_vm11, %v8144_v18 }
0x1152   :  { %10837 = vmatprep.mubr.msk.bf16.mxu1 %vm11659_vm0, %v14596_v36  ;;  %10822 = vmatpush3.bf16.msra.mxu1 %v11594_v38  ;;  %v14626_v38 = vld [vmem:[#allocation32_spill] sm:$0xff] }
0x1153   :  { %10823 = vmatprep.subr.bf16.mxu1 %v14596_v36 }
0x1156   :  { %10824 = vmatpush3.bf16.msra.mxu1 %v11595_v19 }
0x1157   :  { %10825 = vmatprep.subr.bf16.mxu1 %v14596_v36 }
0x115a   :  { %10826 = vmatpush3.bf16.msra.mxu1 %v11596_v22  ;;  %v9725_v22 = vld [vmem:[%s14489_s15 + $0x2] ss:$0 sm:$0xff] }
0x115b   :  { %10827 = vmatprep.subr.bf16.mxu1 %v14596_v36 }
0x115e   :  { %10828 = vmatpush3.bf16.msra.mxu1 %v11597_v28 }
0x115f   :  { %10829 = vmatprep.subr.bf16.mxu1 %v14596_v36 }
0x1162   :  { %10830 = vmatpush3.bf16.msra.mxu1 %v11598_v15  ;;  %v9726_v15 = vld [vmem:[%s14490_s16 + $0x2] ss:$0 sm:$0xff] }
0x1163   :  { %10831 = vmatprep.subr.bf16.mxu1 %v14596_v36 }
0x1166   :  { %10832 = vmatpush3.bf16.msra.mxu1 %v11599_v7 }
0x1167   :  { %10833 = vmatprep.subr.bf16.mxu1 %v14596_v36 }
0x116a   :  { %10834 = vmatpush3.bf16.msra.mxu1 %v11600_v59 }
0x116b   :  { %10835 = vmatprep.subr.bf16.mxu1 %v14596_v36 }
0x116e   :  { %10836 = vmatpush3.bf16.msra.mxu1 %v11601_v31 }
0x1211   :  { %v8244_v25 = vpop.f32.mrf.mxu1 }
0x1212   :  { %v8245_v5 = vadd.f32 %v8244_v25, %v8160_v26  ;;  %v9727_v26 = vld [vmem:[%s14492_s18 + $0x4] sm:$0x3] }
0x1213   :  { %v8246_v43 = vpop.f32.mrf.mxu1 }
0x1214   :  { %v8247_v13 = vadd.f32 %v8246_v43, %v8164_v9  ;;  %v8251_v61 = vmul.f32 %v8245_v5, %v8245_v5 }
0x1215   :  { %v8248_v10 = vpop.f32.mrf.mxu1 }
0x1216   :  { %v8252_v33 = vmul.f32 %v8247_v13, %v8247_v13  ;;  %v8253_v11 = vmul.f32 %v8251_v61, %v8245_v5  ;;  %v14619_v10 = vld [vmem:[#allocation39_spill] sm:$0xff] }
0x1217   :  { %v8249_v54 = vpop.f32.mrf.mxu1 }
0x1218   :  { %v8254_v29 = vmul.f32 %v8252_v33, %v8247_v13  ;;  %v8255_v12 = vmul.f32 0.044715, %v8253_v11  ;;  %v14620_v33 = vld [vmem:[#allocation38_spill] sm:$0xff] }
0x1219   :  { %v9735_v54 = vcombine.high %v14620_v33, %v14619_v10 }
0x121a   :  { %v8256_v42 = vmul.f32 0.044715, %v8254_v29  ;;  %v8257_v62 = vadd.f32 %v8255_v12, %v8245_v5  ;;  %v14621_v29 = vld [vmem:[#allocation37_spill] sm:$0xff] }
0x121b   :  { %8521 = vmatprep.subr.bf16.mxu0 %v9735_v54 }
0x121c   :  { %v8258_v16 = vadd.f32 %v8256_v42, %v8247_v13  ;;  %v8259_v50 = vmul.f32 0.7978846, %v8257_v62  ;;  %v14622_v42 = vld [vmem:[#allocation36_spill] sm:$0xff] }
0x121e   :  { %v8260_v17 = vmul.f32 0.7978846, %v8258_v16  ;;  %v9733_v16 = vcombine.high %v14622_v42, %v14621_v29 }
0x1220   :  { %11628 = vtanh.f32 %v8260_v17  ;;  %v9732_v17 = vcombine.low %v14622_v42, %v14621_v29 }
0x1221   :  { %11630 = vtanh.f32 %v8259_v50 }
0x122d   :  { %v11629_v8 = vpop.eup %11628 }
0x122e   :  { %v8264_v32 = vadd.f32 1.0, %v11629_v8  ;;  %v11631_v3 = vpop.eup %11630  ;;  %v14623_v8 = vld [vmem:[#allocation35_spill] sm:$0xff] }
0x122f   :  { %v8263_v39 = vadd.f32 1.0, %v11631_v3 }
0x1230   :  { %v8266_v40 = vmul.f32 0.5, %v8264_v32  ;;  %v14624_v32 = vld [vmem:[#allocation34_spill] sm:$0xff] }
0x1231   :  { %v8265_v23 = vmul.f32 0.5, %v8263_v39 }
0x1232   :  { %v8268_v2 = vmul.f32 %v8266_v40, %v8247_v13  ;;  %v9731_v40 = vcombine.high %v14624_v32, %v14623_v8 }
0x1233   :  { %v8267_v48 = vmul.f32 %v8265_v23, %v8245_v5  ;;  %v8467_v5 = vrot.slane %v9727_v26, %v14261_v1 }
0x1234   :  { %v8273_v4 = vsel %vm1659_vm4, %v8268_v2, 0.0 }
0x1235   :  { %8274 = vadd.xlane.f32.xlu0 %v8273_v4  ;;  %v14625_v4 = vld [vmem:[#allocation33_spill] sm:$0xff] }
0x12be   :  { %v8275_v51 = vpop.xlane.xlu0 %8274 }
0x12bf   :  { %v8276_v27 = vmul.f32 0.0078125, %v8275_v51  ;;  %v9729_v51 = vcombine.high %v14626_v38, %v14625_v4 }
0x12c1   :  { %v8277_v63 = vsub.f32 %v8268_v2, %v8276_v27  ;;  %v9730_v2 = vcombine.low %v14624_v32, %v14623_v8  ;;  %v9728_v27 = vcombine.low %v14626_v38, %v14625_v4  ;;  %v9739_v32 = vld [vmem:[%s14493_s19 + $0x2] ss:$0 sm:$0xff] }
0x12c2   :  { %v9740_v4 = vld [vmem:[%s14494_s20 + $0x2] ss:$0 sm:$0xff] }
0x12c3   :  { %v8278_v57 = vmul.f32 %v8277_v63, %v8277_v63 }
0x12c5   :  { %v8279_v14 = vsel %vm1659_vm4, %v8278_v57, 0.0 }
0x12c6   :  { %8280 = vadd.xlane.f32.xlu1 %v8279_v14 }
0x134f   :  { %v8281_v47 = vpop.xlane.xlu1 %8280 }
0x1350   :  { %v8282_v56 = vmul.f32 0.0078125, %v8281_v47 }
0x1352   :  { %v8283_v20 = vadd.f32 1e-05, %v8282_v56 }
0x1354   :  { %11632 = vrsqrt.f32 %v8283_v20 }
0x1361   :  { %v11633_v58 = vpop.eup %11632 }
0x1362   :  { %v8285_v52 = vmul.f32 %v11633_v58, %v8277_v63 }
0x1364   :  { %v8292_v46 = vmul.f32 %v9711_v0, %v8285_v52 }
0x1366   :  { %v8299_v49 = vadd.f32 %v9712_v60, %v8292_v46  ;;  %v11602_v46 = vld [vmem:[#allocation6 + $0xb8] sm:$0xff]  }
0x1368   :  { %v8300_v6 = vmul.f32 %v8299_v49, %v8267_v48 }
0x136a   :  { %v8301_v55 = vpack.c.bf16 %v8300_v6, %v8300_v6 }
0x136c   :  { %10838 = vmatmul.mubr.bf16.vlgmr.msra.gmra.mxu1 %v8301_v55 }
0x136d   :  { %8848 = vmatprep.mubr.bf16.mxu1 %v14595_v44 }
0x142c   :  { %v8409_v35 = vpop.f32.mrf.mxu1 }
0x142d   :  { %v8410_v24 = vadd.f32 %v9714_v21, %v8409_v35  ;;  %v11603_v35 = vld [vmem:[#allocation6 + $0xb0] sm:$0xff]  }
0x142e   :  { %v10839_v45 = vpop.f32.mrf.mxu1 }
0x142f   :  { %v14348_v41 = vadd.f32 %v8410_v24, %v14291_v30  ;;  %v9734_v30 = vcombine.low %v14620_v33, %v14619_v10  ;;  %v11604_v24 = vld [vmem:[#allocation6 + $0xa8] sm:$0xff]   ;;  %v11605_v45 = vld [vmem:[#allocation6 + $0xa0] sm:$0xff]  }
0x1430   :  { %v8412_v53 = vpop.f32.mrf.mxu1 }
0x1431   :  { %v8420_v18 = vsel %vm7816_vm10, %v14348_v41, 0.0  ;;  %8522 = vmatpush1.bf16.msra.mxu0 %v9734_v30  ;;  %v11606_v53 = vld [vmem:[#allocation6 + $0x98] sm:$0xff]  }
0x1432   :  { %8421 = vadd.xlane.f32.xlu0 %v8420_v18  ;;  %v10840_v34 = vpop.f32.mrf.mxu1  ;;  %8523 = vmatprep.subr.bf16.mxu0 %v9733_v16  ;;  %v11607_v18 = vld [vmem:[#allocation6 + $0x90] sm:$0xff]  }
0x1433   :  { %v11608_v34 = vld [vmem:[#allocation6 + $0x88] sm:$0xff]  }
0x1435   :  { %8524 = vmatpush1.bf16.msra.mxu0 %v9732_v17 }
0x1436   :  { %8525 = vmatprep.subr.bf16.mxu0 %v9731_v40 }
0x1439   :  { %8526 = vmatpush1.bf16.msra.mxu0 %v9730_v2 }
0x143a   :  { %8527 = vmatprep.subr.bf16.mxu0 %v9729_v51 }
0x143d   :  { %8528 = vmatpush1.bf16.msra.mxu0 %v9728_v27 }
0x143e   :  { %10841 = vmatprep.subr.bf16.mxu0 %v14596_v36 }
0x14bb   :  { %v8422_v9 = vpop.xlane.xlu0 %8421 }
0x14bc   :  { %v8423_v25 = vmul.f32 0.015625, %v8422_v9  ;;  %v11609_v9 = vld [vmem:[#allocation6 + $0x80] sm:$0xff]  }
0x14be   :  { %v8424_v44 = vsub.f32 %v14348_v41, %v8423_v25  ;;  %v8463_v25 = vrot.slane %v9727_v26, %v14277_v37 }
0x14c0   :  { %v8425_v43 = vmul.f32 %v8424_v44, %v8424_v44 }
0x14c2   :  { %v8426_v13 = vsel %vm7816_vm10, %v8425_v43, 0.0 }
0x14c3   :  { %8427 = vadd.xlane.f32.xlu1 %v8426_v13 }
0x154c   :  { %v8428_v63 = vpop.xlane.xlu1 %8427 }
0x154d   :  { %v8429_v57 = vmul.f32 0.015625, %v8428_v63 }
0x154f   :  { %v8430_v14 = vadd.f32 1e-05, %v8429_v57 }
0x1551   :  { %11634 = vrsqrt.f32 %v8430_v14  ;;  %v9742_v14 = vld [vmem:[%s14496_s22 + $0x2] ss:$0 sm:$0xff] }
0x155e   :  { %v11635_v19 = vpop.eup %11634 }
0x155f   :  { %v8432_v28 = vmul.f32 %v11635_v19, %v8424_v44 }
0x1561   :  { %v8439_v7 = vmul.f32 %v9725_v22, %v8432_v28 }
0x1563   :  { %v8446_v59 = vadd.f32 %v9726_v15, %v8439_v7 }
0x1565   :  { %v8447_v31 = vpack.c.bf16 %v8446_v59, %v8446_v59 }
0x1567   :  { %9736 = vmatmul.mubr.msk.bf16.vlgmr.msra.gmra.mxu0 %vm7906_vm11, %v8447_v31 }
0x1568   :  { %10857 = vmatprep.mubr.msk.bf16.mxu0 %vm11659_vm0, %v14596_v36  ;;  %10842 = vmatpush3.bf16.msra.mxu0 %v11602_v46  ;;  %v14634_v46 = vld [vmem:[#allocation40_spill] sm:$0xff] }
0x1569   :  { %10843 = vmatprep.subr.bf16.mxu0 %v14596_v36 }
0x156c   :  { %10844 = vmatpush3.bf16.msra.mxu0 %v11603_v35 }
0x156d   :  { %10845 = vmatprep.subr.bf16.mxu0 %v14596_v36 }
0x1570   :  { %10846 = vmatpush3.bf16.msra.mxu0 %v11604_v24  ;;  %v9753_v24 = vld [vmem:[%s14489_s15 + $0x3] ss:$0 sm:$0xff] }
0x1571   :  { %10847 = vmatprep.subr.bf16.mxu0 %v14596_v36 }
0x1574   :  { %10848 = vmatpush3.bf16.msra.mxu0 %v11605_v45 }
0x1575   :  { %10849 = vmatprep.subr.bf16.mxu0 %v14596_v36 }
0x1578   :  { %10850 = vmatpush3.bf16.msra.mxu0 %v11606_v53  ;;  %v9754_v53 = vld [vmem:[%s14490_s16 + $0x3] ss:$0 sm:$0xff] }
0x1579   :  { %10851 = vmatprep.subr.bf16.mxu0 %v14596_v36 }
0x157c   :  { %10852 = vmatpush3.bf16.msra.mxu0 %v11607_v18 }
0x157d   :  { %10853 = vmatprep.subr.bf16.mxu0 %v14596_v36 }
0x1580   :  { %10854 = vmatpush3.bf16.msra.mxu0 %v11608_v34 }
0x1581   :  { %10855 = vmatprep.subr.bf16.mxu0 %v14596_v36 }
0x1584   :  { %10856 = vmatpush3.bf16.msra.mxu0 %v11609_v9 }
0x1627   :  { %v8547_v61 = vpop.f32.mrf.mxu0 }
0x1628   :  { %v8548_v44 = vadd.f32 %v8547_v61, %v8463_v25  ;;  %v9755_v25 = vld [vmem:[%s14492_s18 + $0x6] sm:$0x3] }
0x1629   :  { %v8549_v11 = vpop.f32.mrf.mxu0 }
0x162a   :  { %v8550_v12 = vadd.f32 %v8549_v11, %v8467_v5  ;;  %v8554_v43 = vmul.f32 %v8548_v44, %v8548_v44 }
0x162b   :  { %v8551_v62 = vpop.f32.mrf.mxu0 }
0x162c   :  { %v8555_v50 = vmul.f32 %v8550_v12, %v8550_v12  ;;  %v8556_v13 = vmul.f32 %v8554_v43, %v8548_v44  ;;  %v14627_v62 = vld [vmem:[#allocation47_spill] sm:$0xff] }
0x162d   :  { %v8552_v47 = vpop.f32.mrf.mxu0 }
0x162e   :  { %v8557_v56 = vmul.f32 %v8555_v50, %v8550_v12  ;;  %v8558_v10 = vmul.f32 0.044715, %v8556_v13  ;;  %v14628_v50 = vld [vmem:[#allocation46_spill] sm:$0xff] }
0x162f   :  { %v9763_v47 = vcombine.high %v14628_v50, %v14627_v62 }
0x1630   :  { %v8559_v20 = vmul.f32 0.044715, %v8557_v56  ;;  %v8560_v33 = vadd.f32 %v8558_v10, %v8548_v44  ;;  %v14629_v56 = vld [vmem:[#allocation45_spill] sm:$0xff] }
0x1631   :  { %8824 = vmatprep.subr.bf16.mxu1 %v9763_v47 }
0x1632   :  { %v8561_v3 = vadd.f32 %v8559_v20, %v8550_v12  ;;  %v8562_v54 = vmul.f32 0.7978846, %v8560_v33  ;;  %v14630_v20 = vld [vmem:[#allocation44_spill] sm:$0xff] }
0x1634   :  { %v8563_v39 = vmul.f32 0.7978846, %v8561_v3  ;;  %v9761_v3 = vcombine.high %v14630_v20, %v14629_v56 }
0x1636   :  { %11636 = vtanh.f32 %v8563_v39  ;;  %v9760_v39 = vcombine.low %v14630_v20, %v14629_v56 }
0x1637   :  { %11638 = vtanh.f32 %v8562_v54 }
0x1643   :  { %v11637_v58 = vpop.eup %11636 }
0x1644   :  { %v8567_v0 = vadd.f32 1.0, %v11637_v58  ;;  %v11639_v16 = vpop.eup %11638  ;;  %v14631_v58 = vld [vmem:[#allocation43_spill] sm:$0xff] }
0x1645   :  { %v8566_v17 = vadd.f32 1.0, %v11639_v16 }
0x1646   :  { %v8569_v23 = vmul.f32 0.5, %v8567_v0  ;;  %v14632_v0 = vld [vmem:[#allocation42_spill] sm:$0xff] }
0x1647   :  { %v8568_v40 = vmul.f32 0.5, %v8566_v17 }
0x1648   :  { %v8571_v52 = vmul.f32 %v8569_v23, %v8550_v12  ;;  %v9759_v23 = vcombine.high %v14632_v0, %v14631_v58 }
0x1649   :  { %v8570_v51 = vmul.f32 %v8568_v40, %v8548_v44  ;;  %v8770_v44 = vrot.slane %v9755_v25, %v14261_v1 }
0x164a   :  { %v8576_v60 = vsel %vm1659_vm4, %v8571_v52, 0.0 }
0x164b   :  { %8577 = vadd.xlane.f32.xlu0 %v8576_v60  ;;  %v14633_v60 = vld [vmem:[#allocation41_spill] sm:$0xff] }
0x16d4   :  { %v8578_v48 = vpop.xlane.xlu0 %8577 }
0x16d5   :  { %v8579_v49 = vmul.f32 0.0078125, %v8578_v48  ;;  %v9757_v48 = vcombine.high %v14634_v46, %v14633_v60 }
0x16d7   :  { %v8580_v6 = vsub.f32 %v8571_v52, %v8579_v49  ;;  %v9758_v52 = vcombine.low %v14632_v0, %v14631_v58  ;;  %v9756_v49 = vcombine.low %v14634_v46, %v14633_v60  ;;  %v9768_v0 = vld [vmem:[%s14494_s20 + $0x3] ss:$0 sm:$0xff] }
0x16d9   :  { %v8581_v55 = vmul.f32 %v8580_v6, %v8580_v6 }
0x16db   :  { %v8582_v21 = vsel %vm1659_vm4, %v8581_v55, 0.0 }
0x16dc   :  { %8583 = vadd.xlane.f32.xlu1 %v8582_v21 }
0x1765   :  { %v8584_v30 = vpop.xlane.xlu1 %8583 }
0x1766   :  { %v8585_v29 = vmul.f32 0.0078125, %v8584_v30 }
0x1768   :  { %v8586_v42 = vadd.f32 1e-05, %v8585_v29 }
0x176a   :  { %11640 = vrsqrt.f32 %v8586_v42 }
0x1777   :  { %v11641_v8 = vpop.eup %11640 }
0x1778   :  { %v8588_v2 = vmul.f32 %v11641_v8, %v8580_v6 }
0x177a   :  { %v8595_v38 = vmul.f32 %v9739_v32, %v8588_v2 }
0x177c   :  { %v8602_v27 = vadd.f32 %v9740_v4, %v8595_v38  ;;  %v11610_v38 = vld [vmem:[#allocation6 + $0xf8] sm:$0xff]  }
0x177e   :  { %v8603_v63 = vmul.f32 %v8602_v27, %v8570_v51 }
0x1780   :  { %v8604_v57 = vpack.c.bf16 %v8603_v63, %v8603_v63 }
0x1782   :  { %10858 = vmatmul.mubr.bf16.vlgmr.msra.gmra.mxu0 %v8604_v57 }
0x1842   :  { %v8712_v19 = vpop.f32.mrf.mxu0 }
0x1843   :  { %v8713_v22 = vadd.f32 %v9742_v14, %v8712_v19  ;;  %v11611_v14 = vld [vmem:[#allocation6 + $0xf0] sm:$0xff]   ;;  %v11612_v19 = vld [vmem:[#allocation6 + $0xe8] sm:$0xff]  }
0x1844   :  { %v10859_v28 = vpop.f32.mrf.mxu0 }
0x1845   :  { %v14404_v15 = vadd.f32 %v8713_v22, %v14348_v41  ;;  %v9762_v41 = vcombine.low %v14628_v50, %v14627_v62  ;;  %v11613_v22 = vld [vmem:[#allocation6 + $0xe0] sm:$0xff]   ;;  %v11614_v28 = vld [vmem:[#allocation6 + $0xd8] sm:$0xff]  }
0x1846   :  { %v8715_v7 = vpop.f32.mrf.mxu0 }
0x1847   :  { %v8723_v59 = vsel %vm7816_vm10, %v14404_v15, 0.0  ;;  %8825 = vmatpush1.bf16.msra.mxu1 %v9762_v41  ;;  %v11615_v7 = vld [vmem:[#allocation6 + $0xd0] sm:$0xff]  }
0x1848   :  { %8724 = vadd.xlane.f32.xlu0 %v8723_v59  ;;  %v10860_v31 = vpop.f32.mrf.mxu0  ;;  %8826 = vmatprep.subr.bf16.mxu1 %v9761_v3  ;;  %v11616_v59 = vld [vmem:[#allocation6 + $0xc8] sm:$0xff]  }
0x1849   :  { %v11617_v31 = vld [vmem:[#allocation6 + $0xc0] sm:$0xff]  }
0x184b   :  { %8827 = vmatpush1.bf16.msra.mxu1 %v9760_v39 }
0x184c   :  { %8828 = vmatprep.subr.bf16.mxu1 %v9759_v23 }
0x184f   :  { %8829 = vmatpush1.bf16.msra.mxu1 %v9758_v52 }
0x1850   :  { %8830 = vmatprep.subr.bf16.mxu1 %v9757_v48 }
0x1853   :  { %8831 = vmatpush1.bf16.msra.mxu1 %v9756_v49  ;;  %v9770_v49 = vld [vmem:[%s14496_s22 + $0x3] ss:$0 sm:$0xff] }
0x1854   :  { %10861 = vmatprep.subr.bf16.mxu1 %v14596_v36 }
0x18d1   :  { %v8725_v26 = vpop.xlane.xlu0 %8724 }
0x18d2   :  { %v8726_v5 = vmul.f32 0.015625, %v8725_v26  ;;  %v8766_v26 = vrot.slane %v9755_v25, %v14277_v37 }
0x18d4   :  { %v8727_v61 = vsub.f32 %v14404_v15, %v8726_v5 }
0x18d6   :  { %v8728_v11 = vmul.f32 %v8727_v61, %v8727_v61 }
0x18d8   :  { %v8729_v12 = vsel %vm7816_vm10, %v8728_v11, 0.0 }
0x18d9   :  { %8730 = vadd.xlane.f32.xlu1 %v8729_v12 }
0x1962   :  { %v8731_v6 = vpop.xlane.xlu1 %8730 }
0x1963   :  { %v8732_v55 = vmul.f32 0.015625, %v8731_v6 }
0x1965   :  { %v8733_v21 = vadd.f32 1e-05, %v8732_v55 }
0x1967   :  { %11642 = vrsqrt.f32 %v8733_v21 }
0x1974   :  { %v11643_v35 = vpop.eup %11642 }
0x1975   :  { %v8735_v45 = vmul.f32 %v11643_v35, %v8727_v61 }
0x1977   :  { %v8742_v18 = vmul.f32 %v9753_v24, %v8735_v45 }
0x1979   :  { %v8749_v34 = vadd.f32 %v9754_v53, %v8742_v18 }
0x197b   :  { %v8750_v9 = vpack.c.bf16 %v8749_v34, %v8749_v34 }
0x197d   :  { %9764 = vmatmul.mubr.msk.bf16.vlgmr.msra.gmra.mxu1 %vm7906_vm11, %v8750_v9 }
0x197e   :  { %10877 = vmatprep.mubr.msk.bf16.mxu1 %vm11659_vm0, %v14596_v36  ;;  %10862 = vmatpush3.bf16.msra.mxu1 %v11610_v38 }
0x197f   :  { %10863 = vmatprep.subr.bf16.mxu1 %v14596_v36 }
0x1982   :  { %10864 = vmatpush3.bf16.msra.mxu1 %v11611_v14 }
0x1983   :  { %10865 = vmatprep.subr.bf16.mxu1 %v14596_v36 }
0x1986   :  { %10866 = vmatpush3.bf16.msra.mxu1 %v11612_v19 }
0x1987   :  { %10867 = vmatprep.subr.bf16.mxu1 %v14596_v36 }
0x198a   :  { %10868 = vmatpush3.bf16.msra.mxu1 %v11613_v22 }
0x198b   :  { %10869 = vmatprep.subr.bf16.mxu1 %v14596_v36 }
0x198e   :  { %10870 = vmatpush3.bf16.msra.mxu1 %v11614_v28 }
0x198f   :  { %10871 = vmatprep.subr.bf16.mxu1 %v14596_v36 }
0x1992   :  { %10872 = vmatpush3.bf16.msra.mxu1 %v11615_v7 }
0x1993   :  { %10873 = vmatprep.subr.bf16.mxu1 %v14596_v36 }
0x1996   :  { %10874 = vmatpush3.bf16.msra.mxu1 %v11616_v59 }
0x1997   :  { %10875 = vmatprep.subr.bf16.mxu1 %v14596_v36  ;;  %v9767_v36 = vld [vmem:[%s14493_s19 + $0x3] ss:$0 sm:$0xff] }
0x199a   :  { %10876 = vmatpush3.bf16.msra.mxu1 %v11617_v31 }
0x1a3d   :  { %v8850_v43 = vpop.f32.mrf.mxu1 }
0x1a3e   :  { %v8851_v5 = vadd.f32 %v8850_v43, %v8766_v26 }
0x1a3f   :  { %v8852_v13 = vpop.f32.mrf.mxu1 }
0x1a40   :  { %v8853_v10 = vadd.f32 %v8852_v13, %v8770_v44  ;;  %v8857_v61 = vmul.f32 %v8851_v5, %v8851_v5 }
0x1a41   :  { %v8854_v33 = vpop.f32.mrf.mxu1 }
0x1a42   :  { %v8858_v54 = vmul.f32 %v8853_v10, %v8853_v10  ;;  %v8859_v11 = vmul.f32 %v8857_v61, %v8851_v5 }
0x1a43   :  { %v8855_v30 = vpop.f32.mrf.mxu1 }
0x1a44   :  { %v8860_v29 = vmul.f32 %v8858_v54, %v8853_v10  ;;  %v8861_v12 = vmul.f32 0.044715, %v8859_v11  ;;  %v9780_v30 = vld [vmem:[%s14498_s24] ss:$0 sm:$0xff] }
0x1a46   :  { %v8862_v42 = vmul.f32 0.044715, %v8860_v29  ;;  %v8863_v62 = vadd.f32 %v8861_v12, %v8851_v5 }
0x1a48   :  { %v8864_v16 = vadd.f32 %v8862_v42, %v8853_v10  ;;  %v8865_v50 = vmul.f32 0.7978846, %v8863_v62  ;;  %v9781_v42 = vld [vmem:[%s14499_s25] ss:$0 sm:$0xff] }
0x1a4a   :  { %v8866_v17 = vmul.f32 0.7978846, %v8864_v16 }
0x1a4c   :  { %11644 = vtanh.f32 %v8866_v17 }
0x1a4d   :  { %11646 = vtanh.f32 %v8865_v50 }
0x1a59   :  { %v11645_v8 = vpop.eup %11644 }
0x1a5a   :  { %v8870_v32 = vadd.f32 1.0, %v11645_v8  ;;  %v11647_v20 = vpop.eup %11646 }
0x1a5b   :  { %v8869_v3 = vadd.f32 1.0, %v11647_v20 }
0x1a5c   :  { %v8872_v40 = vmul.f32 0.5, %v8870_v32  ;;  %v9782_v32 = vld [vmem:[#allocation9] ss:$0 sm:$0xff] }
0x1a5d   :  { %v8871_v58 = vmul.f32 0.5, %v8869_v3 }
0x1a5e   :  { %v8874_v2 = vmul.f32 %v8872_v40, %v8853_v10 }
0x1a5f   :  { %v8873_v52 = vmul.f32 %v8871_v58, %v8851_v5 }
0x1a60   :  { %v8879_v4 = vsel %vm1659_vm4, %v8874_v2, 0.0 }
0x1a61   :  { %8880 = vadd.xlane.f32.xlu0 %v8879_v4 }
0x1aea   :  { %v8881_v1 = vpop.xlane.xlu0 %8880 }
0x1aeb   :  { %v8882_v51 = vmul.f32 0.0078125, %v8881_v1 }
0x1aed   :  { %v8883_v27 = vsub.f32 %v8874_v2, %v8882_v51 }
0x1aef   :  { %v8884_v63 = vmul.f32 %v8883_v27, %v8883_v27 }
0x1af1   :  { %v8885_v57 = vsel %vm1659_vm4, %v8884_v63, 0.0 }
0x1af2   :  { %8886 = vadd.xlane.f32.xlu1 %v8885_v57 }
0x1b7b   :  { %v8887_v47 = vpop.xlane.xlu1 %8886 }
0x1b7c   :  { %v8888_v41 = vmul.f32 0.0078125, %v8887_v47 }
0x1b7e   :  { %v8889_v56 = vadd.f32 1e-05, %v8888_v41 }
0x1b80   :  { %11648 = vrsqrt.f32 %v8889_v56 }
0x1b8d   :  { %v11649_v39 = vpop.eup %11648 }
0x1b8e   :  { %v8891_v37 = vmul.f32 %v11649_v39, %v8883_v27 }
0x1b90   :  { %v8898_v23 = vmul.f32 %v9767_v36, %v8891_v37 }
0x1b92   :  { %v8905_v60 = vadd.f32 %v9768_v0, %v8898_v23 }
0x1b94   :  { %v8906_v46 = vmul.f32 %v8905_v60, %v8873_v52 }
0x1b96   :  { %v8907_v48 = vpack.c.bf16 %v8906_v46, %v8906_v46 }
0x1b98   :  { %10878 = vmatmul.mubr.bf16.vlgmr.msra.gmra.mxu1 %v8907_v48 }
0x1c58   :  { %v9015_v6 = vpop.f32.mrf.mxu1 }
0x1c59   :  { %v9016_v55 = vadd.f32 %v9770_v49, %v9015_v6 }
0x1c5a   :  { %v10879_v21 = vpop.f32.mrf.mxu1 }
0x1c5b   :  { %v9021_v35 = vadd.f32 %v9016_v55, %v14404_v15  ;;  %v9779_v15 = vld [vmem:[%s14497_s23] ss:$0 sm:$0xff] }
0x1c5c   :  { %v9018_v24 = vpop.f32.mrf.mxu1 }
0x1c5d   :  { %v9024_v45 = vsel %vm7816_vm10, %v9021_v35, 0.0 }
0x1c5e   :  { %9025 = vadd.xlane.f32.xlu0 %v9024_v45  ;;  %v10880_v53 = vpop.f32.mrf.mxu1 }
0x1ce7   :  { %v9026_v18 = vpop.xlane.xlu0 %9025 }
0x1ce8   :  { %v9027_v34 = vmul.f32 0.015625, %v9026_v18 }
0x1cea   :  { %v9028_v9 = vsub.f32 %v9021_v35, %v9027_v34 }
0x1cec   :  { %v9029_v25 = vmul.f32 %v9028_v9, %v9028_v9 }
0x1cee   :  { %v9030_v44 = vsel %vm7816_vm10, %v9029_v25, 0.0 }
0x1cef   :  { %9031 = vadd.xlane.f32.xlu1 %v9030_v44 }
0x1d78   :  { %v9032_v43 = vpop.xlane.xlu1 %9031 }
0x1d79   :  { %v9033_v13 = vmul.f32 0.015625, %v9032_v43 }
0x1d7b   :  { %v9034_v10 = vadd.f32 1e-05, %v9033_v13 }
0x1d7d   :  { %11650 = vrsqrt.f32 %v9034_v10 }
0x1d8a   :  { %v11651_v33 = vpop.eup %11650 }
0x1d8b   :  { %v9036_v54 = vmul.f32 %v11651_v33, %v9028_v9 }
0x1d8d   :  { %v9043_v29 = vmul.f32 %v9779_v15, %v9036_v54 }
0x1d8f   :  { %v9050_v16 = vadd.f32 %v9780_v30, %v9043_v29 }
0x1d91   :  { %v9058_v17 = vmul.f32 %v9781_v42, %v9050_v16 }
0x1d93   :  { %v9059_v8 = vsel %vm7816_vm10, %v9058_v17, 0.0 }
0x1d94   :  { %9060 = vadd.xlane.f32.xlu0 %v9059_v8 }
0x1e1d   :  { %v9061_v40 = vpop.xlane.xlu0 %9060 }
0x1e1e   :  { %v9069_v2 = vadd.f32 %v9782_v32, %v9061_v40 }
0x1e20   :  { %9072 = vperm.xlu1 %11180, %v9069_v2  }
0x1e9b   :  { %v9073_v4 = vpop.permute.xlu1 %9072 }
0x1e9c   :  { %9075 = vst [vmem:[%s14500_s27] sm:$0x3] %v9073_v4 }
0x1e9d   :  { %9080 = vsyncmov [#allocation7] }
0x1ea0   :  { %s9081_s24 = vpop.sfrf %9080 }
0x1ea1   :  { %p9783_p0 = scmp.ne.s32.totalorder %s9081_s24, 0 }
0x1ea3   :  { %9085 = shalt.err (%p9783_p0)  }
0x1ea4   :  { %9087 = vsyncmov [#allocation7 + $0x1] }
0x1ea7   :  { %s9088_s25 = vpop.sfrf %9087 }
0x1ea8   :  { %p9784_p1 = scmp.ne.s32.totalorder %s9088_s25, 0 }
0x1eaa   :  { %9092 = shalt.err (%p9784_p1)  }
0x1eab   :  { %9094 = vsyncmov [#allocation7 + $0x2] }
0x1eae   :  { %s9095_s13 = vpop.sfrf %9094 }
0x1eaf   :  { %p9785_p2 = scmp.ne.s32.totalorder %s9095_s13, 0 }
0x1eb1   :  { %9099 = shalt.err (%p9785_p2)  }

</bundles_post_ra>
